<compile_context>
chip_gen: v7x
topology: tpu7x:2x2x1
jax: 0.10.0
libtpu: 0.0.40
codegen_flags: <defaults>
</compile_context>

<pallas_src>
import functools
import math

import jax
import jax.numpy as jnp
from jax.experimental import pallas as pl
from jax.experimental.pallas import tpu as pltpu

ACT_DTYPE = jnp.bfloat16      # activation dtype between layers (MXU-native)
LANE = 128
ATTN_TILE = 256               # TQ/TKV cap: fits v5e scoped VMEM, fine for MXU on v6e/v7x


def _round_up(x, m):
    return (x + m - 1) // m * m


def _pick_tile(n, cands=(512, 384, 256, 128)):
    """Largest candidate that divides n; else n itself (if small); else cands[0] (pad)."""
    for c in cands:
        if n >= c and n % c == 0:
            return c
    return n if n <= cands[0] else cands[0]


def _padded_bytes(shape, dtype):
    """Rough VMEM footprint of a block/scratch after (8, 128) tiling."""
    itemsize = jnp.dtype(dtype).itemsize
    dims = list(shape) if shape else [1]
    dims[-1] = _round_up(dims[-1], LANE)
    if len(dims) >= 2:
        dims[-2] = _round_up(dims[-2], 8)
    n = 1
    for d in dims:
        n *= d
    return n * itemsize


def _vmem_limit(block_bytes, scratch_bytes=0):
    """Explicit scoped-VMEM budget: double-buffered blocks + scratch + headroom."""
    need = 2 * block_bytes + scratch_bytes
    return int(min(max(2 * need + (4 << 20), 16 << 20), 48 << 20))


def _pad_rows(a, rows):
    r = a.shape[1]
    return a if rows == r else jnp.pad(a, ((0, 0), (0, rows - r), (0, 0)))


# ----------------------------------------------------------------------------
# Pallas kernels
# ----------------------------------------------------------------------------

def _linear_kernel(x_ref, w_ref, *rest, activation, has_bias, has_residual):
    """Tiled o = act(x @ w [+ b]) [+ residual] with K-reduction accumulator."""
    rest = list(rest)
    b_ref = rest.pop(0) if has_bias else None
    r_ref = rest.pop(0) if has_residual else None
    o_ref, acc_ref = rest

    @pl.when(pl.program_id(2) == 0)
    def _init():
        acc_ref[...] = jnp.zeros_like(acc_ref)

    acc_ref[...] += jnp.dot(
        x_ref[...].astype(jnp.bfloat16),
        w_ref[...].astype(jnp.bfloat16),
        preferred_element_type=jnp.float32,
    )

    @pl.when(pl.program_id(2) == pl.num_programs(2) - 1)
    def _finalize():
        r = acc_ref[...]
        if has_bias:
            r = r + b_ref[...].astype(jnp.float32)
        if activation == "gelu":
            # TODO(synk): PyTorch nn.GELU default is exact erf; tanh approx used here.
            r = jax.nn.gelu(r, approximate=True)
        if has_residual:
            r = r + r_ref[...].astype(jnp.float32)     # fused residual add (no extra HBM pass)
        o_ref[...] = r.astype(o_ref.dtype)


def _ln_linear_kernel(x_ref, g_ref, bln_ref, w_ref, *rest,
                      activation, has_bias, eps):
    """Fused row LayerNorm + matmul; LN computed once per row tile (j==0) into scratch."""
    if has_bias:
        b_ref, o_ref, y_sc = rest
    else:
        b_ref = None
        o_ref, y_sc = rest

    @pl.when(pl.program_id(1) == 0)
    def _ln():
        x = x_ref[...].astype(jnp.float32)
        mean = jnp.mean(x, axis=-1, keepdims=True)
        var = jnp.mean(jnp.square(x - mean), axis=-1, keepdims=True)
        y = (x - mean) * jax.lax.rsqrt(var + eps)
        y = y * g_ref[...].astype(jnp.float32) + bln_ref[...].astype(jnp.float32)
        y_sc[...] = y.astype(y_sc.dtype)

    acc = jnp.dot(y_sc[...], w_ref[...].astype(jnp.bfloat16),
                  preferred_element_type=jnp.float32)
    if has_bias:
        acc = acc + b_ref[...].astype(jnp.float32)
    if activation == "gelu":
        acc = jax.nn.gelu(acc, approximate=True)
    o_ref[...] = acc.astype(o_ref.dtype)


def _ln_mlp_kernel(x_ref, g_ref, bln_ref, w1_ref, b1_ref, w2_ref, b2_ref,
                   o_ref, y_sc, acc_sc, *, eps):
    """Fused o = x + fc2(GELU(fc1(LN(x)))), hidden dim tiled on grid axis 1."""
    j = pl.program_id(1)

    @pl.when(j == 0)
    def _init():
        x = x_ref[...].astype(jnp.float32)
        mean = jnp.mean(x, axis=-1, keepdims=True)
        var = jnp.mean(jnp.square(x - mean), axis=-1, keepdims=True)
        y = (x - mean) * jax.lax.rsqrt(var + eps)
        y = y * g_ref[...].astype(jnp.float32) + bln_ref[...].astype(jnp.float32)
        y_sc[...] = y.astype(y_sc.dtype)
        acc_sc[...] = jnp.zeros_like(acc_sc)

    h = jnp.dot(y_sc[...], w1_ref[...], preferred_element_type=jnp.float32)
    h = h + b1_ref[...].astype(jnp.float32)
    h = jax.nn.gelu(h, approximate=True)
    acc_sc[...] += jnp.dot(h.astype(jnp.bfloat16), w2_ref[...],
                           preferred_element_type=jnp.float32)

    @pl.when(j == pl.num_programs(1) - 1)
    def _finalize():
        out = (acc_sc[...] + b2_ref[...].astype(jnp.float32)
               + x_ref[...].astype(jnp.float32))            # fused residual add
        o_ref[...] = out.astype(o_ref.dtype)


def _layernorm_kernel(x_ref, g_ref, b_ref, o_ref, *, eps):
    x = x_ref[...].astype(jnp.float32)
    mean = jnp.mean(x, axis=-1, keepdims=True)
    var = jnp.mean(jnp.square(x - mean), axis=-1, keepdims=True)
    y = (x - mean) * jax.lax.rsqrt(var + eps)
    o_ref[...] = (y * g_ref[...].astype(jnp.float32)
                  + b_ref[...].astype(jnp.float32)).astype(o_ref.dtype)


def _flash_attn_kernel(q_ref, k_ref, v_ref, o_ref, m_sc, l_sc, acc_sc, *,
                       num_heads, head_dim, kv_len, kv_tile, need_mask):
    """Flash-style MHA: per-(batch, q-tile) block, KV tiles on grid axis 2.

    q_ref:(1,TQ,C)  k_ref,v_ref:(1,TKV,C)  o_ref:(1,TQ,C).  Heads packed in the
    lane dim (C = H*D).  q/k/v are consumed in bf16 straight off the refs (no
    f32 materialization) and the softmax scale is folded into the Q weights.
    """
    j = pl.program_id(2)
    H, D = num_heads, head_dim

    @pl.when(j == 0)
    def _init():
        m_sc[...] = jnp.full_like(m_sc, -1e30)
        l_sc[...] = jnp.zeros_like(l_sc)
        acc_sc[...] = jnp.zeros_like(acc_sc)

    q = q_ref[0]                                             # bf16 (TQ, C)
    k = k_ref[0]
    v = v_ref[0]

    if need_mask:
        # Only emitted when Lk is not a multiple of TKV; masked score -> -1e30.
        # (Safe: padding is always < TKV, so a tile is never fully masked.)
        kv_idx = j * kv_tile + jax.lax.broadcasted_iota(jnp.int32, (1, kv_tile), 1)
        bias = jnp.where(kv_idx < kv_len, 0.0, -1e30)        # (1, TKV) f32
    else:
        bias = None

    # TODO(synk): per-head accumulators are (H, TQ, D)/(H, TQ, 1) and lane-pad
    #             when D < 128; a head grid axis (or a lane-dense (TQ, C) acc)
    #             would cut scratch VMEM further.
    for h in range(H):                                       # static unroll over heads
        qh = q[:, h * D:(h + 1) * D]
        kh = k[:, h * D:(h + 1) * D]
        vh = v[:, h * D:(h + 1) * D]
        s = jax.lax.dot_general(qh, kh, (((1,), (1,)), ((), ())),
                                preferred_element_type=jnp.float32)   # (TQ, TKV)
        if bias is not None:
            s = s + bias
        m_prev = m_sc[h]                                     # (TQ, 1)
        m_new = jnp.maximum(m_prev, jnp.max(s, axis=-1, keepdims=True))
        alpha = jnp.exp(m_prev - m_new)
        p = jnp.exp(s - m_new)
        l_sc[h] = alpha * l_sc[h] + jnp.sum(p, axis=-1, keepdims=True)
        acc_sc[h] = alpha * acc_sc[h] + jnp.dot(
            p.astype(v.dtype), vh, preferred_element_type=jnp.float32)
        m_sc[h] = m_new

    @pl.when(j == pl.num_programs(2) - 1)
    def _finalize():
        outs = [acc_sc[h] * pl.reciprocal(l_sc[h], approx=True) for h in range(H)]
        o_ref[0] = jnp.concatenate(outs, axis=-1).astype(o_ref.dtype)


# ----------------------------------------------------------------------------
# Pallas wrappers (tiling / padding policy)
# ----------------------------------------------------------------------------

def pallas_linear_2d(x, w, b=None, residual=None, activation=None,
                     out_dtype=ACT_DTYPE):
    M, K = x.shape
    K2, N = w.shape
    assert K == K2
    has_bias = b is not None
    has_residual = residual is not None

    TM = min(512, _round_up(M, 8))
    Mp = _round_up(M, TM)
    TN = _pick_tile(N)
    Np = _round_up(N, TN)
    TK = K if K <= 1024 else _pick_tile(K, (512, 384, 256))
    Kp = _round_up(K, TK)

    xp = x if (Mp == M and Kp == K) else jnp.pad(x, ((0, Mp - M), (0, Kp - K)))
    # Weight padding only triggers for non-divisor shapes; common widths avoid it.
    wp = w if (Kp == K and Np == N) else jnp.pad(w, ((0, Kp - K), (0, Np - N)))

    in_specs = [
        pl.BlockSpec((TM, TK), lambda i, j, k: (i, k)),
        pl.BlockSpec((TK, TN), lambda i, j, k: (k, j)),
    ]
    args = [xp, wp]
    blk_bytes = (_padded_bytes((TM, TK), xp.dtype) + _padded_bytes((TK, TN), wp.dtype)
                 + _padded_bytes((TM, TN), out_dtype))
    if has_bias:
        bp = b if Np == N else jnp.pad(b, ((0, 0), (0, Np - N)))
        in_specs.append(pl.BlockSpec((1, TN), lambda i, j, k: (0, j)))
        args.append(bp)
        blk_bytes += _padded_bytes((1, TN), jnp.float32)
    if has_residual:
        rp = residual
        if Mp != M or Np != N:
            rp = jnp.pad(rp, ((0, Mp - M), (0, Np - N)))
        in_specs.append(pl.BlockSpec((TM, TN), lambda i, j, k: (i, j)))
        args.append(rp)
        blk_bytes += _padded_bytes((TM, TN), rp.dtype)
    scr_bytes = _padded_bytes((TM, TN), jnp.float32)

    kern = functools.partial(_linear_kernel, activation=activation,
                             has_bias=has_bias, has_residual=has_residual)
    out = pl.pallas_call(
        kern,
        out_shape=jax.ShapeDtypeStruct((Mp, Np), out_dtype),
        grid=(Mp // TM, Np // TN, Kp // TK),
        in_specs=in_specs,
        out_specs=pl.BlockSpec((TM, TN), lambda i, j, k: (i, j)),
        scratch_shapes=[pltpu.VMEM((TM, TN), jnp.float32)],
        compiler_params=pltpu.CompilerParams(
            dimension_semantics=("parallel", "parallel", "arbitrary"),
            vmem_limit_bytes=_vmem_limit(blk_bytes, scr_bytes)),
    )(*args)
    if Mp != M or Np != N:
        out = out[:M, :N]
    return out


def pallas_ln_linear_2d(x, g, bln, w, b=None, activation=None,
                        out_dtype=ACT_DTYPE, eps=1e-5):
    M, K = x.shape
    K2, N = w.shape
    assert K == K2
    has_bias = b is not None

    TM = min(512, _round_up(M, 8))
    Mp = _round_up(M, TM)
    TN = _pick_tile(N)
    Np = _round_up(N, TN)

    xp = x if Mp == M else jnp.pad(x, ((0, Mp - M), (0, 0)))
    wp = w if Np == N else jnp.pad(w, ((0, 0), (0, Np - N)))

    in_specs = [
        pl.BlockSpec((TM, K), lambda i, j: (i, 0)),     # j-invariant -> resident
        pl.BlockSpec((1, K), lambda i, j: (0, 0)),
        pl.BlockSpec((1, K), lambda i, j: (0, 0)),
        pl.BlockSpec((K, TN), lambda i, j: (0, j)),
    ]
    args = [xp, g, bln, wp]
    blk_bytes = (_padded_bytes((TM, K), xp.dtype) + 2 * _padded_bytes((1, K), jnp.float32)
                 + _padded_bytes((K, TN), wp.dtype) + _padded_bytes((TM, TN), out_dtype))
    if has_bias:
        bp = b if Np == N else jnp.pad(b, ((0, 0), (0, Np - N)))
        in_specs.append(pl.BlockSpec((1, TN), lambda i, j: (0, j)))
        args.append(bp)
        blk_bytes += _padded_bytes((1, TN), jnp.float32)
    scr_bytes = _padded_bytes((TM, K), jnp.bfloat16)

    kern = functools.partial(_ln_linear_kernel, activation=activation,
                             has_bias=has_bias, eps=eps)
    out = pl.pallas_call(
        kern,
        out_shape=jax.ShapeDtypeStruct((Mp, Np), out_dtype),
        grid=(Mp // TM, Np // TN),
        in_specs=in_specs,
        out_specs=pl.BlockSpec((TM, TN), lambda i, j: (i, j)),
        scratch_shapes=[pltpu.VMEM((TM, K), jnp.bfloat16)],   # normalized x, computed once
        compiler_params=pltpu.CompilerParams(
            # N axis "arbitrary" so the LN scratch (written at j==0) stays valid.
            dimension_semantics=("parallel", "arbitrary"),
            vmem_limit_bytes=_vmem_limit(blk_bytes, scr_bytes)),
    )(*args)
    if Mp != M or Np != N:
        out = out[:M, :N]
    return out


def pallas_ln_mlp_residual_2d(x, g, bln, w1, b1, w2, b2,
                              out_dtype=ACT_DTYPE, eps=1e-5):
    M, C = x.shape
    Hd = w1.shape[1]
    TM = min(256, _round_up(M, 8))
    Mp = _round_up(M, TM)
    TH = _pick_tile(Hd)
    # Hidden dim of realistic widths (4*width) always hits a divisor; no weight pad.
    assert Hd % TH == 0

    xp = x if Mp == M else jnp.pad(x, ((0, Mp - M), (0, 0)))
    blk_bytes = (_padded_bytes((TM, C), xp.dtype) + 3 * _padded_bytes((1, C), jnp.float32)
                 + _padded_bytes((C, TH), w1.dtype) + _padded_bytes((1, TH), jnp.float32)
                 + _padded_bytes((TH, C), w2.dtype) + _padded_bytes((TM, C), out_dtype))
    scr_bytes = (_padded_bytes((TM, C), jnp.bfloat16)
                 + _padded_bytes((TM, C), jnp.float32))

    kern = functools.partial(_ln_mlp_kernel, eps=eps)
    out = pl.pallas_call(
        kern,
        out_shape=jax.ShapeDtypeStruct((Mp, C), out_dtype),
        grid=(Mp // TM, Hd // TH),
        in_specs=[
            pl.BlockSpec((TM, C), lambda i, j: (i, 0)),     # resident across hidden tiles
            pl.BlockSpec((1, C), lambda i, j: (0, 0)),
            pl.BlockSpec((1, C), lambda i, j: (0, 0)),
            pl.BlockSpec((C, TH), lambda i, j: (0, j)),     # fc1 weight tile
            pl.BlockSpec((1, TH), lambda i, j: (0, j)),
            pl.BlockSpec((TH, C), lambda i, j: (j, 0)),     # fc2 weight tile
            pl.BlockSpec((1, C), lambda i, j: (0, 0)),
        ],
        out_specs=pl.BlockSpec((TM, C), lambda i, j: (i, 0)),
        scratch_shapes=[pltpu.VMEM((TM, C), jnp.bfloat16),   # LN(x), computed once
                        pltpu.VMEM((TM, C), jnp.float32)],   # fc2 partial-sum accumulator
        compiler_params=pltpu.CompilerParams(
            dimension_semantics=("parallel", "arbitrary"),
            vmem_limit_bytes=_vmem_limit(blk_bytes, scr_bytes)),
    )(xp, g, bln, w1, b1, w2, b2)
    return out[:M] if Mp != M else out


def pallas_layernorm_2d(x, g, b, out_dtype=ACT_DTYPE, eps=1e-5):
    M, C = x.shape
    TM = min(512, _round_up(M, 8))
    Mp = _round_up(M, TM)
    xp = x if Mp == M else jnp.pad(x, ((0, Mp - M), (0, 0)))
    blk_bytes = (_padded_bytes((TM, C), xp.dtype) + 2 * _padded_bytes((1, C), jnp.float32)
                 + _padded_bytes((TM, C), out_dtype))
    kern = functools.partial(_layernorm_kernel, eps=eps)
    out = pl.pallas_call(
        kern,
        out_shape=jax.ShapeDtypeStruct((Mp, C), out_dtype),
        grid=(Mp // TM,),
        in_specs=[
            pl.BlockSpec((TM, C), lambda i: (i, 0)),
            pl.BlockSpec((1, C), lambda i: (0, 0)),
            pl.BlockSpec((1, C), lambda i: (0, 0)),
        ],
        out_specs=pl.BlockSpec((TM, C), lambda i: (i, 0)),
        compiler_params=pltpu.CompilerParams(
            dimension_semantics=("parallel",),
            vmem_limit_bytes=_vmem_limit(blk_bytes)),
    )(xp, g, b)
    return out[:M] if Mp != M else out


def _attention_call(q_src, k_src, v_src, q_blk, k_blk, v_blk,
                    num_heads, model_dim, q_len, kv_len):
    """q/k/v are lane-blocks (block index q_blk/k_blk/v_blk) of possibly packed tensors."""
    B = q_src.shape[0]
    C = model_dim
    D = C // num_heads

    TQ = min(ATTN_TILE, _round_up(q_len, 8))
    Lq_p = _round_up(q_len, TQ)
    TKV = min(ATTN_TILE, _round_up(kv_len, 8))
    Lk_p = _round_up(kv_len, TKV)

    if k_src is q_src and v_src is q_src:            # packed self-attention (qkv)
        q_src = k_src = v_src = _pad_rows(q_src, Lq_p)
    else:
        q_src = _pad_rows(q_src, Lq_p)
        if v_src is k_src:                           # packed kv
            k_src = v_src = _pad_rows(k_src, Lk_p)
        else:
            k_src = _pad_rows(k_src, Lk_p)
            v_src = _pad_rows(v_src, Lk_p)

    need_mask = Lk_p != kv_len                       # static: mask only when padded
    kern = functools.partial(_flash_attn_kernel, num_heads=num_heads, head_dim=D,
                             kv_len=kv_len, kv_tile=TKV, need_mask=need_mask)

    blk_bytes = (_padded_bytes((1, TQ, C), q_src.dtype)
                 + 2 * _padded_bytes((1, TKV, C), k_src.dtype)
                 + _padded_bytes((1, TQ, C), ACT_DTYPE))
    scr_bytes = (_padded_bytes((num_heads, TQ, D), jnp.float32)
                 + 2 * _padded_bytes((num_heads, TQ, 1), jnp.float32))

    out = pl.pallas_call(
        kern,
        out_shape=jax.ShapeDtypeStruct((B, Lq_p, C), ACT_DTYPE),
        grid=(B, Lq_p // TQ, Lk_p // TKV),
        in_specs=[
            pl.BlockSpec((1, TQ, C), lambda b, i, j: (b, i, q_blk)),
            pl.BlockSpec((1, TKV, C), lambda b, i, j: (b, j, k_blk)),
            pl.BlockSpec((1, TKV, C), lambda b, i, j: (b, j, v_blk)),
        ],
        out_specs=pl.BlockSpec((1, TQ, C), lambda b, i, j: (b, i, 0)),
        scratch_shapes=[
            pltpu.VMEM((num_heads, TQ, 1), jnp.float32),    # running max m
            pltpu.VMEM((num_heads, TQ, 1), jnp.float32),    # running sum l
            pltpu.VMEM((num_heads, TQ, D), jnp.float32),    # output accumulator
        ],
        compiler_params=pltpu.CompilerParams(
            dimension_semantics=("parallel", "parallel", "arbitrary"),
            vmem_limit_bytes=_vmem_limit(blk_bytes, scr_bytes)),
    )(q_src, k_src, v_src)
    if Lq_p != q_len:
        out = out[:, :q_len]
    return out


def self_attention_packed(qkv, num_heads, model_dim):
    """qkv: (B, L, 3C) packed. Q/K/V selected via BlockSpec lane-block indices."""
    B, L, _ = qkv.shape
    if model_dim % LANE == 0:
        return _attention_call(qkv, qkv, qkv, 0, 1, 2, num_heads, model_dim, L, L)
    # Fallback for lane-unaligned widths (e.g. tiny test config): split in JAX.
    q, k, v = jnp.split(qkv, 3, axis=-1)
    return _attention_call(q, k, v, 0, 0, 0, num_heads, model_dim, L, L)


def cross_attention_packed(q, kv, num_heads, model_dim):
    """q: (B, Lq, C); kv: (B, Lk, 2C) packed."""
    Lq = q.shape[1]
    Lk = kv.shape[1]
    if model_dim % LANE == 0:
        return _attention_call(q, kv, kv, 0, 0, 1, num_heads, model_dim, Lq, Lk)
    k, v = jnp.split(kv, 2, axis=-1)
    return _attention_call(q, k, v, 0, 0, 0, num_heads, model_dim, Lq, Lk)


# 3-D conveniences --------------------------------------------------------------

def linear3d(x, p, residual=None, activation=None, out_dtype=ACT_DTYPE):
    B, L, C = x.shape
    res2d = residual.reshape(B * L, -1) if residual is not None else None
    y = pallas_linear_2d(x.reshape(B * L, C), p["w"], p.get("b"),
                         res2d, activation, out_dtype)
    return y.reshape(B, L, -1)


def ln_linear3d(x, ln_p, lin_p, activation=None, out_dtype=ACT_DTYPE):
    B, L, C = x.shape
    y = pallas_ln_linear_2d(x.reshape(B * L, C), ln_p["g"], ln_p["b"],
                            lin_p["w"], lin_p.get("b"), activation, out_dtype)
    return y.reshape(B, L, -1)


def ln_mlp_residual3d(x, ln_p, mlp_p, out_dtype=ACT_DTYPE):
    B, L, C = x.shape
    y = pallas_ln_mlp_residual_2d(x.reshape(B * L, C), ln_p["g"], ln_p["b"],
                                  mlp_p["fc1"]["w"], mlp_p["fc1"]["b"],
                                  mlp_p["fc2"]["w"], mlp_p["fc2"]["b"], out_dtype)
    return y.reshape(B, L, C)


def layernorm3d(x, p, out_dtype=ACT_DTYPE):
    B, L, C = x.shape
    return pallas_layernorm_2d(x.reshape(B * L, C), p["g"], p["b"],
                               out_dtype).reshape(B, L, C)


# ----------------------------------------------------------------------------
# Model building blocks (functional)
# ----------------------------------------------------------------------------

def fourier_embed(x, num_freqs, include_pi):
    """x: (..., 3) -> (..., 3*(1+2*num_freqs)); [x, sin(f x), cos(f x)]."""
    freqs = 2.0 ** jnp.arange(num_freqs, dtype=jnp.float32)
    if include_pi:
        freqs = freqs * jnp.pi
    xf = x[..., None] * freqs
    sin = jnp.sin(xf).reshape(*x.shape[:-1], -1)
    cos = jnp.cos(xf).reshape(*x.shape[:-1], -1)
    return jnp.concatenate([x, sin, cos], axis=-1)


def resblock_forward(p, x, num_heads, width):
    # pre-LN fused into the combined QKV projection (one (C, 3C) matmul);
    # softmax scale is already folded into the Q columns of wqkv.
    qkv = ln_linear3d(x, p["ln1"], p["attn"]["wqkv"])          # (B, L, 3C)
    o = self_attention_packed(qkv, num_heads, width)
    x = linear3d(o, p["attn"]["wo"], residual=x)               # wo + residual fused
    x = ln_mlp_residual3d(x, p["ln2"], p["mlp"])               # LN+fc1+GELU+fc2+residual fused
    return x


def crossblock_forward(p, q_in, kv_in, num_heads, width):
    q = ln_linear3d(q_in, p["lnq"], p["attn"]["wq"])           # scale folded into wq
    kv = ln_linear3d(kv_in, p["lnkv"], p["attn"]["wkv"])       # fused K/V projection (B,Lk,2C)
    o = cross_attention_packed(q, kv, num_heads, width)
    x = linear3d(o, p["attn"]["wo"], residual=q_in)            # wo + residual fused
    x = ln_mlp_residual3d(x, p["ln2"], p["mlp"])
    return x


def encoder_forward(p, cfg, coarse_pc, coarse_feats, sharp_pc, sharp_feats):
    nf, inc_pi, H, W = cfg["num_freqs"], cfg["include_pi"], cfg["num_heads"], cfg["width"]
    c_in = jnp.concatenate([fourier_embed(coarse_pc, nf, inc_pi), coarse_feats], -1)
    s_in = jnp.concatenate([fourier_embed(sharp_pc, nf, inc_pi), sharp_feats], -1)
    c_emb = linear3d(c_in, p["input_proj"])
    s_emb = linear3d(s_in, p["input_proj"])
    data = jnp.concatenate([c_emb, s_emb], axis=1)             # (B, Nc+Ns, width)
    B = data.shape[0]
    query = jnp.broadcast_to(p["query_tokens"][None].astype(ACT_DTYPE),
                             (B,) + p["query_tokens"].shape)   # (B, L, width)
    x = crossblock_forward(p["cross"], query, data, H, W)
    for blk in p["blocks"]:
        x = resblock_forward(blk, x, H, W)
    return x   # encoder ln_post is fused into the pre_kl projection below


def perceiver_forward(p, cfg, x):
    for blk in p["blocks"]:
        x = resblock_forward(blk, x, cfg["num_heads"], cfg["width"])
    return layernorm3d(x, p["ln_post"])


def decoder_forward(p, cfg, query_points, latents):
    nf, inc_pi, H, W = cfg["num_freqs"], cfg["include_pi"], cfg["num_heads"], cfg["width"]
    q_emb = linear3d(fourier_embed(query_points, nf, inc_pi), p["query_proj"])
    x = crossblock_forward(p["cross"], q_emb, latents, H, W)
    # ln_post fused into out_proj; out_proj was pre-padded to a full 128-lane
    # store at init (no per-call jnp.pad of weights), slice back to out_dims.
    out = ln_linear3d(x, p["ln_post"], p["out_proj"], out_dtype=jnp.float32)
    return out[..., :cfg["out_dims"]]                          # (B, Q, out_dims)


def dora_vae_forward(params, cfg, coarse_pc, coarse_feats, sharp_pc, sharp_feats,
                     query_points, sample_posterior=False):
    """DEFAULT-mode forward; returns (decoder_output, entropy)."""
    enc = params["encoder"]
    x = encoder_forward(enc, cfg, coarse_pc, coarse_feats, sharp_pc, sharp_feats)
    # encoder ln_post fused with the pre_kl linear
    moments = ln_linear3d(x, enc["ln_post"], params["pre_kl"], out_dtype=jnp.float32)
    mu, logvar = jnp.split(moments, 2, axis=-1)
    logvar = jnp.clip(logvar, -30.0, 20.0)
    # TODO(synk): sample_posterior=True path (Normal reparameterization + entropy)
    #             not implemented; default path z = mu, entropy = None.
    z = mu
    entropy = None
    z = linear3d(z, params["post_kl"])
    z = perceiver_forward(params["transformer"], cfg, z)
    out = decoder_forward(params["decoder"], cfg, query_points, z)
    return out, entropy


# ----------------------------------------------------------------------------
# Deterministic parameter initialization
# ----------------------------------------------------------------------------

class _KeyIter:
    def __init__(self, key):
        self._key = key

    def __call__(self):
        self._key, sub = jax.random.split(self._key)
        return sub


def _init_linear(nk, din, dout, bias=True, dout_pad=None):
    """Weights stored bf16 (MXU-native); biases f32; optional lane pre-padding of dout."""
    dp = dout if dout_pad is None else max(dout, dout_pad)
    w = 0.02 * jax.random.normal(nk(), (din, dout), jnp.float32)
    if dp != dout:
        w = jnp.pad(w, ((0, 0), (0, dp - dout)))
    p = {"w": w.astype(jnp.bfloat16)}
    if bias:
        p["b"] = jnp.zeros((1, dp), jnp.float32)
    return p


def _init_ln(c):
    return {"g": jnp.ones((1, c), jnp.float32),
            "b": jnp.zeros((1, c), jnp.float32)}


def _init_self_mha(nk, width, num_heads, qkv_bias):
    # Fold the 1/sqrt(D) softmax scale into the Q columns of the fused QKV weight.
    scale = 1.0 / math.sqrt(width // num_heads)
    w = 0.02 * jax.random.normal(nk(), (width, 3 * width), jnp.float32)
    w = w.at[:, :width].multiply(scale)
    wqkv = {"w": w.astype(jnp.bfloat16)}
    if qkv_bias:
        wqkv["b"] = jnp.zeros((1, 3 * width), jnp.float32)
    return {"wqkv": wqkv, "wo": _init_linear(nk, width, width, bias=True)}


def _init_cross_mha(nk, width, num_heads, qkv_bias):
    scale = 1.0 / math.sqrt(width // num_heads)
    wq_w = (0.02 * scale) * jax.random.normal(nk(), (width, width), jnp.float32)
    wq = {"w": wq_w.astype(jnp.bfloat16)}
    if qkv_bias:
        wq["b"] = jnp.zeros((1, width), jnp.float32)
    return {"wq": wq,
            "wkv": _init_linear(nk, width, 2 * width, bias=qkv_bias),
            "wo": _init_linear(nk, width, width, bias=True)}


def _init_mlp(nk, width):
    return {"fc1": _init_linear(nk, width, 4 * width),
            "fc2": _init_linear(nk, 4 * width, width)}


def _init_resblock(nk, width, num_heads, qkv_bias):
    return {"ln1": _init_ln(width),
            "attn": _init_self_mha(nk, width, num_heads, qkv_bias),
            "ln2": _init_ln(width), "mlp": _init_mlp(nk, width)}


def _init_crossblock(nk, width, num_heads, qkv_bias):
    return {"lnq": _init_ln(width), "lnkv": _init_ln(width),
            "attn": _init_cross_mha(nk, width, num_heads, qkv_bias),
            "ln2": _init_ln(width), "mlp": _init_mlp(nk, width)}


def init_dora_vae(key, cfg):
    nk = _KeyIter(key)
    width = cfg["width"]
    nh = cfg["num_heads"]
    qb = cfg["qkv_bias"]
    fdim = 3 * (1 + 2 * cfg["num_freqs"])
    params = {
        "encoder": {
            "input_proj": _init_linear(nk, fdim + cfg["point_feature_channels"], width),
            "query_tokens": 0.02 * jax.random.normal(
                nk(), (cfg["latent_sequence_length"], width), jnp.float32),
            "cross": _init_crossblock(nk, width, nh, qb),
            "blocks": [_init_resblock(nk, width, nh, qb)
                       for _ in range(cfg["encoder_depth"])],
            "ln_post": _init_ln(width),
        },
        "pre_kl": _init_linear(nk, width, 2 * cfg["embed_dim"]),
        "post_kl": _init_linear(nk, cfg["embed_dim"], width),
        "transformer": {
            "blocks": [_init_resblock(nk, width, nh, qb)
                       for _ in range(cfg["decoder_depth"])],
            "ln_post": _init_ln(width),
        },
        "decoder": {
            "query_proj": _init_linear(nk, fdim, width),
            "cross": _init_crossblock(nk, width, nh, qb),
            "ln_post": _init_ln(width),
            # out_proj pre-padded to 128 lanes once at init (lane-dense stores,
            # no per-call weight padding).
            "out_proj": _init_linear(nk, width, cfg["out_dims"], dout_pad=LANE),
        },
    }
    # learn_var=False in this config -> no `var` parameter (unused in forward).
    return params


# ----------------------------------------------------------------------------
# Main
# ----------------------------------------------------------------------------

if __name__ == "__main__":
    cfg = dict(
        point_feature_channels=3,
        latent_sequence_length=8,
        embed_dim=16,
        out_dims=1,
        width=32,
        num_heads=4,
        num_freqs=2,
        include_pi=False,
        encoder_depth=1,
        decoder_depth=2,
        qkv_bias=False,
    )

    key = jax.random.PRNGKey(0)
    k_par, k_c, k_cf, k_s, k_sf, k_q = jax.random.split(key, 6)

    params = init_dora_vae(k_par, cfg)

    B, Nc, Ns, Q = 2, 16, 16, 16
    coarse_pc = jax.random.uniform(k_c, (B, Nc, 3), jnp.float32, -1.0, 1.0)
    coarse_feats = jax.random.normal(k_cf, (B, Nc, cfg["point_feature_channels"]),
                                     jnp.float32)
    sharp_pc = jax.random.uniform(k_s, (B, Ns, 3), jnp.float32, -1.0, 1.0)
    sharp_feats = jax.random.normal(k_sf, (B, Ns, cfg["point_feature_channels"]),
                                    jnp.float32)
    query_points = jax.random.uniform(k_q, (B, Q, 3), jnp.float32, -1.0, 1.0)

    @jax.jit
    def fwd(params, coarse_pc, coarse_feats, sharp_pc, sharp_feats, query_points):
        return dora_vae_forward(params, cfg, coarse_pc, coarse_feats,
                                sharp_pc, sharp_feats, query_points,
                                sample_posterior=False)

    out, entropy = fwd(params, coarse_pc, coarse_feats, sharp_pc, sharp_feats,
                       query_points)
    out = jax.block_until_ready(out)
    assert out.shape == (B, Q, cfg["out_dims"]), out.shape
    assert entropy is None
    assert bool(jnp.all(jnp.isfinite(out)))
    print("KERNEL_OK")
</pallas_src>

<mosaic_0001>
module attributes {stable_mosaic.version = 11 : i64} {
  func.func @_linear_kernel(%arg0: i32, %arg1: i32, %arg2: i32, %arg3: memref<32x15xf32, #tpu.memory_space<vmem>>, %arg4: memref<15x32xbf16, #tpu.memory_space<vmem>>, %arg5: memref<1x32xf32, #tpu.memory_space<vmem>>, %arg6: memref<32x32xbf16, #tpu.memory_space<vmem>>, %arg7: memref<32x32xf32, #tpu.memory_space<vmem>>) attributes {dimension_semantics = [#tpu.dimension_semantics<parallel>, #tpu.dimension_semantics<parallel>, #tpu.dimension_semantics<arbitrary>], iteration_bounds = array<i64: 1, 1, 1>, scalar_prefetch = 0 : i64, scratch_operands = 1 : i64, tpu.core_type = #tpu.core_type<tc>, window_params = [{transform_indices = @transform_0, window_bounds = array<i64: 32, 15>}, {transform_indices = @transform_1, window_bounds = array<i64: 15, 32>}, {transform_indices = @transform_2, window_bounds = array<i64: 1, 32>}, {transform_indices = @transform_3, window_bounds = array<i64: 32, 32>}]} {
    %c0_i32 = arith.constant 0 : i32
    %0 = arith.cmpi eq, %arg2, %c0_i32 : i32
    %1 = arith.extui %0 : i1 to i32
    %c0_i32_0 = arith.constant 0 : i32
    %2 = arith.cmpi ne, %1, %c0_i32_0 : i32
    scf.if %2 {
      %cst_10 = arith.constant 0.000000e+00 : f32
      %13 = vector.broadcast %cst_10 : f32 to vector<32x32xf32>
      %c0_11 = arith.constant 0 : index
      %c0_12 = arith.constant 0 : index
      %14 = vector.load %arg7[%c0_11, %c0_12] : memref<32x32xf32, #tpu.memory_space<vmem>>, vector<32x32xf32>
      tpu.vector_store %arg7[%c0_11, %c0_12], %13 {strides = array<i32>} : memref<32x32xf32, #tpu.memory_space<vmem>>, vector<32x32xf32>,
    } else {
    }
    %c0 = arith.constant 0 : index
    %c0_1 = arith.constant 0 : index
    %3 = vector.load %arg7[%c0, %c0_1] : memref<32x32xf32, #tpu.memory_space<vmem>>, vector<32x32xf32>
    %c0_2 = arith.constant 0 : index
    %c0_3 = arith.constant 0 : index
    %4 = vector.load %arg3[%c0_2, %c0_3] : memref<32x15xf32, #tpu.memory_space<vmem>>, vector<32x15xf32>
    %5 = arith.truncf %4 : vector<32x15xf32> to vector<32x15xbf16>
    %c0_4 = arith.constant 0 : index
    %c0_5 = arith.constant 0 : index
    %6 = vector.load %arg4[%c0_4, %c0_5] : memref<15x32xbf16, #tpu.memory_space<vmem>>, vector<15x32xbf16>
    %cst = arith.constant dense<0.000000e+00> : vector<32x32xf32>
    %7 = tpu.matmul %5, %6, %cst {dimension_numbers = #tpu.dot_dimension_numbers<[1], [0], [0], [1], [0, 0, 1, 1], [], []>} : vector<32x15xbf16>, vector<15x32xbf16>, vector<32x32xf32> -> vector<32x32xf32>
    %8 = arith.addf %3, %7 : vector<32x32xf32>
    %c0_6 = arith.constant 0 : index
    %c0_7 = arith.constant 0 : index
    %9 = vector.load %arg7[%c0_6, %c0_7] : memref<32x32xf32, #tpu.memory_space<vmem>>, vector<32x32xf32>
    tpu.vector_store %arg7[%c0_6, %c0_7], %8 {strides = array<i32>} : memref<32x32xf32, #tpu.memory_space<vmem>>, vector<32x32xf32>,
    %c0_i32_8 = arith.constant 0 : i32
    %10 = arith.cmpi eq, %arg2, %c0_i32_8 : i32
    %11 = arith.extui %10 : i1 to i32
    %c0_i32_9 = arith.constant 0 : i32
    %12 = arith.cmpi ne, %11, %c0_i32_9 : i32
    scf.if %12 {
      %c0_10 = arith.constant 0 : index
      %c0_11 = arith.constant 0 : index
      %13 = vector.load %arg7[%c0_10, %c0_11] : memref<32x32xf32, #tpu.memory_space<vmem>>, vector<32x32xf32>
      %c0_12 = arith.constant 0 : index
      %c0_13 = arith.constant 0 : index
      %14 = vector.load %arg5[%c0_12, %c0_13] : memref<1x32xf32, #tpu.memory_space<vmem>>, vector<1x32xf32>
      %15 = vector.broadcast %14 : vector<1x32xf32> to vector<32x32xf32>
      %16 = arith.addf %13, %15 : vector<32x32xf32>
      %17 = arith.truncf %16 : vector<32x32xf32> to vector<32x32xbf16>
      %c0_14 = arith.constant 0 : index
      %c0_15 = arith.constant 0 : index
      %18 = vector.load %arg6[%c0_14, %c0_15] : memref<32x32xbf16, #tpu.memory_space<vmem>>, vector<32x32xbf16>
      tpu.vector_store %arg6[%c0_14, %c0_15], %17 {strides = array<i32>} : memref<32x32xbf16, #tpu.memory_space<vmem>>, vector<32x32xbf16>,
    } else {
    }
    return
  }
  func.func @transform_0(%arg0: i32, %arg1: i32, %arg2: i32) -> (i32, i32) {
    %c0_i32 = arith.constant 0 : i32
    return %arg0, %arg2 : i32, i32
  }
  func.func @transform_1(%arg0: i32, %arg1: i32, %arg2: i32) -> (i32, i32) {
    %c0_i32 = arith.constant 0 : i32
    return %arg2, %arg1 : i32, i32
  }
  func.func @transform_2(%arg0: i32, %arg1: i32, %arg2: i32) -> (i32, i32) {
    %c0_i32 = arith.constant 0 : i32
    %c0_i32_0 = arith.constant 0 : i32
    return %c0_i32, %arg1 : i32, i32
  }
  func.func @transform_3(%arg0: i32, %arg1: i32, %arg2: i32) -> (i32, i32) {
    %c0_i32 = arith.constant 0 : i32
    return %arg0, %arg1 : i32, i32
  }
}

module attributes {stable_mosaic.version = 11 : i64} {
  func.func @_ln_linear_kernel(%arg0: i32, %arg1: i32, %arg2: memref<32x32xbf16, #tpu.memory_space<vmem>>, %arg3: memref<1x32xf32, #tpu.memory_space<vmem>>, %arg4: memref<1x32xf32, #tpu.memory_space<vmem>>, %arg5: memref<32x32xbf16, #tpu.memory_space<vmem>>, %arg6: memref<32x32xbf16, #tpu.memory_space<vmem>>, %arg7: memref<32x32xbf16, #tpu.memory_space<vmem>>) attributes {dimension_semantics = [#tpu.dimension_semantics<parallel>, #tpu.dimension_semantics<arbitrary>], iteration_bounds = array<i64: 1, 1>, scalar_prefetch = 0 : i64, scratch_operands = 1 : i64, tpu.core_type = #tpu.core_type<tc>, window_params = [{transform_indices = @transform_0, window_bounds = array<i64: 32, 32>}, {pipeline_mode = #tpu.pipeline_mode<synchronous>, transform_indices = @transform_1, window_bounds = array<i64: 1, 32>}, {pipeline_mode = #tpu.pipeline_mode<synchronous>, transform_indices = @transform_2, window_bounds = array<i64: 1, 32>}, {transform_indices = @transform_3, window_bounds = array<i64: 32, 32>}, {transform_indices = @transform_4, window_bounds = array<i64: 32, 32>}]} {
    %c0_i32 = arith.constant 0 : i32
    %0 = arith.cmpi eq, %arg1, %c0_i32 : i32
    %1 = arith.extui %0 : i1 to i32
    %c0_i32_0 = arith.constant 0 : i32
    %2 = arith.cmpi ne, %1, %c0_i32_0 : i32
    scf.if %2 {
      %c0_6 = arith.constant 0 : index
      %c0_7 = arith.constant 0 : index
      %8 = vector.load %arg2[%c0_6, %c0_7] : memref<32x32xbf16, #tpu.memory_space<vmem>>, vector<32x32xbf16>
      %9 = arith.extf %8 : vector<32x32xbf16> to vector<32x32xf32>
      %cst_8 = arith.constant dense<0.000000e+00> : vector<32xf32>
      %10 = vector.multi_reduction <add>, %9, %cst_8 [1] : vector<32x32xf32> to vector<32xf32>
      %11 = vector.shape_cast %10 : vector<32xf32> to vector<32x1xf32>
      %cst_9 = arith.constant 3.200000e+01 : f32
      %12 = vector.broadcast %cst_9 : f32 to vector<32x1xf32>
      %13 = arith.divf %11, %12 : vector<32x1xf32>
      %14 = vector.broadcast %13 : vector<32x1xf32> to vector<32x32xf32>
      %15 = arith.subf %9, %14 : vector<32x32xf32>
      %16 = arith.mulf %15, %15 : vector<32x32xf32>
      %cst_10 = arith.constant dense<0.000000e+00> : vector<32xf32>
      %17 = vector.multi_reduction <add>, %16, %cst_10 [1] : vector<32x32xf32> to vector<32xf32>
      %18 = vector.shape_cast %17 : vector<32xf32> to vector<32x1xf32>
      %cst_11 = arith.constant 3.200000e+01 : f32
      %19 = vector.broadcast %cst_11 : f32 to vector<32x1xf32>
      %20 = arith.divf %18, %19 : vector<32x1xf32>
      %21 = vector.broadcast %13 : vector<32x1xf32> to vector<32x32xf32>
      %22 = arith.subf %9, %21 : vector<32x32xf32>
      %cst_12 = arith.constant 9.99999974E-6 : f32
      %23 = vector.broadcast %cst_12 : f32 to vector<32x1xf32>
      %24 = arith.addf %20, %23 : vector<32x1xf32>
      %25 = math.rsqrt %24 : vector<32x1xf32>
      %26 = vector.broadcast %25 : vector<32x1xf32> to vector<32x32xf32>
      %27 = arith.mulf %22, %26 : vector<32x32xf32>
      %c0_13 = arith.constant 0 : index
      %c0_14 = arith.constant 0 : index
      %28 = vector.load %arg3[%c0_13, %c0_14] : memref<1x32xf32, #tpu.memory_space<vmem>>, vector<1x32xf32>
      %29 = vector.broadcast %28 : vector<1x32xf32> to vector<32x32xf32>
      %30 = arith.mulf %27, %29 : vector<32x32xf32>
      %c0_15 = arith.constant 0 : index
      %c0_16 = arith.constant 0 : index
      %31 = vector.load %arg4[%c0_15, %c0_16] : memref<1x32xf32, #tpu.memory_space<vmem>>, vector<1x32xf32>
      %32 = vector.broadcast %31 : vector<1x32xf32> to vector<32x32xf32>
      %33 = arith.addf %30, %32 : vector<32x32xf32>
      %34 = arith.truncf %33 : vector<32x32xf32> to vector<32x32xbf16>
      %c0_17 = arith.constant 0 : index
      %c0_18 = arith.constant 0 : index
      %35 = vector.load %arg7[%c0_17, %c0_18] : memref<32x32xbf16, #tpu.memory_space<vmem>>, vector<32x32xbf16>
      tpu.vector_store %arg7[%c0_17, %c0_18], %34 {strides = array<i32>} : memref<32x32xbf16, #tpu.memory_space<vmem>>, vector<32x32xbf16>,
    } else {
    }
    %c0 = arith.constant 0 : index
    %c0_1 = arith.constant 0 : index
    %3 = vector.load %arg7[%c0, %c0_1] : memref<32x32xbf16, #tpu.memory_space<vmem>>, vector<32x32xbf16>
    %c0_2 = arith.constant 0 : index
    %c0_3 = arith.constant 0 : index
    %4 = vector.load %arg5[%c0_2, %c0_3] : memref<32x32xbf16, #tpu.memory_space<vmem>>, vector<32x32xbf16>
    %cst = arith.constant dense<0.000000e+00> : vector<32x32xf32>
    %5 = tpu.matmul %3, %4, %cst {dimension_numbers = #tpu.dot_dimension_numbers<[1], [0], [0], [1], [0, 0, 1, 1], [], []>} : vector<32x32xbf16>, vector<32x32xbf16>, vector<32x32xf32> -> vector<32x32xf32>
    %6 = arith.truncf %5 : vector<32x32xf32> to vector<32x32xbf16>
    %c0_4 = arith.constant 0 : index
    %c0_5 = arith.constant 0 : index
    %7 = vector.load %arg6[%c0_4, %c0_5] : memref<32x32xbf16, #tpu.memory_space<vmem>>, vector<32x32xbf16>
    tpu.vector_store %arg6[%c0_4, %c0_5], %6 {strides = array<i32>} : memref<32x32xbf16, #tpu.memory_space<vmem>>, vector<32x32xbf16>,
    return
  }
  func.func @transform_0(%arg0: i32, %arg1: i32) -> (i32, i32) {
    %c0_i32 = arith.constant 0 : i32
    %c0_i32_0 = arith.constant 0 : i32
    return %arg0, %c0_i32 : i32, i32
  }
  func.func @transform_1(%arg0: i32, %arg1: i32) -> (i32, i32) {
    %c0_i32 = arith.constant 0 : i32
    %c0_i32_0 = arith.constant 0 : i32
    %c0_i32_1 = arith.constant 0 : i32
    return %c0_i32, %c0_i32_0 : i32, i32
  }
  func.func @transform_2(%arg0: i32, %arg1: i32) -> (i32, i32) {
    %c0_i32 = arith.constant 0 : i32
    %c0_i32_0 = arith.constant 0 : i32
    %c0_i32_1 = arith.constant 0 : i32
    return %c0_i32, %c0_i32_0 : i32, i32
  }
  func.func @transform_3(%arg0: i32, %arg1: i32) -> (i32, i32) {
    %c0_i32 = arith.constant 0 : i32
    %c0_i32_0 = arith.constant 0 : i32
    return %c0_i32, %arg1 : i32, i32
  }
  func.func @transform_4(%arg0: i32, %arg1: i32) -> (i32, i32) {
    %c0_i32 = arith.constant 0 : i32
    return %arg0, %arg1 : i32, i32
  }
}

module attributes {stable_mosaic.version = 11 : i64} {
  func.func @_ln_linear_kernel(%arg0: i32, %arg1: i32, %arg2: memref<16x32xbf16, #tpu.memory_space<vmem>>, %arg3: memref<1x32xf32, #tpu.memory_space<vmem>>, %arg4: memref<1x32xf32, #tpu.memory_space<vmem>>, %arg5: memref<32x32xbf16, #tpu.memory_space<vmem>>, %arg6: memref<16x32xbf16, #tpu.memory_space<vmem>>, %arg7: memref<16x32xbf16, #tpu.memory_space<vmem>>) attributes {dimension_semantics = [#tpu.dimension_semantics<parallel>, #tpu.dimension_semantics<arbitrary>], iteration_bounds = array<i64: 1, 1>, scalar_prefetch = 0 : i64, scratch_operands = 1 : i64, tpu.core_type = #tpu.core_type<tc>, window_params = [{transform_indices = @transform_0, window_bounds = array<i64: 16, 32>}, {pipeline_mode = #tpu.pipeline_mode<synchronous>, transform_indices = @transform_1, window_bounds = array<i64: 1, 32>}, {pipeline_mode = #tpu.pipeline_mode<synchronous>, transform_indices = @transform_2, window_bounds = array<i64: 1, 32>}, {transform_indices = @transform_3, window_bounds = array<i64: 32, 32>}, {transform_indices = @transform_4, window_bounds = array<i64: 16, 32>}]} {
    %c0_i32 = arith.constant 0 : i32
    %0 = arith.cmpi eq, %arg1, %c0_i32 : i32
    %1 = arith.extui %0 : i1 to i32
    %c0_i32_0 = arith.constant 0 : i32
    %2 = arith.cmpi ne, %1, %c0_i32_0 : i32
    scf.if %2 {
      %c0_6 = arith.constant 0 : index
      %c0_7 = arith.constant 0 : index
      %8 = vector.load %arg2[%c0_6, %c0_7] : memref<16x32xbf16, #tpu.memory_space<vmem>>, vector<16x32xbf16>
      %9 = arith.extf %8 : vector<16x32xbf16> to vector<16x32xf32>
      %cst_8 = arith.constant dense<0.000000e+00> : vector<16xf32>
      %10 = vector.multi_reduction <add>, %9, %cst_8 [1] : vector<16x32xf32> to vector<16xf32>
      %11 = vector.shape_cast %10 : vector<16xf32> to vector<16x1xf32>
      %cst_9 = arith.constant 3.200000e+01 : f32
      %12 = vector.broadcast %cst_9 : f32 to vector<16x1xf32>
      %13 = arith.divf %11, %12 : vector<16x1xf32>
      %14 = vector.broadcast %13 : vector<16x1xf32> to vector<16x32xf32>
      %15 = arith.subf %9, %14 : vector<16x32xf32>
      %16 = arith.mulf %15, %15 : vector<16x32xf32>
      %cst_10 = arith.constant dense<0.000000e+00> : vector<16xf32>
      %17 = vector.multi_reduction <add>, %16, %cst_10 [1] : vector<16x32xf32> to vector<16xf32>
      %18 = vector.shape_cast %17 : vector<16xf32> to vector<16x1xf32>
      %cst_11 = arith.constant 3.200000e+01 : f32
      %19 = vector.broadcast %cst_11 : f32 to vector<16x1xf32>
      %20 = arith.divf %18, %19 : vector<16x1xf32>
      %21 = vector.broadcast %13 : vector<16x1xf32> to vector<16x32xf32>
      %22 = arith.subf %9, %21 : vector<16x32xf32>
      %cst_12 = arith.constant 9.99999974E-6 : f32
      %23 = vector.broadcast %cst_12 : f32 to vector<16x1xf32>
      %24 = arith.addf %20, %23 : vector<16x1xf32>
      %25 = math.rsqrt %24 : vector<16x1xf32>
      %26 = vector.broadcast %25 : vector<16x1xf32> to vector<16x32xf32>
      %27 = arith.mulf %22, %26 : vector<16x32xf32>
      %c0_13 = arith.constant 0 : index
      %c0_14 = arith.constant 0 : index
      %28 = vector.load %arg3[%c0_13, %c0_14] : memref<1x32xf32, #tpu.memory_space<vmem>>, vector<1x32xf32>
      %29 = vector.broadcast %28 : vector<1x32xf32> to vector<16x32xf32>
      %30 = arith.mulf %27, %29 : vector<16x32xf32>
      %c0_15 = arith.constant 0 : index
      %c0_16 = arith.constant 0 : index
      %31 = vector.load %arg4[%c0_15, %c0_16] : memref<1x32xf32, #tpu.memory_space<vmem>>, vector<1x32xf32>
      %32 = vector.broadcast %31 : vector<1x32xf32> to vector<16x32xf32>
      %33 = arith.addf %30, %32 : vector<16x32xf32>
      %34 = arith.truncf %33 : vector<16x32xf32> to vector<16x32xbf16>
      %c0_17 = arith.constant 0 : index
      %c0_18 = arith.constant 0 : index
      %35 = vector.load %arg7[%c0_17, %c0_18] : memref<16x32xbf16, #tpu.memory_space<vmem>>, vector<16x32xbf16>
      tpu.vector_store %arg7[%c0_17, %c0_18], %34 {strides = array<i32>} : memref<16x32xbf16, #tpu.memory_space<vmem>>, vector<16x32xbf16>,
    } else {
    }
    %c0 = arith.constant 0 : index
    %c0_1 = arith.constant 0 : index
    %3 = vector.load %arg7[%c0, %c0_1] : memref<16x32xbf16, #tpu.memory_space<vmem>>, vector<16x32xbf16>
    %c0_2 = arith.constant 0 : index
    %c0_3 = arith.constant 0 : index
    %4 = vector.load %arg5[%c0_2, %c0_3] : memref<32x32xbf16, #tpu.memory_space<vmem>>, vector<32x32xbf16>
    %cst = arith.constant dense<0.000000e+00> : vector<16x32xf32>
    %5 = tpu.matmul %3, %4, %cst {dimension_numbers = #tpu.dot_dimension_numbers<[1], [0], [0], [1], [0, 0, 1, 1], [], []>} : vector<16x32xbf16>, vector<32x32xbf16>, vector<16x32xf32> -> vector<16x32xf32>
    %6 = arith.truncf %5 : vector<16x32xf32> to vector<16x32xbf16>
    %c0_4 = arith.constant 0 : index
    %c0_5 = arith.constant 0 : index
    %7 = vector.load %arg6[%c0_4, %c0_5] : memref<16x32xbf16, #tpu.memory_space<vmem>>, vector<16x32xbf16>
    tpu.vector_store %arg6[%c0_4, %c0_5], %6 {strides = array<i32>} : memref<16x32xbf16, #tpu.memory_space<vmem>>, vector<16x32xbf16>,
    return
  }
  func.func @transform_0(%arg0: i32, %arg1: i32) -> (i32, i32) {
    %c0_i32 = arith.constant 0 : i32
    %c0_i32_0 = arith.constant 0 : i32
    return %arg0, %c0_i32 : i32, i32
  }
  func.func @transform_1(%arg0: i32, %arg1: i32) -> (i32, i32) {
    %c0_i32 = arith.constant 0 : i32
    %c0_i32_0 = arith.constant 0 : i32
    %c0_i32_1 = arith.constant 0 : i32
    return %c0_i32, %c0_i32_0 : i32, i32
  }
  func.func @transform_2(%arg0: i32, %arg1: i32) -> (i32, i32) {
    %c0_i32 = arith.constant 0 : i32
    %c0_i32_0 = arith.constant 0 : i32
    %c0_i32_1 = arith.constant 0 : i32
    return %c0_i32, %c0_i32_0 : i32, i32
  }
  func.func @transform_3(%arg0: i32, %arg1: i32) -> (i32, i32) {
    %c0_i32 = arith.constant 0 : i32
    %c0_i32_0 = arith.constant 0 : i32
    return %c0_i32, %arg1 : i32, i32
  }
  func.func @transform_4(%arg0: i32, %arg1: i32) -> (i32, i32) {
    %c0_i32 = arith.constant 0 : i32
    return %arg0, %arg1 : i32, i32
  }
}

module attributes {stable_mosaic.version = 11 : i64} {
  func.func @_ln_linear_kernel(%arg0: i32, %arg1: i32, %arg2: memref<64x32xbf16, #tpu.memory_space<vmem>>, %arg3: memref<1x32xf32, #tpu.memory_space<vmem>>, %arg4: memref<1x32xf32, #tpu.memory_space<vmem>>, %arg5: memref<32x64xbf16, #tpu.memory_space<vmem>>, %arg6: memref<64x64xbf16, #tpu.memory_space<vmem>>, %arg7: memref<64x32xbf16, #tpu.memory_space<vmem>>) attributes {dimension_semantics = [#tpu.dimension_semantics<parallel>, #tpu.dimension_semantics<arbitrary>], iteration_bounds = array<i64: 1, 1>, scalar_prefetch = 0 : i64, scratch_operands = 1 : i64, tpu.core_type = #tpu.core_type<tc>, window_params = [{transform_indices = @transform_0, window_bounds = array<i64: 64, 32>}, {pipeline_mode = #tpu.pipeline_mode<synchronous>, transform_indices = @transform_1, window_bounds = array<i64: 1, 32>}, {pipeline_mode = #tpu.pipeline_mode<synchronous>, transform_indices = @transform_2, window_bounds = array<i64: 1, 32>}, {transform_indices = @transform_3, window_bounds = array<i64: 32, 64>}, {transform_indices = @transform_4, window_bounds = array<i64: 64, 64>}]} {
    %c0_i32 = arith.constant 0 : i32
    %0 = arith.cmpi eq, %arg1, %c0_i32 : i32
    %1 = arith.extui %0 : i1 to i32
    %c0_i32_0 = arith.constant 0 : i32
    %2 = arith.cmpi ne, %1, %c0_i32_0 : i32
    scf.if %2 {
      %c0_6 = arith.constant 0 : index
      %c0_7 = arith.constant 0 : index
      %8 = vector.load %arg2[%c0_6, %c0_7] : memref<64x32xbf16, #tpu.memory_space<vmem>>, vector<64x32xbf16>
      %9 = arith.extf %8 : vector<64x32xbf16> to vector<64x32xf32>
      %cst_8 = arith.constant dense<0.000000e+00> : vector<64xf32>
      %10 = vector.multi_reduction <add>, %9, %cst_8 [1] : vector<64x32xf32> to vector<64xf32>
      %11 = vector.shape_cast %10 : vector<64xf32> to vector<64x1xf32>
      %cst_9 = arith.constant 3.200000e+01 : f32
      %12 = vector.broadcast %cst_9 : f32 to vector<64x1xf32>
      %13 = arith.divf %11, %12 : vector<64x1xf32>
      %14 = vector.broadcast %13 : vector<64x1xf32> to vector<64x32xf32>
      %15 = arith.subf %9, %14 : vector<64x32xf32>
      %16 = arith.mulf %15, %15 : vector<64x32xf32>
      %cst_10 = arith.constant dense<0.000000e+00> : vector<64xf32>
      %17 = vector.multi_reduction <add>, %16, %cst_10 [1] : vector<64x32xf32> to vector<64xf32>
      %18 = vector.shape_cast %17 : vector<64xf32> to vector<64x1xf32>
      %cst_11 = arith.constant 3.200000e+01 : f32
      %19 = vector.broadcast %cst_11 : f32 to vector<64x1xf32>
      %20 = arith.divf %18, %19 : vector<64x1xf32>
      %21 = vector.broadcast %13 : vector<64x1xf32> to vector<64x32xf32>
      %22 = arith.subf %9, %21 : vector<64x32xf32>
      %cst_12 = arith.constant 9.99999974E-6 : f32
      %23 = vector.broadcast %cst_12 : f32 to vector<64x1xf32>
      %24 = arith.addf %20, %23 : vector<64x1xf32>
      %25 = math.rsqrt %24 : vector<64x1xf32>
      %26 = vector.broadcast %25 : vector<64x1xf32> to vector<64x32xf32>
      %27 = arith.mulf %22, %26 : vector<64x32xf32>
      %c0_13 = arith.constant 0 : index
      %c0_14 = arith.constant 0 : index
      %28 = vector.load %arg3[%c0_13, %c0_14] : memref<1x32xf32, #tpu.memory_space<vmem>>, vector<1x32xf32>
      %29 = vector.broadcast %28 : vector<1x32xf32> to vector<64x32xf32>
      %30 = arith.mulf %27, %29 : vector<64x32xf32>
      %c0_15 = arith.constant 0 : index
      %c0_16 = arith.constant 0 : index
      %31 = vector.load %arg4[%c0_15, %c0_16] : memref<1x32xf32, #tpu.memory_space<vmem>>, vector<1x32xf32>
      %32 = vector.broadcast %31 : vector<1x32xf32> to vector<64x32xf32>
      %33 = arith.addf %30, %32 : vector<64x32xf32>
      %34 = arith.truncf %33 : vector<64x32xf32> to vector<64x32xbf16>
      %c0_17 = arith.constant 0 : index
      %c0_18 = arith.constant 0 : index
      %35 = vector.load %arg7[%c0_17, %c0_18] : memref<64x32xbf16, #tpu.memory_space<vmem>>, vector<64x32xbf16>
      tpu.vector_store %arg7[%c0_17, %c0_18], %34 {strides = array<i32>} : memref<64x32xbf16, #tpu.memory_space<vmem>>, vector<64x32xbf16>,
    } else {
    }
    %c0 = arith.constant 0 : index
    %c0_1 = arith.constant 0 : index
    %3 = vector.load %arg7[%c0, %c0_1] : memref<64x32xbf16, #tpu.memory_space<vmem>>, vector<64x32xbf16>
    %c0_2 = arith.constant 0 : index
    %c0_3 = arith.constant 0 : index
    %4 = vector.load %arg5[%c0_2, %c0_3] : memref<32x64xbf16, #tpu.memory_space<vmem>>, vector<32x64xbf16>
    %cst = arith.constant dense<0.000000e+00> : vector<64x64xf32>
    %5 = tpu.matmul %3, %4, %cst {dimension_numbers = #tpu.dot_dimension_numbers<[1], [0], [0], [1], [0, 0, 1, 1], [], []>} : vector<64x32xbf16>, vector<32x64xbf16>, vector<64x64xf32> -> vector<64x64xf32>
    %6 = arith.truncf %5 : vector<64x64xf32> to vector<64x64xbf16>
    %c0_4 = arith.constant 0 : index
    %c0_5 = arith.constant 0 : index
    %7 = vector.load %arg6[%c0_4, %c0_5] : memref<64x64xbf16, #tpu.memory_space<vmem>>, vector<64x64xbf16>
    tpu.vector_store %arg6[%c0_4, %c0_5], %6 {strides = array<i32>} : memref<64x64xbf16, #tpu.memory_space<vmem>>, vector<64x64xbf16>,
    return
  }
  func.func @transform_0(%arg0: i32, %arg1: i32) -> (i32, i32) {
    %c0_i32 = arith.constant 0 : i32
    %c0_i32_0 = arith.constant 0 : i32
    return %arg0, %c0_i32 : i32, i32
  }
  func.func @transform_1(%arg0: i32, %arg1: i32) -> (i32, i32) {
    %c0_i32 = arith.constant 0 : i32
    %c0_i32_0 = arith.constant 0 : i32
    %c0_i32_1 = arith.constant 0 : i32
    return %c0_i32, %c0_i32_0 : i32, i32
  }
  func.func @transform_2(%arg0: i32, %arg1: i32) -> (i32, i32) {
    %c0_i32 = arith.constant 0 : i32
    %c0_i32_0 = arith.constant 0 : i32
    %c0_i32_1 = arith.constant 0 : i32
    return %c0_i32, %c0_i32_0 : i32, i32
  }
  func.func @transform_3(%arg0: i32, %arg1: i32) -> (i32, i32) {
    %c0_i32 = arith.constant 0 : i32
    %c0_i32_0 = arith.constant 0 : i32
    return %c0_i32, %arg1 : i32, i32
  }
  func.func @transform_4(%arg0: i32, %arg1: i32) -> (i32, i32) {
    %c0_i32 = arith.constant 0 : i32
    return %arg0, %arg1 : i32, i32
  }
}

module attributes {stable_mosaic.version = 11 : i64} {
  func.func @_linear_kernel(%arg0: i32, %arg1: i32, %arg2: i32, %arg3: memref<32x18xf32, #tpu.memory_space<vmem>>, %arg4: memref<18x32xbf16, #tpu.memory_space<vmem>>, %arg5: memref<1x32xf32, #tpu.memory_space<vmem>>, %arg6: memref<32x32xbf16, #tpu.memory_space<vmem>>, %arg7: memref<32x32xf32, #tpu.memory_space<vmem>>) attributes {dimension_semantics = [#tpu.dimension_semantics<parallel>, #tpu.dimension_semantics<parallel>, #tpu.dimension_semantics<arbitrary>], iteration_bounds = array<i64: 1, 1, 1>, scalar_prefetch = 0 : i64, scratch_operands = 1 : i64, tpu.core_type = #tpu.core_type<tc>, window_params = [{transform_indices = @transform_0, window_bounds = array<i64: 32, 18>}, {transform_indices = @transform_1, window_bounds = array<i64: 18, 32>}, {transform_indices = @transform_2, window_bounds = array<i64: 1, 32>}, {transform_indices = @transform_3, window_bounds = array<i64: 32, 32>}]} {
    %c0_i32 = arith.constant 0 : i32
    %0 = arith.cmpi eq, %arg2, %c0_i32 : i32
    %1 = arith.extui %0 : i1 to i32
    %c0_i32_0 = arith.constant 0 : i32
    %2 = arith.cmpi ne, %1, %c0_i32_0 : i32
    scf.if %2 {
      %cst_10 = arith.constant 0.000000e+00 : f32
      %13 = vector.broadcast %cst_10 : f32 to vector<32x32xf32>
      %c0_11 = arith.constant 0 : index
      %c0_12 = arith.constant 0 : index
      %14 = vector.load %arg7[%c0_11, %c0_12] : memref<32x32xf32, #tpu.memory_space<vmem>>, vector<32x32xf32>
      tpu.vector_store %arg7[%c0_11, %c0_12], %13 {strides = array<i32>} : memref<32x32xf32, #tpu.memory_space<vmem>>, vector<32x32xf32>,
    } else {
    }
    %c0 = arith.constant 0 : index
    %c0_1 = arith.constant 0 : index
    %3 = vector.load %arg7[%c0, %c0_1] : memref<32x32xf32, #tpu.memory_space<vmem>>, vector<32x32xf32>
    %c0_2 = arith.constant 0 : index
    %c0_3 = arith.constant 0 : index
    %4 = vector.load %arg3[%c0_2, %c0_3] : memref<32x18xf32, #tpu.memory_space<vmem>>, vector<32x18xf32>
    %5 = arith.truncf %4 : vector<32x18xf32> to vector<32x18xbf16>
    %c0_4 = arith.constant 0 : index
    %c0_5 = arith.constant 0 : index
    %6 = vector.load %arg4[%c0_4, %c0_5] : memref<18x32xbf16, #tpu.memory_space<vmem>>, vector<18x32xbf16>
    %cst = arith.constant dense<0.000000e+00> : vector<32x32xf32>
    %7 = tpu.matmul %5, %6, %cst {dimension_numbers = #tpu.dot_dimension_numbers<[1], [0], [0], [1], [0, 0, 1, 1], [], []>} : vector<32x18xbf16>, vector<18x32xbf16>, vector<32x32xf32> -> vector<32x32xf32>
    %8 = arith.addf %3, %7 : vector<32x32xf32>
    %c0_6 = arith.constant 0 : index
    %c0_7 = arith.constant 0 : index
    %9 = vector.load %arg7[%c0_6, %c0_7] : memref<32x32xf32, #tpu.memory_space<vmem>>, vector<32x32xf32>
    tpu.vector_store %arg7[%c0_6, %c0_7], %8 {strides = array<i32>} : memref<32x32xf32, #tpu.memory_space<vmem>>, vector<32x32xf32>,
    %c0_i32_8 = arith.constant 0 : i32
    %10 = arith.cmpi eq, %arg2, %c0_i32_8 : i32
    %11 = arith.extui %10 : i1 to i32
    %c0_i32_9 = arith.constant 0 : i32
    %12 = arith.cmpi ne, %11, %c0_i32_9 : i32
    scf.if %12 {
      %c0_10 = arith.constant 0 : index
      %c0_11 = arith.constant 0 : index
      %13 = vector.load %arg7[%c0_10, %c0_11] : memref<32x32xf32, #tpu.memory_space<vmem>>, vector<32x32xf32>
      %c0_12 = arith.constant 0 : index
      %c0_13 = arith.constant 0 : index
      %14 = vector.load %arg5[%c0_12, %c0_13] : memref<1x32xf32, #tpu.memory_space<vmem>>, vector<1x32xf32>
      %15 = vector.broadcast %14 : vector<1x32xf32> to vector<32x32xf32>
      %16 = arith.addf %13, %15 : vector<32x32xf32>
      %17 = arith.truncf %16 : vector<32x32xf32> to vector<32x32xbf16>
      %c0_14 = arith.constant 0 : index
      %c0_15 = arith.constant 0 : index
      %18 = vector.load %arg6[%c0_14, %c0_15] : memref<32x32xbf16, #tpu.memory_space<vmem>>, vector<32x32xbf16>
      tpu.vector_store %arg6[%c0_14, %c0_15], %17 {strides = array<i32>} : memref<32x32xbf16, #tpu.memory_space<vmem>>, vector<32x32xbf16>,
    } else {
    }
    return
  }
  func.func @transform_0(%arg0: i32, %arg1: i32, %arg2: i32) -> (i32, i32) {
    %c0_i32 = arith.constant 0 : i32
    return %arg0, %arg2 : i32, i32
  }
  func.func @transform_1(%arg0: i32, %arg1: i32, %arg2: i32) -> (i32, i32) {
    %c0_i32 = arith.constant 0 : i32
    return %arg2, %arg1 : i32, i32
  }
  func.func @transform_2(%arg0: i32, %arg1: i32, %arg2: i32) -> (i32, i32) {
    %c0_i32 = arith.constant 0 : i32
    %c0_i32_0 = arith.constant 0 : i32
    return %c0_i32, %arg1 : i32, i32
  }
  func.func @transform_3(%arg0: i32, %arg1: i32, %arg2: i32) -> (i32, i32) {
    %c0_i32 = arith.constant 0 : i32
    return %arg0, %arg1 : i32, i32
  }
}

module attributes {stable_mosaic.version = 11 : i64} {
  func.func @_flash_attn_kernel(%arg0: i32, %arg1: i32, %arg2: i32, %arg3: memref<1x8x32xbf16, #tpu.memory_space<vmem>>, %arg4: memref<1x32x32xbf16, #tpu.memory_space<vmem>>, %arg5: memref<1x32x32xbf16, #tpu.memory_space<vmem>>, %arg6: memref<1x8x32xbf16, #tpu.memory_space<vmem>>, %arg7: memref<4x8x1xf32, #tpu.memory_space<vmem>>, %arg8: memref<4x8x1xf32, #tpu.memory_space<vmem>>, %arg9: memref<4x8x8xf32, #tpu.memory_space<vmem>>) attributes {dimension_semantics = [#tpu.dimension_semantics<parallel>, #tpu.dimension_semantics<parallel>, #tpu.dimension_semantics<arbitrary>], iteration_bounds = array<i64: 2, 1, 1>, scalar_prefetch = 0 : i64, scratch_operands = 3 : i64, tpu.core_type = #tpu.core_type<tc>, window_params = [{transform_indices = @transform_0, window_bounds = array<i64: 1, 8, 32>}, {transform_indices = @transform_1, window_bounds = array<i64: 1, 32, 32>}, {transform_indices = @transform_2, window_bounds = array<i64: 1, 32, 32>}, {transform_indices = @transform_3, window_bounds = array<i64: 1, 8, 32>}]} {
    %c0_i32 = arith.constant 0 : i32
    %0 = arith.cmpi eq, %arg2, %c0_i32 : i32
    %1 = arith.extui %0 : i1 to i32
    %c0_i32_0 = arith.constant 0 : i32
    %2 = arith.cmpi ne, %1, %c0_i32_0 : i32
    scf.if %2 {
      %cst_95 = arith.constant -1.000000e+30 : f32
      %156 = vector.broadcast %cst_95 : f32 to vector<4x8x1xf32>
      %c0_96 = arith.constant 0 : index
      %c0_97 = arith.constant 0 : index
      %c0_98 = arith.constant 0 : index
      %157 = vector.load %arg7[%c0_96, %c0_97, %c0_98] : memref<4x8x1xf32, #tpu.memory_space<vmem>>, vector<4x8x1xf32>
      tpu.vector_store %arg7[%c0_96, %c0_97, %c0_98], %156 {strides = array<i32>} : memref<4x8x1xf32, #tpu.memory_space<vmem>>, vector<4x8x1xf32>,
      %cst_99 = arith.constant 0.000000e+00 : f32
      %158 = vector.broadcast %cst_99 : f32 to vector<4x8x1xf32>
      %c0_100 = arith.constant 0 : index
      %c0_101 = arith.constant 0 : index
      %c0_102 = arith.constant 0 : index
      %159 = vector.load %arg8[%c0_100, %c0_101, %c0_102] : memref<4x8x1xf32, #tpu.memory_space<vmem>>, vector<4x8x1xf32>
      tpu.vector_store %arg8[%c0_100, %c0_101, %c0_102], %158 {strides = array<i32>} : memref<4x8x1xf32, #tpu.memory_space<vmem>>, vector<4x8x1xf32>,
      %cst_103 = arith.constant 0.000000e+00 : f32
      %160 = vector.broadcast %cst_103 : f32 to vector<4x8x8xf32>
      %c0_104 = arith.constant 0 : index
      %c0_105 = arith.constant 0 : index
      %c0_106 = arith.constant 0 : index
      %161 = vector.load %arg9[%c0_104, %c0_105, %c0_106] : memref<4x8x8xf32, #tpu.memory_space<vmem>>, vector<4x8x8xf32>
      tpu.vector_store %arg9[%c0_104, %c0_105, %c0_106], %160 {strides = array<i32>} : memref<4x8x8xf32, #tpu.memory_space<vmem>>, vector<4x8x8xf32>,
    } else {
    }
    %c0 = arith.constant 0 : index
    %c0_1 = arith.constant 0 : index
    %c0_2 = arith.constant 0 : index
    %3 = vector.load %arg3[%c0, %c0_1, %c0_2] : memref<1x8x32xbf16, #tpu.memory_space<vmem>>, vector<1x8x32xbf16>
    %4 = vector.shape_cast %3 : vector<1x8x32xbf16> to vector<8x32xbf16>
    %c0_3 = arith.constant 0 : index
    %c0_4 = arith.constant 0 : index
    %c0_5 = arith.constant 0 : index
    %5 = vector.load %arg4[%c0_3, %c0_4, %c0_5] : memref<1x32x32xbf16, #tpu.memory_space<vmem>>, vector<1x32x32xbf16>
    %6 = vector.shape_cast %5 : vector<1x32x32xbf16> to vector<32x32xbf16>
    %c0_6 = arith.constant 0 : index
    %c0_7 = arith.constant 0 : index
    %c0_8 = arith.constant 0 : index
    %7 = vector.load %arg5[%c0_6, %c0_7, %c0_8] : memref<1x32x32xbf16, #tpu.memory_space<vmem>>, vector<1x32x32xbf16>
    %8 = vector.shape_cast %7 : vector<1x32x32xbf16> to vector<32x32xbf16>
    %9 = vector.extract_strided_slice %4 {offsets = [0, 0], sizes = [8, 8], strides = [1, 1]} : vector<8x32xbf16> to vector<8x8xbf16>
    %10 = vector.extract_strided_slice %6 {offsets = [0, 0], sizes = [32, 8], strides = [1, 1]} : vector<32x32xbf16> to vector<32x8xbf16>
    %11 = vector.extract_strided_slice %8 {offsets = [0, 0], sizes = [32, 8], strides = [1, 1]} : vector<32x32xbf16> to vector<32x8xbf16>
    %cst = arith.constant dense<0.000000e+00> : vector<8x32xf32>
    %12 = tpu.matmul %9, %10, %cst {dimension_numbers = #tpu.dot_dimension_numbers<[1], [1], [0], [0], [0, 0, 1, 0], [], []>} : vector<8x8xbf16>, vector<32x8xbf16>, vector<8x32xf32> -> vector<8x32xf32>
    %c0_9 = arith.constant 0 : index
    %c0_10 = arith.constant 0 : index
    %c0_11 = arith.constant 0 : index
    %13 = vector.load %arg7[%c0_9, %c0_10, %c0_11] : memref<4x8x1xf32, #tpu.memory_space<vmem>>, vector<1x8x1xf32>
    %14 = vector.shape_cast %13 : vector<1x8x1xf32> to vector<8x1xf32>
    %cst_12 = arith.constant dense<0xFF800000> : vector<8xf32>
    %15 = vector.multi_reduction <maximumf>, %12, %cst_12 [1] : vector<8x32xf32> to vector<8xf32>
    %16 = vector.shape_cast %15 : vector<8xf32> to vector<8x1xf32>
    %17 = arith.maximumf %14, %16 : vector<8x1xf32>
    %18 = arith.subf %14, %17 : vector<8x1xf32>
    %19 = math.exp %18 : vector<8x1xf32>
    %20 = vector.broadcast %17 : vector<8x1xf32> to vector<8x32xf32>
    %21 = arith.subf %12, %20 : vector<8x32xf32>
    %22 = math.exp %21 : vector<8x32xf32>
    %c0_13 = arith.constant 0 : index
    %c0_14 = arith.constant 0 : index
    %c0_15 = arith.constant 0 : index
    %23 = vector.load %arg8[%c0_13, %c0_14, %c0_15] : memref<4x8x1xf32, #tpu.memory_space<vmem>>, vector<1x8x1xf32>
    %24 = vector.shape_cast %23 : vector<1x8x1xf32> to vector<8x1xf32>
    %25 = arith.mulf %19, %24 : vector<8x1xf32>
    %cst_16 = arith.constant dense<0.000000e+00> : vector<8xf32>
    %26 = vector.multi_reduction <add>, %22, %cst_16 [1] : vector<8x32xf32> to vector<8xf32>
    %27 = vector.shape_cast %26 : vector<8xf32> to vector<8x1xf32>
    %28 = arith.addf %25, %27 : vector<8x1xf32>
    %c0_17 = arith.constant 0 : index
    %c0_18 = arith.constant 0 : index
    %c0_19 = arith.constant 0 : index
    %29 = vector.load %arg8[%c0_17, %c0_18, %c0_19] : memref<4x8x1xf32, #tpu.memory_space<vmem>>, vector<1x8x1xf32>
    %30 = vector.shape_cast %29 : vector<1x8x1xf32> to vector<8x1xf32>
    %31 = vector.shape_cast %28 : vector<8x1xf32> to vector<1x8x1xf32>
    tpu.vector_store %arg8[%c0_17, %c0_18, %c0_19], %31 {strides = array<i32>} : memref<4x8x1xf32, #tpu.memory_space<vmem>>, vector<1x8x1xf32>,
    %c0_20 = arith.constant 0 : index
    %c0_21 = arith.constant 0 : index
    %c0_22 = arith.constant 0 : index
    %32 = vector.load %arg9[%c0_20, %c0_21, %c0_22] : memref<4x8x8xf32, #tpu.memory_space<vmem>>, vector<1x8x8xf32>
    %33 = vector.shape_cast %32 : vector<1x8x8xf32> to vector<8x8xf32>
    %34 = vector.broadcast %19 : vector<8x1xf32> to vector<8x8xf32>
    %35 = arith.mulf %34, %33 : vector<8x8xf32>
    %36 = arith.truncf %22 : vector<8x32xf32> to vector<8x32xbf16>
    %cst_23 = arith.constant dense<0.000000e+00> : vector<8x8xf32>
    %37 = tpu.matmul %36, %11, %cst_23 {dimension_numbers = #tpu.dot_dimension_numbers<[1], [0], [0], [1], [0, 0, 1, 1], [], []>} : vector<8x32xbf16>, vector<32x8xbf16>, vector<8x8xf32> -> vector<8x8xf32>
    %38 = arith.addf %35, %37 : vector<8x8xf32>
    %c0_24 = arith.constant 0 : index
    %c0_25 = arith.constant 0 : index
    %c0_26 = arith.constant 0 : index
    %39 = vector.load %arg9[%c0_24, %c0_25, %c0_26] : memref<4x8x8xf32, #tpu.memory_space<vmem>>, vector<1x8x8xf32>
    %40 = vector.shape_cast %39 : vector<1x8x8xf32> to vector<8x8xf32>
    %41 = vector.shape_cast %38 : vector<8x8xf32> to vector<1x8x8xf32>
    tpu.vector_store %arg9[%c0_24, %c0_25, %c0_26], %41 {strides = array<i32>} : memref<4x8x8xf32, #tpu.memory_space<vmem>>, vector<1x8x8xf32>,
    %c0_27 = arith.constant 0 : index
    %c0_28 = arith.constant 0 : index
    %c0_29 = arith.constant 0 : index
    %42 = vector.load %arg7[%c0_27, %c0_28, %c0_29] : memref<4x8x1xf32, #tpu.memory_space<vmem>>, vector<1x8x1xf32>
    %43 = vector.shape_cast %42 : vector<1x8x1xf32> to vector<8x1xf32>
    %44 = vector.shape_cast %17 : vector<8x1xf32> to vector<1x8x1xf32>
    tpu.vector_store %arg7[%c0_27, %c0_28, %c0_29], %44 {strides = array<i32>} : memref<4x8x1xf32, #tpu.memory_space<vmem>>, vector<1x8x1xf32>,
    %45 = vector.extract_strided_slice %4 {offsets = [0, 8], sizes = [8, 8], strides = [1, 1]} : vector<8x32xbf16> to vector<8x8xbf16>
    %46 = vector.extract_strided_slice %6 {offsets = [0, 8], sizes = [32, 8], strides = [1, 1]} : vector<32x32xbf16> to vector<32x8xbf16>
    %47 = vector.extract_strided_slice %8 {offsets = [0, 8], sizes = [32, 8], strides = [1, 1]} : vector<32x32xbf16> to vector<32x8xbf16>
    %cst_30 = arith.constant dense<0.000000e+00> : vector<8x32xf32>
    %48 = tpu.matmul %45, %46, %cst_30 {dimension_numbers = #tpu.dot_dimension_numbers<[1], [1], [0], [0], [0, 0, 1, 0], [], []>} : vector<8x8xbf16>, vector<32x8xbf16>, vector<8x32xf32> -> vector<8x32xf32>
    %c1 = arith.constant 1 : index
    %c0_31 = arith.constant 0 : index
    %c0_32 = arith.constant 0 : index
    %49 = vector.load %arg7[%c1, %c0_31, %c0_32] : memref<4x8x1xf32, #tpu.memory_space<vmem>>, vector<1x8x1xf32>
    %50 = vector.shape_cast %49 : vector<1x8x1xf32> to vector<8x1xf32>
    %cst_33 = arith.constant dense<0xFF800000> : vector<8xf32>
    %51 = vector.multi_reduction <maximumf>, %48, %cst_33 [1] : vector<8x32xf32> to vector<8xf32>
    %52 = vector.shape_cast %51 : vector<8xf32> to vector<8x1xf32>
    %53 = arith.maximumf %50, %52 : vector<8x1xf32>
    %54 = arith.subf %50, %53 : vector<8x1xf32>
    %55 = math.exp %54 : vector<8x1xf32>
    %56 = vector.broadcast %53 : vector<8x1xf32> to vector<8x32xf32>
    %57 = arith.subf %48, %56 : vector<8x32xf32>
    %58 = math.exp %57 : vector<8x32xf32>
    %c1_34 = arith.constant 1 : index
    %c0_35 = arith.constant 0 : index
    %c0_36 = arith.constant 0 : index
    %59 = vector.load %arg8[%c1_34, %c0_35, %c0_36] : memref<4x8x1xf32, #tpu.memory_space<vmem>>, vector<1x8x1xf32>
    %60 = vector.shape_cast %59 : vector<1x8x1xf32> to vector<8x1xf32>
    %61 = arith.mulf %55, %60 : vector<8x1xf32>
    %cst_37 = arith.constant dense<0.000000e+00> : vector<8xf32>
    %62 = vector.multi_reduction <add>, %58, %cst_37 [1] : vector<8x32xf32> to vector<8xf32>
    %63 = vector.shape_cast %62 : vector<8xf32> to vector<8x1xf32>
    %64 = arith.addf %61, %63 : vector<8x1xf32>
    %c1_38 = arith.constant 1 : index
    %c0_39 = arith.constant 0 : index
    %c0_40 = arith.constant 0 : index
    %65 = vector.load %arg8[%c1_38, %c0_39, %c0_40] : memref<4x8x1xf32, #tpu.memory_space<vmem>>, vector<1x8x1xf32>
    %66 = vector.shape_cast %65 : vector<1x8x1xf32> to vector<8x1xf32>
    %67 = vector.shape_cast %64 : vector<8x1xf32> to vector<1x8x1xf32>
    tpu.vector_store %arg8[%c1_38, %c0_39, %c0_40], %67 {strides = array<i32>} : memref<4x8x1xf32, #tpu.memory_space<vmem>>, vector<1x8x1xf32>,
    %c1_41 = arith.constant 1 : index
    %c0_42 = arith.constant 0 : index
    %c0_43 = arith.constant 0 : index
    %68 = vector.load %arg9[%c1_41, %c0_42, %c0_43] : memref<4x8x8xf32, #tpu.memory_space<vmem>>, vector<1x8x8xf32>
    %69 = vector.shape_cast %68 : vector<1x8x8xf32> to vector<8x8xf32>
    %70 = vector.broadcast %55 : vector<8x1xf32> to vector<8x8xf32>
    %71 = arith.mulf %70, %69 : vector<8x8xf32>
    %72 = arith.truncf %58 : vector<8x32xf32> to vector<8x32xbf16>
    %cst_44 = arith.constant dense<0.000000e+00> : vector<8x8xf32>
    %73 = tpu.matmul %72, %47, %cst_44 {dimension_numbers = #tpu.dot_dimension_numbers<[1], [0], [0], [1], [0, 0, 1, 1], [], []>} : vector<8x32xbf16>, vector<32x8xbf16>, vector<8x8xf32> -> vector<8x8xf32>
    %74 = arith.addf %71, %73 : vector<8x8xf32>
    %c1_45 = arith.constant 1 : index
    %c0_46 = arith.constant 0 : index
    %c0_47 = arith.constant 0 : index
    %75 = vector.load %arg9[%c1_45, %c0_46, %c0_47] : memref<4x8x8xf32, #tpu.memory_space<vmem>>, vector<1x8x8xf32>
    %76 = vector.shape_cast %75 : vector<1x8x8xf32> to vector<8x8xf32>
    %77 = vector.shape_cast %74 : vector<8x8xf32> to vector<1x8x8xf32>
    tpu.vector_store %arg9[%c1_45, %c0_46, %c0_47], %77 {strides = array<i32>} : memref<4x8x8xf32, #tpu.memory_space<vmem>>, vector<1x8x8xf32>,
    %c1_48 = arith.constant 1 : index
    %c0_49 = arith.constant 0 : index
    %c0_50 = arith.constant 0 : index
    %78 = vector.load %arg7[%c1_48, %c0_49, %c0_50] : memref<4x8x1xf32, #tpu.memory_space<vmem>>, vector<1x8x1xf32>
    %79 = vector.shape_cast %78 : vector<1x8x1xf32> to vector<8x1xf32>
    %80 = vector.shape_cast %53 : vector<8x1xf32> to vector<1x8x1xf32>
    tpu.vector_store %arg7[%c1_48, %c0_49, %c0_50], %80 {strides = array<i32>} : memref<4x8x1xf32, #tpu.memory_space<vmem>>, vector<1x8x1xf32>,
    %81 = vector.extract_strided_slice %4 {offsets = [0, 16], sizes = [8, 8], strides = [1, 1]} : vector<8x32xbf16> to vector<8x8xbf16>
    %82 = vector.extract_strided_slice %6 {offsets = [0, 16], sizes = [32, 8], strides = [1, 1]} : vector<32x32xbf16> to vector<32x8xbf16>
    %83 = vector.extract_strided_slice %8 {offsets = [0, 16], sizes = [32, 8], strides = [1, 1]} : vector<32x32xbf16> to vector<32x8xbf16>
    %cst_51 = arith.constant dense<0.000000e+00> : vector<8x32xf32>
    %84 = tpu.matmul %81, %82, %cst_51 {dimension_numbers = #tpu.dot_dimension_numbers<[1], [1], [0], [0], [0, 0, 1, 0], [], []>} : vector<8x8xbf16>, vector<32x8xbf16>, vector<8x32xf32> -> vector<8x32xf32>
    %c2 = arith.constant 2 : index
    %c0_52 = arith.constant 0 : index
    %c0_53 = arith.constant 0 : index
    %85 = vector.load %arg7[%c2, %c0_52, %c0_53] : memref<4x8x1xf32, #tpu.memory_space<vmem>>, vector<1x8x1xf32>
    %86 = vector.shape_cast %85 : vector<1x8x1xf32> to vector<8x1xf32>
    %cst_54 = arith.constant dense<0xFF800000> : vector<8xf32>
    %87 = vector.multi_reduction <maximumf>, %84, %cst_54 [1] : vector<8x32xf32> to vector<8xf32>
    %88 = vector.shape_cast %87 : vector<8xf32> to vector<8x1xf32>
    %89 = arith.maximumf %86, %88 : vector<8x1xf32>
    %90 = arith.subf %86, %89 : vector<8x1xf32>
    %91 = math.exp %90 : vector<8x1xf32>
    %92 = vector.broadcast %89 : vector<8x1xf32> to vector<8x32xf32>
    %93 = arith.subf %84, %92 : vector<8x32xf32>
    %94 = math.exp %93 : vector<8x32xf32>
    %c2_55 = arith.constant 2 : index
    %c0_56 = arith.constant 0 : index
    %c0_57 = arith.constant 0 : index
    %95 = vector.load %arg8[%c2_55, %c0_56, %c0_57] : memref<4x8x1xf32, #tpu.memory_space<vmem>>, vector<1x8x1xf32>
    %96 = vector.shape_cast %95 : vector<1x8x1xf32> to vector<8x1xf32>
    %97 = arith.mulf %91, %96 : vector<8x1xf32>
    %cst_58 = arith.constant dense<0.000000e+00> : vector<8xf32>
    %98 = vector.multi_reduction <add>, %94, %cst_58 [1] : vector<8x32xf32> to vector<8xf32>
    %99 = vector.shape_cast %98 : vector<8xf32> to vector<8x1xf32>
    %100 = arith.addf %97, %99 : vector<8x1xf32>
    %c2_59 = arith.constant 2 : index
    %c0_60 = arith.constant 0 : index
    %c0_61 = arith.constant 0 : index
    %101 = vector.load %arg8[%c2_59, %c0_60, %c0_61] : memref<4x8x1xf32, #tpu.memory_space<vmem>>, vector<1x8x1xf32>
    %102 = vector.shape_cast %101 : vector<1x8x1xf32> to vector<8x1xf32>
    %103 = vector.shape_cast %100 : vector<8x1xf32> to vector<1x8x1xf32>
    tpu.vector_store %arg8[%c2_59, %c0_60, %c0_61], %103 {strides = array<i32>} : memref<4x8x1xf32, #tpu.memory_space<vmem>>, vector<1x8x1xf32>,
    %c2_62 = arith.constant 2 : index
    %c0_63 = arith.constant 0 : index
    %c0_64 = arith.constant 0 : index
    %104 = vector.load %arg9[%c2_62, %c0_63, %c0_64] : memref<4x8x8xf32, #tpu.memory_space<vmem>>, vector<1x8x8xf32>
    %105 = vector.shape_cast %104 : vector<1x8x8xf32> to vector<8x8xf32>
    %106 = vector.broadcast %91 : vector<8x1xf32> to vector<8x8xf32>
    %107 = arith.mulf %106, %105 : vector<8x8xf32>
    %108 = arith.truncf %94 : vector<8x32xf32> to vector<8x32xbf16>
    %cst_65 = arith.constant dense<0.000000e+00> : vector<8x8xf32>
    %109 = tpu.matmul %108, %83, %cst_65 {dimension_numbers = #tpu.dot_dimension_numbers<[1], [0], [0], [1], [0, 0, 1, 1], [], []>} : vector<8x32xbf16>, vector<32x8xbf16>, vector<8x8xf32> -> vector<8x8xf32>
    %110 = arith.addf %107, %109 : vector<8x8xf32>
    %c2_66 = arith.constant 2 : index
    %c0_67 = arith.constant 0 : index
    %c0_68 = arith.constant 0 : index
    %111 = vector.load %arg9[%c2_66, %c0_67, %c0_68] : memref<4x8x8xf32, #tpu.memory_space<vmem>>, vector<1x8x8xf32>
    %112 = vector.shape_cast %111 : vector<1x8x8xf32> to vector<8x8xf32>
    %113 = vector.shape_cast %110 : vector<8x8xf32> to vector<1x8x8xf32>
    tpu.vector_store %arg9[%c2_66, %c0_67, %c0_68], %113 {strides = array<i32>} : memref<4x8x8xf32, #tpu.memory_space<vmem>>, vector<1x8x8xf32>,
    %c2_69 = arith.constant 2 : index
    %c0_70 = arith.constant 0 : index
    %c0_71 = arith.constant 0 : index
    %114 = vector.load %arg7[%c2_69, %c0_70, %c0_71] : memref<4x8x1xf32, #tpu.memory_space<vmem>>, vector<1x8x1xf32>
    %115 = vector.shape_cast %114 : vector<1x8x1xf32> to vector<8x1xf32>
    %116 = vector.shape_cast %89 : vector<8x1xf32> to vector<1x8x1xf32>
    tpu.vector_store %arg7[%c2_69, %c0_70, %c0_71], %116 {strides = array<i32>} : memref<4x8x1xf32, #tpu.memory_space<vmem>>, vector<1x8x1xf32>,
    %117 = vector.extract_strided_slice %4 {offsets = [0, 24], sizes = [8, 8], strides = [1, 1]} : vector<8x32xbf16> to vector<8x8xbf16>
    %118 = vector.extract_strided_slice %6 {offsets = [0, 24], sizes = [32, 8], strides = [1, 1]} : vector<32x32xbf16> to vector<32x8xbf16>
    %119 = vector.extract_strided_slice %8 {offsets = [0, 24], sizes = [32, 8], strides = [1, 1]} : vector<32x32xbf16> to vector<32x8xbf16>
    %cst_72 = arith.constant dense<0.000000e+00> : vector<8x32xf32>
    %120 = tpu.matmul %117, %118, %cst_72 {dimension_numbers = #tpu.dot_dimension_numbers<[1], [1], [0], [0], [0, 0, 1, 0], [], []>} : vector<8x8xbf16>, vector<32x8xbf16>, vector<8x32xf32> -> vector<8x32xf32>
    %c3 = arith.constant 3 : index
    %c0_73 = arith.constant 0 : index
    %c0_74 = arith.constant 0 : index
    %121 = vector.load %arg7[%c3, %c0_73, %c0_74] : memref<4x8x1xf32, #tpu.memory_space<vmem>>, vector<1x8x1xf32>
    %122 = vector.shape_cast %121 : vector<1x8x1xf32> to vector<8x1xf32>
    %cst_75 = arith.constant dense<0xFF800000> : vector<8xf32>
    %123 = vector.multi_reduction <maximumf>, %120, %cst_75 [1] : vector<8x32xf32> to vector<8xf32>
    %124 = vector.shape_cast %123 : vector<8xf32> to vector<8x1xf32>
    %125 = arith.maximumf %122, %124 : vector<8x1xf32>
    %126 = arith.subf %122, %125 : vector<8x1xf32>
    %127 = math.exp %126 : vector<8x1xf32>
    %128 = vector.broadcast %125 : vector<8x1xf32> to vector<8x32xf32>
    %129 = arith.subf %120, %128 : vector<8x32xf32>
    %130 = math.exp %129 : vector<8x32xf32>
    %c3_76 = arith.constant 3 : index
    %c0_77 = arith.constant 0 : index
    %c0_78 = arith.constant 0 : index
    %131 = vector.load %arg8[%c3_76, %c0_77, %c0_78] : memref<4x8x1xf32, #tpu.memory_space<vmem>>, vector<1x8x1xf32>
    %132 = vector.shape_cast %131 : vector<1x8x1xf32> to vector<8x1xf32>
    %133 = arith.mulf %127, %132 : vector<8x1xf32>
    %cst_79 = arith.constant dense<0.000000e+00> : vector<8xf32>
    %134 = vector.multi_reduction <add>, %130, %cst_79 [1] : vector<8x32xf32> to vector<8xf32>
    %135 = vector.shape_cast %134 : vector<8xf32> to vector<8x1xf32>
    %136 = arith.addf %133, %135 : vector<8x1xf32>
    %c3_80 = arith.constant 3 : index
    %c0_81 = arith.constant 0 : index
    %c0_82 = arith.constant 0 : index
    %137 = vector.load %arg8[%c3_80, %c0_81, %c0_82] : memref<4x8x1xf32, #tpu.memory_space<vmem>>, vector<1x8x1xf32>
    %138 = vector.shape_cast %137 : vector<1x8x1xf32> to vector<8x1xf32>
    %139 = vector.shape_cast %136 : vector<8x1xf32> to vector<1x8x1xf32>
    tpu.vector_store %arg8[%c3_80, %c0_81, %c0_82], %139 {strides = array<i32>} : memref<4x8x1xf32, #tpu.memory_space<vmem>>, vector<1x8x1xf32>,
    %c3_83 = arith.constant 3 : index
    %c0_84 = arith.constant 0 : index
    %c0_85 = arith.constant 0 : index
    %140 = vector.load %arg9[%c3_83, %c0_84, %c0_85] : memref<4x8x8xf32, #tpu.memory_space<vmem>>, vector<1x8x8xf32>
    %141 = vector.shape_cast %140 : vector<1x8x8xf32> to vector<8x8xf32>
    %142 = vector.broadcast %127 : vector<8x1xf32> to vector<8x8xf32>
    %143 = arith.mulf %142, %141 : vector<8x8xf32>
    %144 = arith.truncf %130 : vector<8x32xf32> to vector<8x32xbf16>
    %cst_86 = arith.constant dense<0.000000e+00> : vector<8x8xf32>
    %145 = tpu.matmul %144, %119, %cst_86 {dimension_numbers = #tpu.dot_dimension_numbers<[1], [0], [0], [1], [0, 0, 1, 1], [], []>} : vector<8x32xbf16>, vector<32x8xbf16>, vector<8x8xf32> -> vector<8x8xf32>
    %146 = arith.addf %143, %145 : vector<8x8xf32>
    %c3_87 = arith.constant 3 : index
    %c0_88 = arith.constant 0 : index
    %c0_89 = arith.constant 0 : index
    %147 = vector.load %arg9[%c3_87, %c0_88, %c0_89] : memref<4x8x8xf32, #tpu.memory_space<vmem>>, vector<1x8x8xf32>
    %148 = vector.shape_cast %147 : vector<1x8x8xf32> to vector<8x8xf32>
    %149 = vector.shape_cast %146 : vector<8x8xf32> to vector<1x8x8xf32>
    tpu.vector_store %arg9[%c3_87, %c0_88, %c0_89], %149 {strides = array<i32>} : memref<4x8x8xf32, #tpu.memory_space<vmem>>, vector<1x8x8xf32>,
    %c3_90 = arith.constant 3 : index
    %c0_91 = arith.constant 0 : index
    %c0_92 = arith.constant 0 : index
    %150 = vector.load %arg7[%c3_90, %c0_91, %c0_92] : memref<4x8x1xf32, #tpu.memory_space<vmem>>, vector<1x8x1xf32>
    %151 = vector.shape_cast %150 : vector<1x8x1xf32> to vector<8x1xf32>
    %152 = vector.shape_cast %125 : vector<8x1xf32> to vector<1x8x1xf32>
    tpu.vector_store %arg7[%c3_90, %c0_91, %c0_92], %152 {strides = array<i32>} : memref<4x8x1xf32, #tpu.memory_space<vmem>>, vector<1x8x1xf32>,
    %c0_i32_93 = arith.constant 0 : i32
    %153 = arith.cmpi eq, %arg2, %c0_i32_93 : i32
    %154 = arith.extui %153 : i1 to i32
    %c0_i32_94 = arith.constant 0 : i32
    %155 = arith.cmpi ne, %154, %c0_i32_94 : i32
    scf.if %155 {
      %c0_95 = arith.constant 0 : index
      %c0_96 = arith.constant 0 : index
      %c0_97 = arith.constant 0 : index
      %156 = vector.load %arg9[%c0_95, %c0_96, %c0_97] : memref<4x8x8xf32, #tpu.memory_space<vmem>>, vector<1x8x8xf32>
      %157 = vector.shape_cast %156 : vector<1x8x8xf32> to vector<8x8xf32>
      %c0_98 = arith.constant 0 : index
      %c0_99 = arith.constant 0 : index
      %c0_100 = arith.constant 0 : index
      %158 = vector.load %arg8[%c0_98, %c0_99, %c0_100] : memref<4x8x1xf32, #tpu.memory_space<vmem>>, vector<1x8x1xf32>
      %159 = vector.shape_cast %158 : vector<1x8x1xf32> to vector<8x1xf32>
      %160 = tpu.reciprocal %159 {approx = true} : vector<8x1xf32> -> vector<8x1xf32>
      %161 = vector.broadcast %160 : vector<8x1xf32> to vector<8x8xf32>
      %162 = arith.mulf %157, %161 : vector<8x8xf32>
      %c1_101 = arith.constant 1 : index
      %c0_102 = arith.constant 0 : index
      %c0_103 = arith.constant 0 : index
      %163 = vector.load %arg9[%c1_101, %c0_102, %c0_103] : memref<4x8x8xf32, #tpu.memory_space<vmem>>, vector<1x8x8xf32>
      %164 = vector.shape_cast %163 : vector<1x8x8xf32> to vector<8x8xf32>
      %c1_104 = arith.constant 1 : index
      %c0_105 = arith.constant 0 : index
      %c0_106 = arith.constant 0 : index
      %165 = vector.load %arg8[%c1_104, %c0_105, %c0_106] : memref<4x8x1xf32, #tpu.memory_space<vmem>>, vector<1x8x1xf32>
      %166 = vector.shape_cast %165 : vector<1x8x1xf32> to vector<8x1xf32>
      %167 = tpu.reciprocal %166 {approx = true} : vector<8x1xf32> -> vector<8x1xf32>
      %168 = vector.broadcast %167 : vector<8x1xf32> to vector<8x8xf32>
      %169 = arith.mulf %164, %168 : vector<8x8xf32>
      %c2_107 = arith.constant 2 : index
      %c0_108 = arith.constant 0 : index
      %c0_109 = arith.constant 0 : index
      %170 = vector.load %arg9[%c2_107, %c0_108, %c0_109] : memref<4x8x8xf32, #tpu.memory_space<vmem>>, vector<1x8x8xf32>
      %171 = vector.shape_cast %170 : vector<1x8x8xf32> to vector<8x8xf32>
      %c2_110 = arith.constant 2 : index
      %c0_111 = arith.constant 0 : index
      %c0_112 = arith.constant 0 : index
      %172 = vector.load %arg8[%c2_110, %c0_111, %c0_112] : memref<4x8x1xf32, #tpu.memory_space<vmem>>, vector<1x8x1xf32>
      %173 = vector.shape_cast %172 : vector<1x8x1xf32> to vector<8x1xf32>
      %174 = tpu.reciprocal %173 {approx = true} : vector<8x1xf32> -> vector<8x1xf32>
      %175 = vector.broadcast %174 : vector<8x1xf32> to vector<8x8xf32>
      %176 = arith.mulf %171, %175 : vector<8x8xf32>
      %c3_113 = arith.constant 3 : index
      %c0_114 = arith.constant 0 : index
      %c0_115 = arith.constant 0 : index
      %177 = vector.load %arg9[%c3_113, %c0_114, %c0_115] : memref<4x8x8xf32, #tpu.memory_space<vmem>>, vector<1x8x8xf32>
      %178 = vector.shape_cast %177 : vector<1x8x8xf32> to vector<8x8xf32>
      %c3_116 = arith.constant 3 : index
      %c0_117 = arith.constant 0 : index
      %c0_118 = arith.constant 0 : index
      %179 = vector.load %arg8[%c3_116, %c0_117, %c0_118] : memref<4x8x1xf32, #tpu.memory_space<vmem>>, vector<1x8x1xf32>
      %180 = vector.shape_cast %179 : vector<1x8x1xf32> to vector<8x1xf32>
      %181 = tpu.reciprocal %180 {approx = true} : vector<8x1xf32> -> vector<8x1xf32>
      %182 = vector.broadcast %181 : vector<8x1xf32> to vector<8x8xf32>
      %183 = arith.mulf %178, %182 : vector<8x8xf32>
      %184 = tpu.concatenate %162, %169, %176, %183 in 1 : vector<8x8xf32>, vector<8x8xf32>, vector<8x8xf32>, vector<8x8xf32> -> vector<8x32xf32>
      %185 = arith.truncf %184 : vector<8x32xf32> to vector<8x32xbf16>
      %c0_119 = arith.constant 0 : index
      %c0_120 = arith.constant 0 : index
      %c0_121 = arith.constant 0 : index
      %186 = vector.load %arg6[%c0_119, %c0_120, %c0_121] : memref<1x8x32xbf16, #tpu.memory_space<vmem>>, vector<1x8x32xbf16>
      %187 = vector.shape_cast %186 : vector<1x8x32xbf16> to vector<8x32xbf16>
      %188 = vector.shape_cast %185 : vector<8x32xbf16> to vector<1x8x32xbf16>
      tpu.vector_store %arg6[%c0_119, %c0_120, %c0_121], %188 {strides = array<i32>} : memref<1x8x32xbf16, #tpu.memory_space<vmem>>, vector<1x8x32xbf16>,
    } else {
    }
    return
  }
  func.func @transform_0(%arg0: i32, %arg1: i32, %arg2: i32) -> (i32, i32, i32) {
    %c0_i32 = arith.constant 0 : i32
    %c0_i32_0 = arith.constant 0 : i32
    return %arg0, %arg1, %c0_i32 : i32, i32, i32
  }
  func.func @transform_1(%arg0: i32, %arg1: i32, %arg2: i32) -> (i32, i32, i32) {
    %c0_i32 = arith.constant 0 : i32
    %c0_i32_0 = arith.constant 0 : i32
    return %arg0, %arg2, %c0_i32 : i32, i32, i32
  }
  func.func @transform_2(%arg0: i32, %arg1: i32, %arg2: i32) -> (i32, i32, i32) {
    %c0_i32 = arith.constant 0 : i32
    %c0_i32_0 = arith.constant 0 : i32
    return %arg0, %arg2, %c0_i32 : i32, i32, i32
  }
  func.func @transform_3(%arg0: i32, %arg1: i32, %arg2: i32) -> (i32, i32, i32) {
    %c0_i32 = arith.constant 0 : i32
    %c0_i32_0 = arith.constant 0 : i32
    return %arg0, %arg1, %c0_i32 : i32, i32, i32
  }
}

module attributes {stable_mosaic.version = 11 : i64} {
  func.func @_linear_kernel(%arg0: i32, %arg1: i32, %arg2: i32, %arg3: memref<16x32xbf16, #tpu.memory_space<vmem>>, %arg4: memref<32x32xbf16, #tpu.memory_space<vmem>>, %arg5: memref<1x32xf32, #tpu.memory_space<vmem>>, %arg6: memref<16x32xbf16, #tpu.memory_space<vmem>>, %arg7: memref<16x32xbf16, #tpu.memory_space<vmem>>, %arg8: memref<16x32xf32, #tpu.memory_space<vmem>>) attributes {dimension_semantics = [#tpu.dimension_semantics<parallel>, #tpu.dimension_semantics<parallel>, #tpu.dimension_semantics<arbitrary>], iteration_bounds = array<i64: 1, 1, 1>, scalar_prefetch = 0 : i64, scratch_operands = 1 : i64, tpu.core_type = #tpu.core_type<tc>, window_params = [{transform_indices = @transform_0, window_bounds = array<i64: 16, 32>}, {transform_indices = @transform_1, window_bounds = array<i64: 32, 32>}, {transform_indices = @transform_2, window_bounds = array<i64: 1, 32>}, {transform_indices = @transform_3, window_bounds = array<i64: 16, 32>}, {transform_indices = @transform_4, window_bounds = array<i64: 16, 32>}]} {
    %c0_i32 = arith.constant 0 : i32
    %0 = arith.cmpi eq, %arg2, %c0_i32 : i32
    %1 = arith.extui %0 : i1 to i32
    %c0_i32_0 = arith.constant 0 : i32
    %2 = arith.cmpi ne, %1, %c0_i32_0 : i32
    scf.if %2 {
      %cst_10 = arith.constant 0.000000e+00 : f32
      %12 = vector.broadcast %cst_10 : f32 to vector<16x32xf32>
      %c0_11 = arith.constant 0 : index
      %c0_12 = arith.constant 0 : index
      %13 = vector.load %arg8[%c0_11, %c0_12] : memref<16x32xf32, #tpu.memory_space<vmem>>, vector<16x32xf32>
      tpu.vector_store %arg8[%c0_11, %c0_12], %12 {strides = array<i32>} : memref<16x32xf32, #tpu.memory_space<vmem>>, vector<16x32xf32>,
    } else {
    }
    %c0 = arith.constant 0 : index
    %c0_1 = arith.constant 0 : index
    %3 = vector.load %arg8[%c0, %c0_1] : memref<16x32xf32, #tpu.memory_space<vmem>>, vector<16x32xf32>
    %c0_2 = arith.constant 0 : index
    %c0_3 = arith.constant 0 : index
    %4 = vector.load %arg3[%c0_2, %c0_3] : memref<16x32xbf16, #tpu.memory_space<vmem>>, vector<16x32xbf16>
    %c0_4 = arith.constant 0 : index
    %c0_5 = arith.constant 0 : index
    %5 = vector.load %arg4[%c0_4, %c0_5] : memref<32x32xbf16, #tpu.memory_space<vmem>>, vector<32x32xbf16>
    %cst = arith.constant dense<0.000000e+00> : vector<16x32xf32>
    %6 = tpu.matmul %4, %5, %cst {dimension_numbers = #tpu.dot_dimension_numbers<[1], [0], [0], [1], [0, 0, 1, 1], [], []>} : vector<16x32xbf16>, vector<32x32xbf16>, vector<16x32xf32> -> vector<16x32xf32>
    %7 = arith.addf %3, %6 : vector<16x32xf32>
    %c0_6 = arith.constant 0 : index
    %c0_7 = arith.constant 0 : index
    %8 = vector.load %arg8[%c0_6, %c0_7] : memref<16x32xf32, #tpu.memory_space<vmem>>, vector<16x32xf32>
    tpu.vector_store %arg8[%c0_6, %c0_7], %7 {strides = array<i32>} : memref<16x32xf32, #tpu.memory_space<vmem>>, vector<16x32xf32>,
    %c0_i32_8 = arith.constant 0 : i32
    %9 = arith.cmpi eq, %arg2, %c0_i32_8 : i32
    %10 = arith.extui %9 : i1 to i32
    %c0_i32_9 = arith.constant 0 : i32
    %11 = arith.cmpi ne, %10, %c0_i32_9 : i32
    scf.if %11 {
      %c0_10 = arith.constant 0 : index
      %c0_11 = arith.constant 0 : index
      %12 = vector.load %arg8[%c0_10, %c0_11] : memref<16x32xf32, #tpu.memory_space<vmem>>, vector<16x32xf32>
      %c0_12 = arith.constant 0 : index
      %c0_13 = arith.constant 0 : index
      %13 = vector.load %arg5[%c0_12, %c0_13] : memref<1x32xf32, #tpu.memory_space<vmem>>, vector<1x32xf32>
      %14 = vector.broadcast %13 : vector<1x32xf32> to vector<16x32xf32>
      %15 = arith.addf %12, %14 : vector<16x32xf32>
      %c0_14 = arith.constant 0 : index
      %c0_15 = arith.constant 0 : index
      %16 = vector.load %arg6[%c0_14, %c0_15] : memref<16x32xbf16, #tpu.memory_space<vmem>>, vector<16x32xbf16>
      %17 = arith.extf %16 : vector<16x32xbf16> to vector<16x32xf32>
      %18 = arith.addf %15, %17 : vector<16x32xf32>
      %19 = arith.truncf %18 : vector<16x32xf32> to vector<16x32xbf16>
      %c0_16 = arith.constant 0 : index
      %c0_17 = arith.constant 0 : index
      %20 = vector.load %arg7[%c0_16, %c0_17] : memref<16x32xbf16, #tpu.memory_space<vmem>>, vector<16x32xbf16>
      tpu.vector_store %arg7[%c0_16, %c0_17], %19 {strides = array<i32>} : memref<16x32xbf16, #tpu.memory_space<vmem>>, vector<16x32xbf16>,
    } else {
    }
    return
  }
  func.func @transform_0(%arg0: i32, %arg1: i32, %arg2: i32) -> (i32, i32) {
    %c0_i32 = arith.constant 0 : i32
    return %arg0, %arg2 : i32, i32
  }
  func.func @transform_1(%arg0: i32, %arg1: i32, %arg2: i32) -> (i32, i32) {
    %c0_i32 = arith.constant 0 : i32
    return %arg2, %arg1 : i32, i32
  }
  func.func @transform_2(%arg0: i32, %arg1: i32, %arg2: i32) -> (i32, i32) {
    %c0_i32 = arith.constant 0 : i32
    %c0_i32_0 = arith.constant 0 : i32
    return %c0_i32, %arg1 : i32, i32
  }
  func.func @transform_3(%arg0: i32, %arg1: i32, %arg2: i32) -> (i32, i32) {
    %c0_i32 = arith.constant 0 : i32
    return %arg0, %arg1 : i32, i32
  }
  func.func @transform_4(%arg0: i32, %arg1: i32, %arg2: i32) -> (i32, i32) {
    %c0_i32 = arith.constant 0 : i32
    return %arg0, %arg1 : i32, i32
  }
}

module attributes {stable_mosaic.version = 11 : i64} {
  func.func @_ln_linear_kernel(%arg0: i32, %arg1: i32, %arg2: memref<16x32xbf16, #tpu.memory_space<vmem>>, %arg3: memref<1x32xf32, #tpu.memory_space<vmem>>, %arg4: memref<1x32xf32, #tpu.memory_space<vmem>>, %arg5: memref<32x96xbf16, #tpu.memory_space<vmem>>, %arg6: memref<16x96xbf16, #tpu.memory_space<vmem>>, %arg7: memref<16x32xbf16, #tpu.memory_space<vmem>>) attributes {dimension_semantics = [#tpu.dimension_semantics<parallel>, #tpu.dimension_semantics<arbitrary>], iteration_bounds = array<i64: 1, 1>, scalar_prefetch = 0 : i64, scratch_operands = 1 : i64, tpu.core_type = #tpu.core_type<tc>, window_params = [{transform_indices = @transform_0, window_bounds = array<i64: 16, 32>}, {pipeline_mode = #tpu.pipeline_mode<synchronous>, transform_indices = @transform_1, window_bounds = array<i64: 1, 32>}, {pipeline_mode = #tpu.pipeline_mode<synchronous>, transform_indices = @transform_2, window_bounds = array<i64: 1, 32>}, {transform_indices = @transform_3, window_bounds = array<i64: 32, 96>}, {transform_indices = @transform_4, window_bounds = array<i64: 16, 96>}]} {
    %c0_i32 = arith.constant 0 : i32
    %0 = arith.cmpi eq, %arg1, %c0_i32 : i32
    %1 = arith.extui %0 : i1 to i32
    %c0_i32_0 = arith.constant 0 : i32
    %2 = arith.cmpi ne, %1, %c0_i32_0 : i32
    scf.if %2 {
      %c0_6 = arith.constant 0 : index
      %c0_7 = arith.constant 0 : index
      %8 = vector.load %arg2[%c0_6, %c0_7] : memref<16x32xbf16, #tpu.memory_space<vmem>>, vector<16x32xbf16>
      %9 = arith.extf %8 : vector<16x32xbf16> to vector<16x32xf32>
      %cst_8 = arith.constant dense<0.000000e+00> : vector<16xf32>
      %10 = vector.multi_reduction <add>, %9, %cst_8 [1] : vector<16x32xf32> to vector<16xf32>
      %11 = vector.shape_cast %10 : vector<16xf32> to vector<16x1xf32>
      %cst_9 = arith.constant 3.200000e+01 : f32
      %12 = vector.broadcast %cst_9 : f32 to vector<16x1xf32>
      %13 = arith.divf %11, %12 : vector<16x1xf32>
      %14 = vector.broadcast %13 : vector<16x1xf32> to vector<16x32xf32>
      %15 = arith.subf %9, %14 : vector<16x32xf32>
      %16 = arith.mulf %15, %15 : vector<16x32xf32>
      %cst_10 = arith.constant dense<0.000000e+00> : vector<16xf32>
      %17 = vector.multi_reduction <add>, %16, %cst_10 [1] : vector<16x32xf32> to vector<16xf32>
      %18 = vector.shape_cast %17 : vector<16xf32> to vector<16x1xf32>
      %cst_11 = arith.constant 3.200000e+01 : f32
      %19 = vector.broadcast %cst_11 : f32 to vector<16x1xf32>
      %20 = arith.divf %18, %19 : vector<16x1xf32>
      %21 = vector.broadcast %13 : vector<16x1xf32> to vector<16x32xf32>
      %22 = arith.subf %9, %21 : vector<16x32xf32>
      %cst_12 = arith.constant 9.99999974E-6 : f32
      %23 = vector.broadcast %cst_12 : f32 to vector<16x1xf32>
      %24 = arith.addf %20, %23 : vector<16x1xf32>
      %25 = math.rsqrt %24 : vector<16x1xf32>
      %26 = vector.broadcast %25 : vector<16x1xf32> to vector<16x32xf32>
      %27 = arith.mulf %22, %26 : vector<16x32xf32>
      %c0_13 = arith.constant 0 : index
      %c0_14 = arith.constant 0 : index
      %28 = vector.load %arg3[%c0_13, %c0_14] : memref<1x32xf32, #tpu.memory_space<vmem>>, vector<1x32xf32>
      %29 = vector.broadcast %28 : vector<1x32xf32> to vector<16x32xf32>
      %30 = arith.mulf %27, %29 : vector<16x32xf32>
      %c0_15 = arith.constant 0 : index
      %c0_16 = arith.constant 0 : index
      %31 = vector.load %arg4[%c0_15, %c0_16] : memref<1x32xf32, #tpu.memory_space<vmem>>, vector<1x32xf32>
      %32 = vector.broadcast %31 : vector<1x32xf32> to vector<16x32xf32>
      %33 = arith.addf %30, %32 : vector<16x32xf32>
      %34 = arith.truncf %33 : vector<16x32xf32> to vector<16x32xbf16>
      %c0_17 = arith.constant 0 : index
      %c0_18 = arith.constant 0 : index
      %35 = vector.load %arg7[%c0_17, %c0_18] : memref<16x32xbf16, #tpu.memory_space<vmem>>, vector<16x32xbf16>
      tpu.vector_store %arg7[%c0_17, %c0_18], %34 {strides = array<i32>} : memref<16x32xbf16, #tpu.memory_space<vmem>>, vector<16x32xbf16>,
    } else {
    }
    %c0 = arith.constant 0 : index
    %c0_1 = arith.constant 0 : index
    %3 = vector.load %arg7[%c0, %c0_1] : memref<16x32xbf16, #tpu.memory_space<vmem>>, vector<16x32xbf16>
    %c0_2 = arith.constant 0 : index
    %c0_3 = arith.constant 0 : index
    %4 = vector.load %arg5[%c0_2, %c0_3] : memref<32x96xbf16, #tpu.memory_space<vmem>>, vector<32x96xbf16>
    %cst = arith.constant dense<0.000000e+00> : vector<16x96xf32>
    %5 = tpu.matmul %3, %4, %cst {dimension_numbers = #tpu.dot_dimension_numbers<[1], [0], [0], [1], [0, 0, 1, 1], [], []>} : vector<16x32xbf16>, vector<32x96xbf16>, vector<16x96xf32> -> vector<16x96xf32>
    %6 = arith.truncf %5 : vector<16x96xf32> to vector<16x96xbf16>
    %c0_4 = arith.constant 0 : index
    %c0_5 = arith.constant 0 : index
    %7 = vector.load %arg6[%c0_4, %c0_5] : memref<16x96xbf16, #tpu.memory_space<vmem>>, vector<16x96xbf16>
    tpu.vector_store %arg6[%c0_4, %c0_5], %6 {strides = array<i32>} : memref<16x96xbf16, #tpu.memory_space<vmem>>, vector<16x96xbf16>,
    return
  }
  func.func @transform_0(%arg0: i32, %arg1: i32) -> (i32, i32) {
    %c0_i32 = arith.constant 0 : i32
    %c0_i32_0 = arith.constant 0 : i32
    return %arg0, %c0_i32 : i32, i32
  }
  func.func @transform_1(%arg0: i32, %arg1: i32) -> (i32, i32) {
    %c0_i32 = arith.constant 0 : i32
    %c0_i32_0 = arith.constant 0 : i32
    %c0_i32_1 = arith.constant 0 : i32
    return %c0_i32, %c0_i32_0 : i32, i32
  }
  func.func @transform_2(%arg0: i32, %arg1: i32) -> (i32, i32) {
    %c0_i32 = arith.constant 0 : i32
    %c0_i32_0 = arith.constant 0 : i32
    %c0_i32_1 = arith.constant 0 : i32
    return %c0_i32, %c0_i32_0 : i32, i32
  }
  func.func @transform_3(%arg0: i32, %arg1: i32) -> (i32, i32) {
    %c0_i32 = arith.constant 0 : i32
    %c0_i32_0 = arith.constant 0 : i32
    return %c0_i32, %arg1 : i32, i32
  }
  func.func @transform_4(%arg0: i32, %arg1: i32) -> (i32, i32) {
    %c0_i32 = arith.constant 0 : i32
    return %arg0, %arg1 : i32, i32
  }
}

module attributes {stable_mosaic.version = 11 : i64} {
  func.func @_ln_mlp_kernel(%arg0: i32, %arg1: i32, %arg2: memref<16x32xbf16, #tpu.memory_space<vmem>>, %arg3: memref<1x32xf32, #tpu.memory_space<vmem>>, %arg4: memref<1x32xf32, #tpu.memory_space<vmem>>, %arg5: memref<32x128xbf16, #tpu.memory_space<vmem>>, %arg6: memref<1x128xf32, #tpu.memory_space<vmem>>, %arg7: memref<128x32xbf16, #tpu.memory_space<vmem>>, %arg8: memref<1x32xf32, #tpu.memory_space<vmem>>, %arg9: memref<16x32xbf16, #tpu.memory_space<vmem>>, %arg10: memref<16x32xbf16, #tpu.memory_space<vmem>>, %arg11: memref<16x32xf32, #tpu.memory_space<vmem>>) attributes {dimension_semantics = [#tpu.dimension_semantics<parallel>, #tpu.dimension_semantics<arbitrary>], iteration_bounds = array<i64: 1, 1>, scalar_prefetch = 0 : i64, scratch_operands = 2 : i64, tpu.core_type = #tpu.core_type<tc>, window_params = [{transform_indices = @transform_0, window_bounds = array<i64: 16, 32>}, {pipeline_mode = #tpu.pipeline_mode<synchronous>, transform_indices = @transform_1, window_bounds = array<i64: 1, 32>}, {pipeline_mode = #tpu.pipeline_mode<synchronous>, transform_indices = @transform_2, window_bounds = array<i64: 1, 32>}, {transform_indices = @transform_3, window_bounds = array<i64: 32, 128>}, {transform_indices = @transform_4, window_bounds = array<i64: 1, 128>}, {transform_indices = @transform_5, window_bounds = array<i64: 128, 32>}, {pipeline_mode = #tpu.pipeline_mode<synchronous>, transform_indices = @transform_6, window_bounds = array<i64: 1, 32>}, {transform_indices = @transform_7, window_bounds = array<i64: 16, 32>}]} {
    %c0_i32 = arith.constant 0 : i32
    %0 = arith.cmpi eq, %arg1, %c0_i32 : i32
    %1 = arith.extui %0 : i1 to i32
    %c0_i32_0 = arith.constant 0 : i32
    %2 = arith.cmpi ne, %1, %c0_i32_0 : i32
    scf.if %2 {
      %c0_19 = arith.constant 0 : index
      %c0_20 = arith.constant 0 : index
      %31 = vector.load %arg2[%c0_19, %c0_20] : memref<16x32xbf16, #tpu.memory_space<vmem>>, vector<16x32xbf16>
      %32 = arith.extf %31 : vector<16x32xbf16> to vector<16x32xf32>
      %cst_21 = arith.constant dense<0.000000e+00> : vector<16xf32>
      %33 = vector.multi_reduction <add>, %32, %cst_21 [1] : vector<16x32xf32> to vector<16xf32>
      %34 = vector.shape_cast %33 : vector<16xf32> to vector<16x1xf32>
      %cst_22 = arith.constant 3.200000e+01 : f32
      %35 = vector.broadcast %cst_22 : f32 to vector<16x1xf32>
      %36 = arith.divf %34, %35 : vector<16x1xf32>
      %37 = vector.broadcast %36 : vector<16x1xf32> to vector<16x32xf32>
      %38 = arith.subf %32, %37 : vector<16x32xf32>
      %39 = arith.mulf %38, %38 : vector<16x32xf32>
      %cst_23 = arith.constant dense<0.000000e+00> : vector<16xf32>
      %40 = vector.multi_reduction <add>, %39, %cst_23 [1] : vector<16x32xf32> to vector<16xf32>
      %41 = vector.shape_cast %40 : vector<16xf32> to vector<16x1xf32>
      %cst_24 = arith.constant 3.200000e+01 : f32
      %42 = vector.broadcast %cst_24 : f32 to vector<16x1xf32>
      %43 = arith.divf %41, %42 : vector<16x1xf32>
      %44 = vector.broadcast %36 : vector<16x1xf32> to vector<16x32xf32>
      %45 = arith.subf %32, %44 : vector<16x32xf32>
      %cst_25 = arith.constant 9.99999974E-6 : f32
      %46 = vector.broadcast %cst_25 : f32 to vector<16x1xf32>
      %47 = arith.addf %43, %46 : vector<16x1xf32>
      %48 = math.rsqrt %47 : vector<16x1xf32>
      %49 = vector.broadcast %48 : vector<16x1xf32> to vector<16x32xf32>
      %50 = arith.mulf %45, %49 : vector<16x32xf32>
      %c0_26 = arith.constant 0 : index
      %c0_27 = arith.constant 0 : index
      %51 = vector.load %arg3[%c0_26, %c0_27] : memref<1x32xf32, #tpu.memory_space<vmem>>, vector<1x32xf32>
      %52 = vector.broadcast %51 : vector<1x32xf32> to vector<16x32xf32>
      %53 = arith.mulf %50, %52 : vector<16x32xf32>
      %c0_28 = arith.constant 0 : index
      %c0_29 = arith.constant 0 : index
      %54 = vector.load %arg4[%c0_28, %c0_29] : memref<1x32xf32, #tpu.memory_space<vmem>>, vector<1x32xf32>
      %55 = vector.broadcast %54 : vector<1x32xf32> to vector<16x32xf32>
      %56 = arith.addf %53, %55 : vector<16x32xf32>
      %57 = arith.truncf %56 : vector<16x32xf32> to vector<16x32xbf16>
      %c0_30 = arith.constant 0 : index
      %c0_31 = arith.constant 0 : index
      %58 = vector.load %arg10[%c0_30, %c0_31] : memref<16x32xbf16, #tpu.memory_space<vmem>>, vector<16x32xbf16>
      tpu.vector_store %arg10[%c0_30, %c0_31], %57 {strides = array<i32>} : memref<16x32xbf16, #tpu.memory_space<vmem>>, vector<16x32xbf16>,
      %cst_32 = arith.constant 0.000000e+00 : f32
      %59 = vector.broadcast %cst_32 : f32 to vector<16x32xf32>
      %c0_33 = arith.constant 0 : index
      %c0_34 = arith.constant 0 : index
      %60 = vector.load %arg11[%c0_33, %c0_34] : memref<16x32xf32, #tpu.memory_space<vmem>>, vector<16x32xf32>
      tpu.vector_store %arg11[%c0_33, %c0_34], %59 {strides = array<i32>} : memref<16x32xf32, #tpu.memory_space<vmem>>, vector<16x32xf32>,
    } else {
    }
    %c0 = arith.constant 0 : index
    %c0_1 = arith.constant 0 : index
    %3 = vector.load %arg10[%c0, %c0_1] : memref<16x32xbf16, #tpu.memory_space<vmem>>, vector<16x32xbf16>
    %c0_2 = arith.constant 0 : index
    %c0_3 = arith.constant 0 : index
    %4 = vector.load %arg5[%c0_2, %c0_3] : memref<32x128xbf16, #tpu.memory_space<vmem>>, vector<32x128xbf16>
    %cst = arith.constant dense<0.000000e+00> : vector<16x128xf32>
    %5 = tpu.matmul %3, %4, %cst {dimension_numbers = #tpu.dot_dimension_numbers<[1], [0], [0], [1], [0, 0, 1, 1], [], []>} : vector<16x32xbf16>, vector<32x128xbf16>, vector<16x128xf32> -> vector<16x128xf32>
    %c0_4 = arith.constant 0 : index
    %c0_5 = arith.constant 0 : index
    %6 = vector.load %arg6[%c0_4, %c0_5] : memref<1x128xf32, #tpu.memory_space<vmem>>, vector<1x128xf32>
    %7 = vector.broadcast %6 : vector<1x128xf32> to vector<16x128xf32>
    %8 = arith.addf %5, %7 : vector<16x128xf32>
    %9 = arith.mulf %8, %8 : vector<16x128xf32>
    %10 = arith.mulf %8, %9 : vector<16x128xf32>
    %cst_6 = arith.constant 4.471500e-02 : f32
    %11 = vector.broadcast %cst_6 : f32 to vector<16x128xf32>
    %12 = arith.mulf %11, %10 : vector<16x128xf32>
    %13 = arith.addf %8, %12 : vector<16x128xf32>
    %cst_7 = arith.constant 0.797884583 : f32
    %14 = vector.broadcast %cst_7 : f32 to vector<16x128xf32>
    %15 = arith.mulf %14, %13 : vector<16x128xf32>
    %16 = math.tanh %15 : vector<16x128xf32>
    %cst_8 = arith.constant 1.000000e+00 : f32
    %17 = vector.broadcast %cst_8 : f32 to vector<16x128xf32>
    %18 = arith.addf %17, %16 : vector<16x128xf32>
    %cst_9 = arith.constant 5.000000e-01 : f32
    %19 = vector.broadcast %cst_9 : f32 to vector<16x128xf32>
    %20 = arith.mulf %19, %18 : vector<16x128xf32>
    %21 = arith.mulf %8, %20 : vector<16x128xf32>
    %c0_10 = arith.constant 0 : index
    %c0_11 = arith.constant 0 : index
    %22 = vector.load %arg11[%c0_10, %c0_11] : memref<16x32xf32, #tpu.memory_space<vmem>>, vector<16x32xf32>
    %23 = arith.truncf %21 : vector<16x128xf32> to vector<16x128xbf16>
    %c0_12 = arith.constant 0 : index
    %c0_13 = arith.constant 0 : index
    %24 = vector.load %arg7[%c0_12, %c0_13] : memref<128x32xbf16, #tpu.memory_space<vmem>>, vector<128x32xbf16>
    %cst_14 = arith.constant dense<0.000000e+00> : vector<16x32xf32>
    %25 = tpu.matmul %23, %24, %cst_14 {dimension_numbers = #tpu.dot_dimension_numbers<[1], [0], [0], [1], [0, 0, 1, 1], [], []>} : vector<16x128xbf16>, vector<128x32xbf16>, vector<16x32xf32> -> vector<16x32xf32>
    %26 = arith.addf %22, %25 : vector<16x32xf32>
    %c0_15 = arith.constant 0 : index
    %c0_16 = arith.constant 0 : index
    %27 = vector.load %arg11[%c0_15, %c0_16] : memref<16x32xf32, #tpu.memory_space<vmem>>, vector<16x32xf32>
    tpu.vector_store %arg11[%c0_15, %c0_16], %26 {strides = array<i32>} : memref<16x32xf32, #tpu.memory_space<vmem>>, vector<16x32xf32>,
    %c0_i32_17 = arith.constant 0 : i32
    %28 = arith.cmpi eq, %arg1, %c0_i32_17 : i32
    %29 = arith.extui %28 : i1 to i32
    %c0_i32_18 = arith.constant 0 : i32
    %30 = arith.cmpi ne, %29, %c0_i32_18 : i32
    scf.if %30 {
      %c0_19 = arith.constant 0 : index
      %c0_20 = arith.constant 0 : index
      %31 = vector.load %arg11[%c0_19, %c0_20] : memref<16x32xf32, #tpu.memory_space<vmem>>, vector<16x32xf32>
      %c0_21 = arith.constant 0 : index
      %c0_22 = arith.constant 0 : index
      %32 = vector.load %arg8[%c0_21, %c0_22] : memref<1x32xf32, #tpu.memory_space<vmem>>, vector<1x32xf32>
      %33 = vector.broadcast %32 : vector<1x32xf32> to vector<16x32xf32>
      %34 = arith.addf %31, %33 : vector<16x32xf32>
      %c0_23 = arith.constant 0 : index
      %c0_24 = arith.constant 0 : index
      %35 = vector.load %arg2[%c0_23, %c0_24] : memref<16x32xbf16, #tpu.memory_space<vmem>>, vector<16x32xbf16>
      %36 = arith.extf %35 : vector<16x32xbf16> to vector<16x32xf32>
      %37 = arith.addf %34, %36 : vector<16x32xf32>
      %38 = arith.truncf %37 : vector<16x32xf32> to vector<16x32xbf16>
      %c0_25 = arith.constant 0 : index
      %c0_26 = arith.constant 0 : index
      %39 = vector.load %arg9[%c0_25, %c0_26] : memref<16x32xbf16, #tpu.memory_space<vmem>>, vector<16x32xbf16>
      tpu.vector_store %arg9[%c0_25, %c0_26], %38 {strides = array<i32>} : memref<16x32xbf16, #tpu.memory_space<vmem>>, vector<16x32xbf16>,
    } else {
    }
    return
  }
  func.func @transform_0(%arg0: i32, %arg1: i32) -> (i32, i32) {
    %c0_i32 = arith.constant 0 : i32
    %c0_i32_0 = arith.constant 0 : i32
    return %arg0, %c0_i32 : i32, i32
  }
  func.func @transform_1(%arg0: i32, %arg1: i32) -> (i32, i32) {
    %c0_i32 = arith.constant 0 : i32
    %c0_i32_0 = arith.constant 0 : i32
    %c0_i32_1 = arith.constant 0 : i32
    return %c0_i32, %c0_i32_0 : i32, i32
  }
  func.func @transform_2(%arg0: i32, %arg1: i32) -> (i32, i32) {
    %c0_i32 = arith.constant 0 : i32
    %c0_i32_0 = arith.constant 0 : i32
    %c0_i32_1 = arith.constant 0 : i32
    return %c0_i32, %c0_i32_0 : i32, i32
  }
  func.func @transform_3(%arg0: i32, %arg1: i32) -> (i32, i32) {
    %c0_i32 = arith.constant 0 : i32
    %c0_i32_0 = arith.constant 0 : i32
    return %c0_i32, %arg1 : i32, i32
  }
  func.func @transform_4(%arg0: i32, %arg1: i32) -> (i32, i32) {
    %c0_i32 = arith.constant 0 : i32
    %c0_i32_0 = arith.constant 0 : i32
    return %c0_i32, %arg1 : i32, i32
  }
  func.func @transform_5(%arg0: i32, %arg1: i32) -> (i32, i32) {
    %c0_i32 = arith.constant 0 : i32
    %c0_i32_0 = arith.constant 0 : i32
    return %arg1, %c0_i32 : i32, i32
  }
  func.func @transform_6(%arg0: i32, %arg1: i32) -> (i32, i32) {
    %c0_i32 = arith.constant 0 : i32
    %c0_i32_0 = arith.constant 0 : i32
    %c0_i32_1 = arith.constant 0 : i32
    return %c0_i32, %c0_i32_0 : i32, i32
  }
  func.func @transform_7(%arg0: i32, %arg1: i32) -> (i32, i32) {
    %c0_i32 = arith.constant 0 : i32
    %c0_i32_0 = arith.constant 0 : i32
    return %arg0, %c0_i32 : i32, i32
  }
}

module attributes {stable_mosaic.version = 11 : i64} {
  func.func @_flash_attn_kernel(%arg0: i32, %arg1: i32, %arg2: i32, %arg3: memref<1x8x32xbf16, #tpu.memory_space<vmem>>, %arg4: memref<1x8x32xbf16, #tpu.memory_space<vmem>>, %arg5: memref<1x8x32xbf16, #tpu.memory_space<vmem>>, %arg6: memref<1x8x32xbf16, #tpu.memory_space<vmem>>, %arg7: memref<4x8x1xf32, #tpu.memory_space<vmem>>, %arg8: memref<4x8x1xf32, #tpu.memory_space<vmem>>, %arg9: memref<4x8x8xf32, #tpu.memory_space<vmem>>) attributes {dimension_semantics = [#tpu.dimension_semantics<parallel>, #tpu.dimension_semantics<parallel>, #tpu.dimension_semantics<arbitrary>], iteration_bounds = array<i64: 2, 1, 1>, scalar_prefetch = 0 : i64, scratch_operands = 3 : i64, tpu.core_type = #tpu.core_type<tc>, window_params = [{transform_indices = @transform_0, window_bounds = array<i64: 1, 8, 32>}, {transform_indices = @transform_1, window_bounds = array<i64: 1, 8, 32>}, {transform_indices = @transform_2, window_bounds = array<i64: 1, 8, 32>}, {transform_indices = @transform_3, window_bounds = array<i64: 1, 8, 32>}]} {
    %c0_i32 = arith.constant 0 : i32
    %0 = arith.cmpi eq, %arg2, %c0_i32 : i32
    %1 = arith.extui %0 : i1 to i32
    %c0_i32_0 = arith.constant 0 : i32
    %2 = arith.cmpi ne, %1, %c0_i32_0 : i32
    scf.if %2 {
      %cst_95 = arith.constant -1.000000e+30 : f32
      %156 = vector.broadcast %cst_95 : f32 to vector<4x8x1xf32>
      %c0_96 = arith.constant 0 : index
      %c0_97 = arith.constant 0 : index
      %c0_98 = arith.constant 0 : index
      %157 = vector.load %arg7[%c0_96, %c0_97, %c0_98] : memref<4x8x1xf32, #tpu.memory_space<vmem>>, vector<4x8x1xf32>
      tpu.vector_store %arg7[%c0_96, %c0_97, %c0_98], %156 {strides = array<i32>} : memref<4x8x1xf32, #tpu.memory_space<vmem>>, vector<4x8x1xf32>,
      %cst_99 = arith.constant 0.000000e+00 : f32
      %158 = vector.broadcast %cst_99 : f32 to vector<4x8x1xf32>
      %c0_100 = arith.constant 0 : index
      %c0_101 = arith.constant 0 : index
      %c0_102 = arith.constant 0 : index
      %159 = vector.load %arg8[%c0_100, %c0_101, %c0_102] : memref<4x8x1xf32, #tpu.memory_space<vmem>>, vector<4x8x1xf32>
      tpu.vector_store %arg8[%c0_100, %c0_101, %c0_102], %158 {strides = array<i32>} : memref<4x8x1xf32, #tpu.memory_space<vmem>>, vector<4x8x1xf32>,
      %cst_103 = arith.constant 0.000000e+00 : f32
      %160 = vector.broadcast %cst_103 : f32 to vector<4x8x8xf32>
      %c0_104 = arith.constant 0 : index
      %c0_105 = arith.constant 0 : index
      %c0_106 = arith.constant 0 : index
      %161 = vector.load %arg9[%c0_104, %c0_105, %c0_106] : memref<4x8x8xf32, #tpu.memory_space<vmem>>, vector<4x8x8xf32>
      tpu.vector_store %arg9[%c0_104, %c0_105, %c0_106], %160 {strides = array<i32>} : memref<4x8x8xf32, #tpu.memory_space<vmem>>, vector<4x8x8xf32>,
    } else {
    }
    %c0 = arith.constant 0 : index
    %c0_1 = arith.constant 0 : index
    %c0_2 = arith.constant 0 : index
    %3 = vector.load %arg3[%c0, %c0_1, %c0_2] : memref<1x8x32xbf16, #tpu.memory_space<vmem>>, vector<1x8x32xbf16>
    %4 = vector.shape_cast %3 : vector<1x8x32xbf16> to vector<8x32xbf16>
    %c0_3 = arith.constant 0 : index
    %c0_4 = arith.constant 0 : index
    %c0_5 = arith.constant 0 : index
    %5 = vector.load %arg4[%c0_3, %c0_4, %c0_5] : memref<1x8x32xbf16, #tpu.memory_space<vmem>>, vector<1x8x32xbf16>
    %6 = vector.shape_cast %5 : vector<1x8x32xbf16> to vector<8x32xbf16>
    %c0_6 = arith.constant 0 : index
    %c0_7 = arith.constant 0 : index
    %c0_8 = arith.constant 0 : index
    %7 = vector.load %arg5[%c0_6, %c0_7, %c0_8] : memref<1x8x32xbf16, #tpu.memory_space<vmem>>, vector<1x8x32xbf16>
    %8 = vector.shape_cast %7 : vector<1x8x32xbf16> to vector<8x32xbf16>
    %9 = vector.extract_strided_slice %4 {offsets = [0, 0], sizes = [8, 8], strides = [1, 1]} : vector<8x32xbf16> to vector<8x8xbf16>
    %10 = vector.extract_strided_slice %6 {offsets = [0, 0], sizes = [8, 8], strides = [1, 1]} : vector<8x32xbf16> to vector<8x8xbf16>
    %11 = vector.extract_strided_slice %8 {offsets = [0, 0], sizes = [8, 8], strides = [1, 1]} : vector<8x32xbf16> to vector<8x8xbf16>
    %cst = arith.constant dense<0.000000e+00> : vector<8x8xf32>
    %12 = tpu.matmul %9, %10, %cst {dimension_numbers = #tpu.dot_dimension_numbers<[1], [1], [0], [0], [0, 0, 1, 0], [], []>} : vector<8x8xbf16>, vector<8x8xbf16>, vector<8x8xf32> -> vector<8x8xf32>
    %c0_9 = arith.constant 0 : index
    %c0_10 = arith.constant 0 : index
    %c0_11 = arith.constant 0 : index
    %13 = vector.load %arg7[%c0_9, %c0_10, %c0_11] : memref<4x8x1xf32, #tpu.memory_space<vmem>>, vector<1x8x1xf32>
    %14 = vector.shape_cast %13 : vector<1x8x1xf32> to vector<8x1xf32>
    %cst_12 = arith.constant dense<0xFF800000> : vector<8xf32>
    %15 = vector.multi_reduction <maximumf>, %12, %cst_12 [1] : vector<8x8xf32> to vector<8xf32>
    %16 = vector.shape_cast %15 : vector<8xf32> to vector<8x1xf32>
    %17 = arith.maximumf %14, %16 : vector<8x1xf32>
    %18 = arith.subf %14, %17 : vector<8x1xf32>
    %19 = math.exp %18 : vector<8x1xf32>
    %20 = vector.broadcast %17 : vector<8x1xf32> to vector<8x8xf32>
    %21 = arith.subf %12, %20 : vector<8x8xf32>
    %22 = math.exp %21 : vector<8x8xf32>
    %c0_13 = arith.constant 0 : index
    %c0_14 = arith.constant 0 : index
    %c0_15 = arith.constant 0 : index
    %23 = vector.load %arg8[%c0_13, %c0_14, %c0_15] : memref<4x8x1xf32, #tpu.memory_space<vmem>>, vector<1x8x1xf32>
    %24 = vector.shape_cast %23 : vector<1x8x1xf32> to vector<8x1xf32>
    %25 = arith.mulf %19, %24 : vector<8x1xf32>
    %cst_16 = arith.constant dense<0.000000e+00> : vector<8xf32>
    %26 = vector.multi_reduction <add>, %22, %cst_16 [1] : vector<8x8xf32> to vector<8xf32>
    %27 = vector.shape_cast %26 : vector<8xf32> to vector<8x1xf32>
    %28 = arith.addf %25, %27 : vector<8x1xf32>
    %c0_17 = arith.constant 0 : index
    %c0_18 = arith.constant 0 : index
    %c0_19 = arith.constant 0 : index
    %29 = vector.load %arg8[%c0_17, %c0_18, %c0_19] : memref<4x8x1xf32, #tpu.memory_space<vmem>>, vector<1x8x1xf32>
    %30 = vector.shape_cast %29 : vector<1x8x1xf32> to vector<8x1xf32>
    %31 = vector.shape_cast %28 : vector<8x1xf32> to vector<1x8x1xf32>
    tpu.vector_store %arg8[%c0_17, %c0_18, %c0_19], %31 {strides = array<i32>} : memref<4x8x1xf32, #tpu.memory_space<vmem>>, vector<1x8x1xf32>,
    %c0_20 = arith.constant 0 : index
    %c0_21 = arith.constant 0 : index
    %c0_22 = arith.constant 0 : index
    %32 = vector.load %arg9[%c0_20, %c0_21, %c0_22] : memref<4x8x8xf32, #tpu.memory_space<vmem>>, vector<1x8x8xf32>
    %33 = vector.shape_cast %32 : vector<1x8x8xf32> to vector<8x8xf32>
    %34 = vector.broadcast %19 : vector<8x1xf32> to vector<8x8xf32>
    %35 = arith.mulf %34, %33 : vector<8x8xf32>
    %36 = arith.truncf %22 : vector<8x8xf32> to vector<8x8xbf16>
    %cst_23 = arith.constant dense<0.000000e+00> : vector<8x8xf32>
    %37 = tpu.matmul %36, %11, %cst_23 {dimension_numbers = #tpu.dot_dimension_numbers<[1], [0], [0], [1], [0, 0, 1, 1], [], []>} : vector<8x8xbf16>, vector<8x8xbf16>, vector<8x8xf32> -> vector<8x8xf32>
    %38 = arith.addf %35, %37 : vector<8x8xf32>
    %c0_24 = arith.constant 0 : index
    %c0_25 = arith.constant 0 : index
    %c0_26 = arith.constant 0 : index
    %39 = vector.load %arg9[%c0_24, %c0_25, %c0_26] : memref<4x8x8xf32, #tpu.memory_space<vmem>>, vector<1x8x8xf32>
    %40 = vector.shape_cast %39 : vector<1x8x8xf32> to vector<8x8xf32>
    %41 = vector.shape_cast %38 : vector<8x8xf32> to vector<1x8x8xf32>
    tpu.vector_store %arg9[%c0_24, %c0_25, %c0_26], %41 {strides = array<i32>} : memref<4x8x8xf32, #tpu.memory_space<vmem>>, vector<1x8x8xf32>,
    %c0_27 = arith.constant 0 : index
    %c0_28 = arith.constant 0 : index
    %c0_29 = arith.constant 0 : index
    %42 = vector.load %arg7[%c0_27, %c0_28, %c0_29] : memref<4x8x1xf32, #tpu.memory_space<vmem>>, vector<1x8x1xf32>
    %43 = vector.shape_cast %42 : vector<1x8x1xf32> to vector<8x1xf32>
    %44 = vector.shape_cast %17 : vector<8x1xf32> to vector<1x8x1xf32>
    tpu.vector_store %arg7[%c0_27, %c0_28, %c0_29], %44 {strides = array<i32>} : memref<4x8x1xf32, #tpu.memory_space<vmem>>, vector<1x8x1xf32>,
    %45 = vector.extract_strided_slice %4 {offsets = [0, 8], sizes = [8, 8], strides = [1, 1]} : vector<8x32xbf16> to vector<8x8xbf16>
    %46 = vector.extract_strided_slice %6 {offsets = [0, 8], sizes = [8, 8], strides = [1, 1]} : vector<8x32xbf16> to vector<8x8xbf16>
    %47 = vector.extract_strided_slice %8 {offsets = [0, 8], sizes = [8, 8], strides = [1, 1]} : vector<8x32xbf16> to vector<8x8xbf16>
    %cst_30 = arith.constant dense<0.000000e+00> : vector<8x8xf32>
    %48 = tpu.matmul %45, %46, %cst_30 {dimension_numbers = #tpu.dot_dimension_numbers<[1], [1], [0], [0], [0, 0, 1, 0], [], []>} : vector<8x8xbf16>, vector<8x8xbf16>, vector<8x8xf32> -> vector<8x8xf32>
    %c1 = arith.constant 1 : index
    %c0_31 = arith.constant 0 : index
    %c0_32 = arith.constant 0 : index
    %49 = vector.load %arg7[%c1, %c0_31, %c0_32] : memref<4x8x1xf32, #tpu.memory_space<vmem>>, vector<1x8x1xf32>
    %50 = vector.shape_cast %49 : vector<1x8x1xf32> to vector<8x1xf32>
    %cst_33 = arith.constant dense<0xFF800000> : vector<8xf32>
    %51 = vector.multi_reduction <maximumf>, %48, %cst_33 [1] : vector<8x8xf32> to vector<8xf32>
    %52 = vector.shape_cast %51 : vector<8xf32> to vector<8x1xf32>
    %53 = arith.maximumf %50, %52 : vector<8x1xf32>
    %54 = arith.subf %50, %53 : vector<8x1xf32>
    %55 = math.exp %54 : vector<8x1xf32>
    %56 = vector.broadcast %53 : vector<8x1xf32> to vector<8x8xf32>
    %57 = arith.subf %48, %56 : vector<8x8xf32>
    %58 = math.exp %57 : vector<8x8xf32>
    %c1_34 = arith.constant 1 : index
    %c0_35 = arith.constant 0 : index
    %c0_36 = arith.constant 0 : index
    %59 = vector.load %arg8[%c1_34, %c0_35, %c0_36] : memref<4x8x1xf32, #tpu.memory_space<vmem>>, vector<1x8x1xf32>
    %60 = vector.shape_cast %59 : vector<1x8x1xf32> to vector<8x1xf32>
    %61 = arith.mulf %55, %60 : vector<8x1xf32>
    %cst_37 = arith.constant dense<0.000000e+00> : vector<8xf32>
    %62 = vector.multi_reduction <add>, %58, %cst_37 [1] : vector<8x8xf32> to vector<8xf32>
    %63 = vector.shape_cast %62 : vector<8xf32> to vector<8x1xf32>
    %64 = arith.addf %61, %63 : vector<8x1xf32>
    %c1_38 = arith.constant 1 : index
    %c0_39 = arith.constant 0 : index
    %c0_40 = arith.constant 0 : index
    %65 = vector.load %arg8[%c1_38, %c0_39, %c0_40] : memref<4x8x1xf32, #tpu.memory_space<vmem>>, vector<1x8x1xf32>
    %66 = vector.shape_cast %65 : vector<1x8x1xf32> to vector<8x1xf32>
    %67 = vector.shape_cast %64 : vector<8x1xf32> to vector<1x8x1xf32>
    tpu.vector_store %arg8[%c1_38, %c0_39, %c0_40], %67 {strides = array<i32>} : memref<4x8x1xf32, #tpu.memory_space<vmem>>, vector<1x8x1xf32>,
    %c1_41 = arith.constant 1 : index
    %c0_42 = arith.constant 0 : index
    %c0_43 = arith.constant 0 : index
    %68 = vector.load %arg9[%c1_41, %c0_42, %c0_43] : memref<4x8x8xf32, #tpu.memory_space<vmem>>, vector<1x8x8xf32>
    %69 = vector.shape_cast %68 : vector<1x8x8xf32> to vector<8x8xf32>
    %70 = vector.broadcast %55 : vector<8x1xf32> to vector<8x8xf32>
    %71 = arith.mulf %70, %69 : vector<8x8xf32>
    %72 = arith.truncf %58 : vector<8x8xf32> to vector<8x8xbf16>
    %cst_44 = arith.constant dense<0.000000e+00> : vector<8x8xf32>
    %73 = tpu.matmul %72, %47, %cst_44 {dimension_numbers = #tpu.dot_dimension_numbers<[1], [0], [0], [1], [0, 0, 1, 1], [], []>} : vector<8x8xbf16>, vector<8x8xbf16>, vector<8x8xf32> -> vector<8x8xf32>
    %74 = arith.addf %71, %73 : vector<8x8xf32>
    %c1_45 = arith.constant 1 : index
    %c0_46 = arith.constant 0 : index
    %c0_47 = arith.constant 0 : index
    %75 = vector.load %arg9[%c1_45, %c0_46, %c0_47] : memref<4x8x8xf32, #tpu.memory_space<vmem>>, vector<1x8x8xf32>
    %76 = vector.shape_cast %75 : vector<1x8x8xf32> to vector<8x8xf32>
    %77 = vector.shape_cast %74 : vector<8x8xf32> to vector<1x8x8xf32>
    tpu.vector_store %arg9[%c1_45, %c0_46, %c0_47], %77 {strides = array<i32>} : memref<4x8x8xf32, #tpu.memory_space<vmem>>, vector<1x8x8xf32>,
    %c1_48 = arith.constant 1 : index
    %c0_49 = arith.constant 0 : index
    %c0_50 = arith.constant 0 : index
    %78 = vector.load %arg7[%c1_48, %c0_49, %c0_50] : memref<4x8x1xf32, #tpu.memory_space<vmem>>, vector<1x8x1xf32>
    %79 = vector.shape_cast %78 : vector<1x8x1xf32> to vector<8x1xf32>
    %80 = vector.shape_cast %53 : vector<8x1xf32> to vector<1x8x1xf32>
    tpu.vector_store %arg7[%c1_48, %c0_49, %c0_50], %80 {strides = array<i32>} : memref<4x8x1xf32, #tpu.memory_space<vmem>>, vector<1x8x1xf32>,
    %81 = vector.extract_strided_slice %4 {offsets = [0, 16], sizes = [8, 8], strides = [1, 1]} : vector<8x32xbf16> to vector<8x8xbf16>
    %82 = vector.extract_strided_slice %6 {offsets = [0, 16], sizes = [8, 8], strides = [1, 1]} : vector<8x32xbf16> to vector<8x8xbf16>
    %83 = vector.extract_strided_slice %8 {offsets = [0, 16], sizes = [8, 8], strides = [1, 1]} : vector<8x32xbf16> to vector<8x8xbf16>
    %cst_51 = arith.constant dense<0.000000e+00> : vector<8x8xf32>
    %84 = tpu.matmul %81, %82, %cst_51 {dimension_numbers = #tpu.dot_dimension_numbers<[1], [1], [0], [0], [0, 0, 1, 0], [], []>} : vector<8x8xbf16>, vector<8x8xbf16>, vector<8x8xf32> -> vector<8x8xf32>
    %c2 = arith.constant 2 : index
    %c0_52 = arith.constant 0 : index
    %c0_53 = arith.constant 0 : index
    %85 = vector.load %arg7[%c2, %c0_52, %c0_53] : memref<4x8x1xf32, #tpu.memory_space<vmem>>, vector<1x8x1xf32>
    %86 = vector.shape_cast %85 : vector<1x8x1xf32> to vector<8x1xf32>
    %cst_54 = arith.constant dense<0xFF800000> : vector<8xf32>
    %87 = vector.multi_reduction <maximumf>, %84, %cst_54 [1] : vector<8x8xf32> to vector<8xf32>
    %88 = vector.shape_cast %87 : vector<8xf32> to vector<8x1xf32>
    %89 = arith.maximumf %86, %88 : vector<8x1xf32>
    %90 = arith.subf %86, %89 : vector<8x1xf32>
    %91 = math.exp %90 : vector<8x1xf32>
    %92 = vector.broadcast %89 : vector<8x1xf32> to vector<8x8xf32>
    %93 = arith.subf %84, %92 : vector<8x8xf32>
    %94 = math.exp %93 : vector<8x8xf32>
    %c2_55 = arith.constant 2 : index
    %c0_56 = arith.constant 0 : index
    %c0_57 = arith.constant 0 : index
    %95 = vector.load %arg8[%c2_55, %c0_56, %c0_57] : memref<4x8x1xf32, #tpu.memory_space<vmem>>, vector<1x8x1xf32>
    %96 = vector.shape_cast %95 : vector<1x8x1xf32> to vector<8x1xf32>
    %97 = arith.mulf %91, %96 : vector<8x1xf32>
    %cst_58 = arith.constant dense<0.000000e+00> : vector<8xf32>
    %98 = vector.multi_reduction <add>, %94, %cst_58 [1] : vector<8x8xf32> to vector<8xf32>
    %99 = vector.shape_cast %98 : vector<8xf32> to vector<8x1xf32>
    %100 = arith.addf %97, %99 : vector<8x1xf32>
    %c2_59 = arith.constant 2 : index
    %c0_60 = arith.constant 0 : index
    %c0_61 = arith.constant 0 : index
    %101 = vector.load %arg8[%c2_59, %c0_60, %c0_61] : memref<4x8x1xf32, #tpu.memory_space<vmem>>, vector<1x8x1xf32>
    %102 = vector.shape_cast %101 : vector<1x8x1xf32> to vector<8x1xf32>
    %103 = vector.shape_cast %100 : vector<8x1xf32> to vector<1x8x1xf32>
    tpu.vector_store %arg8[%c2_59, %c0_60, %c0_61], %103 {strides = array<i32>} : memref<4x8x1xf32, #tpu.memory_space<vmem>>, vector<1x8x1xf32>,
    %c2_62 = arith.constant 2 : index
    %c0_63 = arith.constant 0 : index
    %c0_64 = arith.constant 0 : index
    %104 = vector.load %arg9[%c2_62, %c0_63, %c0_64] : memref<4x8x8xf32, #tpu.memory_space<vmem>>, vector<1x8x8xf32>
    %105 = vector.shape_cast %104 : vector<1x8x8xf32> to vector<8x8xf32>
    %106 = vector.broadcast %91 : vector<8x1xf32> to vector<8x8xf32>
    %107 = arith.mulf %106, %105 : vector<8x8xf32>
    %108 = arith.truncf %94 : vector<8x8xf32> to vector<8x8xbf16>
    %cst_65 = arith.constant dense<0.000000e+00> : vector<8x8xf32>
    %109 = tpu.matmul %108, %83, %cst_65 {dimension_numbers = #tpu.dot_dimension_numbers<[1], [0], [0], [1], [0, 0, 1, 1], [], []>} : vector<8x8xbf16>, vector<8x8xbf16>, vector<8x8xf32> -> vector<8x8xf32>
    %110 = arith.addf %107, %109 : vector<8x8xf32>
    %c2_66 = arith.constant 2 : index
    %c0_67 = arith.constant 0 : index
    %c0_68 = arith.constant 0 : index
    %111 = vector.load %arg9[%c2_66, %c0_67, %c0_68] : memref<4x8x8xf32, #tpu.memory_space<vmem>>, vector<1x8x8xf32>
    %112 = vector.shape_cast %111 : vector<1x8x8xf32> to vector<8x8xf32>
    %113 = vector.shape_cast %110 : vector<8x8xf32> to vector<1x8x8xf32>
    tpu.vector_store %arg9[%c2_66, %c0_67, %c0_68], %113 {strides = array<i32>} : memref<4x8x8xf32, #tpu.memory_space<vmem>>, vector<1x8x8xf32>,
    %c2_69 = arith.constant 2 : index
    %c0_70 = arith.constant 0 : index
    %c0_71 = arith.constant 0 : index
    %114 = vector.load %arg7[%c2_69, %c0_70, %c0_71] : memref<4x8x1xf32, #tpu.memory_space<vmem>>, vector<1x8x1xf32>
    %115 = vector.shape_cast %114 : vector<1x8x1xf32> to vector<8x1xf32>
    %116 = vector.shape_cast %89 : vector<8x1xf32> to vector<1x8x1xf32>
    tpu.vector_store %arg7[%c2_69, %c0_70, %c0_71], %116 {strides = array<i32>} : memref<4x8x1xf32, #tpu.memory_space<vmem>>, vector<1x8x1xf32>,
    %117 = vector.extract_strided_slice %4 {offsets = [0, 24], sizes = [8, 8], strides = [1, 1]} : vector<8x32xbf16> to vector<8x8xbf16>
    %118 = vector.extract_strided_slice %6 {offsets = [0, 24], sizes = [8, 8], strides = [1, 1]} : vector<8x32xbf16> to vector<8x8xbf16>
    %119 = vector.extract_strided_slice %8 {offsets = [0, 24], sizes = [8, 8], strides = [1, 1]} : vector<8x32xbf16> to vector<8x8xbf16>
    %cst_72 = arith.constant dense<0.000000e+00> : vector<8x8xf32>
    %120 = tpu.matmul %117, %118, %cst_72 {dimension_numbers = #tpu.dot_dimension_numbers<[1], [1], [0], [0], [0, 0, 1, 0], [], []>} : vector<8x8xbf16>, vector<8x8xbf16>, vector<8x8xf32> -> vector<8x8xf32>
    %c3 = arith.constant 3 : index
    %c0_73 = arith.constant 0 : index
    %c0_74 = arith.constant 0 : index
    %121 = vector.load %arg7[%c3, %c0_73, %c0_74] : memref<4x8x1xf32, #tpu.memory_space<vmem>>, vector<1x8x1xf32>
    %122 = vector.shape_cast %121 : vector<1x8x1xf32> to vector<8x1xf32>
    %cst_75 = arith.constant dense<0xFF800000> : vector<8xf32>
    %123 = vector.multi_reduction <maximumf>, %120, %cst_75 [1] : vector<8x8xf32> to vector<8xf32>
    %124 = vector.shape_cast %123 : vector<8xf32> to vector<8x1xf32>
    %125 = arith.maximumf %122, %124 : vector<8x1xf32>
    %126 = arith.subf %122, %125 : vector<8x1xf32>
    %127 = math.exp %126 : vector<8x1xf32>
    %128 = vector.broadcast %125 : vector<8x1xf32> to vector<8x8xf32>
    %129 = arith.subf %120, %128 : vector<8x8xf32>
    %130 = math.exp %129 : vector<8x8xf32>
    %c3_76 = arith.constant 3 : index
    %c0_77 = arith.constant 0 : index
    %c0_78 = arith.constant 0 : index
    %131 = vector.load %arg8[%c3_76, %c0_77, %c0_78] : memref<4x8x1xf32, #tpu.memory_space<vmem>>, vector<1x8x1xf32>
    %132 = vector.shape_cast %131 : vector<1x8x1xf32> to vector<8x1xf32>
    %133 = arith.mulf %127, %132 : vector<8x1xf32>
    %cst_79 = arith.constant dense<0.000000e+00> : vector<8xf32>
    %134 = vector.multi_reduction <add>, %130, %cst_79 [1] : vector<8x8xf32> to vector<8xf32>
    %135 = vector.shape_cast %134 : vector<8xf32> to vector<8x1xf32>
    %136 = arith.addf %133, %135 : vector<8x1xf32>
    %c3_80 = arith.constant 3 : index
    %c0_81 = arith.constant 0 : index
    %c0_82 = arith.constant 0 : index
    %137 = vector.load %arg8[%c3_80, %c0_81, %c0_82] : memref<4x8x1xf32, #tpu.memory_space<vmem>>, vector<1x8x1xf32>
    %138 = vector.shape_cast %137 : vector<1x8x1xf32> to vector<8x1xf32>
    %139 = vector.shape_cast %136 : vector<8x1xf32> to vector<1x8x1xf32>
    tpu.vector_store %arg8[%c3_80, %c0_81, %c0_82], %139 {strides = array<i32>} : memref<4x8x1xf32, #tpu.memory_space<vmem>>, vector<1x8x1xf32>,
    %c3_83 = arith.constant 3 : index
    %c0_84 = arith.constant 0 : index
    %c0_85 = arith.constant 0 : index
    %140 = vector.load %arg9[%c3_83, %c0_84, %c0_85] : memref<4x8x8xf32, #tpu.memory_space<vmem>>, vector<1x8x8xf32>
    %141 = vector.shape_cast %140 : vector<1x8x8xf32> to vector<8x8xf32>
    %142 = vector.broadcast %127 : vector<8x1xf32> to vector<8x8xf32>
    %143 = arith.mulf %142, %141 : vector<8x8xf32>
    %144 = arith.truncf %130 : vector<8x8xf32> to vector<8x8xbf16>
    %cst_86 = arith.constant dense<0.000000e+00> : vector<8x8xf32>
    %145 = tpu.matmul %144, %119, %cst_86 {dimension_numbers = #tpu.dot_dimension_numbers<[1], [0], [0], [1], [0, 0, 1, 1], [], []>} : vector<8x8xbf16>, vector<8x8xbf16>, vector<8x8xf32> -> vector<8x8xf32>
    %146 = arith.addf %143, %145 : vector<8x8xf32>
    %c3_87 = arith.constant 3 : index
    %c0_88 = arith.constant 0 : index
    %c0_89 = arith.constant 0 : index
    %147 = vector.load %arg9[%c3_87, %c0_88, %c0_89] : memref<4x8x8xf32, #tpu.memory_space<vmem>>, vector<1x8x8xf32>
    %148 = vector.shape_cast %147 : vector<1x8x8xf32> to vector<8x8xf32>
    %149 = vector.shape_cast %146 : vector<8x8xf32> to vector<1x8x8xf32>
    tpu.vector_store %arg9[%c3_87, %c0_88, %c0_89], %149 {strides = array<i32>} : memref<4x8x8xf32, #tpu.memory_space<vmem>>, vector<1x8x8xf32>,
    %c3_90 = arith.constant 3 : index
    %c0_91 = arith.constant 0 : index
    %c0_92 = arith.constant 0 : index
    %150 = vector.load %arg7[%c3_90, %c0_91, %c0_92] : memref<4x8x1xf32, #tpu.memory_space<vmem>>, vector<1x8x1xf32>
    %151 = vector.shape_cast %150 : vector<1x8x1xf32> to vector<8x1xf32>
    %152 = vector.shape_cast %125 : vector<8x1xf32> to vector<1x8x1xf32>
    tpu.vector_store %arg7[%c3_90, %c0_91, %c0_92], %152 {strides = array<i32>} : memref<4x8x1xf32, #tpu.memory_space<vmem>>, vector<1x8x1xf32>,
    %c0_i32_93 = arith.constant 0 : i32
    %153 = arith.cmpi eq, %arg2, %c0_i32_93 : i32
    %154 = arith.extui %153 : i1 to i32
    %c0_i32_94 = arith.constant 0 : i32
    %155 = arith.cmpi ne, %154, %c0_i32_94 : i32
    scf.if %155 {
      %c0_95 = arith.constant 0 : index
      %c0_96 = arith.constant 0 : index
      %c0_97 = arith.constant 0 : index
      %156 = vector.load %arg9[%c0_95, %c0_96, %c0_97] : memref<4x8x8xf32, #tpu.memory_space<vmem>>, vector<1x8x8xf32>
      %157 = vector.shape_cast %156 : vector<1x8x8xf32> to vector<8x8xf32>
      %c0_98 = arith.constant 0 : index
      %c0_99 = arith.constant 0 : index
      %c0_100 = arith.constant 0 : index
      %158 = vector.load %arg8[%c0_98, %c0_99, %c0_100] : memref<4x8x1xf32, #tpu.memory_space<vmem>>, vector<1x8x1xf32>
      %159 = vector.shape_cast %158 : vector<1x8x1xf32> to vector<8x1xf32>
      %160 = tpu.reciprocal %159 {approx = true} : vector<8x1xf32> -> vector<8x1xf32>
      %161 = vector.broadcast %160 : vector<8x1xf32> to vector<8x8xf32>
      %162 = arith.mulf %157, %161 : vector<8x8xf32>
      %c1_101 = arith.constant 1 : index
      %c0_102 = arith.constant 0 : index
      %c0_103 = arith.constant 0 : index
      %163 = vector.load %arg9[%c1_101, %c0_102, %c0_103] : memref<4x8x8xf32, #tpu.memory_space<vmem>>, vector<1x8x8xf32>
      %164 = vector.shape_cast %163 : vector<1x8x8xf32> to vector<8x8xf32>
      %c1_104 = arith.constant 1 : index
      %c0_105 = arith.constant 0 : index
      %c0_106 = arith.constant 0 : index
      %165 = vector.load %arg8[%c1_104, %c0_105, %c0_106] : memref<4x8x1xf32, #tpu.memory_space<vmem>>, vector<1x8x1xf32>
      %166 = vector.shape_cast %165 : vector<1x8x1xf32> to vector<8x1xf32>
      %167 = tpu.reciprocal %166 {approx = true} : vector<8x1xf32> -> vector<8x1xf32>
      %168 = vector.broadcast %167 : vector<8x1xf32> to vector<8x8xf32>
      %169 = arith.mulf %164, %168 : vector<8x8xf32>
      %c2_107 = arith.constant 2 : index
      %c0_108 = arith.constant 0 : index
      %c0_109 = arith.constant 0 : index
      %170 = vector.load %arg9[%c2_107, %c0_108, %c0_109] : memref<4x8x8xf32, #tpu.memory_space<vmem>>, vector<1x8x8xf32>
      %171 = vector.shape_cast %170 : vector<1x8x8xf32> to vector<8x8xf32>
      %c2_110 = arith.constant 2 : index
      %c0_111 = arith.constant 0 : index
      %c0_112 = arith.constant 0 : index
      %172 = vector.load %arg8[%c2_110, %c0_111, %c0_112] : memref<4x8x1xf32, #tpu.memory_space<vmem>>, vector<1x8x1xf32>
      %173 = vector.shape_cast %172 : vector<1x8x1xf32> to vector<8x1xf32>
      %174 = tpu.reciprocal %173 {approx = true} : vector<8x1xf32> -> vector<8x1xf32>
      %175 = vector.broadcast %174 : vector<8x1xf32> to vector<8x8xf32>
      %176 = arith.mulf %171, %175 : vector<8x8xf32>
      %c3_113 = arith.constant 3 : index
      %c0_114 = arith.constant 0 : index
      %c0_115 = arith.constant 0 : index
      %177 = vector.load %arg9[%c3_113, %c0_114, %c0_115] : memref<4x8x8xf32, #tpu.memory_space<vmem>>, vector<1x8x8xf32>
      %178 = vector.shape_cast %177 : vector<1x8x8xf32> to vector<8x8xf32>
      %c3_116 = arith.constant 3 : index
      %c0_117 = arith.constant 0 : index
      %c0_118 = arith.constant 0 : index
      %179 = vector.load %arg8[%c3_116, %c0_117, %c0_118] : memref<4x8x1xf32, #tpu.memory_space<vmem>>, vector<1x8x1xf32>
      %180 = vector.shape_cast %179 : vector<1x8x1xf32> to vector<8x1xf32>
      %181 = tpu.reciprocal %180 {approx = true} : vector<8x1xf32> -> vector<8x1xf32>
      %182 = vector.broadcast %181 : vector<8x1xf32> to vector<8x8xf32>
      %183 = arith.mulf %178, %182 : vector<8x8xf32>
      %184 = tpu.concatenate %162, %169, %176, %183 in 1 : vector<8x8xf32>, vector<8x8xf32>, vector<8x8xf32>, vector<8x8xf32> -> vector<8x32xf32>
      %185 = arith.truncf %184 : vector<8x32xf32> to vector<8x32xbf16>
      %c0_119 = arith.constant 0 : index
      %c0_120 = arith.constant 0 : index
      %c0_121 = arith.constant 0 : index
      %186 = vector.load %arg6[%c0_119, %c0_120, %c0_121] : memref<1x8x32xbf16, #tpu.memory_space<vmem>>, vector<1x8x32xbf16>
      %187 = vector.shape_cast %186 : vector<1x8x32xbf16> to vector<8x32xbf16>
      %188 = vector.shape_cast %185 : vector<8x32xbf16> to vector<1x8x32xbf16>
      tpu.vector_store %arg6[%c0_119, %c0_120, %c0_121], %188 {strides = array<i32>} : memref<1x8x32xbf16, #tpu.memory_space<vmem>>, vector<1x8x32xbf16>,
    } else {
    }
    return
  }
  func.func @transform_0(%arg0: i32, %arg1: i32, %arg2: i32) -> (i32, i32, i32) {
    %c0_i32 = arith.constant 0 : i32
    %c0_i32_0 = arith.constant 0 : i32
    return %arg0, %arg1, %c0_i32 : i32, i32, i32
  }
  func.func @transform_1(%arg0: i32, %arg1: i32, %arg2: i32) -> (i32, i32, i32) {
    %c0_i32 = arith.constant 0 : i32
    %c0_i32_0 = arith.constant 0 : i32
    return %arg0, %arg2, %c0_i32 : i32, i32, i32
  }
  func.func @transform_2(%arg0: i32, %arg1: i32, %arg2: i32) -> (i32, i32, i32) {
    %c0_i32 = arith.constant 0 : i32
    %c0_i32_0 = arith.constant 0 : i32
    return %arg0, %arg2, %c0_i32 : i32, i32, i32
  }
  func.func @transform_3(%arg0: i32, %arg1: i32, %arg2: i32) -> (i32, i32, i32) {
    %c0_i32 = arith.constant 0 : i32
    %c0_i32_0 = arith.constant 0 : i32
    return %arg0, %arg1, %c0_i32 : i32, i32, i32
  }
}

module attributes {stable_mosaic.version = 11 : i64} {
  func.func @_ln_linear_kernel(%arg0: i32, %arg1: i32, %arg2: memref<16x32xbf16, #tpu.memory_space<vmem>>, %arg3: memref<1x32xf32, #tpu.memory_space<vmem>>, %arg4: memref<1x32xf32, #tpu.memory_space<vmem>>, %arg5: memref<32x32xbf16, #tpu.memory_space<vmem>>, %arg6: memref<1x32xf32, #tpu.memory_space<vmem>>, %arg7: memref<16x32xf32, #tpu.memory_space<vmem>>, %arg8: memref<16x32xbf16, #tpu.memory_space<vmem>>) attributes {dimension_semantics = [#tpu.dimension_semantics<parallel>, #tpu.dimension_semantics<arbitrary>], iteration_bounds = array<i64: 1, 1>, scalar_prefetch = 0 : i64, scratch_operands = 1 : i64, tpu.core_type = #tpu.core_type<tc>, window_params = [{transform_indices = @transform_0, window_bounds = array<i64: 16, 32>}, {pipeline_mode = #tpu.pipeline_mode<synchronous>, transform_indices = @transform_1, window_bounds = array<i64: 1, 32>}, {pipeline_mode = #tpu.pipeline_mode<synchronous>, transform_indices = @transform_2, window_bounds = array<i64: 1, 32>}, {transform_indices = @transform_3, window_bounds = array<i64: 32, 32>}, {transform_indices = @transform_4, window_bounds = array<i64: 1, 32>}, {transform_indices = @transform_5, window_bounds = array<i64: 16, 32>}]} {
    %c0_i32 = arith.constant 0 : i32
    %0 = arith.cmpi eq, %arg1, %c0_i32 : i32
    %1 = arith.extui %0 : i1 to i32
    %c0_i32_0 = arith.constant 0 : i32
    %2 = arith.cmpi ne, %1, %c0_i32_0 : i32
    scf.if %2 {
      %c0_8 = arith.constant 0 : index
      %c0_9 = arith.constant 0 : index
      %10 = vector.load %arg2[%c0_8, %c0_9] : memref<16x32xbf16, #tpu.memory_space<vmem>>, vector<16x32xbf16>
      %11 = arith.extf %10 : vector<16x32xbf16> to vector<16x32xf32>
      %cst_10 = arith.constant dense<0.000000e+00> : vector<16xf32>
      %12 = vector.multi_reduction <add>, %11, %cst_10 [1] : vector<16x32xf32> to vector<16xf32>
      %13 = vector.shape_cast %12 : vector<16xf32> to vector<16x1xf32>
      %cst_11 = arith.constant 3.200000e+01 : f32
      %14 = vector.broadcast %cst_11 : f32 to vector<16x1xf32>
      %15 = arith.divf %13, %14 : vector<16x1xf32>
      %16 = vector.broadcast %15 : vector<16x1xf32> to vector<16x32xf32>
      %17 = arith.subf %11, %16 : vector<16x32xf32>
      %18 = arith.mulf %17, %17 : vector<16x32xf32>
      %cst_12 = arith.constant dense<0.000000e+00> : vector<16xf32>
      %19 = vector.multi_reduction <add>, %18, %cst_12 [1] : vector<16x32xf32> to vector<16xf32>
      %20 = vector.shape_cast %19 : vector<16xf32> to vector<16x1xf32>
      %cst_13 = arith.constant 3.200000e+01 : f32
      %21 = vector.broadcast %cst_13 : f32 to vector<16x1xf32>
      %22 = arith.divf %20, %21 : vector<16x1xf32>
      %23 = vector.broadcast %15 : vector<16x1xf32> to vector<16x32xf32>
      %24 = arith.subf %11, %23 : vector<16x32xf32>
      %cst_14 = arith.constant 9.99999974E-6 : f32
      %25 = vector.broadcast %cst_14 : f32 to vector<16x1xf32>
      %26 = arith.addf %22, %25 : vector<16x1xf32>
      %27 = math.rsqrt %26 : vector<16x1xf32>
      %28 = vector.broadcast %27 : vector<16x1xf32> to vector<16x32xf32>
      %29 = arith.mulf %24, %28 : vector<16x32xf32>
      %c0_15 = arith.constant 0 : index
      %c0_16 = arith.constant 0 : index
      %30 = vector.load %arg3[%c0_15, %c0_16] : memref<1x32xf32, #tpu.memory_space<vmem>>, vector<1x32xf32>
      %31 = vector.broadcast %30 : vector<1x32xf32> to vector<16x32xf32>
      %32 = arith.mulf %29, %31 : vector<16x32xf32>
      %c0_17 = arith.constant 0 : index
      %c0_18 = arith.constant 0 : index
      %33 = vector.load %arg4[%c0_17, %c0_18] : memref<1x32xf32, #tpu.memory_space<vmem>>, vector<1x32xf32>
      %34 = vector.broadcast %33 : vector<1x32xf32> to vector<16x32xf32>
      %35 = arith.addf %32, %34 : vector<16x32xf32>
      %36 = arith.truncf %35 : vector<16x32xf32> to vector<16x32xbf16>
      %c0_19 = arith.constant 0 : index
      %c0_20 = arith.constant 0 : index
      %37 = vector.load %arg8[%c0_19, %c0_20] : memref<16x32xbf16, #tpu.memory_space<vmem>>, vector<16x32xbf16>
      tpu.vector_store %arg8[%c0_19, %c0_20], %36 {strides = array<i32>} : memref<16x32xbf16, #tpu.memory_space<vmem>>, vector<16x32xbf16>,
    } else {
    }
    %c0 = arith.constant 0 : index
    %c0_1 = arith.constant 0 : index
    %3 = vector.load %arg8[%c0, %c0_1] : memref<16x32xbf16, #tpu.memory_space<vmem>>, vector<16x32xbf16>
    %c0_2 = arith.constant 0 : index
    %c0_3 = arith.constant 0 : index
    %4 = vector.load %arg5[%c0_2, %c0_3] : memref<32x32xbf16, #tpu.memory_space<vmem>>, vector<32x32xbf16>
    %cst = arith.constant dense<0.000000e+00> : vector<16x32xf32>
    %5 = tpu.matmul %3, %4, %cst {dimension_numbers = #tpu.dot_dimension_numbers<[1], [0], [0], [1], [0, 0, 1, 1], [], []>} : vector<16x32xbf16>, vector<32x32xbf16>, vector<16x32xf32> -> vector<16x32xf32>
    %c0_4 = arith.constant 0 : index
    %c0_5 = arith.constant 0 : index
    %6 = vector.load %arg6[%c0_4, %c0_5] : memref<1x32xf32, #tpu.memory_space<vmem>>, vector<1x32xf32>
    %7 = vector.broadcast %6 : vector<1x32xf32> to vector<16x32xf32>
    %8 = arith.addf %5, %7 : vector<16x32xf32>
    %c0_6 = arith.constant 0 : index
    %c0_7 = arith.constant 0 : index
    %9 = vector.load %arg7[%c0_6, %c0_7] : memref<16x32xf32, #tpu.memory_space<vmem>>, vector<16x32xf32>
    tpu.vector_store %arg7[%c0_6, %c0_7], %8 {strides = array<i32>} : memref<16x32xf32, #tpu.memory_space<vmem>>, vector<16x32xf32>,
    return
  }
  func.func @transform_0(%arg0: i32, %arg1: i32) -> (i32, i32) {
    %c0_i32 = arith.constant 0 : i32
    %c0_i32_0 = arith.constant 0 : i32
    return %arg0, %c0_i32 : i32, i32
  }
  func.func @transform_1(%arg0: i32, %arg1: i32) -> (i32, i32) {
    %c0_i32 = arith.constant 0 : i32
    %c0_i32_0 = arith.constant 0 : i32
    %c0_i32_1 = arith.constant 0 : i32
    return %c0_i32, %c0_i32_0 : i32, i32
  }
  func.func @transform_2(%arg0: i32, %arg1: i32) -> (i32, i32) {
    %c0_i32 = arith.constant 0 : i32
    %c0_i32_0 = arith.constant 0 : i32
    %c0_i32_1 = arith.constant 0 : i32
    return %c0_i32, %c0_i32_0 : i32, i32
  }
  func.func @transform_3(%arg0: i32, %arg1: i32) -> (i32, i32) {
    %c0_i32 = arith.constant 0 : i32
    %c0_i32_0 = arith.constant 0 : i32
    return %c0_i32, %arg1 : i32, i32
  }
  func.func @transform_4(%arg0: i32, %arg1: i32) -> (i32, i32) {
    %c0_i32 = arith.constant 0 : i32
    %c0_i32_0 = arith.constant 0 : i32
    return %c0_i32, %arg1 : i32, i32
  }
  func.func @transform_5(%arg0: i32, %arg1: i32) -> (i32, i32) {
    %c0_i32 = arith.constant 0 : i32
    return %arg0, %arg1 : i32, i32
  }
}

module attributes {stable_mosaic.version = 11 : i64} {
  func.func @_linear_kernel(%arg0: i32, %arg1: i32, %arg2: i32, %arg3: memref<16x16xf32, #tpu.memory_space<vmem>>, %arg4: memref<16x32xbf16, #tpu.memory_space<vmem>>, %arg5: memref<1x32xf32, #tpu.memory_space<vmem>>, %arg6: memref<16x32xbf16, #tpu.memory_space<vmem>>, %arg7: memref<16x32xf32, #tpu.memory_space<vmem>>) attributes {dimension_semantics = [#tpu.dimension_semantics<parallel>, #tpu.dimension_semantics<parallel>, #tpu.dimension_semantics<arbitrary>], iteration_bounds = array<i64: 1, 1, 1>, scalar_prefetch = 0 : i64, scratch_operands = 1 : i64, tpu.core_type = #tpu.core_type<tc>, window_params = [{transform_indices = @transform_0, window_bounds = array<i64: 16, 16>}, {transform_indices = @transform_1, window_bounds = array<i64: 16, 32>}, {transform_indices = @transform_2, window_bounds = array<i64: 1, 32>}, {transform_indices = @transform_3, window_bounds = array<i64: 16, 32>}]} {
    %c0_i32 = arith.constant 0 : i32
    %0 = arith.cmpi eq, %arg2, %c0_i32 : i32
    %1 = arith.extui %0 : i1 to i32
    %c0_i32_0 = arith.constant 0 : i32
    %2 = arith.cmpi ne, %1, %c0_i32_0 : i32
    scf.if %2 {
      %cst_10 = arith.constant 0.000000e+00 : f32
      %13 = vector.broadcast %cst_10 : f32 to vector<16x32xf32>
      %c0_11 = arith.constant 0 : index
      %c0_12 = arith.constant 0 : index
      %14 = vector.load %arg7[%c0_11, %c0_12] : memref<16x32xf32, #tpu.memory_space<vmem>>, vector<16x32xf32>
      tpu.vector_store %arg7[%c0_11, %c0_12], %13 {strides = array<i32>} : memref<16x32xf32, #tpu.memory_space<vmem>>, vector<16x32xf32>,
    } else {
    }
    %c0 = arith.constant 0 : index
    %c0_1 = arith.constant 0 : index
    %3 = vector.load %arg7[%c0, %c0_1] : memref<16x32xf32, #tpu.memory_space<vmem>>, vector<16x32xf32>
    %c0_2 = arith.constant 0 : index
    %c0_3 = arith.constant 0 : index
    %4 = vector.load %arg3[%c0_2, %c0_3] : memref<16x16xf32, #tpu.memory_space<vmem>>, vector<16x16xf32>
    %5 = arith.truncf %4 : vector<16x16xf32> to vector<16x16xbf16>
    %c0_4 = arith.constant 0 : index
    %c0_5 = arith.constant 0 : index
    %6 = vector.load %arg4[%c0_4, %c0_5] : memref<16x32xbf16, #tpu.memory_space<vmem>>, vector<16x32xbf16>
    %cst = arith.constant dense<0.000000e+00> : vector<16x32xf32>
    %7 = tpu.matmul %5, %6, %cst {dimension_numbers = #tpu.dot_dimension_numbers<[1], [0], [0], [1], [0, 0, 1, 1], [], []>} : vector<16x16xbf16>, vector<16x32xbf16>, vector<16x32xf32> -> vector<16x32xf32>
    %8 = arith.addf %3, %7 : vector<16x32xf32>
    %c0_6 = arith.constant 0 : index
    %c0_7 = arith.constant 0 : index
    %9 = vector.load %arg7[%c0_6, %c0_7] : memref<16x32xf32, #tpu.memory_space<vmem>>, vector<16x32xf32>
    tpu.vector_store %arg7[%c0_6, %c0_7], %8 {strides = array<i32>} : memref<16x32xf32, #tpu.memory_space<vmem>>, vector<16x32xf32>,
    %c0_i32_8 = arith.constant 0 : i32
    %10 = arith.cmpi eq, %arg2, %c0_i32_8 : i32
    %11 = arith.extui %10 : i1 to i32
    %c0_i32_9 = arith.constant 0 : i32
    %12 = arith.cmpi ne, %11, %c0_i32_9 : i32
    scf.if %12 {
      %c0_10 = arith.constant 0 : index
      %c0_11 = arith.constant 0 : index
      %13 = vector.load %arg7[%c0_10, %c0_11] : memref<16x32xf32, #tpu.memory_space<vmem>>, vector<16x32xf32>
      %c0_12 = arith.constant 0 : index
      %c0_13 = arith.constant 0 : index
      %14 = vector.load %arg5[%c0_12, %c0_13] : memref<1x32xf32, #tpu.memory_space<vmem>>, vector<1x32xf32>
      %15 = vector.broadcast %14 : vector<1x32xf32> to vector<16x32xf32>
      %16 = arith.addf %13, %15 : vector<16x32xf32>
      %17 = arith.truncf %16 : vector<16x32xf32> to vector<16x32xbf16>
      %c0_14 = arith.constant 0 : index
      %c0_15 = arith.constant 0 : index
      %18 = vector.load %arg6[%c0_14, %c0_15] : memref<16x32xbf16, #tpu.memory_space<vmem>>, vector<16x32xbf16>
      tpu.vector_store %arg6[%c0_14, %c0_15], %17 {strides = array<i32>} : memref<16x32xbf16, #tpu.memory_space<vmem>>, vector<16x32xbf16>,
    } else {
    }
    return
  }
  func.func @transform_0(%arg0: i32, %arg1: i32, %arg2: i32) -> (i32, i32) {
    %c0_i32 = arith.constant 0 : i32
    return %arg0, %arg2 : i32, i32
  }
  func.func @transform_1(%arg0: i32, %arg1: i32, %arg2: i32) -> (i32, i32) {
    %c0_i32 = arith.constant 0 : i32
    return %arg2, %arg1 : i32, i32
  }
  func.func @transform_2(%arg0: i32, %arg1: i32, %arg2: i32) -> (i32, i32) {
    %c0_i32 = arith.constant 0 : i32
    %c0_i32_0 = arith.constant 0 : i32
    return %c0_i32, %arg1 : i32, i32
  }
  func.func @transform_3(%arg0: i32, %arg1: i32, %arg2: i32) -> (i32, i32) {
    %c0_i32 = arith.constant 0 : i32
    return %arg0, %arg1 : i32, i32
  }
}

module attributes {stable_mosaic.version = 11 : i64} {
  func.func @_layernorm_kernel(%arg0: i32, %arg1: memref<16x32xbf16, #tpu.memory_space<vmem>>, %arg2: memref<1x32xf32, #tpu.memory_space<vmem>>, %arg3: memref<1x32xf32, #tpu.memory_space<vmem>>, %arg4: memref<16x32xbf16, #tpu.memory_space<vmem>>) attributes {dimension_semantics = [#tpu.dimension_semantics<parallel>], iteration_bounds = array<i64: 1>, scalar_prefetch = 0 : i64, scratch_operands = 0 : i64, tpu.core_type = #tpu.core_type<tc>, window_params = [{transform_indices = @transform_0, window_bounds = array<i64: 16, 32>}, {pipeline_mode = #tpu.pipeline_mode<synchronous>, transform_indices = @transform_1, window_bounds = array<i64: 1, 32>}, {pipeline_mode = #tpu.pipeline_mode<synchronous>, transform_indices = @transform_2, window_bounds = array<i64: 1, 32>}, {transform_indices = @transform_3, window_bounds = array<i64: 16, 32>}]} {
    %c0 = arith.constant 0 : index
    %c0_0 = arith.constant 0 : index
    %0 = vector.load %arg1[%c0, %c0_0] : memref<16x32xbf16, #tpu.memory_space<vmem>>, vector<16x32xbf16>
    %1 = arith.extf %0 : vector<16x32xbf16> to vector<16x32xf32>
    %cst = arith.constant dense<0.000000e+00> : vector<16xf32>
    %2 = vector.multi_reduction <add>, %1, %cst [1] : vector<16x32xf32> to vector<16xf32>
    %3 = vector.shape_cast %2 : vector<16xf32> to vector<16x1xf32>
    %cst_1 = arith.constant 3.200000e+01 : f32
    %4 = vector.broadcast %cst_1 : f32 to vector<16x1xf32>
    %5 = arith.divf %3, %4 : vector<16x1xf32>
    %6 = vector.broadcast %5 : vector<16x1xf32> to vector<16x32xf32>
    %7 = arith.subf %1, %6 : vector<16x32xf32>
    %8 = arith.mulf %7, %7 : vector<16x32xf32>
    %cst_2 = arith.constant dense<0.000000e+00> : vector<16xf32>
    %9 = vector.multi_reduction <add>, %8, %cst_2 [1] : vector<16x32xf32> to vector<16xf32>
    %10 = vector.shape_cast %9 : vector<16xf32> to vector<16x1xf32>
    %cst_3 = arith.constant 3.200000e+01 : f32
    %11 = vector.broadcast %cst_3 : f32 to vector<16x1xf32>
    %12 = arith.divf %10, %11 : vector<16x1xf32>
    %13 = vector.broadcast %5 : vector<16x1xf32> to vector<16x32xf32>
    %14 = arith.subf %1, %13 : vector<16x32xf32>
    %cst_4 = arith.constant 9.99999974E-6 : f32
    %15 = vector.broadcast %cst_4 : f32 to vector<16x1xf32>
    %16 = arith.addf %12, %15 : vector<16x1xf32>
    %17 = math.rsqrt %16 : vector<16x1xf32>
    %18 = vector.broadcast %17 : vector<16x1xf32> to vector<16x32xf32>
    %19 = arith.mulf %14, %18 : vector<16x32xf32>
    %c0_5 = arith.constant 0 : index
    %c0_6 = arith.constant 0 : index
    %20 = vector.load %arg2[%c0_5, %c0_6] : memref<1x32xf32, #tpu.memory_space<vmem>>, vector<1x32xf32>
    %21 = vector.broadcast %20 : vector<1x32xf32> to vector<16x32xf32>
    %22 = arith.mulf %19, %21 : vector<16x32xf32>
    %c0_7 = arith.constant 0 : index
    %c0_8 = arith.constant 0 : index
    %23 = vector.load %arg3[%c0_7, %c0_8] : memref<1x32xf32, #tpu.memory_space<vmem>>, vector<1x32xf32>
    %24 = vector.broadcast %23 : vector<1x32xf32> to vector<16x32xf32>
    %25 = arith.addf %22, %24 : vector<16x32xf32>
    %26 = arith.truncf %25 : vector<16x32xf32> to vector<16x32xbf16>
    %c0_9 = arith.constant 0 : index
    %c0_10 = arith.constant 0 : index
    %27 = vector.load %arg4[%c0_9, %c0_10] : memref<16x32xbf16, #tpu.memory_space<vmem>>, vector<16x32xbf16>
    tpu.vector_store %arg4[%c0_9, %c0_10], %26 {strides = array<i32>} : memref<16x32xbf16, #tpu.memory_space<vmem>>, vector<16x32xbf16>,
    return
  }
  func.func @transform_0(%arg0: i32) -> (i32, i32) {
    %c0_i32 = arith.constant 0 : i32
    %c0_i32_0 = arith.constant 0 : i32
    return %arg0, %c0_i32 : i32, i32
  }
  func.func @transform_1(%arg0: i32) -> (i32, i32) {
    %c0_i32 = arith.constant 0 : i32
    %c0_i32_0 = arith.constant 0 : i32
    %c0_i32_1 = arith.constant 0 : i32
    return %c0_i32, %c0_i32_0 : i32, i32
  }
  func.func @transform_2(%arg0: i32) -> (i32, i32) {
    %c0_i32 = arith.constant 0 : i32
    %c0_i32_0 = arith.constant 0 : i32
    %c0_i32_1 = arith.constant 0 : i32
    return %c0_i32, %c0_i32_0 : i32, i32
  }
  func.func @transform_3(%arg0: i32) -> (i32, i32) {
    %c0_i32 = arith.constant 0 : i32
    %c0_i32_0 = arith.constant 0 : i32
    return %arg0, %c0_i32 : i32, i32
  }
}

module attributes {stable_mosaic.version = 11 : i64} {
  func.func @_ln_linear_kernel(%arg0: i32, %arg1: i32, %arg2: memref<16x32xbf16, #tpu.memory_space<vmem>>, %arg3: memref<1x32xf32, #tpu.memory_space<vmem>>, %arg4: memref<1x32xf32, #tpu.memory_space<vmem>>, %arg5: memref<32x64xbf16, #tpu.memory_space<vmem>>, %arg6: memref<16x64xbf16, #tpu.memory_space<vmem>>, %arg7: memref<16x32xbf16, #tpu.memory_space<vmem>>) attributes {dimension_semantics = [#tpu.dimension_semantics<parallel>, #tpu.dimension_semantics<arbitrary>], iteration_bounds = array<i64: 1, 1>, scalar_prefetch = 0 : i64, scratch_operands = 1 : i64, tpu.core_type = #tpu.core_type<tc>, window_params = [{transform_indices = @transform_0, window_bounds = array<i64: 16, 32>}, {pipeline_mode = #tpu.pipeline_mode<synchronous>, transform_indices = @transform_1, window_bounds = array<i64: 1, 32>}, {pipeline_mode = #tpu.pipeline_mode<synchronous>, transform_indices = @transform_2, window_bounds = array<i64: 1, 32>}, {transform_indices = @transform_3, window_bounds = array<i64: 32, 64>}, {transform_indices = @transform_4, window_bounds = array<i64: 16, 64>}]} {
    %c0_i32 = arith.constant 0 : i32
    %0 = arith.cmpi eq, %arg1, %c0_i32 : i32
    %1 = arith.extui %0 : i1 to i32
    %c0_i32_0 = arith.constant 0 : i32
    %2 = arith.cmpi ne, %1, %c0_i32_0 : i32
    scf.if %2 {
      %c0_6 = arith.constant 0 : index
      %c0_7 = arith.constant 0 : index
      %8 = vector.load %arg2[%c0_6, %c0_7] : memref<16x32xbf16, #tpu.memory_space<vmem>>, vector<16x32xbf16>
      %9 = arith.extf %8 : vector<16x32xbf16> to vector<16x32xf32>
      %cst_8 = arith.constant dense<0.000000e+00> : vector<16xf32>
      %10 = vector.multi_reduction <add>, %9, %cst_8 [1] : vector<16x32xf32> to vector<16xf32>
      %11 = vector.shape_cast %10 : vector<16xf32> to vector<16x1xf32>
      %cst_9 = arith.constant 3.200000e+01 : f32
      %12 = vector.broadcast %cst_9 : f32 to vector<16x1xf32>
      %13 = arith.divf %11, %12 : vector<16x1xf32>
      %14 = vector.broadcast %13 : vector<16x1xf32> to vector<16x32xf32>
      %15 = arith.subf %9, %14 : vector<16x32xf32>
      %16 = arith.mulf %15, %15 : vector<16x32xf32>
      %cst_10 = arith.constant dense<0.000000e+00> : vector<16xf32>
      %17 = vector.multi_reduction <add>, %16, %cst_10 [1] : vector<16x32xf32> to vector<16xf32>
      %18 = vector.shape_cast %17 : vector<16xf32> to vector<16x1xf32>
      %cst_11 = arith.constant 3.200000e+01 : f32
      %19 = vector.broadcast %cst_11 : f32 to vector<16x1xf32>
      %20 = arith.divf %18, %19 : vector<16x1xf32>
      %21 = vector.broadcast %13 : vector<16x1xf32> to vector<16x32xf32>
      %22 = arith.subf %9, %21 : vector<16x32xf32>
      %cst_12 = arith.constant 9.99999974E-6 : f32
      %23 = vector.broadcast %cst_12 : f32 to vector<16x1xf32>
      %24 = arith.addf %20, %23 : vector<16x1xf32>
      %25 = math.rsqrt %24 : vector<16x1xf32>
      %26 = vector.broadcast %25 : vector<16x1xf32> to vector<16x32xf32>
      %27 = arith.mulf %22, %26 : vector<16x32xf32>
      %c0_13 = arith.constant 0 : index
      %c0_14 = arith.constant 0 : index
      %28 = vector.load %arg3[%c0_13, %c0_14] : memref<1x32xf32, #tpu.memory_space<vmem>>, vector<1x32xf32>
      %29 = vector.broadcast %28 : vector<1x32xf32> to vector<16x32xf32>
      %30 = arith.mulf %27, %29 : vector<16x32xf32>
      %c0_15 = arith.constant 0 : index
      %c0_16 = arith.constant 0 : index
      %31 = vector.load %arg4[%c0_15, %c0_16] : memref<1x32xf32, #tpu.memory_space<vmem>>, vector<1x32xf32>
      %32 = vector.broadcast %31 : vector<1x32xf32> to vector<16x32xf32>
      %33 = arith.addf %30, %32 : vector<16x32xf32>
      %34 = arith.truncf %33 : vector<16x32xf32> to vector<16x32xbf16>
      %c0_17 = arith.constant 0 : index
      %c0_18 = arith.constant 0 : index
      %35 = vector.load %arg7[%c0_17, %c0_18] : memref<16x32xbf16, #tpu.memory_space<vmem>>, vector<16x32xbf16>
      tpu.vector_store %arg7[%c0_17, %c0_18], %34 {strides = array<i32>} : memref<16x32xbf16, #tpu.memory_space<vmem>>, vector<16x32xbf16>,
    } else {
    }
    %c0 = arith.constant 0 : index
    %c0_1 = arith.constant 0 : index
    %3 = vector.load %arg7[%c0, %c0_1] : memref<16x32xbf16, #tpu.memory_space<vmem>>, vector<16x32xbf16>
    %c0_2 = arith.constant 0 : index
    %c0_3 = arith.constant 0 : index
    %4 = vector.load %arg5[%c0_2, %c0_3] : memref<32x64xbf16, #tpu.memory_space<vmem>>, vector<32x64xbf16>
    %cst = arith.constant dense<0.000000e+00> : vector<16x64xf32>
    %5 = tpu.matmul %3, %4, %cst {dimension_numbers = #tpu.dot_dimension_numbers<[1], [0], [0], [1], [0, 0, 1, 1], [], []>} : vector<16x32xbf16>, vector<32x64xbf16>, vector<16x64xf32> -> vector<16x64xf32>
    %6 = arith.truncf %5 : vector<16x64xf32> to vector<16x64xbf16>
    %c0_4 = arith.constant 0 : index
    %c0_5 = arith.constant 0 : index
    %7 = vector.load %arg6[%c0_4, %c0_5] : memref<16x64xbf16, #tpu.memory_space<vmem>>, vector<16x64xbf16>
    tpu.vector_store %arg6[%c0_4, %c0_5], %6 {strides = array<i32>} : memref<16x64xbf16, #tpu.memory_space<vmem>>, vector<16x64xbf16>,
    return
  }
  func.func @transform_0(%arg0: i32, %arg1: i32) -> (i32, i32) {
    %c0_i32 = arith.constant 0 : i32
    %c0_i32_0 = arith.constant 0 : i32
    return %arg0, %c0_i32 : i32, i32
  }
  func.func @transform_1(%arg0: i32, %arg1: i32) -> (i32, i32) {
    %c0_i32 = arith.constant 0 : i32
    %c0_i32_0 = arith.constant 0 : i32
    %c0_i32_1 = arith.constant 0 : i32
    return %c0_i32, %c0_i32_0 : i32, i32
  }
  func.func @transform_2(%arg0: i32, %arg1: i32) -> (i32, i32) {
    %c0_i32 = arith.constant 0 : i32
    %c0_i32_0 = arith.constant 0 : i32
    %c0_i32_1 = arith.constant 0 : i32
    return %c0_i32, %c0_i32_0 : i32, i32
  }
  func.func @transform_3(%arg0: i32, %arg1: i32) -> (i32, i32) {
    %c0_i32 = arith.constant 0 : i32
    %c0_i32_0 = arith.constant 0 : i32
    return %c0_i32, %arg1 : i32, i32
  }
  func.func @transform_4(%arg0: i32, %arg1: i32) -> (i32, i32) {
    %c0_i32 = arith.constant 0 : i32
    return %arg0, %arg1 : i32, i32
  }
}

module attributes {stable_mosaic.version = 11 : i64} {
  func.func @_flash_attn_kernel(%arg0: i32, %arg1: i32, %arg2: i32, %arg3: memref<1x16x32xbf16, #tpu.memory_space<vmem>>, %arg4: memref<1x8x32xbf16, #tpu.memory_space<vmem>>, %arg5: memref<1x8x32xbf16, #tpu.memory_space<vmem>>, %arg6: memref<1x16x32xbf16, #tpu.memory_space<vmem>>, %arg7: memref<4x16x1xf32, #tpu.memory_space<vmem>>, %arg8: memref<4x16x1xf32, #tpu.memory_space<vmem>>, %arg9: memref<4x16x8xf32, #tpu.memory_space<vmem>>) attributes {dimension_semantics = [#tpu.dimension_semantics<parallel>, #tpu.dimension_semantics<parallel>, #tpu.dimension_semantics<arbitrary>], iteration_bounds = array<i64: 2, 1, 1>, scalar_prefetch = 0 : i64, scratch_operands = 3 : i64, tpu.core_type = #tpu.core_type<tc>, window_params = [{transform_indices = @transform_0, window_bounds = array<i64: 1, 16, 32>}, {transform_indices = @transform_1, window_bounds = array<i64: 1, 8, 32>}, {transform_indices = @transform_2, window_bounds = array<i64: 1, 8, 32>}, {transform_indices = @transform_3, window_bounds = array<i64: 1, 16, 32>}]} {
    %c0_i32 = arith.constant 0 : i32
    %0 = arith.cmpi eq, %arg2, %c0_i32 : i32
    %1 = arith.extui %0 : i1 to i32
    %c0_i32_0 = arith.constant 0 : i32
    %2 = arith.cmpi ne, %1, %c0_i32_0 : i32
    scf.if %2 {
      %cst_95 = arith.constant -1.000000e+30 : f32
      %156 = vector.broadcast %cst_95 : f32 to vector<4x16x1xf32>
      %c0_96 = arith.constant 0 : index
      %c0_97 = arith.constant 0 : index
      %c0_98 = arith.constant 0 : index
      %157 = vector.load %arg7[%c0_96, %c0_97, %c0_98] : memref<4x16x1xf32, #tpu.memory_space<vmem>>, vector<4x16x1xf32>
      tpu.vector_store %arg7[%c0_96, %c0_97, %c0_98], %156 {strides = array<i32>} : memref<4x16x1xf32, #tpu.memory_space<vmem>>, vector<4x16x1xf32>,
      %cst_99 = arith.constant 0.000000e+00 : f32
      %158 = vector.broadcast %cst_99 : f32 to vector<4x16x1xf32>
      %c0_100 = arith.constant 0 : index
      %c0_101 = arith.constant 0 : index
      %c0_102 = arith.constant 0 : index
      %159 = vector.load %arg8[%c0_100, %c0_101, %c0_102] : memref<4x16x1xf32, #tpu.memory_space<vmem>>, vector<4x16x1xf32>
      tpu.vector_store %arg8[%c0_100, %c0_101, %c0_102], %158 {strides = array<i32>} : memref<4x16x1xf32, #tpu.memory_space<vmem>>, vector<4x16x1xf32>,
      %cst_103 = arith.constant 0.000000e+00 : f32
      %160 = vector.broadcast %cst_103 : f32 to vector<4x16x8xf32>
      %c0_104 = arith.constant 0 : index
      %c0_105 = arith.constant 0 : index
      %c0_106 = arith.constant 0 : index
      %161 = vector.load %arg9[%c0_104, %c0_105, %c0_106] : memref<4x16x8xf32, #tpu.memory_space<vmem>>, vector<4x16x8xf32>
      tpu.vector_store %arg9[%c0_104, %c0_105, %c0_106], %160 {strides = array<i32>} : memref<4x16x8xf32, #tpu.memory_space<vmem>>, vector<4x16x8xf32>,
    } else {
    }
    %c0 = arith.constant 0 : index
    %c0_1 = arith.constant 0 : index
    %c0_2 = arith.constant 0 : index
    %3 = vector.load %arg3[%c0, %c0_1, %c0_2] : memref<1x16x32xbf16, #tpu.memory_space<vmem>>, vector<1x16x32xbf16>
    %4 = vector.shape_cast %3 : vector<1x16x32xbf16> to vector<16x32xbf16>
    %c0_3 = arith.constant 0 : index
    %c0_4 = arith.constant 0 : index
    %c0_5 = arith.constant 0 : index
    %5 = vector.load %arg4[%c0_3, %c0_4, %c0_5] : memref<1x8x32xbf16, #tpu.memory_space<vmem>>, vector<1x8x32xbf16>
    %6 = vector.shape_cast %5 : vector<1x8x32xbf16> to vector<8x32xbf16>
    %c0_6 = arith.constant 0 : index
    %c0_7 = arith.constant 0 : index
    %c0_8 = arith.constant 0 : index
    %7 = vector.load %arg5[%c0_6, %c0_7, %c0_8] : memref<1x8x32xbf16, #tpu.memory_space<vmem>>, vector<1x8x32xbf16>
    %8 = vector.shape_cast %7 : vector<1x8x32xbf16> to vector<8x32xbf16>
    %9 = vector.extract_strided_slice %4 {offsets = [0, 0], sizes = [16, 8], strides = [1, 1]} : vector<16x32xbf16> to vector<16x8xbf16>
    %10 = vector.extract_strided_slice %6 {offsets = [0, 0], sizes = [8, 8], strides = [1, 1]} : vector<8x32xbf16> to vector<8x8xbf16>
    %11 = vector.extract_strided_slice %8 {offsets = [0, 0], sizes = [8, 8], strides = [1, 1]} : vector<8x32xbf16> to vector<8x8xbf16>
    %cst = arith.constant dense<0.000000e+00> : vector<16x8xf32>
    %12 = tpu.matmul %9, %10, %cst {dimension_numbers = #tpu.dot_dimension_numbers<[1], [1], [0], [0], [0, 0, 1, 0], [], []>} : vector<16x8xbf16>, vector<8x8xbf16>, vector<16x8xf32> -> vector<16x8xf32>
    %c0_9 = arith.constant 0 : index
    %c0_10 = arith.constant 0 : index
    %c0_11 = arith.constant 0 : index
    %13 = vector.load %arg7[%c0_9, %c0_10, %c0_11] : memref<4x16x1xf32, #tpu.memory_space<vmem>>, vector<1x16x1xf32>
    %14 = vector.shape_cast %13 : vector<1x16x1xf32> to vector<16x1xf32>
    %cst_12 = arith.constant dense<0xFF800000> : vector<16xf32>
    %15 = vector.multi_reduction <maximumf>, %12, %cst_12 [1] : vector<16x8xf32> to vector<16xf32>
    %16 = vector.shape_cast %15 : vector<16xf32> to vector<16x1xf32>
    %17 = arith.maximumf %14, %16 : vector<16x1xf32>
    %18 = arith.subf %14, %17 : vector<16x1xf32>
    %19 = math.exp %18 : vector<16x1xf32>
    %20 = vector.broadcast %17 : vector<16x1xf32> to vector<16x8xf32>
    %21 = arith.subf %12, %20 : vector<16x8xf32>
    %22 = math.exp %21 : vector<16x8xf32>
    %c0_13 = arith.constant 0 : index
    %c0_14 = arith.constant 0 : index
    %c0_15 = arith.constant 0 : index
    %23 = vector.load %arg8[%c0_13, %c0_14, %c0_15] : memref<4x16x1xf32, #tpu.memory_space<vmem>>, vector<1x16x1xf32>
    %24 = vector.shape_cast %23 : vector<1x16x1xf32> to vector<16x1xf32>
    %25 = arith.mulf %19, %24 : vector<16x1xf32>
    %cst_16 = arith.constant dense<0.000000e+00> : vector<16xf32>
    %26 = vector.multi_reduction <add>, %22, %cst_16 [1] : vector<16x8xf32> to vector<16xf32>
    %27 = vector.shape_cast %26 : vector<16xf32> to vector<16x1xf32>
    %28 = arith.addf %25, %27 : vector<16x1xf32>
    %c0_17 = arith.constant 0 : index
    %c0_18 = arith.constant 0 : index
    %c0_19 = arith.constant 0 : index
    %29 = vector.load %arg8[%c0_17, %c0_18, %c0_19] : memref<4x16x1xf32, #tpu.memory_space<vmem>>, vector<1x16x1xf32>
    %30 = vector.shape_cast %29 : vector<1x16x1xf32> to vector<16x1xf32>
    %31 = vector.shape_cast %28 : vector<16x1xf32> to vector<1x16x1xf32>
    tpu.vector_store %arg8[%c0_17, %c0_18, %c0_19], %31 {strides = array<i32>} : memref<4x16x1xf32, #tpu.memory_space<vmem>>, vector<1x16x1xf32>,
    %c0_20 = arith.constant 0 : index
    %c0_21 = arith.constant 0 : index
    %c0_22 = arith.constant 0 : index
    %32 = vector.load %arg9[%c0_20, %c0_21, %c0_22] : memref<4x16x8xf32, #tpu.memory_space<vmem>>, vector<1x16x8xf32>
    %33 = vector.shape_cast %32 : vector<1x16x8xf32> to vector<16x8xf32>
    %34 = vector.broadcast %19 : vector<16x1xf32> to vector<16x8xf32>
    %35 = arith.mulf %34, %33 : vector<16x8xf32>
    %36 = arith.truncf %22 : vector<16x8xf32> to vector<16x8xbf16>
    %cst_23 = arith.constant dense<0.000000e+00> : vector<16x8xf32>
    %37 = tpu.matmul %36, %11, %cst_23 {dimension_numbers = #tpu.dot_dimension_numbers<[1], [0], [0], [1], [0, 0, 1, 1], [], []>} : vector<16x8xbf16>, vector<8x8xbf16>, vector<16x8xf32> -> vector<16x8xf32>
    %38 = arith.addf %35, %37 : vector<16x8xf32>
    %c0_24 = arith.constant 0 : index
    %c0_25 = arith.constant 0 : index
    %c0_26 = arith.constant 0 : index
    %39 = vector.load %arg9[%c0_24, %c0_25, %c0_26] : memref<4x16x8xf32, #tpu.memory_space<vmem>>, vector<1x16x8xf32>
    %40 = vector.shape_cast %39 : vector<1x16x8xf32> to vector<16x8xf32>
    %41 = vector.shape_cast %38 : vector<16x8xf32> to vector<1x16x8xf32>
    tpu.vector_store %arg9[%c0_24, %c0_25, %c0_26], %41 {strides = array<i32>} : memref<4x16x8xf32, #tpu.memory_space<vmem>>, vector<1x16x8xf32>,
    %c0_27 = arith.constant 0 : index
    %c0_28 = arith.constant 0 : index
    %c0_29 = arith.constant 0 : index
    %42 = vector.load %arg7[%c0_27, %c0_28, %c0_29] : memref<4x16x1xf32, #tpu.memory_space<vmem>>, vector<1x16x1xf32>
    %43 = vector.shape_cast %42 : vector<1x16x1xf32> to vector<16x1xf32>
    %44 = vector.shape_cast %17 : vector<16x1xf32> to vector<1x16x1xf32>
    tpu.vector_store %arg7[%c0_27, %c0_28, %c0_29], %44 {strides = array<i32>} : memref<4x16x1xf32, #tpu.memory_space<vmem>>, vector<1x16x1xf32>,
    %45 = vector.extract_strided_slice %4 {offsets = [0, 8], sizes = [16, 8], strides = [1, 1]} : vector<16x32xbf16> to vector<16x8xbf16>
    %46 = vector.extract_strided_slice %6 {offsets = [0, 8], sizes = [8, 8], strides = [1, 1]} : vector<8x32xbf16> to vector<8x8xbf16>
    %47 = vector.extract_strided_slice %8 {offsets = [0, 8], sizes = [8, 8], strides = [1, 1]} : vector<8x32xbf16> to vector<8x8xbf16>
    %cst_30 = arith.constant dense<0.000000e+00> : vector<16x8xf32>
    %48 = tpu.matmul %45, %46, %cst_30 {dimension_numbers = #tpu.dot_dimension_numbers<[1], [1], [0], [0], [0, 0, 1, 0], [], []>} : vector<16x8xbf16>, vector<8x8xbf16>, vector<16x8xf32> -> vector<16x8xf32>
    %c1 = arith.constant 1 : index
    %c0_31 = arith.constant 0 : index
    %c0_32 = arith.constant 0 : index
    %49 = vector.load %arg7[%c1, %c0_31, %c0_32] : memref<4x16x1xf32, #tpu.memory_space<vmem>>, vector<1x16x1xf32>
    %50 = vector.shape_cast %49 : vector<1x16x1xf32> to vector<16x1xf32>
    %cst_33 = arith.constant dense<0xFF800000> : vector<16xf32>
    %51 = vector.multi_reduction <maximumf>, %48, %cst_33 [1] : vector<16x8xf32> to vector<16xf32>
    %52 = vector.shape_cast %51 : vector<16xf32> to vector<16x1xf32>
    %53 = arith.maximumf %50, %52 : vector<16x1xf32>
    %54 = arith.subf %50, %53 : vector<16x1xf32>
    %55 = math.exp %54 : vector<16x1xf32>
    %56 = vector.broadcast %53 : vector<16x1xf32> to vector<16x8xf32>
    %57 = arith.subf %48, %56 : vector<16x8xf32>
    %58 = math.exp %57 : vector<16x8xf32>
    %c1_34 = arith.constant 1 : index
    %c0_35 = arith.constant 0 : index
    %c0_36 = arith.constant 0 : index
    %59 = vector.load %arg8[%c1_34, %c0_35, %c0_36] : memref<4x16x1xf32, #tpu.memory_space<vmem>>, vector<1x16x1xf32>
    %60 = vector.shape_cast %59 : vector<1x16x1xf32> to vector<16x1xf32>
    %61 = arith.mulf %55, %60 : vector<16x1xf32>
    %cst_37 = arith.constant dense<0.000000e+00> : vector<16xf32>
    %62 = vector.multi_reduction <add>, %58, %cst_37 [1] : vector<16x8xf32> to vector<16xf32>
    %63 = vector.shape_cast %62 : vector<16xf32> to vector<16x1xf32>
    %64 = arith.addf %61, %63 : vector<16x1xf32>
    %c1_38 = arith.constant 1 : index
    %c0_39 = arith.constant 0 : index
    %c0_40 = arith.constant 0 : index
    %65 = vector.load %arg8[%c1_38, %c0_39, %c0_40] : memref<4x16x1xf32, #tpu.memory_space<vmem>>, vector<1x16x1xf32>
    %66 = vector.shape_cast %65 : vector<1x16x1xf32> to vector<16x1xf32>
    %67 = vector.shape_cast %64 : vector<16x1xf32> to vector<1x16x1xf32>
    tpu.vector_store %arg8[%c1_38, %c0_39, %c0_40], %67 {strides = array<i32>} : memref<4x16x1xf32, #tpu.memory_space<vmem>>, vector<1x16x1xf32>,
    %c1_41 = arith.constant 1 : index
    %c0_42 = arith.constant 0 : index
    %c0_43 = arith.constant 0 : index
    %68 = vector.load %arg9[%c1_41, %c0_42, %c0_43] : memref<4x16x8xf32, #tpu.memory_space<vmem>>, vector<1x16x8xf32>
    %69 = vector.shape_cast %68 : vector<1x16x8xf32> to vector<16x8xf32>
    %70 = vector.broadcast %55 : vector<16x1xf32> to vector<16x8xf32>
    %71 = arith.mulf %70, %69 : vector<16x8xf32>
    %72 = arith.truncf %58 : vector<16x8xf32> to vector<16x8xbf16>
    %cst_44 = arith.constant dense<0.000000e+00> : vector<16x8xf32>
    %73 = tpu.matmul %72, %47, %cst_44 {dimension_numbers = #tpu.dot_dimension_numbers<[1], [0], [0], [1], [0, 0, 1, 1], [], []>} : vector<16x8xbf16>, vector<8x8xbf16>, vector<16x8xf32> -> vector<16x8xf32>
    %74 = arith.addf %71, %73 : vector<16x8xf32>
    %c1_45 = arith.constant 1 : index
    %c0_46 = arith.constant 0 : index
    %c0_47 = arith.constant 0 : index
    %75 = vector.load %arg9[%c1_45, %c0_46, %c0_47] : memref<4x16x8xf32, #tpu.memory_space<vmem>>, vector<1x16x8xf32>
    %76 = vector.shape_cast %75 : vector<1x16x8xf32> to vector<16x8xf32>
    %77 = vector.shape_cast %74 : vector<16x8xf32> to vector<1x16x8xf32>
    tpu.vector_store %arg9[%c1_45, %c0_46, %c0_47], %77 {strides = array<i32>} : memref<4x16x8xf32, #tpu.memory_space<vmem>>, vector<1x16x8xf32>,
    %c1_48 = arith.constant 1 : index
    %c0_49 = arith.constant 0 : index
    %c0_50 = arith.constant 0 : index
    %78 = vector.load %arg7[%c1_48, %c0_49, %c0_50] : memref<4x16x1xf32, #tpu.memory_space<vmem>>, vector<1x16x1xf32>
    %79 = vector.shape_cast %78 : vector<1x16x1xf32> to vector<16x1xf32>
    %80 = vector.shape_cast %53 : vector<16x1xf32> to vector<1x16x1xf32>
    tpu.vector_store %arg7[%c1_48, %c0_49, %c0_50], %80 {strides = array<i32>} : memref<4x16x1xf32, #tpu.memory_space<vmem>>, vector<1x16x1xf32>,
    %81 = vector.extract_strided_slice %4 {offsets = [0, 16], sizes = [16, 8], strides = [1, 1]} : vector<16x32xbf16> to vector<16x8xbf16>
    %82 = vector.extract_strided_slice %6 {offsets = [0, 16], sizes = [8, 8], strides = [1, 1]} : vector<8x32xbf16> to vector<8x8xbf16>
    %83 = vector.extract_strided_slice %8 {offsets = [0, 16], sizes = [8, 8], strides = [1, 1]} : vector<8x32xbf16> to vector<8x8xbf16>
    %cst_51 = arith.constant dense<0.000000e+00> : vector<16x8xf32>
    %84 = tpu.matmul %81, %82, %cst_51 {dimension_numbers = #tpu.dot_dimension_numbers<[1], [1], [0], [0], [0, 0, 1, 0], [], []>} : vector<16x8xbf16>, vector<8x8xbf16>, vector<16x8xf32> -> vector<16x8xf32>
    %c2 = arith.constant 2 : index
    %c0_52 = arith.constant 0 : index
    %c0_53 = arith.constant 0 : index
    %85 = vector.load %arg7[%c2, %c0_52, %c0_53] : memref<4x16x1xf32, #tpu.memory_space<vmem>>, vector<1x16x1xf32>
    %86 = vector.shape_cast %85 : vector<1x16x1xf32> to vector<16x1xf32>
    %cst_54 = arith.constant dense<0xFF800000> : vector<16xf32>
    %87 = vector.multi_reduction <maximumf>, %84, %cst_54 [1] : vector<16x8xf32> to vector<16xf32>
    %88 = vector.shape_cast %87 : vector<16xf32> to vector<16x1xf32>
    %89 = arith.maximumf %86, %88 : vector<16x1xf32>
    %90 = arith.subf %86, %89 : vector<16x1xf32>
    %91 = math.exp %90 : vector<16x1xf32>
    %92 = vector.broadcast %89 : vector<16x1xf32> to vector<16x8xf32>
    %93 = arith.subf %84, %92 : vector<16x8xf32>
    %94 = math.exp %93 : vector<16x8xf32>
    %c2_55 = arith.constant 2 : index
    %c0_56 = arith.constant 0 : index
    %c0_57 = arith.constant 0 : index
    %95 = vector.load %arg8[%c2_55, %c0_56, %c0_57] : memref<4x16x1xf32, #tpu.memory_space<vmem>>, vector<1x16x1xf32>
    %96 = vector.shape_cast %95 : vector<1x16x1xf32> to vector<16x1xf32>
    %97 = arith.mulf %91, %96 : vector<16x1xf32>
    %cst_58 = arith.constant dense<0.000000e+00> : vector<16xf32>
    %98 = vector.multi_reduction <add>, %94, %cst_58 [1] : vector<16x8xf32> to vector<16xf32>
    %99 = vector.shape_cast %98 : vector<16xf32> to vector<16x1xf32>
    %100 = arith.addf %97, %99 : vector<16x1xf32>
    %c2_59 = arith.constant 2 : index
    %c0_60 = arith.constant 0 : index
    %c0_61 = arith.constant 0 : index
    %101 = vector.load %arg8[%c2_59, %c0_60, %c0_61] : memref<4x16x1xf32, #tpu.memory_space<vmem>>, vector<1x16x1xf32>
    %102 = vector.shape_cast %101 : vector<1x16x1xf32> to vector<16x1xf32>
    %103 = vector.shape_cast %100 : vector<16x1xf32> to vector<1x16x1xf32>
    tpu.vector_store %arg8[%c2_59, %c0_60, %c0_61], %103 {strides = array<i32>} : memref<4x16x1xf32, #tpu.memory_space<vmem>>, vector<1x16x1xf32>,
    %c2_62 = arith.constant 2 : index
    %c0_63 = arith.constant 0 : index
    %c0_64 = arith.constant 0 : index
    %104 = vector.load %arg9[%c2_62, %c0_63, %c0_64] : memref<4x16x8xf32, #tpu.memory_space<vmem>>, vector<1x16x8xf32>
    %105 = vector.shape_cast %104 : vector<1x16x8xf32> to vector<16x8xf32>
    %106 = vector.broadcast %91 : vector<16x1xf32> to vector<16x8xf32>
    %107 = arith.mulf %106, %105 : vector<16x8xf32>
    %108 = arith.truncf %94 : vector<16x8xf32> to vector<16x8xbf16>
    %cst_65 = arith.constant dense<0.000000e+00> : vector<16x8xf32>
    %109 = tpu.matmul %108, %83, %cst_65 {dimension_numbers = #tpu.dot_dimension_numbers<[1], [0], [0], [1], [0, 0, 1, 1], [], []>} : vector<16x8xbf16>, vector<8x8xbf16>, vector<16x8xf32> -> vector<16x8xf32>
    %110 = arith.addf %107, %109 : vector<16x8xf32>
    %c2_66 = arith.constant 2 : index
    %c0_67 = arith.constant 0 : index
    %c0_68 = arith.constant 0 : index
    %111 = vector.load %arg9[%c2_66, %c0_67, %c0_68] : memref<4x16x8xf32, #tpu.memory_space<vmem>>, vector<1x16x8xf32>
    %112 = vector.shape_cast %111 : vector<1x16x8xf32> to vector<16x8xf32>
    %113 = vector.shape_cast %110 : vector<16x8xf32> to vector<1x16x8xf32>
    tpu.vector_store %arg9[%c2_66, %c0_67, %c0_68], %113 {strides = array<i32>} : memref<4x16x8xf32, #tpu.memory_space<vmem>>, vector<1x16x8xf32>,
    %c2_69 = arith.constant 2 : index
    %c0_70 = arith.constant 0 : index
    %c0_71 = arith.constant 0 : index
    %114 = vector.load %arg7[%c2_69, %c0_70, %c0_71] : memref<4x16x1xf32, #tpu.memory_space<vmem>>, vector<1x16x1xf32>
    %115 = vector.shape_cast %114 : vector<1x16x1xf32> to vector<16x1xf32>
    %116 = vector.shape_cast %89 : vector<16x1xf32> to vector<1x16x1xf32>
    tpu.vector_store %arg7[%c2_69, %c0_70, %c0_71], %116 {strides = array<i32>} : memref<4x16x1xf32, #tpu.memory_space<vmem>>, vector<1x16x1xf32>,
    %117 = vector.extract_strided_slice %4 {offsets = [0, 24], sizes = [16, 8], strides = [1, 1]} : vector<16x32xbf16> to vector<16x8xbf16>
    %118 = vector.extract_strided_slice %6 {offsets = [0, 24], sizes = [8, 8], strides = [1, 1]} : vector<8x32xbf16> to vector<8x8xbf16>
    %119 = vector.extract_strided_slice %8 {offsets = [0, 24], sizes = [8, 8], strides = [1, 1]} : vector<8x32xbf16> to vector<8x8xbf16>
    %cst_72 = arith.constant dense<0.000000e+00> : vector<16x8xf32>
    %120 = tpu.matmul %117, %118, %cst_72 {dimension_numbers = #tpu.dot_dimension_numbers<[1], [1], [0], [0], [0, 0, 1, 0], [], []>} : vector<16x8xbf16>, vector<8x8xbf16>, vector<16x8xf32> -> vector<16x8xf32>
    %c3 = arith.constant 3 : index
    %c0_73 = arith.constant 0 : index
    %c0_74 = arith.constant 0 : index
    %121 = vector.load %arg7[%c3, %c0_73, %c0_74] : memref<4x16x1xf32, #tpu.memory_space<vmem>>, vector<1x16x1xf32>
    %122 = vector.shape_cast %121 : vector<1x16x1xf32> to vector<16x1xf32>
    %cst_75 = arith.constant dense<0xFF800000> : vector<16xf32>
    %123 = vector.multi_reduction <maximumf>, %120, %cst_75 [1] : vector<16x8xf32> to vector<16xf32>
    %124 = vector.shape_cast %123 : vector<16xf32> to vector<16x1xf32>
    %125 = arith.maximumf %122, %124 : vector<16x1xf32>
    %126 = arith.subf %122, %125 : vector<16x1xf32>
    %127 = math.exp %126 : vector<16x1xf32>
    %128 = vector.broadcast %125 : vector<16x1xf32> to vector<16x8xf32>
    %129 = arith.subf %120, %128 : vector<16x8xf32>
    %130 = math.exp %129 : vector<16x8xf32>
    %c3_76 = arith.constant 3 : index
    %c0_77 = arith.constant 0 : index
    %c0_78 = arith.constant 0 : index
    %131 = vector.load %arg8[%c3_76, %c0_77, %c0_78] : memref<4x16x1xf32, #tpu.memory_space<vmem>>, vector<1x16x1xf32>
    %132 = vector.shape_cast %131 : vector<1x16x1xf32> to vector<16x1xf32>
    %133 = arith.mulf %127, %132 : vector<16x1xf32>
    %cst_79 = arith.constant dense<0.000000e+00> : vector<16xf32>
    %134 = vector.multi_reduction <add>, %130, %cst_79 [1] : vector<16x8xf32> to vector<16xf32>
    %135 = vector.shape_cast %134 : vector<16xf32> to vector<16x1xf32>
    %136 = arith.addf %133, %135 : vector<16x1xf32>
    %c3_80 = arith.constant 3 : index
    %c0_81 = arith.constant 0 : index
    %c0_82 = arith.constant 0 : index
    %137 = vector.load %arg8[%c3_80, %c0_81, %c0_82] : memref<4x16x1xf32, #tpu.memory_space<vmem>>, vector<1x16x1xf32>
    %138 = vector.shape_cast %137 : vector<1x16x1xf32> to vector<16x1xf32>
    %139 = vector.shape_cast %136 : vector<16x1xf32> to vector<1x16x1xf32>
    tpu.vector_store %arg8[%c3_80, %c0_81, %c0_82], %139 {strides = array<i32>} : memref<4x16x1xf32, #tpu.memory_space<vmem>>, vector<1x16x1xf32>,
    %c3_83 = arith.constant 3 : index
    %c0_84 = arith.constant 0 : index
    %c0_85 = arith.constant 0 : index
    %140 = vector.load %arg9[%c3_83, %c0_84, %c0_85] : memref<4x16x8xf32, #tpu.memory_space<vmem>>, vector<1x16x8xf32>
    %141 = vector.shape_cast %140 : vector<1x16x8xf32> to vector<16x8xf32>
    %142 = vector.broadcast %127 : vector<16x1xf32> to vector<16x8xf32>
    %143 = arith.mulf %142, %141 : vector<16x8xf32>
    %144 = arith.truncf %130 : vector<16x8xf32> to vector<16x8xbf16>
    %cst_86 = arith.constant dense<0.000000e+00> : vector<16x8xf32>
    %145 = tpu.matmul %144, %119, %cst_86 {dimension_numbers = #tpu.dot_dimension_numbers<[1], [0], [0], [1], [0, 0, 1, 1], [], []>} : vector<16x8xbf16>, vector<8x8xbf16>, vector<16x8xf32> -> vector<16x8xf32>
    %146 = arith.addf %143, %145 : vector<16x8xf32>
    %c3_87 = arith.constant 3 : index
    %c0_88 = arith.constant 0 : index
    %c0_89 = arith.constant 0 : index
    %147 = vector.load %arg9[%c3_87, %c0_88, %c0_89] : memref<4x16x8xf32, #tpu.memory_space<vmem>>, vector<1x16x8xf32>
    %148 = vector.shape_cast %147 : vector<1x16x8xf32> to vector<16x8xf32>
    %149 = vector.shape_cast %146 : vector<16x8xf32> to vector<1x16x8xf32>
    tpu.vector_store %arg9[%c3_87, %c0_88, %c0_89], %149 {strides = array<i32>} : memref<4x16x8xf32, #tpu.memory_space<vmem>>, vector<1x16x8xf32>,
    %c3_90 = arith.constant 3 : index
    %c0_91 = arith.constant 0 : index
    %c0_92 = arith.constant 0 : index
    %150 = vector.load %arg7[%c3_90, %c0_91, %c0_92] : memref<4x16x1xf32, #tpu.memory_space<vmem>>, vector<1x16x1xf32>
    %151 = vector.shape_cast %150 : vector<1x16x1xf32> to vector<16x1xf32>
    %152 = vector.shape_cast %125 : vector<16x1xf32> to vector<1x16x1xf32>
    tpu.vector_store %arg7[%c3_90, %c0_91, %c0_92], %152 {strides = array<i32>} : memref<4x16x1xf32, #tpu.memory_space<vmem>>, vector<1x16x1xf32>,
    %c0_i32_93 = arith.constant 0 : i32
    %153 = arith.cmpi eq, %arg2, %c0_i32_93 : i32
    %154 = arith.extui %153 : i1 to i32
    %c0_i32_94 = arith.constant 0 : i32
    %155 = arith.cmpi ne, %154, %c0_i32_94 : i32
    scf.if %155 {
      %c0_95 = arith.constant 0 : index
      %c0_96 = arith.constant 0 : index
      %c0_97 = arith.constant 0 : index
      %156 = vector.load %arg9[%c0_95, %c0_96, %c0_97] : memref<4x16x8xf32, #tpu.memory_space<vmem>>, vector<1x16x8xf32>
      %157 = vector.shape_cast %156 : vector<1x16x8xf32> to vector<16x8xf32>
      %c0_98 = arith.constant 0 : index
      %c0_99 = arith.constant 0 : index
      %c0_100 = arith.constant 0 : index
      %158 = vector.load %arg8[%c0_98, %c0_99, %c0_100] : memref<4x16x1xf32, #tpu.memory_space<vmem>>, vector<1x16x1xf32>
      %159 = vector.shape_cast %158 : vector<1x16x1xf32> to vector<16x1xf32>
      %160 = tpu.reciprocal %159 {approx = true} : vector<16x1xf32> -> vector<16x1xf32>
      %161 = vector.broadcast %160 : vector<16x1xf32> to vector<16x8xf32>
      %162 = arith.mulf %157, %161 : vector<16x8xf32>
      %c1_101 = arith.constant 1 : index
      %c0_102 = arith.constant 0 : index
      %c0_103 = arith.constant 0 : index
      %163 = vector.load %arg9[%c1_101, %c0_102, %c0_103] : memref<4x16x8xf32, #tpu.memory_space<vmem>>, vector<1x16x8xf32>
      %164 = vector.shape_cast %163 : vector<1x16x8xf32> to vector<16x8xf32>
      %c1_104 = arith.constant 1 : index
      %c0_105 = arith.constant 0 : index
      %c0_106 = arith.constant 0 : index
      %165 = vector.load %arg8[%c1_104, %c0_105, %c0_106] : memref<4x16x1xf32, #tpu.memory_space<vmem>>, vector<1x16x1xf32>
      %166 = vector.shape_cast %165 : vector<1x16x1xf32> to vector<16x1xf32>
      %167 = tpu.reciprocal %166 {approx = true} : vector<16x1xf32> -> vector<16x1xf32>
      %168 = vector.broadcast %167 : vector<16x1xf32> to vector<16x8xf32>
      %169 = arith.mulf %164, %168 : vector<16x8xf32>
      %c2_107 = arith.constant 2 : index
      %c0_108 = arith.constant 0 : index
      %c0_109 = arith.constant 0 : index
      %170 = vector.load %arg9[%c2_107, %c0_108, %c0_109] : memref<4x16x8xf32, #tpu.memory_space<vmem>>, vector<1x16x8xf32>
      %171 = vector.shape_cast %170 : vector<1x16x8xf32> to vector<16x8xf32>
      %c2_110 = arith.constant 2 : index
      %c0_111 = arith.constant 0 : index
      %c0_112 = arith.constant 0 : index
      %172 = vector.load %arg8[%c2_110, %c0_111, %c0_112] : memref<4x16x1xf32, #tpu.memory_space<vmem>>, vector<1x16x1xf32>
      %173 = vector.shape_cast %172 : vector<1x16x1xf32> to vector<16x1xf32>
      %174 = tpu.reciprocal %173 {approx = true} : vector<16x1xf32> -> vector<16x1xf32>
      %175 = vector.broadcast %174 : vector<16x1xf32> to vector<16x8xf32>
      %176 = arith.mulf %171, %175 : vector<16x8xf32>
      %c3_113 = arith.constant 3 : index
      %c0_114 = arith.constant 0 : index
      %c0_115 = arith.constant 0 : index
      %177 = vector.load %arg9[%c3_113, %c0_114, %c0_115] : memref<4x16x8xf32, #tpu.memory_space<vmem>>, vector<1x16x8xf32>
      %178 = vector.shape_cast %177 : vector<1x16x8xf32> to vector<16x8xf32>
      %c3_116 = arith.constant 3 : index
      %c0_117 = arith.constant 0 : index
      %c0_118 = arith.constant 0 : index
      %179 = vector.load %arg8[%c3_116, %c0_117, %c0_118] : memref<4x16x1xf32, #tpu.memory_space<vmem>>, vector<1x16x1xf32>
      %180 = vector.shape_cast %179 : vector<1x16x1xf32> to vector<16x1xf32>
      %181 = tpu.reciprocal %180 {approx = true} : vector<16x1xf32> -> vector<16x1xf32>
      %182 = vector.broadcast %181 : vector<16x1xf32> to vector<16x8xf32>
      %183 = arith.mulf %178, %182 : vector<16x8xf32>
      %184 = tpu.concatenate %162, %169, %176, %183 in 1 : vector<16x8xf32>, vector<16x8xf32>, vector<16x8xf32>, vector<16x8xf32> -> vector<16x32xf32>
      %185 = arith.truncf %184 : vector<16x32xf32> to vector<16x32xbf16>
      %c0_119 = arith.constant 0 : index
      %c0_120 = arith.constant 0 : index
      %c0_121 = arith.constant 0 : index
      %186 = vector.load %arg6[%c0_119, %c0_120, %c0_121] : memref<1x16x32xbf16, #tpu.memory_space<vmem>>, vector<1x16x32xbf16>
      %187 = vector.shape_cast %186 : vector<1x16x32xbf16> to vector<16x32xbf16>
      %188 = vector.shape_cast %185 : vector<16x32xbf16> to vector<1x16x32xbf16>
      tpu.vector_store %arg6[%c0_119, %c0_120, %c0_121], %188 {strides = array<i32>} : memref<1x16x32xbf16, #tpu.memory_space<vmem>>, vector<1x16x32xbf16>,
    } else {
    }
    return
  }
  func.func @transform_0(%arg0: i32, %arg1: i32, %arg2: i32) -> (i32, i32, i32) {
    %c0_i32 = arith.constant 0 : i32
    %c0_i32_0 = arith.constant 0 : i32
    return %arg0, %arg1, %c0_i32 : i32, i32, i32
  }
  func.func @transform_1(%arg0: i32, %arg1: i32, %arg2: i32) -> (i32, i32, i32) {
    %c0_i32 = arith.constant 0 : i32
    %c0_i32_0 = arith.constant 0 : i32
    return %arg0, %arg2, %c0_i32 : i32, i32, i32
  }
  func.func @transform_2(%arg0: i32, %arg1: i32, %arg2: i32) -> (i32, i32, i32) {
    %c0_i32 = arith.constant 0 : i32
    %c0_i32_0 = arith.constant 0 : i32
    return %arg0, %arg2, %c0_i32 : i32, i32, i32
  }
  func.func @transform_3(%arg0: i32, %arg1: i32, %arg2: i32) -> (i32, i32, i32) {
    %c0_i32 = arith.constant 0 : i32
    %c0_i32_0 = arith.constant 0 : i32
    return %arg0, %arg1, %c0_i32 : i32, i32, i32
  }
}

module attributes {stable_mosaic.version = 11 : i64} {
  func.func @_linear_kernel(%arg0: i32, %arg1: i32, %arg2: i32, %arg3: memref<32x32xbf16, #tpu.memory_space<vmem>>, %arg4: memref<32x32xbf16, #tpu.memory_space<vmem>>, %arg5: memref<1x32xf32, #tpu.memory_space<vmem>>, %arg6: memref<32x32xbf16, #tpu.memory_space<vmem>>, %arg7: memref<32x32xbf16, #tpu.memory_space<vmem>>, %arg8: memref<32x32xf32, #tpu.memory_space<vmem>>) attributes {dimension_semantics = [#tpu.dimension_semantics<parallel>, #tpu.dimension_semantics<parallel>, #tpu.dimension_semantics<arbitrary>], iteration_bounds = array<i64: 1, 1, 1>, scalar_prefetch = 0 : i64, scratch_operands = 1 : i64, tpu.core_type = #tpu.core_type<tc>, window_params = [{transform_indices = @transform_0, window_bounds = array<i64: 32, 32>}, {transform_indices = @transform_1, window_bounds = array<i64: 32, 32>}, {transform_indices = @transform_2, window_bounds = array<i64: 1, 32>}, {transform_indices = @transform_3, window_bounds = array<i64: 32, 32>}, {transform_indices = @transform_4, window_bounds = array<i64: 32, 32>}]} {
    %c0_i32 = arith.constant 0 : i32
    %0 = arith.cmpi eq, %arg2, %c0_i32 : i32
    %1 = arith.extui %0 : i1 to i32
    %c0_i32_0 = arith.constant 0 : i32
    %2 = arith.cmpi ne, %1, %c0_i32_0 : i32
    scf.if %2 {
      %cst_10 = arith.constant 0.000000e+00 : f32
      %12 = vector.broadcast %cst_10 : f32 to vector<32x32xf32>
      %c0_11 = arith.constant 0 : index
      %c0_12 = arith.constant 0 : index
      %13 = vector.load %arg8[%c0_11, %c0_12] : memref<32x32xf32, #tpu.memory_space<vmem>>, vector<32x32xf32>
      tpu.vector_store %arg8[%c0_11, %c0_12], %12 {strides = array<i32>} : memref<32x32xf32, #tpu.memory_space<vmem>>, vector<32x32xf32>,
    } else {
    }
    %c0 = arith.constant 0 : index
    %c0_1 = arith.constant 0 : index
    %3 = vector.load %arg8[%c0, %c0_1] : memref<32x32xf32, #tpu.memory_space<vmem>>, vector<32x32xf32>
    %c0_2 = arith.constant 0 : index
    %c0_3 = arith.constant 0 : index
    %4 = vector.load %arg3[%c0_2, %c0_3] : memref<32x32xbf16, #tpu.memory_space<vmem>>, vector<32x32xbf16>
    %c0_4 = arith.constant 0 : index
    %c0_5 = arith.constant 0 : index
    %5 = vector.load %arg4[%c0_4, %c0_5] : memref<32x32xbf16, #tpu.memory_space<vmem>>, vector<32x32xbf16>
    %cst = arith.constant dense<0.000000e+00> : vector<32x32xf32>
    %6 = tpu.matmul %4, %5, %cst {dimension_numbers = #tpu.dot_dimension_numbers<[1], [0], [0], [1], [0, 0, 1, 1], [], []>} : vector<32x32xbf16>, vector<32x32xbf16>, vector<32x32xf32> -> vector<32x32xf32>
    %7 = arith.addf %3, %6 : vector<32x32xf32>
    %c0_6 = arith.constant 0 : index
    %c0_7 = arith.constant 0 : index
    %8 = vector.load %arg8[%c0_6, %c0_7] : memref<32x32xf32, #tpu.memory_space<vmem>>, vector<32x32xf32>
    tpu.vector_store %arg8[%c0_6, %c0_7], %7 {strides = array<i32>} : memref<32x32xf32, #tpu.memory_space<vmem>>, vector<32x32xf32>,
    %c0_i32_8 = arith.constant 0 : i32
    %9 = arith.cmpi eq, %arg2, %c0_i32_8 : i32
    %10 = arith.extui %9 : i1 to i32
    %c0_i32_9 = arith.constant 0 : i32
    %11 = arith.cmpi ne, %10, %c0_i32_9 : i32
    scf.if %11 {
      %c0_10 = arith.constant 0 : index
      %c0_11 = arith.constant 0 : index
      %12 = vector.load %arg8[%c0_10, %c0_11] : memref<32x32xf32, #tpu.memory_space<vmem>>, vector<32x32xf32>
      %c0_12 = arith.constant 0 : index
      %c0_13 = arith.constant 0 : index
      %13 = vector.load %arg5[%c0_12, %c0_13] : memref<1x32xf32, #tpu.memory_space<vmem>>, vector<1x32xf32>
      %14 = vector.broadcast %13 : vector<1x32xf32> to vector<32x32xf32>
      %15 = arith.addf %12, %14 : vector<32x32xf32>
      %c0_14 = arith.constant 0 : index
      %c0_15 = arith.constant 0 : index
      %16 = vector.load %arg6[%c0_14, %c0_15] : memref<32x32xbf16, #tpu.memory_space<vmem>>, vector<32x32xbf16>
      %17 = arith.extf %16 : vector<32x32xbf16> to vector<32x32xf32>
      %18 = arith.addf %15, %17 : vector<32x32xf32>
      %19 = arith.truncf %18 : vector<32x32xf32> to vector<32x32xbf16>
      %c0_16 = arith.constant 0 : index
      %c0_17 = arith.constant 0 : index
      %20 = vector.load %arg7[%c0_16, %c0_17] : memref<32x32xbf16, #tpu.memory_space<vmem>>, vector<32x32xbf16>
      tpu.vector_store %arg7[%c0_16, %c0_17], %19 {strides = array<i32>} : memref<32x32xbf16, #tpu.memory_space<vmem>>, vector<32x32xbf16>,
    } else {
    }
    return
  }
  func.func @transform_0(%arg0: i32, %arg1: i32, %arg2: i32) -> (i32, i32) {
    %c0_i32 = arith.constant 0 : i32
    return %arg0, %arg2 : i32, i32
  }
  func.func @transform_1(%arg0: i32, %arg1: i32, %arg2: i32) -> (i32, i32) {
    %c0_i32 = arith.constant 0 : i32
    return %arg2, %arg1 : i32, i32
  }
  func.func @transform_2(%arg0: i32, %arg1: i32, %arg2: i32) -> (i32, i32) {
    %c0_i32 = arith.constant 0 : i32
    %c0_i32_0 = arith.constant 0 : i32
    return %c0_i32, %arg1 : i32, i32
  }
  func.func @transform_3(%arg0: i32, %arg1: i32, %arg2: i32) -> (i32, i32) {
    %c0_i32 = arith.constant 0 : i32
    return %arg0, %arg1 : i32, i32
  }
  func.func @transform_4(%arg0: i32, %arg1: i32, %arg2: i32) -> (i32, i32) {
    %c0_i32 = arith.constant 0 : i32
    return %arg0, %arg1 : i32, i32
  }
}

module attributes {stable_mosaic.version = 11 : i64} {
  func.func @_ln_mlp_kernel(%arg0: i32, %arg1: i32, %arg2: memref<32x32xbf16, #tpu.memory_space<vmem>>, %arg3: memref<1x32xf32, #tpu.memory_space<vmem>>, %arg4: memref<1x32xf32, #tpu.memory_space<vmem>>, %arg5: memref<32x128xbf16, #tpu.memory_space<vmem>>, %arg6: memref<1x128xf32, #tpu.memory_space<vmem>>, %arg7: memref<128x32xbf16, #tpu.memory_space<vmem>>, %arg8: memref<1x32xf32, #tpu.memory_space<vmem>>, %arg9: memref<32x32xbf16, #tpu.memory_space<vmem>>, %arg10: memref<32x32xbf16, #tpu.memory_space<vmem>>, %arg11: memref<32x32xf32, #tpu.memory_space<vmem>>) attributes {dimension_semantics = [#tpu.dimension_semantics<parallel>, #tpu.dimension_semantics<arbitrary>], iteration_bounds = array<i64: 1, 1>, scalar_prefetch = 0 : i64, scratch_operands = 2 : i64, tpu.core_type = #tpu.core_type<tc>, window_params = [{transform_indices = @transform_0, window_bounds = array<i64: 32, 32>}, {pipeline_mode = #tpu.pipeline_mode<synchronous>, transform_indices = @transform_1, window_bounds = array<i64: 1, 32>}, {pipeline_mode = #tpu.pipeline_mode<synchronous>, transform_indices = @transform_2, window_bounds = array<i64: 1, 32>}, {transform_indices = @transform_3, window_bounds = array<i64: 32, 128>}, {transform_indices = @transform_4, window_bounds = array<i64: 1, 128>}, {transform_indices = @transform_5, window_bounds = array<i64: 128, 32>}, {pipeline_mode = #tpu.pipeline_mode<synchronous>, transform_indices = @transform_6, window_bounds = array<i64: 1, 32>}, {transform_indices = @transform_7, window_bounds = array<i64: 32, 32>}]} {
    %c0_i32 = arith.constant 0 : i32
    %0 = arith.cmpi eq, %arg1, %c0_i32 : i32
    %1 = arith.extui %0 : i1 to i32
    %c0_i32_0 = arith.constant 0 : i32
    %2 = arith.cmpi ne, %1, %c0_i32_0 : i32
    scf.if %2 {
      %c0_19 = arith.constant 0 : index
      %c0_20 = arith.constant 0 : index
      %31 = vector.load %arg2[%c0_19, %c0_20] : memref<32x32xbf16, #tpu.memory_space<vmem>>, vector<32x32xbf16>
      %32 = arith.extf %31 : vector<32x32xbf16> to vector<32x32xf32>
      %cst_21 = arith.constant dense<0.000000e+00> : vector<32xf32>
      %33 = vector.multi_reduction <add>, %32, %cst_21 [1] : vector<32x32xf32> to vector<32xf32>
      %34 = vector.shape_cast %33 : vector<32xf32> to vector<32x1xf32>
      %cst_22 = arith.constant 3.200000e+01 : f32
      %35 = vector.broadcast %cst_22 : f32 to vector<32x1xf32>
      %36 = arith.divf %34, %35 : vector<32x1xf32>
      %37 = vector.broadcast %36 : vector<32x1xf32> to vector<32x32xf32>
      %38 = arith.subf %32, %37 : vector<32x32xf32>
      %39 = arith.mulf %38, %38 : vector<32x32xf32>
      %cst_23 = arith.constant dense<0.000000e+00> : vector<32xf32>
      %40 = vector.multi_reduction <add>, %39, %cst_23 [1] : vector<32x32xf32> to vector<32xf32>
      %41 = vector.shape_cast %40 : vector<32xf32> to vector<32x1xf32>
      %cst_24 = arith.constant 3.200000e+01 : f32
      %42 = vector.broadcast %cst_24 : f32 to vector<32x1xf32>
      %43 = arith.divf %41, %42 : vector<32x1xf32>
      %44 = vector.broadcast %36 : vector<32x1xf32> to vector<32x32xf32>
      %45 = arith.subf %32, %44 : vector<32x32xf32>
      %cst_25 = arith.constant 9.99999974E-6 : f32
      %46 = vector.broadcast %cst_25 : f32 to vector<32x1xf32>
      %47 = arith.addf %43, %46 : vector<32x1xf32>
      %48 = math.rsqrt %47 : vector<32x1xf32>
      %49 = vector.broadcast %48 : vector<32x1xf32> to vector<32x32xf32>
      %50 = arith.mulf %45, %49 : vector<32x32xf32>
      %c0_26 = arith.constant 0 : index
      %c0_27 = arith.constant 0 : index
      %51 = vector.load %arg3[%c0_26, %c0_27] : memref<1x32xf32, #tpu.memory_space<vmem>>, vector<1x32xf32>
      %52 = vector.broadcast %51 : vector<1x32xf32> to vector<32x32xf32>
      %53 = arith.mulf %50, %52 : vector<32x32xf32>
      %c0_28 = arith.constant 0 : index
      %c0_29 = arith.constant 0 : index
      %54 = vector.load %arg4[%c0_28, %c0_29] : memref<1x32xf32, #tpu.memory_space<vmem>>, vector<1x32xf32>
      %55 = vector.broadcast %54 : vector<1x32xf32> to vector<32x32xf32>
      %56 = arith.addf %53, %55 : vector<32x32xf32>
      %57 = arith.truncf %56 : vector<32x32xf32> to vector<32x32xbf16>
      %c0_30 = arith.constant 0 : index
      %c0_31 = arith.constant 0 : index
      %58 = vector.load %arg10[%c0_30, %c0_31] : memref<32x32xbf16, #tpu.memory_space<vmem>>, vector<32x32xbf16>
      tpu.vector_store %arg10[%c0_30, %c0_31], %57 {strides = array<i32>} : memref<32x32xbf16, #tpu.memory_space<vmem>>, vector<32x32xbf16>,
      %cst_32 = arith.constant 0.000000e+00 : f32
      %59 = vector.broadcast %cst_32 : f32 to vector<32x32xf32>
      %c0_33 = arith.constant 0 : index
      %c0_34 = arith.constant 0 : index
      %60 = vector.load %arg11[%c0_33, %c0_34] : memref<32x32xf32, #tpu.memory_space<vmem>>, vector<32x32xf32>
      tpu.vector_store %arg11[%c0_33, %c0_34], %59 {strides = array<i32>} : memref<32x32xf32, #tpu.memory_space<vmem>>, vector<32x32xf32>,
    } else {
    }
    %c0 = arith.constant 0 : index
    %c0_1 = arith.constant 0 : index
    %3 = vector.load %arg10[%c0, %c0_1] : memref<32x32xbf16, #tpu.memory_space<vmem>>, vector<32x32xbf16>
    %c0_2 = arith.constant 0 : index
    %c0_3 = arith.constant 0 : index
    %4 = vector.load %arg5[%c0_2, %c0_3] : memref<32x128xbf16, #tpu.memory_space<vmem>>, vector<32x128xbf16>
    %cst = arith.constant dense<0.000000e+00> : vector<32x128xf32>
    %5 = tpu.matmul %3, %4, %cst {dimension_numbers = #tpu.dot_dimension_numbers<[1], [0], [0], [1], [0, 0, 1, 1], [], []>} : vector<32x32xbf16>, vector<32x128xbf16>, vector<32x128xf32> -> vector<32x128xf32>
    %c0_4 = arith.constant 0 : index
    %c0_5 = arith.constant 0 : index
    %6 = vector.load %arg6[%c0_4, %c0_5] : memref<1x128xf32, #tpu.memory_space<vmem>>, vector<1x128xf32>
    %7 = vector.broadcast %6 : vector<1x128xf32> to vector<32x128xf32>
    %8 = arith.addf %5, %7 : vector<32x128xf32>
    %9 = arith.mulf %8, %8 : vector<32x128xf32>
    %10 = arith.mulf %8, %9 : vector<32x128xf32>
    %cst_6 = arith.constant 4.471500e-02 : f32
    %11 = vector.broadcast %cst_6 : f32 to vector<32x128xf32>
    %12 = arith.mulf %11, %10 : vector<32x128xf32>
    %13 = arith.addf %8, %12 : vector<32x128xf32>
    %cst_7 = arith.constant 0.797884583 : f32
    %14 = vector.broadcast %cst_7 : f32 to vector<32x128xf32>
    %15 = arith.mulf %14, %13 : vector<32x128xf32>
    %16 = math.tanh %15 : vector<32x128xf32>
    %cst_8 = arith.constant 1.000000e+00 : f32
    %17 = vector.broadcast %cst_8 : f32 to vector<32x128xf32>
    %18 = arith.addf %17, %16 : vector<32x128xf32>
    %cst_9 = arith.constant 5.000000e-01 : f32
    %19 = vector.broadcast %cst_9 : f32 to vector<32x128xf32>
    %20 = arith.mulf %19, %18 : vector<32x128xf32>
    %21 = arith.mulf %8, %20 : vector<32x128xf32>
    %c0_10 = arith.constant 0 : index
    %c0_11 = arith.constant 0 : index
    %22 = vector.load %arg11[%c0_10, %c0_11] : memref<32x32xf32, #tpu.memory_space<vmem>>, vector<32x32xf32>
    %23 = arith.truncf %21 : vector<32x128xf32> to vector<32x128xbf16>
    %c0_12 = arith.constant 0 : index
    %c0_13 = arith.constant 0 : index
    %24 = vector.load %arg7[%c0_12, %c0_13] : memref<128x32xbf16, #tpu.memory_space<vmem>>, vector<128x32xbf16>
    %cst_14 = arith.constant dense<0.000000e+00> : vector<32x32xf32>
    %25 = tpu.matmul %23, %24, %cst_14 {dimension_numbers = #tpu.dot_dimension_numbers<[1], [0], [0], [1], [0, 0, 1, 1], [], []>} : vector<32x128xbf16>, vector<128x32xbf16>, vector<32x32xf32> -> vector<32x32xf32>
    %26 = arith.addf %22, %25 : vector<32x32xf32>
    %c0_15 = arith.constant 0 : index
    %c0_16 = arith.constant 0 : index
    %27 = vector.load %arg11[%c0_15, %c0_16] : memref<32x32xf32, #tpu.memory_space<vmem>>, vector<32x32xf32>
    tpu.vector_store %arg11[%c0_15, %c0_16], %26 {strides = array<i32>} : memref<32x32xf32, #tpu.memory_space<vmem>>, vector<32x32xf32>,
    %c0_i32_17 = arith.constant 0 : i32
    %28 = arith.cmpi eq, %arg1, %c0_i32_17 : i32
    %29 = arith.extui %28 : i1 to i32
    %c0_i32_18 = arith.constant 0 : i32
    %30 = arith.cmpi ne, %29, %c0_i32_18 : i32
    scf.if %30 {
      %c0_19 = arith.constant 0 : index
      %c0_20 = arith.constant 0 : index
      %31 = vector.load %arg11[%c0_19, %c0_20] : memref<32x32xf32, #tpu.memory_space<vmem>>, vector<32x32xf32>
      %c0_21 = arith.constant 0 : index
      %c0_22 = arith.constant 0 : index
      %32 = vector.load %arg8[%c0_21, %c0_22] : memref<1x32xf32, #tpu.memory_space<vmem>>, vector<1x32xf32>
      %33 = vector.broadcast %32 : vector<1x32xf32> to vector<32x32xf32>
      %34 = arith.addf %31, %33 : vector<32x32xf32>
      %c0_23 = arith.constant 0 : index
      %c0_24 = arith.constant 0 : index
      %35 = vector.load %arg2[%c0_23, %c0_24] : memref<32x32xbf16, #tpu.memory_space<vmem>>, vector<32x32xbf16>
      %36 = arith.extf %35 : vector<32x32xbf16> to vector<32x32xf32>
      %37 = arith.addf %34, %36 : vector<32x32xf32>
      %38 = arith.truncf %37 : vector<32x32xf32> to vector<32x32xbf16>
      %c0_25 = arith.constant 0 : index
      %c0_26 = arith.constant 0 : index
      %39 = vector.load %arg9[%c0_25, %c0_26] : memref<32x32xbf16, #tpu.memory_space<vmem>>, vector<32x32xbf16>
      tpu.vector_store %arg9[%c0_25, %c0_26], %38 {strides = array<i32>} : memref<32x32xbf16, #tpu.memory_space<vmem>>, vector<32x32xbf16>,
    } else {
    }
    return
  }
  func.func @transform_0(%arg0: i32, %arg1: i32) -> (i32, i32) {
    %c0_i32 = arith.constant 0 : i32
    %c0_i32_0 = arith.constant 0 : i32
    return %arg0, %c0_i32 : i32, i32
  }
  func.func @transform_1(%arg0: i32, %arg1: i32) -> (i32, i32) {
    %c0_i32 = arith.constant 0 : i32
    %c0_i32_0 = arith.constant 0 : i32
    %c0_i32_1 = arith.constant 0 : i32
    return %c0_i32, %c0_i32_0 : i32, i32
  }
  func.func @transform_2(%arg0: i32, %arg1: i32) -> (i32, i32) {
    %c0_i32 = arith.constant 0 : i32
    %c0_i32_0 = arith.constant 0 : i32
    %c0_i32_1 = arith.constant 0 : i32
    return %c0_i32, %c0_i32_0 : i32, i32
  }
  func.func @transform_3(%arg0: i32, %arg1: i32) -> (i32, i32) {
    %c0_i32 = arith.constant 0 : i32
    %c0_i32_0 = arith.constant 0 : i32
    return %c0_i32, %arg1 : i32, i32
  }
  func.func @transform_4(%arg0: i32, %arg1: i32) -> (i32, i32) {
    %c0_i32 = arith.constant 0 : i32
    %c0_i32_0 = arith.constant 0 : i32
    return %c0_i32, %arg1 : i32, i32
  }
  func.func @transform_5(%arg0: i32, %arg1: i32) -> (i32, i32) {
    %c0_i32 = arith.constant 0 : i32
    %c0_i32_0 = arith.constant 0 : i32
    return %arg1, %c0_i32 : i32, i32
  }
  func.func @transform_6(%arg0: i32, %arg1: i32) -> (i32, i32) {
    %c0_i32 = arith.constant 0 : i32
    %c0_i32_0 = arith.constant 0 : i32
    %c0_i32_1 = arith.constant 0 : i32
    return %c0_i32, %c0_i32_0 : i32, i32
  }
  func.func @transform_7(%arg0: i32, %arg1: i32) -> (i32, i32) {
    %c0_i32 = arith.constant 0 : i32
    %c0_i32_0 = arith.constant 0 : i32
    return %arg0, %c0_i32 : i32, i32
  }
}

module attributes {stable_mosaic.version = 11 : i64} {
  func.func @_ln_linear_kernel(%arg0: i32, %arg1: i32, %arg2: memref<32x32xbf16, #tpu.memory_space<vmem>>, %arg3: memref<1x32xf32, #tpu.memory_space<vmem>>, %arg4: memref<1x32xf32, #tpu.memory_space<vmem>>, %arg5: memref<32x128xbf16, #tpu.memory_space<vmem>>, %arg6: memref<1x128xf32, #tpu.memory_space<vmem>>, %arg7: memref<32x128xf32, #tpu.memory_space<vmem>>, %arg8: memref<32x32xbf16, #tpu.memory_space<vmem>>) attributes {dimension_semantics = [#tpu.dimension_semantics<parallel>, #tpu.dimension_semantics<arbitrary>], iteration_bounds = array<i64: 1, 1>, scalar_prefetch = 0 : i64, scratch_operands = 1 : i64, tpu.core_type = #tpu.core_type<tc>, window_params = [{transform_indices = @transform_0, window_bounds = array<i64: 32, 32>}, {pipeline_mode = #tpu.pipeline_mode<synchronous>, transform_indices = @transform_1, window_bounds = array<i64: 1, 32>}, {pipeline_mode = #tpu.pipeline_mode<synchronous>, transform_indices = @transform_2, window_bounds = array<i64: 1, 32>}, {transform_indices = @transform_3, window_bounds = array<i64: 32, 128>}, {transform_indices = @transform_4, window_bounds = array<i64: 1, 128>}, {transform_indices = @transform_5, window_bounds = array<i64: 32, 128>}]} {
    %c0_i32 = arith.constant 0 : i32
    %0 = arith.cmpi eq, %arg1, %c0_i32 : i32
    %1 = arith.extui %0 : i1 to i32
    %c0_i32_0 = arith.constant 0 : i32
    %2 = arith.cmpi ne, %1, %c0_i32_0 : i32
    scf.if %2 {
      %c0_8 = arith.constant 0 : index
      %c0_9 = arith.constant 0 : index
      %10 = vector.load %arg2[%c0_8, %c0_9] : memref<32x32xbf16, #tpu.memory_space<vmem>>, vector<32x32xbf16>
      %11 = arith.extf %10 : vector<32x32xbf16> to vector<32x32xf32>
      %cst_10 = arith.constant dense<0.000000e+00> : vector<32xf32>
      %12 = vector.multi_reduction <add>, %11, %cst_10 [1] : vector<32x32xf32> to vector<32xf32>
      %13 = vector.shape_cast %12 : vector<32xf32> to vector<32x1xf32>
      %cst_11 = arith.constant 3.200000e+01 : f32
      %14 = vector.broadcast %cst_11 : f32 to vector<32x1xf32>
      %15 = arith.divf %13, %14 : vector<32x1xf32>
      %16 = vector.broadcast %15 : vector<32x1xf32> to vector<32x32xf32>
      %17 = arith.subf %11, %16 : vector<32x32xf32>
      %18 = arith.mulf %17, %17 : vector<32x32xf32>
      %cst_12 = arith.constant dense<0.000000e+00> : vector<32xf32>
      %19 = vector.multi_reduction <add>, %18, %cst_12 [1] : vector<32x32xf32> to vector<32xf32>
      %20 = vector.shape_cast %19 : vector<32xf32> to vector<32x1xf32>
      %cst_13 = arith.constant 3.200000e+01 : f32
      %21 = vector.broadcast %cst_13 : f32 to vector<32x1xf32>
      %22 = arith.divf %20, %21 : vector<32x1xf32>
      %23 = vector.broadcast %15 : vector<32x1xf32> to vector<32x32xf32>
      %24 = arith.subf %11, %23 : vector<32x32xf32>
      %cst_14 = arith.constant 9.99999974E-6 : f32
      %25 = vector.broadcast %cst_14 : f32 to vector<32x1xf32>
      %26 = arith.addf %22, %25 : vector<32x1xf32>
      %27 = math.rsqrt %26 : vector<32x1xf32>
      %28 = vector.broadcast %27 : vector<32x1xf32> to vector<32x32xf32>
      %29 = arith.mulf %24, %28 : vector<32x32xf32>
      %c0_15 = arith.constant 0 : index
      %c0_16 = arith.constant 0 : index
      %30 = vector.load %arg3[%c0_15, %c0_16] : memref<1x32xf32, #tpu.memory_space<vmem>>, vector<1x32xf32>
      %31 = vector.broadcast %30 : vector<1x32xf32> to vector<32x32xf32>
      %32 = arith.mulf %29, %31 : vector<32x32xf32>
      %c0_17 = arith.constant 0 : index
      %c0_18 = arith.constant 0 : index
      %33 = vector.load %arg4[%c0_17, %c0_18] : memref<1x32xf32, #tpu.memory_space<vmem>>, vector<1x32xf32>
      %34 = vector.broadcast %33 : vector<1x32xf32> to vector<32x32xf32>
      %35 = arith.addf %32, %34 : vector<32x32xf32>
      %36 = arith.truncf %35 : vector<32x32xf32> to vector<32x32xbf16>
      %c0_19 = arith.constant 0 : index
      %c0_20 = arith.constant 0 : index
      %37 = vector.load %arg8[%c0_19, %c0_20] : memref<32x32xbf16, #tpu.memory_space<vmem>>, vector<32x32xbf16>
      tpu.vector_store %arg8[%c0_19, %c0_20], %36 {strides = array<i32>} : memref<32x32xbf16, #tpu.memory_space<vmem>>, vector<32x32xbf16>,
    } else {
    }
    %c0 = arith.constant 0 : index
    %c0_1 = arith.constant 0 : index
    %3 = vector.load %arg8[%c0, %c0_1] : memref<32x32xbf16, #tpu.memory_space<vmem>>, vector<32x32xbf16>
    %c0_2 = arith.constant 0 : index
    %c0_3 = arith.constant 0 : index
    %4 = vector.load %arg5[%c0_2, %c0_3] : memref<32x128xbf16, #tpu.memory_space<vmem>>, vector<32x128xbf16>
    %cst = arith.constant dense<0.000000e+00> : vector<32x128xf32>
    %5 = tpu.matmul %3, %4, %cst {dimension_numbers = #tpu.dot_dimension_numbers<[1], [0], [0], [1], [0, 0, 1, 1], [], []>} : vector<32x32xbf16>, vector<32x128xbf16>, vector<32x128xf32> -> vector<32x128xf32>
    %c0_4 = arith.constant 0 : index
    %c0_5 = arith.constant 0 : index
    %6 = vector.load %arg6[%c0_4, %c0_5] : memref<1x128xf32, #tpu.memory_space<vmem>>, vector<1x128xf32>
    %7 = vector.broadcast %6 : vector<1x128xf32> to vector<32x128xf32>
    %8 = arith.addf %5, %7 : vector<32x128xf32>
    %c0_6 = arith.constant 0 : index
    %c0_7 = arith.constant 0 : index
    %9 = vector.load %arg7[%c0_6, %c0_7] : memref<32x128xf32, #tpu.memory_space<vmem>>, vector<32x128xf32>
    tpu.vector_store %arg7[%c0_6, %c0_7], %8 {strides = array<i32>} : memref<32x128xf32, #tpu.memory_space<vmem>>, vector<32x128xf32>,
    return
  }
  func.func @transform_0(%arg0: i32, %arg1: i32) -> (i32, i32) {
    %c0_i32 = arith.constant 0 : i32
    %c0_i32_0 = arith.constant 0 : i32
    return %arg0, %c0_i32 : i32, i32
  }
  func.func @transform_1(%arg0: i32, %arg1: i32) -> (i32, i32) {
    %c0_i32 = arith.constant 0 : i32
    %c0_i32_0 = arith.constant 0 : i32
    %c0_i32_1 = arith.constant 0 : i32
    return %c0_i32, %c0_i32_0 : i32, i32
  }
  func.func @transform_2(%arg0: i32, %arg1: i32) -> (i32, i32) {
    %c0_i32 = arith.constant 0 : i32
    %c0_i32_0 = arith.constant 0 : i32
    %c0_i32_1 = arith.constant 0 : i32
    return %c0_i32, %c0_i32_0 : i32, i32
  }
  func.func @transform_3(%arg0: i32, %arg1: i32) -> (i32, i32) {
    %c0_i32 = arith.constant 0 : i32
    %c0_i32_0 = arith.constant 0 : i32
    return %c0_i32, %arg1 : i32, i32
  }
  func.func @transform_4(%arg0: i32, %arg1: i32) -> (i32, i32) {
    %c0_i32 = arith.constant 0 : i32
    %c0_i32_0 = arith.constant 0 : i32
    return %c0_i32, %arg1 : i32, i32
  }
  func.func @transform_5(%arg0: i32, %arg1: i32) -> (i32, i32) {
    %c0_i32 = arith.constant 0 : i32
    return %arg0, %arg1 : i32, i32
  }
}

</mosaic_0001>

<bundles_post_ra>
// kernel: fwd.51
= control target key start
LH: loop header
LB: loop body
LE: loop exit
PB: predicated region body
PF: predicated region fallthrough
CT: control target
= control target key end

     0   :  { %vm48_vm0 = vcmask 1046528   ;;  %vm49_vm1 = vcmask 1047552   ;;  %vm41_vm2 = vcmask 121856   ;;  %v180_v1 = vmov 65535   ;;  %s242_s1 = inlined_call_operand.vmem [shape: bf16[15,32], index: 1, kind: input, shape index: {}]   ;;  %s243_s0 = inlined_call_operand.vmem [shape: f32[32,15], index: 0, kind: input, shape index: {}]   ;;  %s244_s2 = inlined_call_operand.vmem [shape: f32[1,32], index: 2, kind: input, shape index: {}]   ;;  %s245_s3 = inlined_call_operand.vmem [shape: bf16[32,32], index: 3, kind: output, shape index: {}]  }
   0x1   :  { %v179_v0 = vld [vmem:[%s242_s1] sm:$0xff]   ;;  %v50_v2 = vsel %vm48_vm0, 4294967295, %v180_v1  ;;  %v29_v5 = vld [vmem:[%s243_s0 + $0x8] sm:$0xff]  ;;  %v30_v6 = vld [vmem:[%s243_s0 + $0x10] sm:$0xff]  ;;  %vm19_vm3 = vcmask 261120   ;;  %v181_v10 = vmov 0.0  }
   0x2   :  { %v51_v3 = vsel %vm49_vm1, %v50_v2, 0  ;;  %v28_v4 = vld [vmem:[%s243_s0] sm:$0xff]  ;;  %v31_v9 = vld [vmem:[%s243_s0 + $0x18] sm:$0xff]  ;;  %22 = vst.msk [vmem:[#allocation2 + $0x10] sm:$0xff] %vm19_vm3, %v181_v10  ;;  %20 = vst.msk [vmem:[#allocation2] sm:$0xff] %vm19_vm3, %v181_v10  ;;  %vm147_vm4 = vcmask 257024  }
   0x3   :  { %v53_v7 = vand.u32 %v179_v0, %v51_v3  ;;  %v32_v8 = vpack.c.bf16 %v29_v5, %v28_v4  ;;  %21 = vst.msk [vmem:[#allocation2 + $0x8] sm:$0xff] %vm19_vm3, %v181_v10  ;;  %23 = vst.msk [vmem:[#allocation2 + $0x18] sm:$0xff] %vm19_vm3, %v181_v10  ;;  %v33_v11 = vpack.c.bf16 %v31_v9, %v30_v6  ;;  %v159_v24 = vld [vmem:[%s244_s2] ss:$0 sm:$0xff] }
   0x5   :  { %171 = vmatprep.subr.bf16.mxu0 %v53_v7  ;;  %173 = vmatprep.mubr.msk.bf16.mxu0 %vm41_vm2, %v32_v8 }
   0x6   :  { %172 = vmatpush3.bf16.msra.mxu0 %v53_v7 }
   0x9   :  { %174 = vmatmul.mubr.msk.bf16.vlgmr.msra.gmra.mrb[0].mxu0 %vm41_vm2, %v33_v11  ;;  %v26_v12 = vld [vmem:[#allocation2 + $0x10] sm:$0xff]  ;;  %v24_v13 = vld [vmem:[#allocation2] sm:$0xff] }
   0xa   :  { %v27_v15 = vld [vmem:[#allocation2 + $0x18] sm:$0xff]  ;;  %v25_v18 = vld [vmem:[#allocation2 + $0x8] sm:$0xff] }
  0xdc   :  { %v175_v14 = vpop.f32.mrb[0].mxu0 }
  0xdd   :  { %v106_v16 = vadd.f32 %v175_v14, %v26_v12  ;;  %v89_v17 = vpop.f32.mrb[1].mxu0 }
  0xde   :  { %v104_v19 = vadd.f32 %v89_v17, %v24_v13  ;;  %v176_v20 = vpop.f32.mrb[2].mxu0 }
  0xdf   :  { %111 = vst.msk [vmem:[#allocation2 + $0x10] sm:$0xff] %vm19_vm3, %v106_v16  ;;  %v107_v21 = vadd.f32 %v176_v20, %v27_v15  ;;  %v92_v22 = vpop.f32.mrb[3].mxu0 }
  0xe0   :  { %109 = vst.msk [vmem:[#allocation2] sm:$0xff] %vm19_vm3, %v104_v19  ;;  %v105_v23 = vadd.f32 %v92_v22, %v25_v18 }
  0xe1   :  { %112 = vst.msk [vmem:[#allocation2 + $0x18] sm:$0xff] %vm19_vm3, %v107_v21 }
  0xe2   :  { %110 = vst.msk [vmem:[#allocation2 + $0x8] sm:$0xff] %vm19_vm3, %v105_v23 }
  0xe6   :  { %v118_v25 = vld [vmem:[#allocation2 + $0x10] sm:$0xff] }
  0xe7   :  { %v129_v26 = vadd.f32 %v159_v24, %v118_v25  ;;  %v116_v27 = vld [vmem:[#allocation2] sm:$0xff] }
  0xe8   :  { %v127_v28 = vadd.f32 %v159_v24, %v116_v27  ;;  %v119_v29 = vld [vmem:[#allocation2 + $0x18] sm:$0xff] }
  0xe9   :  { %v166_v30 = vpack.c.bf16 %v129_v26, %v129_v26  ;;  %v130_v31 = vadd.f32 %v159_v24, %v119_v29  ;;  %v117_v32 = vld [vmem:[#allocation2 + $0x8] sm:$0xff] }
  0xea   :  { %v164_v33 = vpack.c.bf16 %v127_v28, %v127_v28  ;;  %v128_v34 = vadd.f32 %v159_v24, %v117_v32 }
  0xeb   :  { %150 = vst.msk [vmem:[%s245_s3 + $0x8] sm:$0xf] %vm147_vm4, %v166_v30  ;;  %v167_v35 = vpack.c.bf16 %v130_v31, %v130_v31 }
  0xec   :  { %148 = vst.msk [vmem:[%s245_s3] sm:$0xf] %vm147_vm4, %v164_v33  ;;  %v165_v36 = vpack.c.bf16 %v128_v34, %v128_v34 }
  0xed   :  { %151 = vst.msk [vmem:[%s245_s3 + $0xc] sm:$0xf] %vm147_vm4, %v167_v35 }
  0xee   :  { %149 = vst.msk [vmem:[%s245_s3 + $0x4] sm:$0xf] %vm147_vm4, %v165_v36 }

// kernel: fwd.52
= control target key start
LH: loop header
LB: loop body
LE: loop exit
PB: predicated region body
PF: predicated region fallthrough
CT: control target
= control target key end

     0   :  { %vm30_vm0 = vcmask 261120   ;;  %vm200_vm1 = vcmask 257024   ;;  %s321_s0 = inlined_call_operand.vmem [shape: bf16[32,32], index: 0, kind: input, shape index: {}]   ;;  %s322_s3 = inlined_call_operand.vmem [shape: bf16[32,32], index: 3, kind: input, shape index: {}]   ;;  %s323_s1 = inlined_call_operand.vmem [shape: f32[1,32], index: 1, kind: input, shape index: {}]   ;;  %s324_s2 = inlined_call_operand.vmem [shape: f32[1,32], index: 2, kind: input, shape index: {}]   ;;  %s325_s4 = inlined_call_operand.vmem [shape: bf16[32,32], index: 4, kind: output, shape index: {}]  }
   0x1   :  { %v224_v0 = vld [vmem:[%s321_s0] sm:$0xff]   ;;  %v231_v1 = vld [vmem:[%s321_s0 + $0x8] sm:$0xff]  }
   0x2   :  { %v225_v2 = vunpack.c.l.bf16 %v224_v0  ;;  %v229_v3 = vunpack.c.l.bf16 %v231_v1  ;;  %v226_v4 = vunpack.c.h.bf16 %v224_v0  ;;  %v230_v5 = vunpack.c.h.bf16 %v231_v1  ;;  %v244_v30 = vld [vmem:[%s322_s3] sm:$0xff]   ;;  %v245_v31 = vld [vmem:[%s322_s3 + $0x8] sm:$0xff]  }
   0x3   :  { %236 = vmatprep.subr.bf16.mxu0 %v244_v30  ;;  %v209_v46 = vld [vmem:[%s323_s1] ss:$0 sm:$0xff] }
   0x4   :  { %v31_v6 = vsel %vm30_vm0, %v225_v2, 0.0  ;;  %v37_v7 = vsel %vm30_vm0, %v229_v3, 0.0  ;;  %v34_v8 = vsel %vm30_vm0, %v226_v4, 0.0  ;;  %v40_v9 = vsel %vm30_vm0, %v230_v5, 0.0  ;;  %237 = vmatpush3.bf16.msra.mxu0 %v244_v30  ;;  %v210_v51 = vld [vmem:[%s324_s2] ss:$0 sm:$0xff] }
   0x5   :  { %32 = vadd.xlane.f32.xlu0 %v31_v6  ;;  %38 = vadd.xlane.f32.xlu1 %v37_v7 }
   0x6   :  { %238 = vmatprep.subr.bf16.mxu0 %v245_v31 }
   0x8   :  { %239 = vmatpush3.bf16.msra.mxu0 %v245_v31 }
   0x9   :  { %35 = vadd.xlane.f32.xlu0 %v34_v8  ;;  %41 = vadd.xlane.f32.xlu1 %v40_v9 }
  0x92   :  { %v33_v10 = vpop.xlane.xlu0 %32  ;;  %v39_v11 = vpop.xlane.xlu1 %38 }
  0x93   :  { %v44_v12 = vmul.f32 0.03125, %v33_v10  ;;  %v46_v13 = vmul.f32 0.03125, %v39_v11 }
  0x95   :  { %v48_v14 = vsub.f32 %v225_v2, %v44_v12  ;;  %v50_v15 = vsub.f32 %v229_v3, %v46_v13 }
  0x96   :  { %v36_v16 = vpop.xlane.xlu0 %35  ;;  %v42_v17 = vpop.xlane.xlu1 %41 }
  0x97   :  { %v45_v18 = vmul.f32 0.03125, %v36_v16  ;;  %v47_v19 = vmul.f32 0.03125, %v42_v17  ;;  %v52_v20 = vmul.f32 %v48_v14, %v48_v14  ;;  %v54_v21 = vmul.f32 %v50_v15, %v50_v15 }
  0x99   :  { %v49_v22 = vsub.f32 %v226_v4, %v45_v18  ;;  %v51_v23 = vsub.f32 %v230_v5, %v47_v19  ;;  %v56_v24 = vsel %vm30_vm0, %v52_v20, 0.0  ;;  %v62_v25 = vsel %vm30_vm0, %v54_v21, 0.0 }
  0x9a   :  { %57 = vadd.xlane.f32.xlu0 %v56_v24 }
  0x9b   :  { %v53_v26 = vmul.f32 %v49_v22, %v49_v22  ;;  %v55_v27 = vmul.f32 %v51_v23, %v51_v23 }
  0x9d   :  { %v59_v28 = vsel %vm30_vm0, %v53_v26, 0.0  ;;  %v65_v29 = vsel %vm30_vm0, %v55_v27, 0.0 }
  0x9e   :  { %63 = vadd.xlane.f32.xlu0 %v62_v25  ;;  %60 = vadd.xlane.f32.xlu1 %v59_v28 }
  0xa2   :  { %66 = vadd.xlane.f32.xlu1 %v65_v29 }
 0x127   :  { %v58_v32 = vpop.xlane.xlu0 %57 }
 0x128   :  { %v68_v33 = vmul.f32 0.03125, %v58_v32 }
 0x12a   :  { %v72_v34 = vadd.f32 1e-05, %v68_v33 }
 0x12b   :  { %v61_v35 = vpop.xlane.xlu1 %60  ;;  %v64_v36 = vpop.xlane.xlu0 %63 }
 0x12c   :  { %246 = vrsqrt.f32 %v72_v34  ;;  %v69_v37 = vmul.f32 0.03125, %v61_v35  ;;  %v70_v38 = vmul.f32 0.03125, %v64_v36 }
 0x12e   :  { %v73_v39 = vadd.f32 1e-05, %v69_v37  ;;  %v74_v40 = vadd.f32 1e-05, %v70_v38 }
 0x12f   :  { %v67_v41 = vpop.xlane.xlu1 %66 }
 0x130   :  { %248 = vrsqrt.f32 %v73_v39  ;;  %v71_v42 = vmul.f32 0.03125, %v67_v41 }
 0x131   :  { %250 = vrsqrt.f32 %v74_v40 }
 0x132   :  { %v75_v43 = vadd.f32 1e-05, %v71_v42 }
 0x134   :  { %252 = vrsqrt.f32 %v75_v43 }
 0x136   :  { %v247_v44 = vpop.eup %246 }
 0x137   :  { %v80_v45 = vmul.f32 %v247_v44, %v48_v14 }
 0x139   :  { %v91_v49 = vmul.f32 %v209_v46, %v80_v45 }
 0x13a   :  { %v249_v47 = vpop.eup %248 }
 0x13b   :  { %v251_v48 = vpop.eup %250  ;;  %v81_v50 = vmul.f32 %v249_v47, %v49_v22  ;;  %v102_v55 = vadd.f32 %v210_v51, %v91_v49 }
 0x13c   :  { %v82_v52 = vmul.f32 %v251_v48, %v50_v15 }
 0x13d   :  { %v92_v53 = vmul.f32 %v209_v46, %v81_v50 }
 0x13e   :  { %v253_v54 = vpop.eup %252  ;;  %v93_v57 = vmul.f32 %v209_v46, %v82_v52 }
 0x13f   :  { %v103_v56 = vadd.f32 %v210_v51, %v92_v53  ;;  %v83_v58 = vmul.f32 %v253_v54, %v51_v23 }
 0x140   :  { %v104_v61 = vadd.f32 %v210_v51, %v93_v57 }
 0x141   :  { %v106_v59 = vpack.c.bf16 %v103_v56, %v102_v55  ;;  %v94_v60 = vmul.f32 %v209_v46, %v83_v58 }
 0x143   :  { %108 = vst.msk [vmem:[#allocation2] sm:$0xff] %vm30_vm0, %v106_v59  ;;  %v105_v62 = vadd.f32 %v210_v51, %v94_v60 }
 0x145   :  { %v107_v63 = vpack.c.bf16 %v105_v62, %v104_v61 }
 0x147   :  { %109 = vst.msk [vmem:[#allocation2 + $0x8] sm:$0xff] %vm30_vm0, %v107_v63 }
 0x14a   :  { %v110_v0 = vld [vmem:[#allocation2] sm:$0xff] }
 0x14b   :  { %240 = vmatprep.mubr.msk.bf16.mxu0 %vm30_vm0, %v110_v0 }
 0x14e   :  { %v111_v1 = vld [vmem:[#allocation2 + $0x8] sm:$0xff] }
 0x14f   :  { %241 = vmatmul.mubr.msk.bf16.vlgmr.msra.gmra.mrb[0].mxu0 %vm30_vm0, %v111_v1 }
 0x222   :  { %v242_v2 = vpop.f32.mrb[0].mxu0 }
 0x223   :  { %v221_v3 = vpack.c.bf16 %v242_v2, %v242_v2  ;;  %v169_v4 = vpop.f32.mrb[1].mxu0 }
 0x224   :  { %v219_v5 = vpack.c.bf16 %v169_v4, %v169_v4  ;;  %v243_v6 = vpop.f32.mrb[2].mxu0 }
 0x225   :  { %203 = vst.msk [vmem:[%s325_s4 + $0x8] sm:$0xf] %vm200_vm1, %v221_v3  ;;  %v222_v7 = vpack.c.bf16 %v243_v6, %v243_v6  ;;  %v172_v8 = vpop.f32.mrb[3].mxu0 }
 0x226   :  { %201 = vst.msk [vmem:[%s325_s4] sm:$0xf] %vm200_vm1, %v219_v5  ;;  %v220_v9 = vpack.c.bf16 %v172_v8, %v172_v8 }
 0x227   :  { %204 = vst.msk [vmem:[%s325_s4 + $0xc] sm:$0xf] %vm200_vm1, %v222_v7 }
 0x228   :  { %202 = vst.msk [vmem:[%s325_s4 + $0x4] sm:$0xf] %vm200_vm1, %v220_v9 }

// kernel: fwd.31
= control target key start
LH: loop header
LB: loop body
LE: loop exit
PB: predicated region body
PF: predicated region fallthrough
CT: control target
= control target key end

     0   :  { %vm26_vm0 = vcmask 261120   ;;  %v183_v16 = vmov 0.0   ;;  %vm184_vm1 = vmmov 0   ;;  %vm144_vm2 = vcmask 257024   ;;  %s237_s0 = inlined_call_operand.vmem [shape: bf16[16,32], index: 0, kind: input, shape index: {}]   ;;  %s238_s3 = inlined_call_operand.vmem [shape: bf16[32,32], index: 3, kind: input, shape index: {}]   ;;  %s239_s1 = inlined_call_operand.vmem [shape: f32[1,32], index: 1, kind: input, shape index: {}]   ;;  %s240_s2 = inlined_call_operand.vmem [shape: f32[1,32], index: 2, kind: input, shape index: {}]   ;;  %s241_s4 = inlined_call_operand.vmem [shape: bf16[16,32], index: 4, kind: output, shape index: {}]  }
   0x1   :  { %v161_v0 = vld [vmem:[%s237_s0] sm:$0xff]   ;;  %167 = vmatprep.subr.bf16.mxu0 %v183_v16  ;;  %v178_v17 = vld [vmem:[%s238_s3 + $0x8] sm:$0xff]   ;;  %171 = vmatprep.mubr.msk.bf16.mxu0 %vm184_vm1, %v183_v16 }
   0x2   :  { %v162_v1 = vunpack.c.l.bf16 %v161_v0  ;;  %v163_v2 = vunpack.c.h.bf16 %v161_v0  ;;  %v177_v15 = vld [vmem:[%s238_s3] sm:$0xff]  }
   0x3   :  { %168 = vmatpush3.bf16.msra.mxu0 %v177_v15  ;;  %v151_v26 = vld [vmem:[%s239_s1] ss:$0 sm:$0xff] }
   0x4   :  { %v27_v3 = vsel %vm26_vm0, %v162_v1, 0.0  ;;  %v30_v4 = vsel %vm26_vm0, %v163_v2, 0.0  ;;  %169 = vmatprep.subr.bf16.mxu0 %v183_v16  ;;  %v152_v30 = vld [vmem:[%s240_s2] ss:$0 sm:$0xff] }
   0x5   :  { %28 = vadd.xlane.f32.xlu0 %v27_v3 }
   0x7   :  { %170 = vmatpush3.bf16.msra.mxu0 %v178_v17 }
   0x9   :  { %31 = vadd.xlane.f32.xlu0 %v30_v4 }
  0x92   :  { %v29_v5 = vpop.xlane.xlu0 %28 }
  0x93   :  { %v34_v6 = vmul.f32 0.03125, %v29_v5 }
  0x95   :  { %v36_v7 = vsub.f32 %v162_v1, %v34_v6 }
  0x96   :  { %v32_v8 = vpop.xlane.xlu0 %31 }
  0x97   :  { %v35_v9 = vmul.f32 0.03125, %v32_v8  ;;  %v38_v10 = vmul.f32 %v36_v7, %v36_v7 }
  0x99   :  { %v37_v11 = vsub.f32 %v163_v2, %v35_v9  ;;  %v40_v12 = vsel %vm26_vm0, %v38_v10, 0.0 }
  0x9a   :  { %41 = vadd.xlane.f32.xlu1 %v40_v12 }
  0x9b   :  { %v39_v13 = vmul.f32 %v37_v11, %v37_v11 }
  0x9d   :  { %v43_v14 = vsel %vm26_vm0, %v39_v13, 0.0 }
  0x9e   :  { %44 = vadd.xlane.f32.xlu1 %v43_v14 }
 0x127   :  { %v42_v18 = vpop.xlane.xlu1 %41 }
 0x128   :  { %v46_v19 = vmul.f32 0.03125, %v42_v18 }
 0x12a   :  { %v48_v20 = vadd.f32 1e-05, %v46_v19 }
 0x12b   :  { %v45_v21 = vpop.xlane.xlu1 %44 }
 0x12c   :  { %179 = vrsqrt.f32 %v48_v20  ;;  %v47_v22 = vmul.f32 0.03125, %v45_v21 }
 0x12e   :  { %v49_v23 = vadd.f32 1e-05, %v47_v22 }
 0x130   :  { %181 = vrsqrt.f32 %v49_v23 }
 0x136   :  { %v180_v24 = vpop.eup %179 }
 0x137   :  { %v52_v25 = vmul.f32 %v180_v24, %v36_v7 }
 0x139   :  { %v61_v28 = vmul.f32 %v151_v26, %v52_v25 }
 0x13a   :  { %v182_v27 = vpop.eup %181 }
 0x13b   :  { %v53_v29 = vmul.f32 %v182_v27, %v37_v11  ;;  %v70_v32 = vadd.f32 %v152_v30, %v61_v28 }
 0x13d   :  { %v62_v31 = vmul.f32 %v151_v26, %v53_v29 }
 0x13f   :  { %v71_v33 = vadd.f32 %v152_v30, %v62_v31 }
 0x141   :  { %v72_v34 = vpack.c.bf16 %v71_v33, %v70_v32 }
 0x143   :  { %73 = vst.msk [vmem:[#allocation2] sm:$0xff] %vm26_vm0, %v72_v34 }
 0x14a   :  { %v74_v35 = vld [vmem:[#allocation2] sm:$0xff] }
 0x14b   :  { %172 = vmatmul.mubr.msk.bf16.vlgmr.msra.gmra.mrb[0].mxu0 %vm26_vm0, %v74_v35 }
 0x21e   :  { %v129_v36 = vpop.f32.mrb[0].mxu0 }
 0x21f   :  { %v158_v37 = vpack.c.bf16 %v129_v36, %v129_v36  ;;  %v173_v38 = vpop.f32.mrb[1].mxu0 }
 0x220   :  { %v132_v39 = vpop.f32.mrb[2].mxu0 }
 0x221   :  { %145 = vst.msk [vmem:[%s241_s4] sm:$0xf] %vm144_vm2, %v158_v37  ;;  %v159_v40 = vpack.c.bf16 %v132_v39, %v132_v39  ;;  %v174_v41 = vpop.f32.mrb[3].mxu0 }
 0x223   :  { %146 = vst.msk [vmem:[%s241_s4 + $0x4] sm:$0xf] %vm144_vm2, %v159_v40 }

// kernel: fwd.32
= control target key start
LH: loop header
LB: loop body
LE: loop exit
PB: predicated region body
PF: predicated region fallthrough
CT: control target
= control target key end

     0   :  { %vm38_vm0 = vcmask 261120   ;;  %vm312_vm1 = vcmask 519168   ;;  %s553_s0 = inlined_call_operand.vmem [shape: bf16[64,32], index: 0, kind: input, shape index: {}]   ;;  %s554_s3 = inlined_call_operand.vmem [shape: bf16[32,64], index: 3, kind: input, shape index: {}]   ;;  %s555_s1 = inlined_call_operand.vmem [shape: f32[1,32], index: 1, kind: input, shape index: {}]   ;;  %s556_s2 = inlined_call_operand.vmem [shape: f32[1,32], index: 2, kind: input, shape index: {}]   ;;  %s557_s4 = inlined_call_operand.vmem [shape: bf16[64,64], index: 4, kind: output, shape index: {}]  }
   0x1   :  { %v350_v0 = vld [vmem:[%s553_s0] sm:$0xff]   ;;  %v366_v1 = vld [vmem:[%s553_s0 + $0x10] sm:$0xff]   ;;  %v365_v6 = vld [vmem:[%s553_s0 + $0x8] sm:$0xff]  }
   0x2   :  { %v351_v2 = vunpack.c.l.bf16 %v350_v0  ;;  %v359_v3 = vunpack.c.l.bf16 %v366_v1  ;;  %v352_v4 = vunpack.c.h.bf16 %v350_v0  ;;  %v360_v5 = vunpack.c.h.bf16 %v366_v1  ;;  %v367_v13 = vld [vmem:[%s553_s0 + $0x18] sm:$0xff]   ;;  %v390_v60 = vld [vmem:[%s554_s3] sm:$0xff]   ;;  %v391_v61 = vld [vmem:[%s554_s3 + $0x8] sm:$0xff]  }
   0x3   :  { %v355_v11 = vunpack.c.l.bf16 %v365_v6  ;;  %v356_v12 = vunpack.c.h.bf16 %v365_v6  ;;  %v363_v16 = vunpack.c.l.bf16 %v367_v13  ;;  %v364_v17 = vunpack.c.h.bf16 %v367_v13  ;;  %374 = vmatprep.subr.bf16.mxu0 %v390_v60  ;;  %386 = vmatprep.subr.bf16.mxu1 %v390_v60 }
   0x4   :  { %v39_v7 = vsel %vm38_vm0, %v351_v2, 0.0  ;;  %v51_v8 = vsel %vm38_vm0, %v359_v3, 0.0  ;;  %v42_v9 = vsel %vm38_vm0, %v352_v4, 0.0  ;;  %v54_v10 = vsel %vm38_vm0, %v360_v5, 0.0  ;;  %375 = vmatpush3.bf16.msra.mxu0 %v390_v60  ;;  %388 = vmatpush3.bf16.msra.mxu1 %v390_v60 }
   0x5   :  { %40 = vadd.xlane.f32.xlu0 %v39_v7  ;;  %52 = vadd.xlane.f32.xlu1 %v51_v8  ;;  %v45_v14 = vsel %vm38_vm0, %v355_v11, 0.0  ;;  %v48_v15 = vsel %vm38_vm0, %v356_v12, 0.0  ;;  %v57_v18 = vsel %vm38_vm0, %v363_v16, 0.0  ;;  %v60_v19 = vsel %vm38_vm0, %v364_v17, 0.0 }
   0x6   :  { %376 = vmatprep.subr.bf16.mxu0 %v391_v61  ;;  %387 = vmatprep.subr.bf16.mxu1 %v391_v61 }
   0x8   :  { %377 = vmatpush3.bf16.msra.mxu0 %v391_v61  ;;  %389 = vmatpush3.bf16.msra.mxu1 %v391_v61 }
   0x9   :  { %43 = vadd.xlane.f32.xlu0 %v42_v9  ;;  %55 = vadd.xlane.f32.xlu1 %v54_v10 }
   0xd   :  { %46 = vadd.xlane.f32.xlu0 %v45_v14  ;;  %49 = vadd.xlane.f32.xlu1 %v48_v15 }
  0x11   :  { %58 = vadd.xlane.f32.xlu0 %v57_v18  ;;  %61 = vadd.xlane.f32.xlu1 %v60_v19 }
  0x92   :  { %v41_v20 = vpop.xlane.xlu0 %40  ;;  %v53_v21 = vpop.xlane.xlu1 %52 }
  0x93   :  { %v64_v22 = vmul.f32 0.03125, %v41_v20  ;;  %v68_v23 = vmul.f32 0.03125, %v53_v21 }
  0x95   :  { %v453_v24 = vsub.f32 %v351_v2, %v64_v22  ;;  %v455_v25 = vsub.f32 %v359_v3, %v68_v23  ;;  %v325_v22 = vld [vmem:[%s555_s1] ss:$0 sm:$0xff] }
  0x96   :  { %v44_v26 = vpop.xlane.xlu0 %43  ;;  %v56_v27 = vpop.xlane.xlu1 %55 }
  0x97   :  { %v65_v28 = vmul.f32 0.03125, %v44_v26  ;;  %v69_v29 = vmul.f32 0.03125, %v56_v27  ;;  %v80_v30 = vmul.f32 %v453_v24, %v453_v24  ;;  %v84_v31 = vmul.f32 %v455_v25, %v455_v25 }
  0x99   :  { %v461_v32 = vsub.f32 %v352_v4, %v65_v28  ;;  %v463_v33 = vsub.f32 %v360_v5, %v69_v29  ;;  %v88_v34 = vsel %vm38_vm0, %v80_v30, 0.0  ;;  %v100_v37 = vsel %vm38_vm0, %v84_v31, 0.0  ;;  %v326_v31 = vld [vmem:[%s556_s2] ss:$0 sm:$0xff] }
  0x9a   :  { %89 = vadd.xlane.f32.xlu0 %v88_v34  ;;  %v47_v35 = vpop.xlane.xlu0 %46  ;;  %v50_v36 = vpop.xlane.xlu1 %49 }
  0x9b   :  { %v66_v38 = vmul.f32 0.03125, %v47_v35  ;;  %v67_v39 = vmul.f32 0.03125, %v50_v36  ;;  %v81_v40 = vmul.f32 %v461_v32, %v461_v32  ;;  %v85_v41 = vmul.f32 %v463_v33, %v463_v33 }
  0x9d   :  { %v471_v42 = vsub.f32 %v355_v11, %v66_v38  ;;  %v473_v43 = vsub.f32 %v356_v12, %v67_v39  ;;  %v91_v44 = vsel %vm38_vm0, %v81_v40, 0.0  ;;  %v103_v47 = vsel %vm38_vm0, %v85_v41, 0.0 }
  0x9e   :  { %101 = vadd.xlane.f32.xlu0 %v100_v37  ;;  %92 = vadd.xlane.f32.xlu1 %v91_v44  ;;  %v59_v45 = vpop.xlane.xlu0 %58  ;;  %v62_v46 = vpop.xlane.xlu1 %61 }
  0x9f   :  { %v70_v48 = vmul.f32 0.03125, %v59_v45  ;;  %v71_v49 = vmul.f32 0.03125, %v62_v46  ;;  %v82_v50 = vmul.f32 %v471_v42, %v471_v42  ;;  %v83_v51 = vmul.f32 %v473_v43, %v473_v43 }
  0xa1   :  { %v481_v52 = vsub.f32 %v363_v16, %v70_v48  ;;  %v483_v53 = vsub.f32 %v364_v17, %v71_v49  ;;  %v94_v54 = vsel %vm38_vm0, %v82_v50, 0.0  ;;  %v97_v55 = vsel %vm38_vm0, %v83_v51, 0.0 }
  0xa2   :  { %104 = vadd.xlane.f32.xlu1 %v103_v47  ;;  %95 = vadd.xlane.f32.xlu0 %v94_v54 }
  0xa3   :  { %v86_v56 = vmul.f32 %v481_v52, %v481_v52  ;;  %v87_v57 = vmul.f32 %v483_v53, %v483_v53 }
  0xa5   :  { %v106_v58 = vsel %vm38_vm0, %v86_v56, 0.0  ;;  %v109_v59 = vsel %vm38_vm0, %v87_v57, 0.0 }
  0xa6   :  { %98 = vadd.xlane.f32.xlu1 %v97_v55  ;;  %107 = vadd.xlane.f32.xlu0 %v106_v58 }
  0xaa   :  { %110 = vadd.xlane.f32.xlu1 %v109_v59 }
 0x127   :  { %v90_v62 = vpop.xlane.xlu0 %89 }
 0x128   :  { %v112_v63 = vmul.f32 0.03125, %v90_v62 }
 0x12a   :  { %v120_v0 = vadd.f32 1e-05, %v112_v63 }
 0x12b   :  { %v93_v1 = vpop.xlane.xlu1 %92  ;;  %v102_v2 = vpop.xlane.xlu0 %101 }
 0x12c   :  { %392 = vrsqrt.f32 %v120_v0  ;;  %v113_v3 = vmul.f32 0.03125, %v93_v1  ;;  %v116_v4 = vmul.f32 0.03125, %v102_v2 }
 0x12e   :  { %v121_v5 = vadd.f32 1e-05, %v113_v3  ;;  %v124_v6 = vadd.f32 1e-05, %v116_v4 }
 0x12f   :  { %v105_v7 = vpop.xlane.xlu1 %104  ;;  %v96_v8 = vpop.xlane.xlu0 %95 }
 0x130   :  { %394 = vrsqrt.f32 %v121_v5  ;;  %v117_v9 = vmul.f32 0.03125, %v105_v7  ;;  %v114_v10 = vmul.f32 0.03125, %v96_v8 }
 0x131   :  { %396 = vrsqrt.f32 %v124_v6 }
 0x132   :  { %v125_v11 = vadd.f32 1e-05, %v117_v9  ;;  %v122_v12 = vadd.f32 1e-05, %v114_v10 }
 0x133   :  { %v99_v13 = vpop.xlane.xlu1 %98  ;;  %v108_v14 = vpop.xlane.xlu0 %107 }
 0x134   :  { %398 = vrsqrt.f32 %v125_v11  ;;  %v115_v15 = vmul.f32 0.03125, %v99_v13  ;;  %v118_v16 = vmul.f32 0.03125, %v108_v14 }
 0x135   :  { %400 = vrsqrt.f32 %v122_v12 }
 0x136   :  { %v393_v17 = vpop.eup %392  ;;  %v123_v18 = vadd.f32 1e-05, %v115_v15  ;;  %v126_v19 = vadd.f32 1e-05, %v118_v16 }
 0x137   :  { %v136_v20 = vmul.f32 %v393_v17, %v453_v24  ;;  %v111_v21 = vpop.xlane.xlu1 %110 }
 0x138   :  { %402 = vrsqrt.f32 %v123_v18  ;;  %v119_v23 = vmul.f32 0.03125, %v111_v21 }
 0x139   :  { %404 = vrsqrt.f32 %v126_v19  ;;  %v151_v29 = vmul.f32 %v325_v22, %v136_v20 }
 0x13a   :  { %v395_v26 = vpop.eup %394  ;;  %v127_v27 = vadd.f32 1e-05, %v119_v23 }
 0x13b   :  { %v397_v28 = vpop.eup %396  ;;  %v137_v30 = vmul.f32 %v395_v26, %v461_v32  ;;  %v166_v37 = vadd.f32 %v326_v31, %v151_v29 }
 0x13c   :  { %v140_v24 = vmul.f32 %v397_v28, %v455_v25  ;;  %406 = vrsqrt.f32 %v127_v27 }
 0x13d   :  { %v152_v34 = vmul.f32 %v325_v22, %v137_v30 }
 0x13e   :  { %v399_v35 = vpop.eup %398  ;;  %v155_v39 = vmul.f32 %v325_v22, %v140_v24 }
 0x13f   :  { %v401_v36 = vpop.eup %400  ;;  %v167_v38 = vadd.f32 %v326_v31, %v152_v34  ;;  %v141_v40 = vmul.f32 %v399_v35, %v463_v33 }
 0x140   :  { %v138_v41 = vmul.f32 %v401_v36, %v471_v42  ;;  %v170_v47 = vadd.f32 %v326_v31, %v155_v39 }
 0x141   :  { %v174_v44 = vpack.c.bf16 %v167_v38, %v166_v37  ;;  %v156_v45 = vmul.f32 %v325_v22, %v141_v40 }
 0x142   :  { %v403_v32 = vpop.eup %402  ;;  %v153_v25 = vmul.f32 %v325_v22, %v138_v41 }
 0x143   :  { %v405_v46 = vpop.eup %404  ;;  %178 = vst.msk [vmem:[#allocation2] sm:$0xff] %vm38_vm0, %v174_v44  ;;  %v171_v48 = vadd.f32 %v326_v31, %v156_v45  ;;  %v139_v49 = vmul.f32 %v403_v32, %v473_v43 }
 0x144   :  { %v142_v50 = vmul.f32 %v405_v46, %v481_v52  ;;  %v168_v33 = vadd.f32 %v326_v31, %v153_v25 }
 0x145   :  { %v176_v51 = vpack.c.bf16 %v171_v48, %v170_v47  ;;  %v154_v54 = vmul.f32 %v325_v22, %v139_v49 }
 0x146   :  { %v407_v55 = vpop.eup %406  ;;  %v157_v56 = vmul.f32 %v325_v22, %v142_v50 }
 0x147   :  { %180 = vst.msk [vmem:[#allocation2 + $0x10] sm:$0xff] %vm38_vm0, %v176_v51  ;;  %v169_v42 = vadd.f32 %v326_v31, %v154_v54  ;;  %v143_v57 = vmul.f32 %v407_v55, %v483_v53 }
 0x148   :  { %v172_v61 = vadd.f32 %v326_v31, %v157_v56 }
 0x149   :  { %v175_v58 = vpack.c.bf16 %v169_v42, %v168_v33  ;;  %v158_v59 = vmul.f32 %v325_v22, %v143_v57 }
 0x14a   :  { %v182_v60 = vld [vmem:[#allocation2] sm:$0xff] }
 0x14b   :  { %179 = vst.msk [vmem:[#allocation2 + $0x8] sm:$0xff] %vm38_vm0, %v175_v58  ;;  %v173_v62 = vadd.f32 %v326_v31, %v158_v59  ;;  %378 = vmatprep.mubr.msk.bf16.mxu0 %vm38_vm0, %v182_v60 }
 0x14d   :  { %v177_v43 = vpack.c.bf16 %v173_v62, %v172_v61 }
 0x14e   :  { %v184_v52 = vld [vmem:[#allocation2 + $0x10] sm:$0xff] }
 0x14f   :  { %181 = vst.msk [vmem:[#allocation2 + $0x18] sm:$0xff] %vm38_vm0, %v177_v43  ;;  %382 = vmatprep.mubr.msk.bf16.mxu1 %vm38_vm0, %v184_v52 }
 0x152   :  { %v183_v63 = vld [vmem:[#allocation2 + $0x8] sm:$0xff] }
 0x153   :  { %379 = vmatmul.mubr.msk.bf16.vlgmr.msra.gmra.mrb[0].mxu0 %vm38_vm0, %v183_v63 }
 0x156   :  { %v185_v0 = vld [vmem:[#allocation2 + $0x18] sm:$0xff] }
 0x157   :  { %383 = vmatmul.mubr.msk.bf16.vlgmr.msra.gmra.mrb[0].mxu1 %vm38_vm0, %v185_v0 }
 0x226   :  { %v380_v53 = vpop.f32.mrb[0].mxu0 }
 0x227   :  { %v343_v1 = vpack.c.bf16 %v380_v53, %v380_v53  ;;  %v249_v2 = vpop.f32.mrb[1].mxu0 }
 0x228   :  { %v341_v3 = vpack.c.bf16 %v249_v2, %v249_v2  ;;  %v381_v4 = vpop.f32.mrb[2].mxu0 }
 0x229   :  { %315 = vst.msk [vmem:[%s557_s4 + $0x8] sm:$0xf] %vm312_vm1, %v343_v1  ;;  %v344_v5 = vpack.c.bf16 %v381_v4, %v381_v4  ;;  %v252_v6 = vpop.f32.mrb[3].mxu0 }
 0x22a   :  { %313 = vst.msk [vmem:[%s557_s4] sm:$0xf] %vm312_vm1, %v341_v3  ;;  %v342_v7 = vpack.c.bf16 %v252_v6, %v252_v6  ;;  %v384_v8 = vpop.f32.mrb[0].mxu1 }
 0x22b   :  { %316 = vst.msk [vmem:[%s557_s4 + $0xc] sm:$0xf] %vm312_vm1, %v344_v5  ;;  %v347_v9 = vpack.c.bf16 %v384_v8, %v384_v8  ;;  %v265_v10 = vpop.f32.mrb[1].mxu1 }
 0x22c   :  { %314 = vst.msk [vmem:[%s557_s4 + $0x4] sm:$0xf] %vm312_vm1, %v342_v7  ;;  %v345_v11 = vpack.c.bf16 %v265_v10, %v265_v10  ;;  %v385_v12 = vpop.f32.mrb[2].mxu1 }
 0x22d   :  { %319 = vst.msk [vmem:[%s557_s4 + $0x18] sm:$0xf] %vm312_vm1, %v347_v9  ;;  %v348_v13 = vpack.c.bf16 %v385_v12, %v385_v12  ;;  %v268_v14 = vpop.f32.mrb[3].mxu1 }
 0x22e   :  { %317 = vst.msk [vmem:[%s557_s4 + $0x10] sm:$0xf] %vm312_vm1, %v345_v11  ;;  %v346_v15 = vpack.c.bf16 %v268_v14, %v268_v14 }
 0x22f   :  { %320 = vst.msk [vmem:[%s557_s4 + $0x1c] sm:$0xf] %vm312_vm1, %v348_v13 }
 0x230   :  { %318 = vst.msk [vmem:[%s557_s4 + $0x14] sm:$0xf] %vm312_vm1, %v346_v15 }

// kernel: fwd.30
= control target key start
LH: loop header
LB: loop body
LE: loop exit
PB: predicated region body
PF: predicated region fallthrough
CT: control target
= control target key end

     0   :  { %vm19_vm0 = vcmask 261120   ;;  %v187_v0 = vmov 0.0   ;;  %vm53_vm1 = vcmask 1040384   ;;  %vm46_vm2 = vcmask 146432   ;;  %s249_s1 = inlined_call_operand.vmem [shape: bf16[18,32], index: 1, kind: input, shape index: {}]   ;;  %s250_s0 = inlined_call_operand.vmem [shape: f32[32,18], index: 0, kind: input, shape index: {}]   ;;  %s251_s2 = inlined_call_operand.vmem [shape: f32[1,32], index: 2, kind: input, shape index: {}]   ;;  %s252_s3 = inlined_call_operand.vmem [shape: bf16[32,32], index: 3, kind: output, shape index: {}]  }
   0x1   :  { %22 = vst.msk [vmem:[#allocation2 + $0x10] sm:$0xff] %vm19_vm0, %v187_v0  ;;  %20 = vst.msk [vmem:[#allocation2] sm:$0xff] %vm19_vm0, %v187_v0  ;;  %v185_v1 = vld [vmem:[%s249_s1] sm:$0xff]   ;;  %v186_v2 = vld [vmem:[%s249_s1 + $0x8] ss:$0 sps:$4 sm:$0x11]  }
   0x2   :  { %21 = vst.msk [vmem:[#allocation2 + $0x8] sm:$0xff] %vm19_vm0, %v187_v0  ;;  %23 = vst.msk [vmem:[#allocation2 + $0x18] sm:$0xff] %vm19_vm0, %v187_v0  ;;  %v28_v3 = vld [vmem:[%s250_s0] sm:$0xff]  ;;  %v29_v4 = vld [vmem:[%s250_s0 + $0x8] sm:$0xff]  ;;  %175 = vmatprep.subr.bf16.mxu0 %v185_v1  ;;  %v55_v8 = vsel %vm53_vm1, %v186_v2, 0  ;;  %vm149_vm3 = vcmask 257024  }
   0x3   :  { %v32_v5 = vpack.c.bf16 %v29_v4, %v28_v3  ;;  %176 = vmatpush3.bf16.msra.mxu0 %v185_v1  ;;  %v30_v6 = vld [vmem:[%s250_s0 + $0x10] sm:$0xff]  ;;  %v31_v7 = vld [vmem:[%s250_s0 + $0x18] sm:$0xff]  ;;  %v162_v22 = vld [vmem:[%s251_s2] ss:$0 sm:$0xff] }
   0x4   :  { %183 = vmatprep.subr.msk.bf16.mxu0 %vm53_vm1, %v186_v2  ;;  %v33_v9 = vpack.c.bf16 %v31_v7, %v30_v6 }
   0x5   :  { %179 = vmatprep.mubr.msk.bf16.mxu0 %vm46_vm2, %v32_v5 }
   0x7   :  { %178 = vmatpush3.bf16.msra.mxu0 %v55_v8 }
   0x8   :  { %v26_v10 = vld [vmem:[#allocation2 + $0x10] sm:$0xff]  ;;  %v24_v11 = vld [vmem:[#allocation2] sm:$0xff] }
   0x9   :  { %v27_v13 = vld [vmem:[#allocation2 + $0x18] sm:$0xff]  ;;  %v25_v16 = vld [vmem:[#allocation2 + $0x8] sm:$0xff] }
   0xa   :  { %180 = vmatmul.mubr.msk.bf16.vlgmr.msra.gmra.mrb[0].mxu0 %vm46_vm2, %v33_v9 }
  0xdd   :  { %v181_v12 = vpop.f32.mrb[0].mxu0 }
  0xde   :  { %v108_v14 = vadd.f32 %v181_v12, %v26_v10  ;;  %v91_v15 = vpop.f32.mrb[1].mxu0 }
  0xdf   :  { %v106_v17 = vadd.f32 %v91_v15, %v24_v11  ;;  %v182_v18 = vpop.f32.mrb[2].mxu0 }
  0xe0   :  { %113 = vst.msk [vmem:[#allocation2 + $0x10] sm:$0xff] %vm19_vm0, %v108_v14  ;;  %v109_v19 = vadd.f32 %v182_v18, %v27_v13  ;;  %v94_v20 = vpop.f32.mrb[3].mxu0 }
  0xe1   :  { %111 = vst.msk [vmem:[#allocation2] sm:$0xff] %vm19_vm0, %v106_v17  ;;  %v107_v21 = vadd.f32 %v94_v20, %v25_v16 }
  0xe2   :  { %114 = vst.msk [vmem:[#allocation2 + $0x18] sm:$0xff] %vm19_vm0, %v109_v19 }
  0xe3   :  { %112 = vst.msk [vmem:[#allocation2 + $0x8] sm:$0xff] %vm19_vm0, %v107_v21 }
  0xe7   :  { %v120_v23 = vld [vmem:[#allocation2 + $0x10] sm:$0xff] }
  0xe8   :  { %v131_v24 = vadd.f32 %v162_v22, %v120_v23  ;;  %v118_v25 = vld [vmem:[#allocation2] sm:$0xff] }
  0xe9   :  { %v129_v26 = vadd.f32 %v162_v22, %v118_v25  ;;  %v121_v27 = vld [vmem:[#allocation2 + $0x18] sm:$0xff] }
  0xea   :  { %v169_v28 = vpack.c.bf16 %v131_v24, %v131_v24  ;;  %v132_v29 = vadd.f32 %v162_v22, %v121_v27  ;;  %v119_v30 = vld [vmem:[#allocation2 + $0x8] sm:$0xff] }
  0xeb   :  { %v167_v31 = vpack.c.bf16 %v129_v26, %v129_v26  ;;  %v130_v32 = vadd.f32 %v162_v22, %v119_v30 }
  0xec   :  { %152 = vst.msk [vmem:[%s252_s3 + $0x8] sm:$0xf] %vm149_vm3, %v169_v28  ;;  %v170_v33 = vpack.c.bf16 %v132_v29, %v132_v29 }
  0xed   :  { %150 = vst.msk [vmem:[%s252_s3] sm:$0xf] %vm149_vm3, %v167_v31  ;;  %v168_v34 = vpack.c.bf16 %v130_v32, %v130_v32 }
  0xee   :  { %153 = vst.msk [vmem:[%s252_s3 + $0xc] sm:$0xf] %vm149_vm3, %v170_v33 }
  0xef   :  { %151 = vst.msk [vmem:[%s252_s3 + $0x4] sm:$0xf] %vm149_vm3, %v168_v34 }

// kernel: fwd.34
= control target key start
LH: loop header
LB: loop body
LE: loop exit
PB: predicated region body
PF: predicated region fallthrough
CT: control target
= control target key end

     0   :  { %vm22_vm0 = vcmask 261120   ;;  %v163_v0 = vmov 0.0   ;;  %vm164_vm1 = vmmov 0   ;;  %vm127_vm2 = vcmask 257024   ;;  %s216_s1 = inlined_call_operand.vmem [shape: bf16[32,32], index: 1, kind: input, shape index: {}]   ;;  %s217_s0 = inlined_call_operand.vmem [shape: bf16[16,32], index: 0, kind: input, shape index: {}]   ;;  %s218_s3 = inlined_call_operand.vmem [shape: bf16[16,32], index: 3, kind: input, shape index: {}]   ;;  %s219_s2 = inlined_call_operand.vmem [shape: f32[1,32], index: 2, kind: input, shape index: {}]   ;;  %s220_s4 = inlined_call_operand.vmem [shape: bf16[16,32], index: 4, kind: output, shape index: {}]  }
   0x1   :  { %150 = vmatprep.subr.bf16.mxu0 %v163_v0  ;;  %v160_v1 = vld [vmem:[%s216_s1] sm:$0xff]   ;;  %154 = vmatprep.mubr.msk.bf16.mxu0 %vm164_vm1, %v163_v0  ;;  %23 = vst.msk [vmem:[#allocation2] sm:$0xff] %vm22_vm0, %v163_v0  ;;  %24 = vst.msk [vmem:[#allocation2 + $0x8] sm:$0xff] %vm22_vm0, %v163_v0  ;;  %v161_v2 = vld [vmem:[%s216_s1 + $0x8] sm:$0xff]  }
   0x2   :  { %151 = vmatpush3.bf16.msra.mxu0 %v160_v1  ;;  %v162_v3 = vld [vmem:[%s217_s0] sm:$0xff]  }
   0x3   :  { %152 = vmatprep.subr.bf16.mxu0 %v163_v0  ;;  %v144_v12 = vld [vmem:[%s218_s3] sm:$0xff]  }
   0x4   :  { %v138_v13 = vld [vmem:[%s219_s2] ss:$0 sm:$0xff]  ;;  %v145_v14 = vunpack.c.l.bf16 %v144_v12  ;;  %v146_v17 = vunpack.c.h.bf16 %v144_v12 }
   0x6   :  { %153 = vmatpush3.bf16.msra.mxu0 %v161_v2 }
   0x8   :  { %v25_v4 = vld [vmem:[#allocation2] sm:$0xff]  ;;  %v26_v6 = vld [vmem:[#allocation2 + $0x8] sm:$0xff] }
   0x9   :  { %155 = vmatmul.mubr.msk.bf16.vlgmr.msra.gmra.mrb[0].mxu0 %vm22_vm0, %v162_v3 }
  0xdc   :  { %v88_v5 = vpop.f32.mrb[0].mxu0 }
  0xdd   :  { %v95_v7 = vadd.f32 %v88_v5, %v25_v4  ;;  %v156_v8 = vpop.f32.mrb[1].mxu0 }
  0xde   :  { %v91_v9 = vpop.f32.mrb[2].mxu0 }
  0xdf   :  { %97 = vst.msk [vmem:[#allocation2] sm:$0xff] %vm22_vm0, %v95_v7  ;;  %v96_v10 = vadd.f32 %v91_v9, %v26_v6  ;;  %v157_v11 = vpop.f32.mrb[3].mxu0 }
  0xe1   :  { %98 = vst.msk [vmem:[#allocation2 + $0x8] sm:$0xff] %vm22_vm0, %v96_v10 }
  0xe6   :  { %v102_v15 = vld [vmem:[#allocation2] sm:$0xff] }
  0xe7   :  { %v111_v16 = vadd.f32 %v138_v13, %v102_v15 }
  0xe8   :  { %v103_v18 = vld [vmem:[#allocation2 + $0x8] sm:$0xff] }
  0xe9   :  { %v117_v19 = vadd.f32 %v145_v14, %v111_v16  ;;  %v112_v20 = vadd.f32 %v138_v13, %v103_v18 }
  0xeb   :  { %v141_v21 = vpack.c.bf16 %v117_v19, %v117_v19  ;;  %v118_v22 = vadd.f32 %v146_v17, %v112_v20 }
  0xed   :  { %128 = vst.msk [vmem:[%s220_s4] sm:$0xf] %vm127_vm2, %v141_v21  ;;  %v142_v23 = vpack.c.bf16 %v118_v22, %v118_v22 }
  0xef   :  { %129 = vst.msk [vmem:[%s220_s4 + $0x4] sm:$0xf] %vm127_vm2, %v142_v23 }

// kernel: fwd.33
= control target key start
LH: loop header
LB: loop body
LE: loop exit
PB: predicated region body
PF: predicated region fallthrough
CT: control target
= control target key end

     0   :  { %s1287_s12 = smov 0   ;;  %s1289_s13 = smov 0   ;;  %s1526_s0 = inlined_call_operand.vmem [shape: bf16[2,8,32], index: 0, kind: input, shape index: {}]   ;;  %s1527_s1 = inlined_call_operand.vmem [shape: bf16[2,32,32], index: 1, kind: input, shape index: {}]   ;;  %s1528_s2 = inlined_call_operand.vmem [shape: bf16[2,32,32], index: 2, kind: input, shape index: {}]   ;;  %s1529_s3 = inlined_call_operand.vmem [shape: bf16[2,8,32], index: 3, kind: output, shape index: {}]  }
   0x1   :  { %s1291_s14 = smov 0  }
   0x2 LB: > { %s32_s15 = sadd.s32 1, %s1251_s13  ;;  %p1057_p0 = scmp.ge.s32.totalorder %s1255_s14, 1  ;;  %s1255_s14 = sphi %s1291_s14, %s13_s14   ;;  %s1251_s13 = sphi %s1289_s13, %s1531_s13   ;;  %s1247_s12 = sphi %s1287_s12, %s1530_s12  }
   0x3   : > { %p34_p1 = scmp.ge.s32.totalorder %s32_s15, 2  ;;  %p196_p2 = scmp.lt.s32.totalorder %s1255_s14, 3 }
   0x5   : > { %s1533_s15 = smov (%p34_p1, %s32_s15), 0  ;;  %p197_p3 = pnand %p1057_p0, %p196_p2 }
   0x6   : > { %p242_p4 = scmp.lt.s32.totalorder (!%p197_p3), %s1247_s12, 1  ;;  %vm290_vm0 = vcmask (!%p197_p3), 64512   ;;  %v1257_v0 = vmov (!%p197_p3), 0.0   ;;  %vm1258_vm1 = vmmov (!%p197_p3), 0   ;;  %vm281_vm2 = vcmask (!%p197_p3), 7168   ;;  %s1261_s24 = smov (!%p197_p3), 120  }
   0x7   : > { %200 = sbr.rel (%p197_p3) target bundleno = 2501 (0x9c5), region = 32  ;;  %1105 = vmatprep.subr.bf16.mxu0 (!%p197_p3), %v1257_v0  ;;  %291 = vst.msk [vmem:[#allocation4] sm:$0xff] (!%p197_p3), %vm290_vm0, %v1257_v0  ;;  %292 = vst.msk [vmem:[#allocation4 + $0x8] sm:$0xff] (!%p197_p3), %vm290_vm0, %v1257_v0  ;;  %1109 = vmatprep.mubr.msk.bf16.mxu0 (!%p197_p3), %vm1258_vm1, %v1257_v0  ;;  %v1259_v6 = vmov (!%p197_p3), -1e+30   ;;  %vm365_vm3 = vcmask (!%p197_p3), 261120  }
   0x8   : > { %293 = vst.msk [vmem:[#allocation4 + $0x10] sm:$0xff] (!%p197_p3), %vm290_vm0, %v1257_v0  ;;  %294 = vst.msk [vmem:[#allocation4 + $0x18] sm:$0xff] (!%p197_p3), %vm290_vm0, %v1257_v0  ;;  %1113 = vmatprep.subr.bf16.mxu1 (!%p197_p3), %v1257_v0  ;;  %1117 = vmatprep.mubr.msk.bf16.mxu1 (!%p197_p3), %vm1258_vm1, %v1257_v0  ;;  %v1260_v12 = vmov (!%p197_p3), 0   ;;  %s1262_s28 = smov (!%p197_p3), 112   ;;  %s1263_s29 = smov (!%p197_p3), 104   ;;  %vm933_vm4 = vcmask (!%p197_p3), 130048  }
   0x9   : > { %282 = vst.msk [vmem:[#allocation2] sm:$0xff] (!%p197_p3), %vm281_vm2, %v1259_v6  ;;  %283 = vst.msk [vmem:[#allocation2 + $0x8] sm:$0xff] (!%p197_p3), %vm281_vm2, %v1259_v6  ;;  %1203 = vset.pattern.permute.xlu0 (!%p197_p3), %v1260_v12  ;;  %1204 = vset.pattern.permute.xlu1 (!%p197_p3), %v1260_v12  ;;  %s1264_s30 = smov (!%p197_p3), 8   ;;  %s1265_s4 = smov (!%p197_p3), 16   ;;  %vm935_vm5 = vcmask (!%p197_p3), 195584   ;;  %vm938_vm6 = vcmask (!%p197_p3), 257024  }
   0xa   : > { %284 = vst.msk [vmem:[#allocation2 + $0x10] sm:$0xff] (!%p197_p3), %vm281_vm2, %v1259_v6  ;;  %285 = vst.msk [vmem:[#allocation2 + $0x18] sm:$0xff] (!%p197_p3), %vm281_vm2, %v1259_v6  ;;  %s1266_s5 = smov (!%p197_p3), 24  }
   0xb   : > { %286 = vst.msk [vmem:[#allocation3] sm:$0xff] (!%p197_p3), %vm281_vm2, %v1257_v0  ;;  %287 = vst.msk [vmem:[#allocation3 + $0x8] sm:$0xff] (!%p197_p3), %vm281_vm2, %v1257_v0 }
   0xc   : > { %288 = vst.msk [vmem:[#allocation3 + $0x10] sm:$0xff] (!%p197_p3), %vm281_vm2, %v1257_v0  ;;  %289 = vst.msk [vmem:[#allocation3 + $0x18] sm:$0xff] (!%p197_p3), %vm281_vm2, %v1257_v0 }
   0xe   : > { %s1535_s12 = smov (!%p242_p4, %s1247_s12), 1 }
   0xf   : > { %s1079_s16 = sshll.u32 %s1535_s12, 4  ;;  %s1058_s20 = sshll.u32 %s1535_s12, 2 }
  0x10   : > { %s257_s19 = scalar_lea.vmem %s1527_s1, %s1079_s16  ;;  %s248_s23 = scalar_lea.vmem %s1526_s0, %s1058_s20  ;;  %v1367_v14 = vld [vmem:[#allocation2] sm:$0xff]  ;;  %v1409_v39 = vld [vmem:[#allocation2 + $0x8] sm:$0xff] }
  0x11   : > { %v1327_v1 = vld [vmem:[%s257_s19] sm:$0xff]   ;;  %v1332_v3 = vld [vmem:[%s257_s19 + $0x8] sm:$0xff]   ;;  %s267_s27 = scalar_lea.vmem %s1528_s2, %s1079_s16  ;;  %s275_s8 = scalar_lea.vmem %s1529_s3, %s1058_s20 }
  0x12   : > { %v319_v2 = vsel %vm290_vm0, %v1327_v1, 0  ;;  %v322_v4 = vsel %vm290_vm0, %v1332_v3, 0  ;;  %v295_v5 = vld [vmem:[%s248_s23] sm:$0xf]  ;;  %460 = vrot.lane.b32.xlu1 %v1327_v1, %s1261_s24  ;;  %v1385_v19 = vld [vmem:[%s267_s27 + $0x8] sm:$0xff]  }
  0x13   : > { %1106 = vmatpush3.bf16.xpose.msra.mxu0 %v319_v2  ;;  %v1363_v13 = vcombine.low %v295_v5, %v295_v5  ;;  %v1382_v18 = vld [vmem:[%s267_s27] sm:$0xff]   ;;  %v1446_v2 = vld [vmem:[#allocation2 + $0x10] sm:$0xff] }
  0x14   : > { %1107 = vmatprep.subr.bf16.mxu0 %v1257_v0  ;;  %1114 = vmatpush3.bf16.msra.mxu1 %v1382_v18 }
  0x15   : > { %1115 = vmatprep.subr.bf16.mxu1 %v1257_v0 }
  0x16   : > { %462 = vrot.lane.b32.xlu1 %v1332_v3, %s1261_s24 }
  0x18   : > { %1116 = vmatpush3.bf16.msra.mxu1 %v1385_v19 }
  0x19   : > { %1121 = vmatprep.subr.bf16.mxu1 %v1257_v0 }
  0x1a   : > { %458 = vrot.lane.b32.xlu1 %v1363_v13, %s1261_s24 }
  0x1b   : > { %1108 = vmatpush3.bf16.xpose.msra.mxu0 %v322_v4 }
  0x1c   : > { %1129 = vmatprep.subr.bf16.mxu0 %v1257_v0 }
  0x22   : > { %1110 = vmatmul.mubr.msk.bf16.vlgmr.msra.gmra.mrb[0].mxu0 %vm290_vm0, %v295_v5 }
  0x23   : > { %1133 = vmatprep.mubr.msk.bf16.mxu0 %vm1258_vm1, %v1257_v0 }
  0x84   : > { %v461_v23 = vpop.permute.xlu1 %460 }
  0x85   : > { %v468_v25 = vsel %vm290_vm0, %v461_v23, 0 }
  0x88   : > { %v463_v27 = vpop.permute.xlu1 %462 }
  0x89   : > { %v471_v28 = vsel %vm290_vm0, %v463_v27, 0 }
  0x8c   : > { %v459_v29 = vpop.permute.xlu1 %458 }
  0xf5   : > { %v358_v7 = vpop.f32.mrb[0].mxu0 }
  0xf6   : > { %v1111_v8 = vpop.f32.mrb[1].mxu0  ;;  %v366_v9 = vsel %vm365_vm3, %v358_v7, -inf }
  0xf7   : > { %367 = vmax.xlane.f32.xlu0 %v366_v9  ;;  %v361_v10 = vpop.f32.mrb[2].mxu0 }
  0xf8   : > { %v1112_v11 = vpop.f32.mrb[3].mxu0 }
 0x184   : > { %v368_v15 = vpop.xlane.xlu0 %367 }
 0x185   : > { %v1370_v16 = vmax.f32 %v1367_v14, %v368_v15 }
 0x187   : > { %v370_v17 = vsub.f32 %v1367_v14, %v1370_v16  ;;  %454 = vst.msk [vmem:[#allocation2] sm:$0xff] %vm281_vm2, %v1370_v16  ;;  %375 = vperm.xlu0 %1203, %v1370_v16  }
 0x206   : > { %v376_v20 = vpop.permute.xlu0 %375 }
 0x207   : > { %v378_v21 = vsub.f32 %v358_v7, %v376_v20 }
 0x209   : > { %v379_v22 = vmul.f32 1.442695, %v378_v21 }
 0x20b   : > { %1209 = vpow2.f32 %v379_v22 }
 0x215   : > { %v1390_v24 = vpop.eup %1209 }
 0x216   : > { %v396_v26 = vpack.c.bf16 %v1390_v24, %v1390_v24 }
 0x218   : > { %1118 = vmatmul.mubr.msk.bf16.vlgmr.msra.gmra.mrb[0].mxu1 %vm365_vm3, %v396_v26 }
 0x219   : > { %1122 = vmatpush3.bf16.xpose.msra.mxu1 %v468_v25  ;;  %1125 = vmatprep.mubr.msk.bf16.mxu1 %vm1258_vm1, %v1257_v0 }
 0x21a   : > { %1123 = vmatprep.subr.bf16.mxu1 %v1257_v0 }
 0x221   : > { %1124 = vmatpush3.bf16.xpose.msra.mxu1 %v471_v28 }
 0x222   : > { %1145 = vmatprep.subr.bf16.mxu1 %v1257_v0 }
 0x228   : > { %1126 = vmatmul.mubr.msk.bf16.vlgmr.msra.gmra.mrb[4].mxu1 %vm290_vm0, %v459_v29 }
 0x229   : > { %1149 = vmatprep.mubr.msk.bf16.mxu1 %vm1258_vm1, %v1257_v0 }
 0x2eb   : > { %v1404_v30 = vpop.f32.mrb[0].mxu1 }
 0x2ec   : > { %v1119_v31 = vpop.f32.mrb[1].mxu1 }
 0x2ed   : > { %v449_v32 = vpop.f32.mrb[2].mxu1 }
 0x2ee   : > { %v1120_v33 = vpop.f32.mrb[3].mxu1 }
 0x2fb   : > { %v507_v34 = vpop.f32.mrb[4].mxu1 }
 0x2fc   : > { %v1127_v35 = vpop.f32.mrb[5].mxu1  ;;  %v515_v36 = vsel %vm365_vm3, %v507_v34, -inf }
 0x2fd   : > { %516 = vmax.xlane.f32.xlu1 %v515_v36  ;;  %v510_v37 = vpop.f32.mrb[6].mxu1  ;;  %v796_v35 = vld [vmem:[#allocation2 + $0x18] sm:$0xff] }
 0x2fe   : > { %v1128_v38 = vpop.f32.mrb[7].mxu1 }
 0x2ff   : > { %v531_v38 = vld [vmem:[#allocation3 + $0x8] sm:$0xff] }
 0x30e   : > { %547 = vrot.lane.b32.xlu1 %v1382_v18, %s1261_s24 }
 0x38a   : > { %v517_v40 = vpop.xlane.xlu1 %516 }
 0x38b   : > { %v1412_v41 = vmax.f32 %v1409_v39, %v517_v40 }
 0x38d   : > { %v519_v42 = vsub.f32 %v1409_v39, %v1412_v41  ;;  %598 = vst.msk [vmem:[#allocation2 + $0x8] sm:$0xff] %vm281_vm2, %v1412_v41  ;;  %524 = vperm.xlu0 %1203, %v1412_v41  }
 0x38e   : > { %v548_v43 = vpop.permute.xlu1 %547 }
 0x38f   : > { %1130 = vmatpush3.bf16.msra.mxu0 %v548_v43 }
 0x390   : > { %1131 = vmatprep.subr.bf16.mxu0 %v1257_v0 }
 0x391   : > { %549 = vrot.lane.b32.xlu0 %v1385_v19, %s1261_s24 }
 0x395   : > { %601 = vrot.lane.b32.xlu0 %v1327_v1, %s1262_s28 }
 0x399   : > { %603 = vrot.lane.b32.xlu0 %v1332_v3, %s1262_s28 }
 0x39d   : > { %599 = vrot.lane.b32.xlu0 %v1363_v13, %s1262_s28 }
 0x40c   : > { %v525_v44 = vpop.permute.xlu0 %524 }
 0x40d   : > { %v527_v45 = vsub.f32 %v507_v34, %v525_v44  ;;  %v520_v34 = vmul.f32 1.442695, %v519_v42 }
 0x40f   : > { %v528_v46 = vmul.f32 1.442695, %v527_v45 }
 0x410   : > { %v550_v47 = vpop.permute.xlu0 %549 }
 0x411   : > { %1211 = vpow2.f32 %v528_v46  ;;  %1132 = vmatpush3.bf16.msra.mxu0 %v550_v47 }
 0x412   : > { %1137 = vmatprep.subr.bf16.mxu0 %v1257_v0 }
 0x414   : > { %v602_v48 = vpop.permute.xlu0 %601 }
 0x415   : > { %v609_v50 = vsel %vm290_vm0, %v602_v48, 0 }
 0x418   : > { %v604_v52 = vpop.permute.xlu0 %603 }
 0x419   : > { %v612_v53 = vsel %vm290_vm0, %v604_v52, 0 }
 0x41b   : > { %v1429_v49 = vpop.eup %1211 }
 0x41c   : > { %v546_v51 = vpack.c.bf16 %v1429_v49, %v1429_v49  ;;  %v600_v54 = vpop.permute.xlu0 %599  ;;  %v533_v33 = vsel %vm365_vm3, %v1429_v49, 0.0 }
 0x41e   : > { %1134 = vmatmul.mubr.msk.bf16.vlgmr.msra.gmra.mrb[4].mxu0 %vm365_vm3, %v546_v51 }
 0x41f   : > { %1138 = vmatpush3.bf16.xpose.msra.mxu0 %v609_v50  ;;  %1141 = vmatprep.mubr.msk.bf16.mxu0 %vm1258_vm1, %v1257_v0 }
 0x420   : > { %1139 = vmatprep.subr.bf16.mxu0 %v1257_v0 }
 0x427   : > { %1140 = vmatpush3.bf16.xpose.msra.mxu0 %v612_v53  ;;  %v383_v53 = vsel %vm365_vm3, %v1390_v24, 0.0  ;;  %v672_v24 = vld [vmem:[#allocation3 + $0x10] sm:$0xff] }
 0x428   : > { %1161 = vmatprep.subr.bf16.mxu0 %v1257_v0 }
 0x42e   : > { %1142 = vmatmul.mubr.msk.bf16.vlgmr.msra.gmra.mrb[8].mxu0 %vm290_vm0, %v600_v54  ;;  %v371_v54 = vmul.f32 1.442695, %v370_v17 }
 0x42f   : > { %1165 = vmatprep.mubr.msk.bf16.mxu0 %vm1258_vm1, %v1257_v0 }
 0x4f1   : > { %v1443_v55 = vpop.f32.mrb[4].mxu0 }
 0x4f2   : > { %v1135_v56 = vpop.f32.mrb[5].mxu0 }
 0x4f3   : > { %v593_v57 = vpop.f32.mrb[6].mxu0 }
 0x4f4   : > { %v1136_v58 = vpop.f32.mrb[7].mxu0 }
 0x501   : > { %v648_v59 = vpop.f32.mrb[8].mxu0 }
 0x502   : > { %v1143_v60 = vpop.f32.mrb[9].mxu0  ;;  %v656_v61 = vsel %vm365_vm3, %v648_v59, -inf }
 0x503   : > { %657 = vmax.xlane.f32.xlu1 %v656_v61  ;;  %v651_v62 = vpop.f32.mrb[10].mxu0 }
 0x504   : > { %v1144_v63 = vpop.f32.mrb[11].mxu0  ;;  %v813_v62 = vld [vmem:[#allocation3 + $0x18] sm:$0xff] }
 0x590   : > { %v658_v4 = vpop.xlane.xlu1 %657 }
 0x591   : > { %v1449_v5 = vmax.f32 %v1446_v2, %v658_v4  ;;  %v381_v4 = vld [vmem:[#allocation3] sm:$0xff] }
 0x593   : > { %v660_v6 = vsub.f32 %v1446_v2, %v1449_v5  ;;  %739 = vst.msk [vmem:[#allocation2 + $0x10] sm:$0xff] %vm281_vm2, %v1449_v5  ;;  %665 = vperm.xlu0 %1203, %v1449_v5  }
 0x597   : > { %688 = vrot.lane.b32.xlu0 %v1382_v18, %s1262_s28 }
 0x59b   : > { %690 = vrot.lane.b32.xlu0 %v1385_v19, %s1262_s28 }
 0x59f   : > { %742 = vrot.lane.b32.xlu0 %v1327_v1, %s1263_s29 }
 0x5a3   : > { %744 = vrot.lane.b32.xlu0 %v1332_v3, %s1263_s29 }
 0x5a7   : > { %740 = vrot.lane.b32.xlu0 %v1363_v13, %s1263_s29 }
 0x612   : > { %v666_v7 = vpop.permute.xlu0 %665 }
 0x613   : > { %v668_v8 = vsub.f32 %v648_v59, %v666_v7 }
 0x615   : > { %v669_v9 = vmul.f32 1.442695, %v668_v8 }
 0x616   : > { %v689_v10 = vpop.permute.xlu0 %688 }
 0x617   : > { %1213 = vpow2.f32 %v669_v9  ;;  %1146 = vmatpush3.bf16.msra.mxu1 %v689_v10  ;;  %v389_v9 = vld [vmem:[#allocation4] sm:$0xff] }
 0x618   : > { %1147 = vmatprep.subr.bf16.mxu1 %v1257_v0  ;;  %1215 = vpow2.f32 %v520_v34 }
 0x61a   : > { %v691_v11 = vpop.permute.xlu0 %690 }
 0x61b   : > { %1148 = vmatpush3.bf16.msra.mxu1 %v691_v11 }
 0x61c   : > { %1153 = vmatprep.subr.bf16.mxu1 %v1257_v0 }
 0x61e   : > { %v743_v12 = vpop.permute.xlu0 %742 }
 0x61f   : > { %v750_v15 = vsel %vm290_vm0, %v743_v12, 0 }
 0x621   : > { %v1214_v1 = vpop.eup %1213 }
 0x622   : > { %v687_v3 = vpack.c.bf16 %v1214_v1, %v1214_v1  ;;  %v745_v13 = vpop.permute.xlu0 %744  ;;  %v1216_v36 = vpop.eup %1215  ;;  %v674_v41 = vsel %vm365_vm3, %v1214_v1, 0.0  ;;  %v539_v1 = vld [vmem:[#allocation4 + $0x8] sm:$0xff] }
 0x623   : > { %v753_v20 = vsel %vm290_vm0, %v745_v13, 0  ;;  %v532_v43 = vmul.f32 %v1216_v36, %v531_v38 }
 0x624   : > { %1150 = vmatmul.mubr.msk.bf16.vlgmr.msra.gmra.mrb[8].mxu1 %vm365_vm3, %v687_v3 }
 0x625   : > { %1154 = vmatpush3.bf16.xpose.msra.mxu1 %v750_v15  ;;  %1157 = vmatprep.mubr.msk.bf16.mxu1 %vm1258_vm1, %v1257_v0 }
 0x626   : > { %1155 = vmatprep.subr.bf16.mxu1 %v1257_v0  ;;  %v741_v21 = vpop.permute.xlu0 %740 }
 0x62d   : > { %1156 = vmatpush3.bf16.xpose.msra.mxu1 %v753_v20 }
 0x634   : > { %1158 = vmatmul.mubr.msk.bf16.vlgmr.msra.gmra.mrb[12].mxu1 %vm290_vm0, %v741_v21  ;;  %v680_v21 = vld [vmem:[#allocation4 + $0x10] sm:$0xff] }
 0x6f7   : > { %v1475_v22 = vpop.f32.mrb[8].mxu1 }
 0x6f8   : > { %v1151_v23 = vpop.f32.mrb[9].mxu1 }
 0x6f9   : > { %v734_v25 = vpop.f32.mrb[10].mxu1 }
 0x6fa   : > { %v1152_v26 = vpop.f32.mrb[11].mxu1 }
 0x707   : > { %v789_v27 = vpop.f32.mrb[12].mxu1 }
 0x708   : > { %v1159_v28 = vpop.f32.mrb[13].mxu1  ;;  %v797_v29 = vsel %vm365_vm3, %v789_v27, -inf }
 0x709   : > { %798 = vmax.xlane.f32.xlu0 %v797_v29  ;;  %v792_v31 = vpop.f32.mrb[14].mxu1 }
 0x70a   : > { %v1160_v32 = vpop.f32.mrb[15].mxu1 }
 0x70d   : > { %534 = vadd.xlane.f32.xlu0 %v533_v33 }
 0x796   : > { %v799_v37 = vpop.xlane.xlu0 %798 }
 0x797   : > { %v800_v40 = vmax.f32 %v796_v35, %v799_v37 }
 0x799   : > { %880 = vst.msk [vmem:[#allocation2 + $0x18] sm:$0xff] %vm281_vm2, %v800_v40  ;;  %806 = vperm.xlu1 %1204, %v800_v40   ;;  %v801_v39 = vsub.f32 %v796_v35, %v800_v40  ;;  %v821_v35 = vld [vmem:[#allocation4 + $0x18] sm:$0xff] }
 0x79a   : > { %v535_v44 = vpop.xlane.xlu0 %534 }
 0x79b   : > { %v536_v45 = vadd.f32 %v535_v44, %v532_v43  ;;  %v802_v42 = vmul.f32 1.442695, %v801_v39 }
 0x79d   : > { %537 = vst.msk [vmem:[#allocation3 + $0x8] sm:$0xff] %vm281_vm2, %v536_v45  ;;  %829 = vrot.lane.b32.xlu1 %v1382_v18, %s1263_s29  ;;  %1217 = vpow2.f32 %v802_v42 }
 0x7a1   : > { %831 = vrot.lane.b32.xlu1 %v1385_v19, %s1263_s29 }
 0x7a4   : > { %v894_v56 = vld [vmem:[#allocation3 + $0x8] sm:$0xff] }
 0x7a7   : > { %v1218_v46 = vpop.eup %1217 }
 0x7a8   : > { %v814_v63 = vmul.f32 %v1218_v46, %v813_v62 }
 0x7c5   : > { %675 = vadd.xlane.f32.xlu1 %v674_v41 }
 0x7d6   : > { %824 = vperm.xlu1 %1204, %v1218_v46  }
 0x818   : > { %v807_v47 = vpop.permute.xlu1 %806 }
 0x819   : > { %v809_v48 = vsub.f32 %v789_v27, %v807_v47 }
 0x81b   : > { %v810_v49 = vmul.f32 1.442695, %v809_v48 }
 0x81c   : > { %v830_v50 = vpop.permute.xlu1 %829 }
 0x81d   : > { %1219 = vpow2.f32 %v810_v49  ;;  %1162 = vmatpush3.bf16.msra.mxu0 %v830_v50 }
 0x81e   : > { %1163 = vmatprep.subr.bf16.mxu0 %v1257_v0  ;;  %1221 = vpow2.f32 %v371_v54  ;;  %v661_v0 = vmul.f32 1.442695, %v660_v6 }
 0x820   : > { %v832_v18 = vpop.permute.xlu1 %831  ;;  %1223 = vpow2.f32 %v661_v0 }
 0x821   : > { %1164 = vmatpush3.bf16.msra.mxu0 %v832_v18  ;;  %1225 = vrcp.f32 %v894_v56 }
 0x827   : > { %v1220_v51 = vpop.eup %1219 }
 0x828   : > { %v815_v19 = vsel %vm365_vm3, %v1220_v51, 0.0  ;;  %v828_v52 = vpack.c.bf16 %v1220_v51, %v1220_v51  ;;  %v1222_v57 = vpop.eup %1221 }
 0x829   : > { %816 = vadd.xlane.f32.xlu0 %v815_v19  ;;  %v382_v6 = vmul.f32 %v1222_v57, %v381_v4 }
 0x82a   : > { %1166 = vmatmul.mubr.msk.bf16.vlgmr.msra.gmra.mrb[12].mxu0 %vm365_vm3, %v828_v52  ;;  %v1224_v58 = vpop.eup %1223 }
 0x82b   : > { %v1226_v59 = vpop.eup %1225  ;;  %v673_v60 = vmul.f32 %v1224_v58, %v672_v24 }
 0x82d   : > { %384 = vadd.xlane.f32.xlu0 %v383_v53 }
 0x843   : > { %392 = vperm.xlu0 %1203, %v1222_v57  }
 0x847   : > { %542 = vperm.xlu0 %1203, %v1216_v36  }
 0x84b   : > { %683 = vperm.xlu0 %1203, %v1224_v58  }
 0x84f   : > { %898 = vperm.xlu0 %1203, %v1226_v59  }
 0x852   : > { %v676_v61 = vpop.xlane.xlu1 %675 }
 0x853   : > { %v677_v14 = vadd.f32 %v676_v61, %v673_v60 }
 0x855   : > { %678 = vst.msk [vmem:[#allocation3 + $0x10] sm:$0xff] %vm281_vm2, %v677_v14 }
 0x856   : > { %v825_v36 = vpop.permute.xlu1 %824 }
 0x857   : > { %v827_v37 = vmul.f32 %v825_v36, %v821_v35 }
 0x85c   : > { %v903_v16 = vld [vmem:[#allocation3 + $0x10] sm:$0xff] }
 0x85d   : > { %1227 = vrcp.f32 %v903_v16 }
 0x867   : > { %v1228_v17 = vpop.eup %1227 }
 0x868   : > { %907 = vperm.xlu0 %1203, %v1228_v17  }
 0x8b6   : > { %v817_v2 = vpop.xlane.xlu0 %816 }
 0x8b7   : > { %v818_v5 = vadd.f32 %v817_v2, %v814_v63 }
 0x8b9   : > { %819 = vst.msk [vmem:[#allocation3 + $0x18] sm:$0xff] %vm281_vm2, %v818_v5 }
 0x8ba   : > { %v385_v7 = vpop.xlane.xlu0 %384 }
 0x8bb   : > { %v386_v8 = vadd.f32 %v385_v7, %v382_v6 }
 0x8bd   : > { %388 = vst.msk [vmem:[#allocation3] sm:$0xff] %vm281_vm2, %v386_v8 }
 0x8c0   : > { %v912_v10 = vld [vmem:[#allocation3 + $0x18] sm:$0xff] }
 0x8c1   : > { %1229 = vrcp.f32 %v912_v10 }
 0x8c2   : > { %v393_v11 = vpop.permute.xlu0 %392 }
 0x8c3   : > { %v395_v12 = vmul.f32 %v393_v11, %v389_v9 }
 0x8c4   : > { %v885_v15 = vld [vmem:[#allocation3] sm:$0xff] }
 0x8c5   : > { %v452_v3 = vadd.f32 %v1404_v30, %v395_v12  ;;  %1231 = vrcp.f32 %v885_v15 }
 0x8c6   : > { %v543_v13 = vpop.permute.xlu0 %542 }
 0x8c7   : > { %453 = vst.msk [vmem:[#allocation4] sm:$0xff] %vm290_vm0, %v452_v3  ;;  %v545_v20 = vmul.f32 %v543_v13, %v539_v1 }
 0x8c9   : > { %v596_v23 = vadd.f32 %v1443_v55, %v545_v20 }
 0x8ca   : > { %v684_v25 = vpop.permute.xlu0 %683 }
 0x8cb   : > { %v1230_v26 = vpop.eup %1229  ;;  %597 = vst.msk [vmem:[#allocation4 + $0x8] sm:$0xff] %vm290_vm0, %v596_v23  ;;  %v686_v27 = vmul.f32 %v684_v25, %v680_v21 }
 0x8cc   : > { %916 = vperm.xlu0 %1203, %v1230_v26  }
 0x8cd   : > { %v737_v28 = vadd.f32 %v1475_v22, %v686_v27 }
 0x8ce   : > { %v899_v31 = vpop.permute.xlu0 %898  ;;  %v884_v46 = vld [vmem:[#allocation4] sm:$0xff] }
 0x8cf   : > { %v1232_v29 = vpop.eup %1231  ;;  %738 = vst.msk [vmem:[#allocation4 + $0x10] sm:$0xff] %vm290_vm0, %v737_v28 }
 0x8d0   : > { %889 = vperm.xlu0 %1203, %v1232_v29  }
 0x8d2   : > { %v893_v30 = vld [vmem:[#allocation4 + $0x8] sm:$0xff] }
 0x8d3   : > { %v901_v32 = vmul.f32 %v899_v31, %v893_v30 }
 0x8d5   : > { %921 = vrot.lane.b32.xlu1 %v901_v32, %s1264_s30 }
 0x8d6   : > { %v902_v33 = vld [vmem:[#allocation4 + $0x10] sm:$0xff] }
 0x8e7   : > { %v908_v34 = vpop.permute.xlu0 %907 }
 0x8e8   : > { %v910_v55 = vmul.f32 %v908_v34, %v902_v33 }
 0x8ea   : > { %925 = vrot.lane.b32.xlu0 %v910_v55, %s1265_s4 }
 0x8fd   : > { %v872_v38 = vpop.f32.mrb[12].mxu0 }
 0x8fe   : > { %v878_v40 = vadd.f32 %v872_v38, %v827_v37  ;;  %v1167_v22 = vpop.f32.mrb[13].mxu0 }
 0x8ff   : > { %v875_v43 = vpop.f32.mrb[14].mxu0 }
 0x900   : > { %879 = vst.msk [vmem:[#allocation4 + $0x18] sm:$0xff] %vm290_vm0, %v878_v40  ;;  %v1168_v44 = vpop.f32.mrb[15].mxu0 }
 0x907   : > { %v911_v39 = vld [vmem:[#allocation4 + $0x18] sm:$0xff] }
 0x947   : > { %v922_v48 = vpop.permute.xlu1 %921 }
 0x94b   : > { %v917_v45 = vpop.permute.xlu0 %916 }
 0x94c   : > { %v919_v41 = vmul.f32 %v917_v45, %v911_v39 }
 0x94e   : > { %929 = vrot.lane.b32.xlu1 %v919_v41, %s1266_s5 }
 0x94f   : > { %v890_v42 = vpop.permute.xlu0 %889 }
 0x950   : > { %v892_v47 = vmul.f32 %v890_v42, %v884_v46 }
 0x952   : > { %v932_v50 = vsel %vm290_vm0, %v892_v47, %v922_v48 }
 0x95c   : > { %v926_v49 = vpop.permute.xlu0 %925 }
 0x95d   : > { %v934_v18 = vsel %vm933_vm4, %v932_v50, %v926_v49 }
 0x9c0   : > { %v930_v51 = vpop.permute.xlu1 %929 }
 0x9c1   : > { %v936_v19 = vsel %vm935_vm5, %v934_v18, %v930_v51 }
 0x9c2   : > { %v937_v52 = vpack.c.bf16 %v936_v19, %v936_v19 }
 0x9c4   : > { %939 = vst.msk [vmem:[%s275_s8] sm:$0xf] %vm938_vm6, %v937_v52 }
 0x9c5 PF: > { %s13_s14 = sadd.s32 1, %s1255_s14   ;;  %s1530_s12 = smov %s1251_s13 }
 0x9c6   : > { %p10_p5 = scmp.ge.s32.totalorder %s13_s14, 4   ;;  %s1531_s13 = smov %s1533_s15 }
 0x9c8   :  { %12 = sbr.rel (!%p10_p5) target bundleno = 2 (0x2), region = 85 }

// kernel: fwd.36
= control target key start
LH: loop header
LB: loop body
LE: loop exit
PB: predicated region body
PF: predicated region fallthrough
CT: control target
= control target key end

     0   :  { %vm26_vm0 = vcmask 261120   ;;  %v183_v16 = vmov 0.0   ;;  %vm184_vm1 = vmmov 0   ;;  %vm144_vm2 = vcmask 781312   ;;  %s237_s0 = inlined_call_operand.vmem [shape: bf16[16,32], index: 0, kind: input, shape index: {}]   ;;  %s238_s3 = inlined_call_operand.vmem [shape: bf16[32,96], index: 3, kind: input, shape index: {}]   ;;  %s239_s1 = inlined_call_operand.vmem [shape: f32[1,32], index: 1, kind: input, shape index: {}]   ;;  %s240_s2 = inlined_call_operand.vmem [shape: f32[1,32], index: 2, kind: input, shape index: {}]   ;;  %s241_s4 = inlined_call_operand.vmem [shape: bf16[16,96], index: 4, kind: output, shape index: {}]  }
   0x1   :  { %v161_v0 = vld [vmem:[%s237_s0] sm:$0xff]   ;;  %167 = vmatprep.subr.bf16.mxu0 %v183_v16  ;;  %v178_v17 = vld [vmem:[%s238_s3 + $0x8] sm:$0xff]   ;;  %171 = vmatprep.mubr.msk.bf16.mxu0 %vm184_vm1, %v183_v16 }
   0x2   :  { %v162_v1 = vunpack.c.l.bf16 %v161_v0  ;;  %v163_v2 = vunpack.c.h.bf16 %v161_v0  ;;  %v177_v15 = vld [vmem:[%s238_s3] sm:$0xff]  }
   0x3   :  { %168 = vmatpush3.bf16.msra.mxu0 %v177_v15  ;;  %v151_v26 = vld [vmem:[%s239_s1] ss:$0 sm:$0xff] }
   0x4   :  { %v27_v3 = vsel %vm26_vm0, %v162_v1, 0.0  ;;  %v30_v4 = vsel %vm26_vm0, %v163_v2, 0.0  ;;  %169 = vmatprep.subr.bf16.mxu0 %v183_v16  ;;  %v152_v30 = vld [vmem:[%s240_s2] ss:$0 sm:$0xff] }
   0x5   :  { %28 = vadd.xlane.f32.xlu0 %v27_v3 }
   0x7   :  { %170 = vmatpush3.bf16.msra.mxu0 %v178_v17 }
   0x9   :  { %31 = vadd.xlane.f32.xlu0 %v30_v4 }
  0x92   :  { %v29_v5 = vpop.xlane.xlu0 %28 }
  0x93   :  { %v34_v6 = vmul.f32 0.03125, %v29_v5 }
  0x95   :  { %v36_v7 = vsub.f32 %v162_v1, %v34_v6 }
  0x96   :  { %v32_v8 = vpop.xlane.xlu0 %31 }
  0x97   :  { %v35_v9 = vmul.f32 0.03125, %v32_v8  ;;  %v38_v10 = vmul.f32 %v36_v7, %v36_v7 }
  0x99   :  { %v37_v11 = vsub.f32 %v163_v2, %v35_v9  ;;  %v40_v12 = vsel %vm26_vm0, %v38_v10, 0.0 }
  0x9a   :  { %41 = vadd.xlane.f32.xlu1 %v40_v12 }
  0x9b   :  { %v39_v13 = vmul.f32 %v37_v11, %v37_v11 }
  0x9d   :  { %v43_v14 = vsel %vm26_vm0, %v39_v13, 0.0 }
  0x9e   :  { %44 = vadd.xlane.f32.xlu1 %v43_v14 }
 0x127   :  { %v42_v18 = vpop.xlane.xlu1 %41 }
 0x128   :  { %v46_v19 = vmul.f32 0.03125, %v42_v18 }
 0x12a   :  { %v48_v20 = vadd.f32 1e-05, %v46_v19 }
 0x12b   :  { %v45_v21 = vpop.xlane.xlu1 %44 }
 0x12c   :  { %179 = vrsqrt.f32 %v48_v20  ;;  %v47_v22 = vmul.f32 0.03125, %v45_v21 }
 0x12e   :  { %v49_v23 = vadd.f32 1e-05, %v47_v22 }
 0x130   :  { %181 = vrsqrt.f32 %v49_v23 }
 0x136   :  { %v180_v24 = vpop.eup %179 }
 0x137   :  { %v52_v25 = vmul.f32 %v180_v24, %v36_v7 }
 0x139   :  { %v61_v28 = vmul.f32 %v151_v26, %v52_v25 }
 0x13a   :  { %v182_v27 = vpop.eup %181 }
 0x13b   :  { %v53_v29 = vmul.f32 %v182_v27, %v37_v11  ;;  %v70_v32 = vadd.f32 %v152_v30, %v61_v28 }
 0x13d   :  { %v62_v31 = vmul.f32 %v151_v26, %v53_v29 }
 0x13f   :  { %v71_v33 = vadd.f32 %v152_v30, %v62_v31 }
 0x141   :  { %v72_v34 = vpack.c.bf16 %v71_v33, %v70_v32 }
 0x143   :  { %73 = vst.msk [vmem:[#allocation2] sm:$0xff] %vm26_vm0, %v72_v34 }
 0x14a   :  { %v74_v35 = vld [vmem:[#allocation2] sm:$0xff] }
 0x14b   :  { %172 = vmatmul.mubr.msk.bf16.vlgmr.msra.gmra.mrb[0].mxu0 %vm26_vm0, %v74_v35 }
 0x21e   :  { %v129_v36 = vpop.f32.mrb[0].mxu0 }
 0x21f   :  { %v158_v37 = vpack.c.bf16 %v129_v36, %v129_v36  ;;  %v173_v38 = vpop.f32.mrb[1].mxu0 }
 0x220   :  { %v132_v39 = vpop.f32.mrb[2].mxu0 }
 0x221   :  { %145 = vst.msk [vmem:[%s241_s4] sm:$0xf] %vm144_vm2, %v158_v37  ;;  %v159_v40 = vpack.c.bf16 %v132_v39, %v132_v39  ;;  %v174_v41 = vpop.f32.mrb[3].mxu0 }
 0x223   :  { %146 = vst.msk [vmem:[%s241_s4 + $0x4] sm:$0xf] %vm144_vm2, %v159_v40 }

// kernel: fwd.35
= control target key start
LH: loop header
LB: loop body
LE: loop exit
PB: predicated region body
PF: predicated region fallthrough
CT: control target
= control target key end

     0   :  { %vm35_vm0 = vcmask 261120   ;;  %v406_v16 = vmov 0.0   ;;  %vm407_vm1 = vmmov 0   ;;  %vm312_vm2 = vcmask 257024   ;;  %s519_s0 = inlined_call_operand.vmem [shape: bf16[16,32], index: 0, kind: input, shape index: {}]   ;;  %s520_s3 = inlined_call_operand.vmem [shape: bf16[32,128], index: 3, kind: input, shape index: {}]   ;;  %s521_s1 = inlined_call_operand.vmem [shape: f32[1,32], index: 1, kind: input, shape index: {}]   ;;  %s522_s2 = inlined_call_operand.vmem [shape: f32[1,32], index: 2, kind: input, shape index: {}]   ;;  %s523_s5 = inlined_call_operand.vmem [shape: bf16[128,32], index: 5, kind: input, shape index: {}]   ;;  %s524_s4 = inlined_call_operand.vmem [shape: f32[1,128], index: 4, kind: input, shape index: {}]   ;;  %s525_s6 = inlined_call_operand.vmem [shape: f32[1,32], index: 6, kind: input, shape index: {}]   ;;  %s526_s7 = inlined_call_operand.vmem [shape: bf16[16,32], index: 7, kind: output, shape index: {}]  }
   0x1   :  { %v339_v0 = vld [vmem:[%s519_s0] sm:$0xff]   ;;  %358 = vmatprep.subr.bf16.mxu0 %v406_v16  ;;  %83 = vst.msk [vmem:[#allocation3] sm:$0xff] %vm35_vm0, %v406_v16  ;;  %84 = vst.msk [vmem:[#allocation3 + $0x8] sm:$0xff] %vm35_vm0, %v406_v16  ;;  %366 = vmatprep.subr.bf16.mxu1 %v406_v16  ;;  %v389_v17 = vld [vmem:[%s520_s3 + $0x8] sm:$0xff]  }
   0x2   :  { %v451_v1 = vunpack.c.l.bf16 %v339_v0  ;;  %v453_v2 = vunpack.c.h.bf16 %v339_v0  ;;  %v388_v15 = vld [vmem:[%s520_s3] sm:$0xff]   ;;  %362 = vmatprep.mubr.msk.bf16.mxu0 %vm407_vm1, %v406_v16  ;;  %382 = vmatprep.mubr.msk.bf16.mxu1 %vm407_vm1, %v406_v16  ;;  %v391_v37 = vld [vmem:[%s523_s5 + $0x8] sm:$0xff]   ;;  %v392_v38 = vld [vmem:[%s523_s5 + $0x10] sm:$0xff]  }
   0x3   :  { %359 = vmatpush3.bf16.msra.mxu0 %v388_v15  ;;  %v319_v26 = vld [vmem:[%s521_s1] ss:$0 sm:$0xff]  ;;  %v393_v39 = vld [vmem:[%s523_s5 + $0x18] sm:$0xff]   ;;  %v395_v41 = vld [vmem:[%s523_s5 + $0x28] sm:$0xff]  }
   0x4   :  { %v36_v3 = vsel %vm35_vm0, %v451_v1, 0.0  ;;  %v39_v4 = vsel %vm35_vm0, %v453_v2, 0.0  ;;  %360 = vmatprep.subr.bf16.mxu0 %v406_v16  ;;  %v320_v30 = vld [vmem:[%s522_s2] ss:$0 sm:$0xff]  ;;  %v396_v42 = vld [vmem:[%s523_s5 + $0x30] sm:$0xff]   ;;  %v397_v43 = vld [vmem:[%s523_s5 + $0x38] sm:$0xff]  }
   0x5   :  { %37 = vadd.xlane.f32.xlu0 %v36_v3  ;;  %v390_v36 = vld [vmem:[%s523_s5] sm:$0xff]  }
   0x6   :  { %367 = vmatpush3.bf16.msra.mxu1 %v390_v36  ;;  %v394_v40 = vld [vmem:[%s523_s5 + $0x20] sm:$0xff]  }
   0x7   :  { %361 = vmatpush3.bf16.msra.mxu0 %v389_v17  ;;  %368 = vmatprep.subr.bf16.mxu1 %v406_v16  ;;  %v321_v44 = vld [vmem:[%s524_s4] ss:$0 sm:$0xff] }
   0x9   :  { %40 = vadd.xlane.f32.xlu0 %v39_v4 }
   0xa   :  { %369 = vmatpush3.bf16.msra.mxu1 %v391_v37 }
   0xb   :  { %370 = vmatprep.subr.bf16.mxu1 %v406_v16 }
   0xe   :  { %371 = vmatpush3.bf16.msra.mxu1 %v392_v38 }
   0xf   :  { %372 = vmatprep.subr.bf16.mxu1 %v406_v16 }
  0x12   :  { %373 = vmatpush3.bf16.msra.mxu1 %v393_v39 }
  0x13   :  { %374 = vmatprep.subr.bf16.mxu1 %v406_v16 }
  0x16   :  { %375 = vmatpush3.bf16.msra.mxu1 %v394_v40 }
  0x17   :  { %376 = vmatprep.subr.bf16.mxu1 %v406_v16 }
  0x1a   :  { %377 = vmatpush3.bf16.msra.mxu1 %v395_v41 }
  0x1b   :  { %378 = vmatprep.subr.bf16.mxu1 %v406_v16 }
  0x1e   :  { %379 = vmatpush3.bf16.msra.mxu1 %v396_v42 }
  0x1f   :  { %380 = vmatprep.subr.bf16.mxu1 %v406_v16  ;;  %v333_v16 = vld [vmem:[%s525_s6] ss:$0 sm:$0xff] }
  0x22   :  { %381 = vmatpush3.bf16.msra.mxu1 %v397_v43 }
  0x92   :  { %v38_v5 = vpop.xlane.xlu0 %37 }
  0x93   :  { %v43_v6 = vmul.f32 0.03125, %v38_v5 }
  0x95   :  { %v45_v7 = vsub.f32 %v451_v1, %v43_v6 }
  0x96   :  { %v41_v8 = vpop.xlane.xlu0 %40 }
  0x97   :  { %v44_v9 = vmul.f32 0.03125, %v41_v8  ;;  %v47_v10 = vmul.f32 %v45_v7, %v45_v7  ;;  %v172_v8 = vld [vmem:[#allocation3] sm:$0xff] }
  0x99   :  { %v46_v11 = vsub.f32 %v453_v2, %v44_v9  ;;  %v49_v12 = vsel %vm35_vm0, %v47_v10, 0.0  ;;  %v173_v10 = vld [vmem:[#allocation3 + $0x8] sm:$0xff] }
  0x9a   :  { %50 = vadd.xlane.f32.xlu1 %v49_v12 }
  0x9b   :  { %v48_v13 = vmul.f32 %v46_v11, %v46_v11 }
  0x9d   :  { %v52_v14 = vsel %vm35_vm0, %v48_v13, 0.0 }
  0x9e   :  { %53 = vadd.xlane.f32.xlu1 %v52_v14 }
 0x127   :  { %v51_v18 = vpop.xlane.xlu1 %50 }
 0x128   :  { %v55_v19 = vmul.f32 0.03125, %v51_v18 }
 0x12a   :  { %v57_v20 = vadd.f32 1e-05, %v55_v19 }
 0x12b   :  { %v54_v21 = vpop.xlane.xlu1 %53 }
 0x12c   :  { %398 = vrsqrt.f32 %v57_v20  ;;  %v56_v22 = vmul.f32 0.03125, %v54_v21 }
 0x12e   :  { %v58_v23 = vadd.f32 1e-05, %v56_v22 }
 0x130   :  { %400 = vrsqrt.f32 %v58_v23 }
 0x136   :  { %v399_v24 = vpop.eup %398 }
 0x137   :  { %v61_v25 = vmul.f32 %v399_v24, %v45_v7 }
 0x139   :  { %v70_v28 = vmul.f32 %v319_v26, %v61_v25 }
 0x13a   :  { %v401_v27 = vpop.eup %400 }
 0x13b   :  { %v62_v29 = vmul.f32 %v401_v27, %v46_v11  ;;  %v79_v32 = vadd.f32 %v320_v30, %v70_v28 }
 0x13d   :  { %v71_v31 = vmul.f32 %v319_v26, %v62_v29 }
 0x13f   :  { %v80_v33 = vadd.f32 %v320_v30, %v71_v31 }
 0x141   :  { %v81_v34 = vpack.c.bf16 %v80_v33, %v79_v32 }
 0x143   :  { %82 = vst.msk [vmem:[#allocation2] sm:$0xff] %vm35_vm0, %v81_v34 }
 0x14a   :  { %v85_v35 = vld [vmem:[#allocation2] sm:$0xff] }
 0x14b   :  { %363 = vmatmul.mubr.msk.bf16.vlgmr.msra.gmra.mrb[0].mxu0 %vm35_vm0, %v85_v35 }
 0x21e   :  { %v147_v45 = vpop.f32.mrb[0].mxu0 }
 0x21f   :  { %v148_v46 = vadd.f32 %v321_v44, %v147_v45  ;;  %v364_v47 = vpop.f32.mrb[1].mxu0 }
 0x220   :  { %v150_v48 = vpop.f32.mrb[2].mxu0 }
 0x221   :  { %v154_v49 = vmul.f32 %v148_v46, %v148_v46  ;;  %v151_v50 = vadd.f32 %v321_v44, %v150_v48  ;;  %v365_v51 = vpop.f32.mrb[3].mxu0 }
 0x223   :  { %v156_v52 = vmul.f32 %v154_v49, %v148_v46  ;;  %v155_v53 = vmul.f32 %v151_v50, %v151_v50 }
 0x225   :  { %v158_v54 = vmul.f32 0.044715, %v156_v52  ;;  %v157_v55 = vmul.f32 %v155_v53, %v151_v50 }
 0x227   :  { %v160_v56 = vadd.f32 %v158_v54, %v148_v46  ;;  %v159_v57 = vmul.f32 0.044715, %v157_v55 }
 0x229   :  { %v162_v58 = vmul.f32 0.7978846, %v160_v56  ;;  %v161_v59 = vadd.f32 %v159_v57, %v151_v50 }
 0x22b   :  { %402 = vtanh.f32 %v162_v58  ;;  %v163_v60 = vmul.f32 0.7978846, %v161_v59 }
 0x22d   :  { %404 = vtanh.f32 %v163_v60 }
 0x235   :  { %v403_v61 = vpop.eup %402 }
 0x236   :  { %v166_v62 = vadd.f32 1.0, %v403_v61 }
 0x237   :  { %v405_v63 = vpop.eup %404 }
 0x238   :  { %v167_v0 = vadd.f32 1.0, %v405_v63  ;;  %v168_v3 = vmul.f32 0.5, %v166_v62 }
 0x23a   :  { %v169_v4 = vmul.f32 0.5, %v167_v0  ;;  %v170_v5 = vmul.f32 %v168_v3, %v148_v46 }
 0x23c   :  { %v171_v6 = vmul.f32 %v169_v4, %v151_v50 }
 0x23e   :  { %v174_v7 = vpack.c.bf16 %v171_v6, %v170_v5 }
 0x240   :  { %383 = vmatmul.mubr.bf16.vlgmr.msra.gmra.mrb[0].mxu1 %v174_v7 }
 0x313   :  { %v273_v9 = vpop.f32.mrb[0].mxu1 }
 0x314   :  { %v280_v11 = vadd.f32 %v273_v9, %v172_v8  ;;  %v384_v12 = vpop.f32.mrb[1].mxu1 }
 0x315   :  { %v276_v13 = vpop.f32.mrb[2].mxu1 }
 0x316   :  { %282 = vst.msk [vmem:[#allocation3] sm:$0xff] %vm35_vm0, %v280_v11  ;;  %v281_v14 = vadd.f32 %v276_v13, %v173_v10  ;;  %v385_v15 = vpop.f32.mrb[3].mxu1 }
 0x318   :  { %283 = vst.msk [vmem:[#allocation3 + $0x8] sm:$0xff] %vm35_vm0, %v281_v14 }
 0x31d   :  { %v287_v17 = vld [vmem:[#allocation3] sm:$0xff] }
 0x31e   :  { %v296_v18 = vadd.f32 %v333_v16, %v287_v17 }
 0x31f   :  { %v288_v19 = vld [vmem:[#allocation3 + $0x8] sm:$0xff] }
 0x320   :  { %v302_v20 = vadd.f32 %v451_v1, %v296_v18  ;;  %v297_v21 = vadd.f32 %v333_v16, %v288_v19 }
 0x322   :  { %v336_v22 = vpack.c.bf16 %v302_v20, %v302_v20  ;;  %v303_v23 = vadd.f32 %v453_v2, %v297_v21 }
 0x324   :  { %313 = vst.msk [vmem:[%s526_s7] sm:$0xf] %vm312_vm2, %v336_v22  ;;  %v337_v24 = vpack.c.bf16 %v303_v23, %v303_v23 }
 0x326   :  { %314 = vst.msk [vmem:[%s526_s7 + $0x4] sm:$0xf] %vm312_vm2, %v337_v24 }

// kernel: fwd.40
= control target key start
LH: loop header
LB: loop body
LE: loop exit
PB: predicated region body
PF: predicated region fallthrough
CT: control target
= control target key end

     0   :  { %vm29_vm0 = vcmask 261120   ;;  %v181_v16 = vmov 0.0   ;;  %vm182_vm1 = vmmov 0   ;;  %s245_s0 = inlined_call_operand.vmem [shape: bf16[16,32], index: 0, kind: input, shape index: {}]   ;;  %s246_s3 = inlined_call_operand.vmem [shape: bf16[32,32], index: 3, kind: input, shape index: {}]   ;;  %s247_s1 = inlined_call_operand.vmem [shape: f32[1,32], index: 1, kind: input, shape index: {}]   ;;  %s248_s2 = inlined_call_operand.vmem [shape: f32[1,32], index: 2, kind: input, shape index: {}]   ;;  %s249_s4 = inlined_call_operand.vmem [shape: f32[1,32], index: 4, kind: input, shape index: {}]   ;;  %s250_s5 = inlined_call_operand.vmem [shape: f32[16,32], index: 5, kind: output, shape index: {}]  }
   0x1   :  { %v159_v0 = vld [vmem:[%s245_s0] sm:$0xff]   ;;  %165 = vmatprep.subr.bf16.mxu0 %v181_v16  ;;  %v176_v17 = vld [vmem:[%s246_s3 + $0x8] sm:$0xff]   ;;  %169 = vmatprep.mubr.msk.bf16.mxu0 %vm182_vm1, %v181_v16 }
   0x2   :  { %v160_v1 = vunpack.c.l.bf16 %v159_v0  ;;  %v161_v2 = vunpack.c.h.bf16 %v159_v0  ;;  %v175_v15 = vld [vmem:[%s246_s3] sm:$0xff]  }
   0x3   :  { %166 = vmatpush3.bf16.msra.mxu0 %v175_v15  ;;  %v152_v26 = vld [vmem:[%s247_s1] ss:$0 sm:$0xff] }
   0x4   :  { %v30_v3 = vsel %vm29_vm0, %v160_v1, 0.0  ;;  %v33_v4 = vsel %vm29_vm0, %v161_v2, 0.0  ;;  %167 = vmatprep.subr.bf16.mxu0 %v181_v16  ;;  %v153_v30 = vld [vmem:[%s248_s2] ss:$0 sm:$0xff] }
   0x5   :  { %31 = vadd.xlane.f32.xlu0 %v30_v3  ;;  %v154_v36 = vld [vmem:[%s249_s4] ss:$0 sm:$0xff] }
   0x7   :  { %168 = vmatpush3.bf16.msra.mxu0 %v176_v17 }
   0x9   :  { %34 = vadd.xlane.f32.xlu0 %v33_v4 }
  0x92   :  { %v32_v5 = vpop.xlane.xlu0 %31 }
  0x93   :  { %v37_v6 = vmul.f32 0.03125, %v32_v5 }
  0x95   :  { %v39_v7 = vsub.f32 %v160_v1, %v37_v6 }
  0x96   :  { %v35_v8 = vpop.xlane.xlu0 %34 }
  0x97   :  { %v38_v9 = vmul.f32 0.03125, %v35_v8  ;;  %v41_v10 = vmul.f32 %v39_v7, %v39_v7 }
  0x99   :  { %v40_v11 = vsub.f32 %v161_v2, %v38_v9  ;;  %v43_v12 = vsel %vm29_vm0, %v41_v10, 0.0 }
  0x9a   :  { %44 = vadd.xlane.f32.xlu1 %v43_v12 }
  0x9b   :  { %v42_v13 = vmul.f32 %v40_v11, %v40_v11 }
  0x9d   :  { %v46_v14 = vsel %vm29_vm0, %v42_v13, 0.0 }
  0x9e   :  { %47 = vadd.xlane.f32.xlu1 %v46_v14 }
 0x127   :  { %v45_v18 = vpop.xlane.xlu1 %44 }
 0x128   :  { %v49_v19 = vmul.f32 0.03125, %v45_v18 }
 0x12a   :  { %v51_v20 = vadd.f32 1e-05, %v49_v19 }
 0x12b   :  { %v48_v21 = vpop.xlane.xlu1 %47 }
 0x12c   :  { %177 = vrsqrt.f32 %v51_v20  ;;  %v50_v22 = vmul.f32 0.03125, %v48_v21 }
 0x12e   :  { %v52_v23 = vadd.f32 1e-05, %v50_v22 }
 0x130   :  { %179 = vrsqrt.f32 %v52_v23 }
 0x136   :  { %v178_v24 = vpop.eup %177 }
 0x137   :  { %v55_v25 = vmul.f32 %v178_v24, %v39_v7 }
 0x139   :  { %v64_v28 = vmul.f32 %v152_v26, %v55_v25 }
 0x13a   :  { %v180_v27 = vpop.eup %179 }
 0x13b   :  { %v56_v29 = vmul.f32 %v180_v27, %v40_v11  ;;  %v73_v32 = vadd.f32 %v153_v30, %v64_v28 }
 0x13d   :  { %v65_v31 = vmul.f32 %v152_v26, %v56_v29 }
 0x13f   :  { %v74_v33 = vadd.f32 %v153_v30, %v65_v31 }
 0x141   :  { %v75_v34 = vpack.c.bf16 %v74_v33, %v73_v32 }
 0x143   :  { %76 = vst.msk [vmem:[#allocation2] sm:$0xff] %vm29_vm0, %v75_v34 }
 0x14a   :  { %v77_v35 = vld [vmem:[#allocation2] sm:$0xff] }
 0x14b   :  { %170 = vmatmul.mubr.msk.bf16.vlgmr.msra.gmra.mrb[0].mxu0 %vm29_vm0, %v77_v35 }
 0x21e   :  { %v139_v37 = vpop.f32.mrb[0].mxu0 }
 0x21f   :  { %v140_v38 = vadd.f32 %v154_v36, %v139_v37  ;;  %v171_v39 = vpop.f32.mrb[1].mxu0 }
 0x220   :  { %v142_v40 = vpop.f32.mrb[2].mxu0 }
 0x221   :  { %146 = vst.msk [vmem:[%s250_s5] sm:$0xff] %vm29_vm0, %v140_v38  ;;  %v143_v41 = vadd.f32 %v154_v36, %v142_v40  ;;  %v172_v42 = vpop.f32.mrb[3].mxu0 }
 0x223   :  { %147 = vst.msk [vmem:[%s250_s5 + $0x8] sm:$0xff] %vm29_vm0, %v143_v41 }

// kernel: fwd.41
= control target key start
LH: loop header
LB: loop body
LE: loop exit
PB: predicated region body
PF: predicated region fallthrough
CT: control target
= control target key end

     0   :  { %vm19_vm0 = vcmask 261120   ;;  %v132_v0 = vmov 0.0   ;;  %vm133_vm1 = vmmov 0   ;;  %vm35_vm2 = vcmask 130048   ;;  %s176_s1 = inlined_call_operand.vmem [shape: bf16[16,32], index: 1, kind: input, shape index: {}]   ;;  %s177_s0 = inlined_call_operand.vmem [shape: f32[16,16], index: 0, kind: input, shape index: {}]   ;;  %s178_s2 = inlined_call_operand.vmem [shape: f32[1,32], index: 2, kind: input, shape index: {}]   ;;  %s179_s3 = inlined_call_operand.vmem [shape: bf16[16,32], index: 3, kind: output, shape index: {}]  }
   0x1   :  { %20 = vst.msk [vmem:[#allocation2] sm:$0xff] %vm19_vm0, %v132_v0  ;;  %21 = vst.msk [vmem:[#allocation2 + $0x8] sm:$0xff] %vm19_vm0, %v132_v0  ;;  %123 = vmatprep.subr.bf16.mxu0 %v132_v0  ;;  %v131_v1 = vld [vmem:[%s176_s1] sm:$0xff]   ;;  %125 = vmatprep.mubr.msk.bf16.mxu0 %vm133_vm1, %v132_v0  ;;  %v25_v3 = vld [vmem:[%s177_s0 + $0x8] sm:$0xff]  ;;  %vm107_vm3 = vcmask 257024  }
   0x2   :  { %v24_v2 = vld [vmem:[%s177_s0] sm:$0xff]  ;;  %124 = vmatpush3.bf16.msra.mxu0 %v131_v1 }
   0x3   :  { %v26_v4 = vpack.c.bf16 %v25_v3, %v24_v2  ;;  %v116_v13 = vld [vmem:[%s178_s2] ss:$0 sm:$0xff] }
   0x5   :  { %126 = vmatmul.mubr.msk.bf16.vlgmr.msra.gmra.mrb[0].mxu0 %vm35_vm2, %v26_v4 }
   0x8   :  { %v22_v5 = vld [vmem:[#allocation2] sm:$0xff]  ;;  %v23_v7 = vld [vmem:[#allocation2 + $0x8] sm:$0xff] }
  0xd8   :  { %v73_v6 = vpop.f32.mrb[0].mxu0 }
  0xd9   :  { %v80_v8 = vadd.f32 %v73_v6, %v22_v5  ;;  %v127_v9 = vpop.f32.mrb[1].mxu0 }
  0xda   :  { %v76_v10 = vpop.f32.mrb[2].mxu0 }
  0xdb   :  { %83 = vst.msk [vmem:[#allocation2] sm:$0xff] %vm19_vm0, %v80_v8  ;;  %v81_v11 = vadd.f32 %v76_v10, %v23_v7  ;;  %v128_v12 = vpop.f32.mrb[3].mxu0 }
  0xdd   :  { %84 = vst.msk [vmem:[#allocation2 + $0x8] sm:$0xff] %vm19_vm0, %v81_v11 }
  0xe2   :  { %v88_v14 = vld [vmem:[#allocation2] sm:$0xff] }
  0xe3   :  { %v97_v15 = vadd.f32 %v116_v13, %v88_v14 }
  0xe4   :  { %v89_v16 = vld [vmem:[#allocation2 + $0x8] sm:$0xff] }
  0xe5   :  { %v119_v17 = vpack.c.bf16 %v97_v15, %v97_v15  ;;  %v98_v18 = vadd.f32 %v116_v13, %v89_v16 }
  0xe7   :  { %108 = vst.msk [vmem:[%s179_s3] sm:$0xf] %vm107_vm3, %v119_v17  ;;  %v120_v19 = vpack.c.bf16 %v98_v18, %v98_v18 }
  0xe9   :  { %109 = vst.msk [vmem:[%s179_s3 + $0x4] sm:$0xf] %vm107_vm3, %v120_v19 }

// kernel: fwd.37
= control target key start
LH: loop header
LB: loop body
LE: loop exit
PB: predicated region body
PF: predicated region fallthrough
CT: control target
= control target key end

     0   :  { %s1193_s12 = smov 0   ;;  %s1195_s13 = smov 0   ;;  %s1357_s0 = inlined_call_operand.vmem [shape: bf16[2,8,32], index: 0, kind: input, shape index: {}]   ;;  %s1358_s1 = inlined_call_operand.vmem [shape: bf16[2,8,32], index: 1, kind: input, shape index: {}]   ;;  %s1359_s2 = inlined_call_operand.vmem [shape: bf16[2,8,32], index: 2, kind: input, shape index: {}]   ;;  %s1360_s3 = inlined_call_operand.vmem [shape: bf16[2,8,32], index: 3, kind: output, shape index: {}]  }
   0x1   :  { %s1197_s14 = smov 0  }
   0x2 LB: > { %s32_s15 = sadd.s32 1, %s1157_s13  ;;  %p995_p0 = scmp.ge.s32.totalorder %s1161_s14, 1  ;;  %s1161_s14 = sphi %s1197_s14, %s13_s14   ;;  %s1157_s13 = sphi %s1195_s13, %s1362_s13   ;;  %s1153_s12 = sphi %s1193_s12, %s1361_s12  }
   0x3   : > { %p34_p1 = scmp.ge.s32.totalorder %s32_s15, 2  ;;  %p190_p2 = scmp.lt.s32.totalorder %s1161_s14, 3 }
   0x5   : > { %s1364_s15 = smov (%p34_p1, %s32_s15), 0  ;;  %p191_p3 = pnand %p995_p0, %p190_p2 }
   0x6   : > { %p232_p4 = scmp.lt.s32.totalorder (!%p191_p3), %s1153_s12, 1  ;;  %vm274_vm0 = vcmask (!%p191_p3), 64512   ;;  %v1163_v0 = vmov (!%p191_p3), 0.0   ;;  %vm1164_vm1 = vmmov (!%p191_p3), 0   ;;  %vm265_vm2 = vcmask (!%p191_p3), 7168   ;;  %s1167_s23 = smov (!%p191_p3), 120  }
   0x7   : > { %194 = sbr.rel (%p191_p3) target bundleno = 1465 (0x5b9), region = 32  ;;  %1029 = vmatprep.subr.bf16.mxu0 (!%p191_p3), %v1163_v0  ;;  %275 = vst.msk [vmem:[#allocation4] sm:$0xff] (!%p191_p3), %vm274_vm0, %v1163_v0  ;;  %276 = vst.msk [vmem:[#allocation4 + $0x8] sm:$0xff] (!%p191_p3), %vm274_vm0, %v1163_v0  ;;  %1031 = vmatprep.mubr.msk.bf16.mxu0 (!%p191_p3), %vm1164_vm1, %v1163_v0  ;;  %v1165_v4 = vmov (!%p191_p3), -1e+30   ;;  %v1166_v10 = vmov (!%p191_p3), 0  }
   0x8   : > { %277 = vst.msk [vmem:[#allocation4 + $0x10] sm:$0xff] (!%p191_p3), %vm274_vm0, %v1163_v0  ;;  %278 = vst.msk [vmem:[#allocation4 + $0x18] sm:$0xff] (!%p191_p3), %vm274_vm0, %v1163_v0  ;;  %1035 = vmatprep.subr.bf16.mxu1 (!%p191_p3), %v1163_v0  ;;  %1037 = vmatprep.mubr.msk.bf16.mxu1 (!%p191_p3), %vm1164_vm1, %v1163_v0  ;;  %s1168_s24 = smov (!%p191_p3), 112   ;;  %s1169_s25 = smov (!%p191_p3), 104   ;;  %vm364_vm3 = vcmask (!%p191_p3), 1043456   ;;  %vm877_vm4 = vcmask (!%p191_p3), 130048  }
   0x9   : > { %266 = vst.msk [vmem:[#allocation2] sm:$0xff] (!%p191_p3), %vm265_vm2, %v1165_v4  ;;  %267 = vst.msk [vmem:[#allocation2 + $0x8] sm:$0xff] (!%p191_p3), %vm265_vm2, %v1165_v4  ;;  %1111 = vset.pattern.permute.xlu0 (!%p191_p3), %v1166_v10  ;;  %1112 = vset.pattern.permute.xlu1 (!%p191_p3), %v1166_v10  ;;  %s1170_s29 = smov (!%p191_p3), 8   ;;  %s1171_s30 = smov (!%p191_p3), 16   ;;  %vm879_vm5 = vcmask (!%p191_p3), 195584   ;;  %vm882_vm6 = vcmask (!%p191_p3), 257024  }
   0xa   : > { %268 = vst.msk [vmem:[#allocation2 + $0x10] sm:$0xff] (!%p191_p3), %vm265_vm2, %v1165_v4  ;;  %269 = vst.msk [vmem:[#allocation2 + $0x18] sm:$0xff] (!%p191_p3), %vm265_vm2, %v1165_v4  ;;  %s1172_s4 = smov (!%p191_p3), 24  }
   0xb   : > { %270 = vst.msk [vmem:[#allocation3] sm:$0xff] (!%p191_p3), %vm265_vm2, %v1163_v0  ;;  %271 = vst.msk [vmem:[#allocation3 + $0x8] sm:$0xff] (!%p191_p3), %vm265_vm2, %v1163_v0 }
   0xc   : > { %272 = vst.msk [vmem:[#allocation3 + $0x10] sm:$0xff] (!%p191_p3), %vm265_vm2, %v1163_v0  ;;  %273 = vst.msk [vmem:[#allocation3 + $0x18] sm:$0xff] (!%p191_p3), %vm265_vm2, %v1163_v0 }
   0xe   : > { %s1366_s12 = smov (!%p232_p4, %s1153_s12), 1 }
   0xf   : > { %s1225_s16 = sshll.u32 %s1366_s12, 2 }
  0x10   : > { %s245_s19 = scalar_lea.vmem %s1358_s1, %s1225_s16  ;;  %s238_s22 = scalar_lea.vmem %s1357_s0, %s1225_s16  ;;  %v1259_v13 = vld [vmem:[#allocation2] sm:$0xff]  ;;  %v1302_v52 = vld [vmem:[#allocation2 + $0x8] sm:$0xff] }
  0x11   : > { %v280_v1 = vld [vmem:[%s245_s19] sm:$0xf]  ;;  %s252_s28 = scalar_lea.vmem %s1359_s2, %s1225_s16  ;;  %v606_v56 = vld [vmem:[#allocation2 + $0x10] sm:$0xff]  ;;  %v741_v60 = vld [vmem:[#allocation2 + $0x18] sm:$0xff]  ;;  %s259_s7 = scalar_lea.vmem %s1360_s3, %s1225_s16 }
  0x12   : > { %v287_v2 = vsel %vm274_vm0, %v280_v1, 0  ;;  %v279_v3 = vld [vmem:[%s238_s22] sm:$0xf]  ;;  %v1003_v11 = vcombine.low %v280_v1, %v280_v1 }
  0x13   : > { %1030 = vmatpush3.bf16.xpose.msra.mxu0 %v287_v2  ;;  %v1002_v12 = vcombine.low %v279_v3, %v279_v3  ;;  %v1273_v17 = vld [vmem:[%s252_s28] sm:$0xf] }
  0x14   : > { %1047 = vmatprep.subr.bf16.mxu0 %v1163_v0  ;;  %419 = vrot.lane.b32.xlu1 %v1003_v11, %s1167_s23  ;;  %v366_v18 = vsel %vm364_vm3, %v1273_v17, 0  ;;  %v1005_v63 = vcombine.low %v1273_v17, %v1273_v17 }
  0x15   : > { %1036 = vmatpush3.bf16.msra.mxu1 %v366_v18 }
  0x16   : > { %1041 = vmatprep.subr.bf16.mxu1 %v1163_v0 }
  0x18   : > { %414 = vrot.lane.b32.xlu1 %v1002_v12, %s1167_s23 }
  0x1a   : > { %1032 = vmatmul.mubr.msk.bf16.vlgmr.msra.gmra.mrb[0].mxu0 %vm274_vm0, %v279_v3 }
  0x1b   : > { %1049 = vmatprep.mubr.msk.bf16.mxu0 %vm1164_vm1, %v1163_v0 }
  0x1c   : > { %557 = vrot.lane.b32.xlu1 %v1003_v11, %s1168_s24 }
  0x20   : > { %555 = vrot.lane.b32.xlu1 %v1002_v12, %s1168_s24 }
  0x24   : > { %692 = vrot.lane.b32.xlu1 %v1003_v11, %s1169_s25 }
  0x28   : > { %690 = vrot.lane.b32.xlu1 %v1002_v12, %s1169_s25 }
  0x86   : > { %v420_v22 = vpop.permute.xlu1 %419 }
  0x87   : > { %v425_v25 = vsel %vm274_vm0, %v420_v22, 0 }
  0x8a   : > { %v415_v23 = vpop.permute.xlu1 %414 }
  0x8e   : > { %v558_v27 = vpop.permute.xlu1 %557 }
  0x8f   : > { %v563_v29 = vsel %vm274_vm0, %v558_v27, 0 }
  0x92   : > { %v556_v28 = vpop.permute.xlu1 %555 }
  0x96   : > { %v693_v30 = vpop.permute.xlu1 %692 }
  0x97   : > { %v698_v31 = vsel %vm274_vm0, %v693_v30, 0 }
  0x9a   : > { %v691_v32 = vpop.permute.xlu1 %690 }
  0xed   : > { %v323_v5 = vpop.f32.mrb[0].mxu0 }
  0xee   : > { %v1033_v6 = vpop.f32.mrb[1].mxu0  ;;  %v330_v7 = vsel %vm274_vm0, %v323_v5, -inf }
  0xef   : > { %331 = vmax.xlane.f32.xlu0 %v330_v7  ;;  %v326_v8 = vpop.f32.mrb[2].mxu0 }
  0xf0   : > { %v1034_v9 = vpop.f32.mrb[3].mxu0 }
 0x17c   : > { %v332_v14 = vpop.xlane.xlu0 %331 }
 0x17d   : > { %v1262_v15 = vmax.f32 %v1259_v13, %v332_v14 }
 0x17f   : > { %v334_v16 = vsub.f32 %v1259_v13, %v1262_v15  ;;  %410 = vst.msk [vmem:[#allocation2] sm:$0xff] %vm265_vm2, %v1262_v15  ;;  %339 = vperm.xlu0 %1111, %v1262_v15  }
 0x1fe   : > { %v340_v19 = vpop.permute.xlu0 %339 }
 0x1ff   : > { %v342_v20 = vsub.f32 %v323_v5, %v340_v19 }
 0x201   : > { %v343_v21 = vmul.f32 1.442695, %v342_v20 }
 0x203   : > { %1115 = vpow2.f32 %v343_v21 }
 0x20d   : > { %v1278_v24 = vpop.eup %1115 }
 0x20e   : > { %v360_v26 = vpack.c.bf16 %v1278_v24, %v1278_v24  ;;  %v347_v2 = vsel %vm274_vm0, %v1278_v24, 0.0 }
 0x210   : > { %1038 = vmatmul.mubr.msk.bf16.vlgmr.msra.gmra.mrb[0].mxu1 %vm274_vm0, %v360_v26 }
 0x211   : > { %1042 = vmatpush3.bf16.xpose.msra.mxu1 %v425_v25  ;;  %1043 = vmatprep.mubr.msk.bf16.mxu1 %vm1164_vm1, %v1163_v0 }
 0x212   : > { %1053 = vmatprep.subr.bf16.mxu1 %v1163_v0 }
 0x218   : > { %1044 = vmatmul.mubr.msk.bf16.vlgmr.msra.gmra.mrb[4].mxu1 %vm274_vm0, %v415_v23 }
 0x219   : > { %1054 = vmatpush3.bf16.xpose.msra.mxu1 %v563_v29  ;;  %1055 = vmatprep.mubr.msk.bf16.mxu1 %vm1164_vm1, %v1163_v0 }
 0x21a   : > { %1065 = vmatprep.subr.bf16.mxu1 %v1163_v0 }
 0x220   : > { %1056 = vmatmul.mubr.msk.bf16.vlgmr.msra.gmra.mrb[8].mxu1 %vm274_vm0, %v556_v28  ;;  %v335_v28 = vmul.f32 1.442695, %v334_v16 }
 0x221   : > { %1066 = vmatpush3.bf16.xpose.msra.mxu1 %v698_v31  ;;  %1067 = vmatprep.mubr.msk.bf16.mxu1 %vm1164_vm1, %v1163_v0 }
 0x228   : > { %1068 = vmatmul.mubr.msk.bf16.vlgmr.msra.gmra.mrb[12].mxu1 %vm274_vm0, %v691_v32 }
 0x2e3   : > { %v1297_v33 = vpop.f32.mrb[0].mxu1 }
 0x2e4   : > { %v1039_v34 = vpop.f32.mrb[1].mxu1 }
 0x2e5   : > { %v405_v35 = vpop.f32.mrb[2].mxu1 }
 0x2e6   : > { %v1040_v36 = vpop.f32.mrb[3].mxu1 }
 0x2e7   : > { %v345_v36 = vld [vmem:[#allocation3] sm:$0xff] }
 0x2eb   : > { %v461_v37 = vpop.f32.mrb[4].mxu1 }
 0x2ec   : > { %v1045_v38 = vpop.f32.mrb[5].mxu1  ;;  %v469_v39 = vsel %vm274_vm0, %v461_v37, -inf }
 0x2ed   : > { %470 = vmax.xlane.f32.xlu1 %v469_v39  ;;  %v464_v40 = vpop.f32.mrb[6].mxu1 }
 0x2ee   : > { %v1046_v41 = vpop.f32.mrb[7].mxu1 }
 0x2ef   : > { %v485_v41 = vld [vmem:[#allocation3 + $0x8] sm:$0xff] }
 0x2f3   : > { %v599_v42 = vpop.f32.mrb[8].mxu1 }
 0x2f4   : > { %v1057_v43 = vpop.f32.mrb[9].mxu1  ;;  %v607_v44 = vsel %vm274_vm0, %v599_v42, -inf }
 0x2f5   : > { %608 = vmax.xlane.f32.xlu0 %v607_v44  ;;  %v602_v45 = vpop.f32.mrb[10].mxu1 }
 0x2f6   : > { %v1058_v46 = vpop.f32.mrb[11].mxu1  ;;  %v623_v45 = vld [vmem:[#allocation3 + $0x10] sm:$0xff] }
 0x2fb   : > { %v734_v47 = vpop.f32.mrb[12].mxu1 }
 0x2fc   : > { %v1069_v48 = vpop.f32.mrb[13].mxu1  ;;  %v742_v49 = vsel %vm274_vm0, %v734_v47, -inf }
 0x2fd   : > { %743 = vmax.xlane.f32.xlu1 %v742_v49  ;;  %v737_v50 = vpop.f32.mrb[14].mxu1 }
 0x2fe   : > { %v1070_v51 = vpop.f32.mrb[15].mxu1  ;;  %v758_v50 = vld [vmem:[#allocation3 + $0x18] sm:$0xff] }
 0x2ff   : > { %v353_v51 = vld [vmem:[#allocation4] sm:$0xff] }
 0x37a   : > { %v471_v53 = vpop.xlane.xlu1 %470 }
 0x37b   : > { %v472_v54 = vmax.f32 %v1302_v52, %v471_v53 }
 0x37d   : > { %v473_v55 = vsub.f32 %v1302_v52, %v472_v54  ;;  %554 = vst.msk [vmem:[#allocation2 + $0x8] sm:$0xff] %vm265_vm2, %v472_v54  ;;  %478 = vperm.xlu1 %1112, %v472_v54  }
 0x37f   : > { %v474_v30 = vmul.f32 1.442695, %v473_v55 }
 0x382   : > { %v609_v57 = vpop.xlane.xlu0 %608 }
 0x383   : > { %v610_v58 = vmax.f32 %v606_v56, %v609_v57 }
 0x385   : > { %v611_v59 = vsub.f32 %v606_v56, %v610_v58  ;;  %689 = vst.msk [vmem:[#allocation2 + $0x10] sm:$0xff] %vm265_vm2, %v610_v58  ;;  %616 = vperm.xlu0 %1111, %v610_v58  }
 0x387   : > { %v612_v32 = vmul.f32 1.442695, %v611_v59 }
 0x38a   : > { %v744_v61 = vpop.xlane.xlu1 %743 }
 0x38b   : > { %v745_v62 = vmax.f32 %v741_v60, %v744_v61 }
 0x38d   : > { %v746_v1 = vsub.f32 %v741_v60, %v745_v62  ;;  %824 = vst.msk [vmem:[#allocation2 + $0x18] sm:$0xff] %vm265_vm2, %v745_v62  ;;  %751 = vperm.xlu1 %1112, %v745_v62  }
 0x38f   : > { %v747_v31 = vmul.f32 1.442695, %v746_v1 }
 0x391   : > { %504 = vrot.lane.b32.xlu1 %v1005_v63, %s1167_s23 }
 0x395   : > { %639 = vrot.lane.b32.xlu1 %v1005_v63, %s1168_s24 }
 0x399   : > { %774 = vrot.lane.b32.xlu1 %v1005_v63, %s1169_s25  ;;  %v493_v63 = vld [vmem:[#allocation4 + $0x8] sm:$0xff] }
 0x3bd   : > { %348 = vadd.xlane.f32.xlu1 %v347_v2 }
 0x3fc   : > { %v479_v3 = vpop.permute.xlu1 %478 }
 0x3fd   : > { %v481_v4 = vsub.f32 %v461_v37, %v479_v3 }
 0x3ff   : > { %v482_v5 = vmul.f32 1.442695, %v481_v4 }
 0x401   : > { %1117 = vpow2.f32 %v482_v5 }
 0x404   : > { %v617_v6 = vpop.permute.xlu0 %616 }
 0x405   : > { %v619_v7 = vsub.f32 %v599_v42, %v617_v6 }
 0x407   : > { %v620_v8 = vmul.f32 1.442695, %v619_v7  ;;  %v631_v7 = vld [vmem:[#allocation4 + $0x10] sm:$0xff] }
 0x409   : > { %1119 = vpow2.f32 %v620_v8 }
 0x40b   : > { %v1118_v9 = vpop.eup %1117 }
 0x40c   : > { %v752_v10 = vpop.permute.xlu1 %751  ;;  %v487_v11 = vsel %vm274_vm0, %v1118_v9, 0.0  ;;  %v500_v20 = vpack.c.bf16 %v1118_v9, %v1118_v9 }
 0x40d   : > { %v754_v12 = vsub.f32 %v734_v47, %v752_v10  ;;  %488 = vadd.xlane.f32.xlu0 %v487_v11 }
 0x40f   : > { %v755_v14 = vmul.f32 1.442695, %v754_v12 }
 0x410   : > { %v505_v17 = vpop.permute.xlu1 %504 }
 0x411   : > { %1121 = vpow2.f32 %v755_v14  ;;  %v510_v18 = vsel %vm364_vm3, %v505_v17, 0 }
 0x412   : > { %1048 = vmatpush3.bf16.msra.mxu0 %v510_v18  ;;  %1123 = vpow2.f32 %v335_v28  ;;  %v766_v18 = vld [vmem:[#allocation4 + $0x18] sm:$0xff] }
 0x413   : > { %v1120_v19 = vpop.eup %1119  ;;  %1059 = vmatprep.subr.bf16.mxu0 %v1163_v0  ;;  %1125 = vpow2.f32 %v474_v30 }
 0x414   : > { %v625_v21 = vsel %vm274_vm0, %v1120_v19, 0.0  ;;  %v640_v22 = vpop.permute.xlu1 %639  ;;  %v638_v26 = vpack.c.bf16 %v1120_v19, %v1120_v19  ;;  %1127 = vpow2.f32 %v747_v31 }
 0x415   : > { %626 = vadd.xlane.f32.xlu0 %v625_v21  ;;  %1050 = vmatmul.mubr.msk.bf16.vlgmr.msra.gmra.mrb[4].mxu0 %vm274_vm0, %v500_v20  ;;  %v645_v23 = vsel %vm364_vm3, %v640_v22, 0  ;;  %1129 = vpow2.f32 %v612_v32 }
 0x416   : > { %1060 = vmatpush3.bf16.msra.mxu0 %v645_v23  ;;  %1061 = vmatprep.mubr.msk.bf16.mxu0 %vm1164_vm1, %v1163_v0 }
 0x417   : > { %1071 = vmatprep.subr.bf16.mxu0 %v1163_v0 }
 0x418   : > { %v775_v24 = vpop.permute.xlu1 %774 }
 0x419   : > { %v780_v27 = vsel %vm364_vm3, %v775_v24, 0 }
 0x41b   : > { %v1122_v25 = vpop.eup %1121 }
 0x41c   : > { %v760_v29 = vsel %vm274_vm0, %v1122_v25, 0.0  ;;  %v773_v34 = vpack.c.bf16 %v1122_v25, %v1122_v25  ;;  %v1124_v13 = vpop.eup %1123 }
 0x41d   : > { %1062 = vmatmul.mubr.msk.bf16.vlgmr.msra.gmra.mrb[8].mxu0 %vm274_vm0, %v638_v26  ;;  %761 = vadd.xlane.f32.xlu1 %v760_v29  ;;  %v1126_v15 = vpop.eup %1125 }
 0x41e   : > { %1072 = vmatpush3.bf16.msra.mxu0 %v780_v27  ;;  %1073 = vmatprep.mubr.msk.bf16.mxu0 %vm1164_vm1, %v1163_v0  ;;  %v1128_v16 = vpop.eup %1127  ;;  %v346_v0 = vmul.f32 %v1124_v13, %v345_v36  ;;  %v486_v42 = vmul.f32 %v1126_v15, %v485_v41 }
 0x41f   : > { %v1130_v35 = vpop.eup %1129  ;;  %v759_v52 = vmul.f32 %v1128_v16, %v758_v50 }
 0x420   : > { %v624_v46 = vmul.f32 %v1130_v35, %v623_v45 }
 0x425   : > { %1074 = vmatmul.mubr.msk.bf16.vlgmr.msra.gmra.mrb[12].mxu0 %vm274_vm0, %v773_v34 }
 0x42b   : > { %356 = vperm.xlu0 %1111, %v1124_v13  }
 0x42e   : > { %496 = vperm.xlu1 %1112, %v1126_v15  }
 0x42f   : > { %769 = vperm.xlu0 %1111, %v1128_v16  }
 0x432   : > { %634 = vperm.xlu1 %1112, %v1130_v35  }
 0x44a   : > { %v349_v37 = vpop.xlane.xlu1 %348 }
 0x44b   : > { %v350_v38 = vadd.f32 %v349_v37, %v346_v0 }
 0x44d   : > { %352 = vst.msk [vmem:[#allocation3] sm:$0xff] %vm265_vm2, %v350_v38 }
 0x454   : > { %v829_v39 = vld [vmem:[#allocation3] sm:$0xff] }
 0x455   : > { %1131 = vrcp.f32 %v829_v39 }
 0x45f   : > { %v1132_v40 = vpop.eup %1131 }
 0x460   : > { %833 = vperm.xlu1 %1112, %v1132_v40  }
 0x49a   : > { %v489_v43 = vpop.xlane.xlu0 %488 }
 0x49b   : > { %v490_v44 = vadd.f32 %v489_v43, %v486_v42 }
 0x49d   : > { %491 = vst.msk [vmem:[#allocation3 + $0x8] sm:$0xff] %vm265_vm2, %v490_v44 }
 0x4a2   : > { %v627_v47 = vpop.xlane.xlu0 %626 }
 0x4a3   : > { %v628_v48 = vadd.f32 %v627_v47, %v624_v46 }
 0x4a4   : > { %v838_v49 = vld [vmem:[#allocation3 + $0x8] sm:$0xff] }
 0x4a5   : > { %629 = vst.msk [vmem:[#allocation3 + $0x10] sm:$0xff] %vm265_vm2, %v628_v48  ;;  %1133 = vrcp.f32 %v838_v49 }
 0x4aa   : > { %v762_v53 = vpop.xlane.xlu1 %761  ;;  %v357_v54 = vpop.permute.xlu0 %356 }
 0x4ab   : > { %v763_v55 = vadd.f32 %v762_v53, %v759_v52  ;;  %v359_v56 = vmul.f32 %v357_v54, %v353_v51 }
 0x4ac   : > { %v847_v57 = vld [vmem:[#allocation3 + $0x10] sm:$0xff] }
 0x4ad   : > { %764 = vst.msk [vmem:[#allocation3 + $0x18] sm:$0xff] %vm265_vm2, %v763_v55  ;;  %v408_v58 = vadd.f32 %v1297_v33, %v359_v56  ;;  %1135 = vrcp.f32 %v847_v57 }
 0x4ae   : > { %v497_v1 = vpop.permute.xlu1 %496  ;;  %v770_v19 = vpop.permute.xlu0 %769 }
 0x4af   : > { %v1134_v59 = vpop.eup %1133  ;;  %409 = vst.msk [vmem:[#allocation4] sm:$0xff] %vm274_vm0, %v408_v58  ;;  %v499_v2 = vmul.f32 %v497_v1, %v493_v63  ;;  %v772_v20 = vmul.f32 %v770_v19, %v766_v18 }
 0x4b0   : > { %842 = vperm.xlu0 %1111, %v1134_v59  }
 0x4b2   : > { %v635_v8 = vpop.permute.xlu1 %634 }
 0x4b3   : > { %v637_v9 = vmul.f32 %v635_v8, %v631_v7 }
 0x4b4   : > { %v856_v60 = vld [vmem:[#allocation3 + $0x18] sm:$0xff] }
 0x4b5   : > { %1137 = vrcp.f32 %v856_v60 }
 0x4b6   : > { %v828_v16 = vld [vmem:[#allocation4] sm:$0xff] }
 0x4b7   : > { %v1136_v61 = vpop.eup %1135 }
 0x4b8   : > { %851 = vperm.xlu1 %1112, %v1136_v61  }
 0x4bf   : > { %v1138_v62 = vpop.eup %1137 }
 0x4c0   : > { %860 = vperm.xlu0 %1111, %v1138_v62  }
 0x4df   : > { %v834_v29 = vpop.permute.xlu1 %833 }
 0x4e0   : > { %v836_v36 = vmul.f32 %v834_v29, %v828_v16 }
 0x4e8   : > { %v546_v3 = vpop.f32.mrb[4].mxu0 }
 0x4e9   : > { %v552_v4 = vadd.f32 %v546_v3, %v499_v2  ;;  %v1051_v5 = vpop.f32.mrb[5].mxu0 }
 0x4ea   : > { %v549_v6 = vpop.f32.mrb[6].mxu0 }
 0x4eb   : > { %553 = vst.msk [vmem:[#allocation4 + $0x8] sm:$0xff] %vm274_vm0, %v552_v4  ;;  %v1052_v33 = vpop.f32.mrb[7].mxu0 }
 0x4f0   : > { %v681_v10 = vpop.f32.mrb[8].mxu0 }
 0x4f1   : > { %v687_v11 = vadd.f32 %v681_v10, %v637_v9  ;;  %v1063_v12 = vpop.f32.mrb[9].mxu0 }
 0x4f2   : > { %v684_v14 = vpop.f32.mrb[10].mxu0  ;;  %v837_v27 = vld [vmem:[#allocation4 + $0x8] sm:$0xff] }
 0x4f3   : > { %688 = vst.msk [vmem:[#allocation4 + $0x10] sm:$0xff] %vm274_vm0, %v687_v11  ;;  %v1064_v17 = vpop.f32.mrb[11].mxu0 }
 0x4f8   : > { %v816_v21 = vpop.f32.mrb[12].mxu0 }
 0x4f9   : > { %v822_v22 = vadd.f32 %v816_v21, %v772_v20  ;;  %v1075_v23 = vpop.f32.mrb[13].mxu0 }
 0x4fa   : > { %v819_v24 = vpop.f32.mrb[14].mxu0  ;;  %v846_v31 = vld [vmem:[#allocation4 + $0x10] sm:$0xff] }
 0x4fb   : > { %823 = vst.msk [vmem:[#allocation4 + $0x18] sm:$0xff] %vm274_vm0, %v822_v22  ;;  %v1076_v25 = vpop.f32.mrb[15].mxu0 }
 0x502   : > { %v855_v13 = vld [vmem:[#allocation4 + $0x18] sm:$0xff] }
 0x52f   : > { %v843_v26 = vpop.permute.xlu0 %842 }
 0x530   : > { %v845_v28 = vmul.f32 %v843_v26, %v837_v27 }
 0x532   : > { %865 = vrot.lane.b32.xlu1 %v845_v28, %s1170_s29 }
 0x537   : > { %v852_v30 = vpop.permute.xlu1 %851 }
 0x538   : > { %v854_v32 = vmul.f32 %v852_v30, %v846_v31 }
 0x53a   : > { %869 = vrot.lane.b32.xlu0 %v854_v32, %s1171_s30 }
 0x53f   : > { %v861_v34 = vpop.permute.xlu0 %860 }
 0x540   : > { %v863_v15 = vmul.f32 %v861_v34, %v855_v13 }
 0x542   : > { %873 = vrot.lane.b32.xlu1 %v863_v15, %s1172_s4 }
 0x5a4   : > { %v866_v35 = vpop.permute.xlu1 %865 }
 0x5a5   : > { %v876_v37 = vsel %vm274_vm0, %v836_v36, %v866_v35 }
 0x5ac   : > { %v870_v0 = vpop.permute.xlu0 %869 }
 0x5ad   : > { %v878_v38 = vsel %vm877_vm4, %v876_v37, %v870_v0 }
 0x5b4   : > { %v874_v39 = vpop.permute.xlu1 %873 }
 0x5b5   : > { %v880_v40 = vsel %vm879_vm5, %v878_v38, %v874_v39 }
 0x5b6   : > { %v881_v41 = vpack.c.bf16 %v880_v40, %v880_v40 }
 0x5b8   : > { %883 = vst.msk [vmem:[%s259_s7] sm:$0xf] %vm882_vm6, %v881_v41 }
 0x5b9 PF: > { %s13_s14 = sadd.s32 1, %s1161_s14   ;;  %s1361_s12 = smov %s1157_s13 }
 0x5ba   : > { %p10_p5 = scmp.ge.s32.totalorder %s13_s14, 4   ;;  %s1362_s13 = smov %s1364_s15 }
 0x5bc   :  { %12 = sbr.rel (!%p10_p5) target bundleno = 2 (0x2), region = 85 }

// kernel: fwd.50
= control target key start
LH: loop header
LB: loop body
LE: loop exit
PB: predicated region body
PF: predicated region fallthrough
CT: control target
= control target key end

     0   :  { %vm18_vm0 = vcmask 261120   ;;  %vm72_vm1 = vcmask 257024   ;;  %s132_s0 = inlined_call_operand.vmem [shape: bf16[16,32], index: 0, kind: input, shape index: {}]   ;;  %s133_s1 = inlined_call_operand.vmem [shape: f32[1,32], index: 1, kind: input, shape index: {}]   ;;  %s134_s2 = inlined_call_operand.vmem [shape: f32[1,32], index: 2, kind: input, shape index: {}]   ;;  %s135_s3 = inlined_call_operand.vmem [shape: bf16[16,32], index: 3, kind: output, shape index: {}]  }
   0x1   :  { %v86_v0 = vld [vmem:[%s132_s0] sm:$0xff]  }
   0x2   :  { %v87_v1 = vunpack.c.l.bf16 %v86_v0  ;;  %v88_v2 = vunpack.c.h.bf16 %v86_v0  ;;  %v79_v22 = vld [vmem:[%s133_s1] ss:$0 sm:$0xff] }
   0x3   :  { %v80_v24 = vld [vmem:[%s134_s2] ss:$0 sm:$0xff] }
   0x4   :  { %v19_v3 = vsel %vm18_vm0, %v87_v1, 0.0  ;;  %v22_v4 = vsel %vm18_vm0, %v88_v2, 0.0 }
   0x5   :  { %20 = vadd.xlane.f32.xlu0 %v19_v3 }
   0x9   :  { %23 = vadd.xlane.f32.xlu0 %v22_v4 }
  0x92   :  { %v21_v5 = vpop.xlane.xlu0 %20 }
  0x93   :  { %v26_v6 = vmul.f32 0.03125, %v21_v5 }
  0x95   :  { %v28_v7 = vsub.f32 %v87_v1, %v26_v6 }
  0x96   :  { %v24_v8 = vpop.xlane.xlu0 %23 }
  0x97   :  { %v27_v9 = vmul.f32 0.03125, %v24_v8  ;;  %v30_v10 = vmul.f32 %v28_v7, %v28_v7 }
  0x99   :  { %v29_v11 = vsub.f32 %v88_v2, %v27_v9  ;;  %v32_v12 = vsel %vm18_vm0, %v30_v10, 0.0 }
  0x9a   :  { %33 = vadd.xlane.f32.xlu1 %v32_v12 }
  0x9b   :  { %v31_v13 = vmul.f32 %v29_v11, %v29_v11 }
  0x9d   :  { %v35_v14 = vsel %vm18_vm0, %v31_v13, 0.0 }
  0x9e   :  { %36 = vadd.xlane.f32.xlu1 %v35_v14 }
 0x127   :  { %v34_v15 = vpop.xlane.xlu1 %33 }
 0x128   :  { %v38_v16 = vmul.f32 0.03125, %v34_v15 }
 0x12a   :  { %v40_v17 = vadd.f32 1e-05, %v38_v16 }
 0x12b   :  { %v37_v18 = vpop.xlane.xlu1 %36 }
 0x12c   :  { %89 = vrsqrt.f32 %v40_v17  ;;  %v39_v19 = vmul.f32 0.03125, %v37_v18 }
 0x12e   :  { %v41_v20 = vadd.f32 1e-05, %v39_v19 }
 0x130   :  { %91 = vrsqrt.f32 %v41_v20 }
 0x136   :  { %v90_v21 = vpop.eup %89 }
 0x137   :  { %v44_v23 = vmul.f32 %v90_v21, %v28_v7 }
 0x139   :  { %v53_v25 = vmul.f32 %v79_v22, %v44_v23 }
 0x13a   :  { %v92_v26 = vpop.eup %91 }
 0x13b   :  { %v62_v27 = vadd.f32 %v80_v24, %v53_v25  ;;  %v45_v28 = vmul.f32 %v92_v26, %v29_v11 }
 0x13d   :  { %v83_v29 = vpack.c.bf16 %v62_v27, %v62_v27  ;;  %v54_v30 = vmul.f32 %v79_v22, %v45_v28 }
 0x13f   :  { %73 = vst.msk [vmem:[%s135_s3] sm:$0xf] %vm72_vm1, %v83_v29  ;;  %v63_v31 = vadd.f32 %v80_v24, %v54_v30 }
 0x141   :  { %v84_v32 = vpack.c.bf16 %v63_v31, %v63_v31 }
 0x143   :  { %74 = vst.msk [vmem:[%s135_s3 + $0x4] sm:$0xf] %vm72_vm1, %v84_v32 }

// kernel: fwd.53
= control target key start
LH: loop header
LB: loop body
LE: loop exit
PB: predicated region body
PF: predicated region fallthrough
CT: control target
= control target key end

     0   :  { %vm26_vm0 = vcmask 261120   ;;  %v183_v16 = vmov 0.0   ;;  %vm184_vm1 = vmmov 0   ;;  %vm144_vm2 = vcmask 519168   ;;  %s237_s0 = inlined_call_operand.vmem [shape: bf16[16,32], index: 0, kind: input, shape index: {}]   ;;  %s238_s3 = inlined_call_operand.vmem [shape: bf16[32,64], index: 3, kind: input, shape index: {}]   ;;  %s239_s1 = inlined_call_operand.vmem [shape: f32[1,32], index: 1, kind: input, shape index: {}]   ;;  %s240_s2 = inlined_call_operand.vmem [shape: f32[1,32], index: 2, kind: input, shape index: {}]   ;;  %s241_s4 = inlined_call_operand.vmem [shape: bf16[16,64], index: 4, kind: output, shape index: {}]  }
   0x1   :  { %v161_v0 = vld [vmem:[%s237_s0] sm:$0xff]   ;;  %167 = vmatprep.subr.bf16.mxu0 %v183_v16  ;;  %v178_v17 = vld [vmem:[%s238_s3 + $0x8] sm:$0xff]   ;;  %171 = vmatprep.mubr.msk.bf16.mxu0 %vm184_vm1, %v183_v16 }
   0x2   :  { %v162_v1 = vunpack.c.l.bf16 %v161_v0  ;;  %v163_v2 = vunpack.c.h.bf16 %v161_v0  ;;  %v177_v15 = vld [vmem:[%s238_s3] sm:$0xff]  }
   0x3   :  { %168 = vmatpush3.bf16.msra.mxu0 %v177_v15  ;;  %v151_v26 = vld [vmem:[%s239_s1] ss:$0 sm:$0xff] }
   0x4   :  { %v27_v3 = vsel %vm26_vm0, %v162_v1, 0.0  ;;  %v30_v4 = vsel %vm26_vm0, %v163_v2, 0.0  ;;  %169 = vmatprep.subr.bf16.mxu0 %v183_v16  ;;  %v152_v30 = vld [vmem:[%s240_s2] ss:$0 sm:$0xff] }
   0x5   :  { %28 = vadd.xlane.f32.xlu0 %v27_v3 }
   0x7   :  { %170 = vmatpush3.bf16.msra.mxu0 %v178_v17 }
   0x9   :  { %31 = vadd.xlane.f32.xlu0 %v30_v4 }
  0x92   :  { %v29_v5 = vpop.xlane.xlu0 %28 }
  0x93   :  { %v34_v6 = vmul.f32 0.03125, %v29_v5 }
  0x95   :  { %v36_v7 = vsub.f32 %v162_v1, %v34_v6 }
  0x96   :  { %v32_v8 = vpop.xlane.xlu0 %31 }
  0x97   :  { %v35_v9 = vmul.f32 0.03125, %v32_v8  ;;  %v38_v10 = vmul.f32 %v36_v7, %v36_v7 }
  0x99   :  { %v37_v11 = vsub.f32 %v163_v2, %v35_v9  ;;  %v40_v12 = vsel %vm26_vm0, %v38_v10, 0.0 }
  0x9a   :  { %41 = vadd.xlane.f32.xlu1 %v40_v12 }
  0x9b   :  { %v39_v13 = vmul.f32 %v37_v11, %v37_v11 }
  0x9d   :  { %v43_v14 = vsel %vm26_vm0, %v39_v13, 0.0 }
  0x9e   :  { %44 = vadd.xlane.f32.xlu1 %v43_v14 }
 0x127   :  { %v42_v18 = vpop.xlane.xlu1 %41 }
 0x128   :  { %v46_v19 = vmul.f32 0.03125, %v42_v18 }
 0x12a   :  { %v48_v20 = vadd.f32 1e-05, %v46_v19 }
 0x12b   :  { %v45_v21 = vpop.xlane.xlu1 %44 }
 0x12c   :  { %179 = vrsqrt.f32 %v48_v20  ;;  %v47_v22 = vmul.f32 0.03125, %v45_v21 }
 0x12e   :  { %v49_v23 = vadd.f32 1e-05, %v47_v22 }
 0x130   :  { %181 = vrsqrt.f32 %v49_v23 }
 0x136   :  { %v180_v24 = vpop.eup %179 }
 0x137   :  { %v52_v25 = vmul.f32 %v180_v24, %v36_v7 }
 0x139   :  { %v61_v28 = vmul.f32 %v151_v26, %v52_v25 }
 0x13a   :  { %v182_v27 = vpop.eup %181 }
 0x13b   :  { %v53_v29 = vmul.f32 %v182_v27, %v37_v11  ;;  %v70_v32 = vadd.f32 %v152_v30, %v61_v28 }
 0x13d   :  { %v62_v31 = vmul.f32 %v151_v26, %v53_v29 }
 0x13f   :  { %v71_v33 = vadd.f32 %v152_v30, %v62_v31 }
 0x141   :  { %v72_v34 = vpack.c.bf16 %v71_v33, %v70_v32 }
 0x143   :  { %73 = vst.msk [vmem:[#allocation2] sm:$0xff] %vm26_vm0, %v72_v34 }
 0x14a   :  { %v74_v35 = vld [vmem:[#allocation2] sm:$0xff] }
 0x14b   :  { %172 = vmatmul.mubr.msk.bf16.vlgmr.msra.gmra.mrb[0].mxu0 %vm26_vm0, %v74_v35 }
 0x21e   :  { %v129_v36 = vpop.f32.mrb[0].mxu0 }
 0x21f   :  { %v158_v37 = vpack.c.bf16 %v129_v36, %v129_v36  ;;  %v173_v38 = vpop.f32.mrb[1].mxu0 }
 0x220   :  { %v132_v39 = vpop.f32.mrb[2].mxu0 }
 0x221   :  { %145 = vst.msk [vmem:[%s241_s4] sm:$0xf] %vm144_vm2, %v158_v37  ;;  %v159_v40 = vpack.c.bf16 %v132_v39, %v132_v39  ;;  %v174_v41 = vpop.f32.mrb[3].mxu0 }
 0x223   :  { %146 = vst.msk [vmem:[%s241_s4 + $0x4] sm:$0xf] %vm144_vm2, %v159_v40 }

// kernel: fwd.55
= control target key start
LH: loop header
LB: loop body
LE: loop exit
PB: predicated region body
PF: predicated region fallthrough
CT: control target
= control target key end

     0   :  { %vm22_vm0 = vcmask 261120   ;;  %v221_v1 = vmov 0.0   ;;  %vm171_vm1 = vcmask 257024   ;;  %s290_s1 = inlined_call_operand.vmem [shape: bf16[32,32], index: 1, kind: input, shape index: {}]   ;;  %s291_s0 = inlined_call_operand.vmem [shape: bf16[32,32], index: 0, kind: input, shape index: {}]   ;;  %s292_s3 = inlined_call_operand.vmem [shape: bf16[32,32], index: 3, kind: input, shape index: {}]   ;;  %s293_s2 = inlined_call_operand.vmem [shape: f32[1,32], index: 2, kind: input, shape index: {}]   ;;  %s294_s4 = inlined_call_operand.vmem [shape: bf16[32,32], index: 4, kind: output, shape index: {}]  }
   0x1   :  { %v217_v0 = vld [vmem:[%s290_s1] sm:$0xff]   ;;  %25 = vst.msk [vmem:[#allocation2 + $0x10] sm:$0xff] %vm22_vm0, %v221_v1  ;;  %23 = vst.msk [vmem:[#allocation2] sm:$0xff] %vm22_vm0, %v221_v1  ;;  %v218_v2 = vld [vmem:[%s290_s1 + $0x8] sm:$0xff]  }
   0x2   :  { %24 = vst.msk [vmem:[#allocation2 + $0x8] sm:$0xff] %vm22_vm0, %v221_v1  ;;  %26 = vst.msk [vmem:[#allocation2 + $0x18] sm:$0xff] %vm22_vm0, %v221_v1  ;;  %208 = vmatprep.subr.bf16.mxu0 %v217_v0  ;;  %v219_v3 = vld [vmem:[%s291_s0] sm:$0xff]   ;;  %v220_v4 = vld [vmem:[%s291_s0 + $0x8] sm:$0xff]  }
   0x3   :  { %209 = vmatpush3.bf16.msra.mxu0 %v217_v0  ;;  %212 = vmatprep.mubr.msk.bf16.mxu0 %vm22_vm0, %v219_v3  ;;  %v203_v17 = vld [vmem:[%s292_s3 + $0x8] sm:$0xff]   ;;  %v196_v18 = vld [vmem:[%s292_s3] sm:$0xff]  }
   0x4   :  { %210 = vmatprep.subr.bf16.mxu0 %v218_v2  ;;  %v186_v19 = vld [vmem:[%s293_s2] ss:$0 sm:$0xff]  ;;  %v201_v20 = vunpack.c.l.bf16 %v203_v17  ;;  %v197_v22 = vunpack.c.l.bf16 %v196_v18  ;;  %v202_v25 = vunpack.c.h.bf16 %v203_v17  ;;  %v198_v28 = vunpack.c.h.bf16 %v196_v18 }
   0x7   :  { %211 = vmatpush3.bf16.msra.mxu0 %v218_v2 }
   0x8   :  { %v29_v5 = vld [vmem:[#allocation2 + $0x10] sm:$0xff]  ;;  %v27_v6 = vld [vmem:[#allocation2] sm:$0xff] }
   0x9   :  { %v30_v8 = vld [vmem:[#allocation2 + $0x18] sm:$0xff]  ;;  %v28_v11 = vld [vmem:[#allocation2 + $0x8] sm:$0xff] }
   0xa   :  { %213 = vmatmul.mubr.msk.bf16.vlgmr.msra.gmra.mrb[0].mxu0 %vm22_vm0, %v220_v4 }
  0xdd   :  { %v214_v7 = vpop.f32.mrb[0].mxu0 }
  0xde   :  { %v119_v9 = vadd.f32 %v214_v7, %v29_v5  ;;  %v102_v10 = vpop.f32.mrb[1].mxu0 }
  0xdf   :  { %v117_v12 = vadd.f32 %v102_v10, %v27_v6  ;;  %v215_v13 = vpop.f32.mrb[2].mxu0 }
  0xe0   :  { %123 = vst.msk [vmem:[#allocation2 + $0x10] sm:$0xff] %vm22_vm0, %v119_v9  ;;  %v120_v14 = vadd.f32 %v215_v13, %v30_v8  ;;  %v105_v15 = vpop.f32.mrb[3].mxu0 }
  0xe1   :  { %121 = vst.msk [vmem:[#allocation2] sm:$0xff] %vm22_vm0, %v117_v12  ;;  %v118_v16 = vadd.f32 %v105_v15, %v28_v11 }
  0xe2   :  { %124 = vst.msk [vmem:[#allocation2 + $0x18] sm:$0xff] %vm22_vm0, %v120_v14 }
  0xe3   :  { %122 = vst.msk [vmem:[#allocation2 + $0x8] sm:$0xff] %vm22_vm0, %v118_v16 }
  0xe7   :  { %v130_v21 = vld [vmem:[#allocation2 + $0x10] sm:$0xff] }
  0xe8   :  { %v141_v23 = vadd.f32 %v186_v19, %v130_v21  ;;  %v128_v24 = vld [vmem:[#allocation2] sm:$0xff] }
  0xe9   :  { %v139_v26 = vadd.f32 %v186_v19, %v128_v24  ;;  %v131_v27 = vld [vmem:[#allocation2 + $0x18] sm:$0xff] }
  0xea   :  { %v153_v29 = vadd.f32 %v201_v20, %v141_v23  ;;  %v142_v30 = vadd.f32 %v186_v19, %v131_v27  ;;  %v129_v31 = vld [vmem:[#allocation2 + $0x8] sm:$0xff] }
  0xeb   :  { %v151_v32 = vadd.f32 %v197_v22, %v139_v26  ;;  %v140_v33 = vadd.f32 %v186_v19, %v129_v31 }
  0xec   :  { %v193_v34 = vpack.c.bf16 %v153_v29, %v153_v29  ;;  %v154_v35 = vadd.f32 %v202_v25, %v142_v30 }
  0xed   :  { %v191_v36 = vpack.c.bf16 %v151_v32, %v151_v32  ;;  %v152_v37 = vadd.f32 %v198_v28, %v140_v33 }
  0xee   :  { %174 = vst.msk [vmem:[%s294_s4 + $0x8] sm:$0xf] %vm171_vm1, %v193_v34  ;;  %v194_v38 = vpack.c.bf16 %v154_v35, %v154_v35 }
  0xef   :  { %172 = vst.msk [vmem:[%s294_s4] sm:$0xf] %vm171_vm1, %v191_v36  ;;  %v192_v39 = vpack.c.bf16 %v152_v37, %v152_v37 }
  0xf0   :  { %175 = vst.msk [vmem:[%s294_s4 + $0xc] sm:$0xf] %vm171_vm1, %v194_v38 }
  0xf1   :  { %173 = vst.msk [vmem:[%s294_s4 + $0x4] sm:$0xf] %vm171_vm1, %v192_v39 }

// kernel: fwd.56
= control target key start
LH: loop header
LB: loop body
LE: loop exit
PB: predicated region body
PF: predicated region fallthrough
CT: control target
= control target key end

     0   :  { %vm39_vm0 = vcmask 261120   ;;  %vm413_vm1 = vcmask 257024   ;;  %s674_s0 = inlined_call_operand.vmem [shape: bf16[32,32], index: 0, kind: input, shape index: {}]   ;;  %s675_s3 = inlined_call_operand.vmem [shape: bf16[32,128], index: 3, kind: input, shape index: {}]   ;;  %s676_s1 = inlined_call_operand.vmem [shape: f32[1,32], index: 1, kind: input, shape index: {}]   ;;  %s677_s2 = inlined_call_operand.vmem [shape: f32[1,32], index: 2, kind: input, shape index: {}]   ;;  %s678_s5 = inlined_call_operand.vmem [shape: bf16[128,32], index: 5, kind: input, shape index: {}]   ;;  %s679_s4 = inlined_call_operand.vmem [shape: f32[1,128], index: 4, kind: input, shape index: {}]   ;;  %s680_s6 = inlined_call_operand.vmem [shape: f32[1,32], index: 6, kind: input, shape index: {}]   ;;  %s681_s7 = inlined_call_operand.vmem [shape: bf16[32,32], index: 7, kind: output, shape index: {}]  }
   0x1   :  { %v447_v0 = vld [vmem:[%s674_s0] sm:$0xff]   ;;  %v463_v1 = vld [vmem:[%s674_s0 + $0x8] sm:$0xff]  }
   0x2   :  { %v580_v2 = vunpack.c.l.bf16 %v447_v0  ;;  %v582_v3 = vunpack.c.h.bf16 %v447_v0  ;;  %v584_v4 = vunpack.c.l.bf16 %v463_v1  ;;  %v586_v5 = vunpack.c.h.bf16 %v463_v1  ;;  %v507_v30 = vld [vmem:[%s675_s3] sm:$0xff]   ;;  %v508_v31 = vld [vmem:[%s675_s3 + $0x8] sm:$0xff]  }
   0x3   :  { %478 = vmatprep.subr.bf16.mxu0 %v507_v30  ;;  %v422_v46 = vld [vmem:[%s676_s1] ss:$0 sm:$0xff] }
   0x4   :  { %v40_v6 = vsel %vm39_vm0, %v580_v2, 0.0  ;;  %v46_v7 = vsel %vm39_vm0, %v584_v4, 0.0  ;;  %v43_v8 = vsel %vm39_vm0, %v582_v3, 0.0  ;;  %v49_v9 = vsel %vm39_vm0, %v586_v5, 0.0  ;;  %479 = vmatpush3.bf16.msra.mxu0 %v507_v30  ;;  %v423_v51 = vld [vmem:[%s677_s2] ss:$0 sm:$0xff] }
   0x5   :  { %41 = vadd.xlane.f32.xlu0 %v40_v6  ;;  %47 = vadd.xlane.f32.xlu1 %v46_v7  ;;  %v509_v6 = vld [vmem:[%s678_s5] sm:$0xff]   ;;  %v510_v7 = vld [vmem:[%s678_s5 + $0x8] sm:$0xff]  }
   0x6   :  { %480 = vmatprep.subr.bf16.mxu0 %v508_v31  ;;  %486 = vmatprep.subr.bf16.mxu1 %v509_v6 }
   0x7   :  { %487 = vmatpush3.bf16.msra.mxu1 %v509_v6 }
   0x8   :  { %481 = vmatpush3.bf16.msra.mxu0 %v508_v31  ;;  %488 = vmatprep.subr.bf16.mxu1 %v510_v7 }
   0x9   :  { %44 = vadd.xlane.f32.xlu0 %v43_v8  ;;  %50 = vadd.xlane.f32.xlu1 %v49_v9  ;;  %v511_v8 = vld [vmem:[%s678_s5 + $0x10] sm:$0xff]   ;;  %v512_v9 = vld [vmem:[%s678_s5 + $0x18] sm:$0xff]  }
   0xb   :  { %489 = vmatpush3.bf16.msra.mxu1 %v510_v7 }
   0xc   :  { %490 = vmatprep.subr.bf16.mxu1 %v511_v8 }
   0xf   :  { %491 = vmatpush3.bf16.msra.mxu1 %v511_v8 }
  0x10   :  { %492 = vmatprep.subr.bf16.mxu1 %v512_v9 }
  0x13   :  { %493 = vmatpush3.bf16.msra.mxu1 %v512_v9 }
  0x92   :  { %v42_v10 = vpop.xlane.xlu0 %41  ;;  %v48_v11 = vpop.xlane.xlu1 %47 }
  0x93   :  { %v53_v12 = vmul.f32 0.03125, %v42_v10  ;;  %v55_v13 = vmul.f32 0.03125, %v48_v11  ;;  %v513_v10 = vld [vmem:[%s678_s5 + $0x20] sm:$0xff]   ;;  %v514_v11 = vld [vmem:[%s678_s5 + $0x28] sm:$0xff]  }
  0x94   :  { %494 = vmatprep.subr.bf16.mxu1 %v513_v10 }
  0x95   :  { %v57_v14 = vsub.f32 %v580_v2, %v53_v12  ;;  %v59_v15 = vsub.f32 %v584_v4, %v55_v13  ;;  %495 = vmatpush3.bf16.msra.mxu1 %v513_v10  ;;  %v515_v12 = vld [vmem:[%s678_s5 + $0x30] sm:$0xff]   ;;  %v516_v13 = vld [vmem:[%s678_s5 + $0x38] sm:$0xff]  }
  0x96   :  { %v45_v16 = vpop.xlane.xlu0 %44  ;;  %v51_v17 = vpop.xlane.xlu1 %50  ;;  %496 = vmatprep.subr.bf16.mxu1 %v514_v11 }
  0x97   :  { %v54_v18 = vmul.f32 0.03125, %v45_v16  ;;  %v56_v19 = vmul.f32 0.03125, %v51_v17  ;;  %v61_v20 = vmul.f32 %v57_v14, %v57_v14  ;;  %v63_v21 = vmul.f32 %v59_v15, %v59_v15 }
  0x99   :  { %v58_v22 = vsub.f32 %v582_v3, %v54_v18  ;;  %v60_v23 = vsub.f32 %v586_v5, %v56_v19  ;;  %v65_v24 = vsel %vm39_vm0, %v61_v20, 0.0  ;;  %v71_v25 = vsel %vm39_vm0, %v63_v21, 0.0  ;;  %497 = vmatpush3.bf16.msra.mxu1 %v514_v11 }
  0x9a   :  { %66 = vadd.xlane.f32.xlu0 %v65_v24  ;;  %498 = vmatprep.subr.bf16.mxu1 %v515_v12 }
  0x9b   :  { %v62_v26 = vmul.f32 %v58_v22, %v58_v22  ;;  %v64_v27 = vmul.f32 %v60_v23, %v60_v23 }
  0x9d   :  { %v68_v28 = vsel %vm39_vm0, %v62_v26, 0.0  ;;  %v74_v29 = vsel %vm39_vm0, %v64_v27, 0.0  ;;  %499 = vmatpush3.bf16.msra.mxu1 %v515_v12 }
  0x9e   :  { %72 = vadd.xlane.f32.xlu0 %v71_v25  ;;  %69 = vadd.xlane.f32.xlu1 %v68_v28 }
  0x9f   :  { %500 = vmatprep.subr.bf16.mxu1 %v516_v13 }
  0xa1   :  { %501 = vmatpush3.bf16.msra.mxu1 %v516_v13 }
  0xa2   :  { %75 = vadd.xlane.f32.xlu1 %v74_v29 }
 0x127   :  { %v67_v32 = vpop.xlane.xlu0 %66 }
 0x128   :  { %v77_v33 = vmul.f32 0.03125, %v67_v32 }
 0x12a   :  { %v81_v34 = vadd.f32 1e-05, %v77_v33 }
 0x12b   :  { %v70_v35 = vpop.xlane.xlu1 %69  ;;  %v73_v36 = vpop.xlane.xlu0 %72 }
 0x12c   :  { %517 = vrsqrt.f32 %v81_v34  ;;  %v78_v37 = vmul.f32 0.03125, %v70_v35  ;;  %v79_v38 = vmul.f32 0.03125, %v73_v36 }
 0x12e   :  { %v82_v39 = vadd.f32 1e-05, %v78_v37  ;;  %v83_v40 = vadd.f32 1e-05, %v79_v38 }
 0x12f   :  { %v76_v41 = vpop.xlane.xlu1 %75 }
 0x130   :  { %519 = vrsqrt.f32 %v82_v39  ;;  %v80_v42 = vmul.f32 0.03125, %v76_v41 }
 0x131   :  { %521 = vrsqrt.f32 %v83_v40 }
 0x132   :  { %v84_v43 = vadd.f32 1e-05, %v80_v42 }
 0x134   :  { %523 = vrsqrt.f32 %v84_v43 }
 0x136   :  { %v518_v44 = vpop.eup %517 }
 0x137   :  { %v89_v45 = vmul.f32 %v518_v44, %v57_v14  ;;  %v533_v14 = vmov 0.0  }
 0x138   :  { %121 = vst.msk [vmem:[#allocation3 + $0x10] sm:$0xff] %vm39_vm0, %v533_v14  ;;  %119 = vst.msk [vmem:[#allocation3] sm:$0xff] %vm39_vm0, %v533_v14 }
 0x139   :  { %v100_v49 = vmul.f32 %v422_v46, %v89_v45  ;;  %120 = vst.msk [vmem:[#allocation3 + $0x8] sm:$0xff] %vm39_vm0, %v533_v14  ;;  %122 = vst.msk [vmem:[#allocation3 + $0x18] sm:$0xff] %vm39_vm0, %v533_v14  ;;  %v437_v14 = vld [vmem:[%s680_s6] ss:$0 sm:$0xff] }
 0x13a   :  { %v520_v47 = vpop.eup %519 }
 0x13b   :  { %v522_v48 = vpop.eup %521  ;;  %v90_v50 = vmul.f32 %v520_v47, %v58_v22  ;;  %v111_v55 = vadd.f32 %v423_v51, %v100_v49 }
 0x13c   :  { %v91_v52 = vmul.f32 %v522_v48, %v59_v15  ;;  %v424_v15 = vld [vmem:[%s679_s4] ss:$0 sm:$0xff] }
 0x13d   :  { %v101_v53 = vmul.f32 %v422_v46, %v90_v50 }
 0x13e   :  { %v524_v54 = vpop.eup %523  ;;  %v102_v57 = vmul.f32 %v422_v46, %v91_v52 }
 0x13f   :  { %v112_v56 = vadd.f32 %v423_v51, %v101_v53  ;;  %v92_v58 = vmul.f32 %v524_v54, %v60_v23 }
 0x140   :  { %v113_v61 = vadd.f32 %v423_v51, %v102_v57  ;;  %v241_v8 = vld [vmem:[#allocation3 + $0x8] sm:$0xff] }
 0x141   :  { %v115_v59 = vpack.c.bf16 %v112_v56, %v111_v55  ;;  %v103_v60 = vmul.f32 %v422_v46, %v92_v58 }
 0x143   :  { %117 = vst.msk [vmem:[#allocation2] sm:$0xff] %vm39_vm0, %v115_v59  ;;  %v114_v62 = vadd.f32 %v423_v51, %v103_v60 }
 0x145   :  { %v116_v63 = vpack.c.bf16 %v114_v62, %v113_v61  ;;  %v242_v62 = vld [vmem:[#allocation3 + $0x10] sm:$0xff] }
 0x147   :  { %118 = vst.msk [vmem:[#allocation2 + $0x8] sm:$0xff] %vm39_vm0, %v116_v63  ;;  %v240_v63 = vld [vmem:[#allocation3] sm:$0xff] }
 0x14a   :  { %v123_v0 = vld [vmem:[#allocation2] sm:$0xff] }
 0x14b   :  { %482 = vmatprep.mubr.msk.bf16.mxu0 %vm39_vm0, %v123_v0 }
 0x14e   :  { %v124_v1 = vld [vmem:[#allocation2 + $0x8] sm:$0xff] }
 0x14f   :  { %483 = vmatmul.mubr.msk.bf16.vlgmr.msra.gmra.mrb[0].mxu0 %vm39_vm0, %v124_v1  ;;  %v243_v1 = vld [vmem:[#allocation3 + $0x18] sm:$0xff] }
 0x222   :  { %v484_v16 = vpop.f32.mrb[0].mxu0 }
 0x223   :  { %v198_v17 = vadd.f32 %v484_v16, %v424_v15  ;;  %v189_v18 = vpop.f32.mrb[1].mxu0 }
 0x224   :  { %v190_v19 = vadd.f32 %v424_v15, %v189_v18  ;;  %v485_v20 = vpop.f32.mrb[2].mxu0 }
 0x225   :  { %v206_v21 = vmul.f32 %v198_v17, %v198_v17  ;;  %v201_v22 = vadd.f32 %v485_v20, %v424_v15  ;;  %v192_v23 = vpop.f32.mrb[3].mxu0 }
 0x226   :  { %v204_v24 = vmul.f32 %v190_v19, %v190_v19  ;;  %v193_v25 = vadd.f32 %v424_v15, %v192_v23 }
 0x227   :  { %v210_v26 = vmul.f32 %v206_v21, %v198_v17  ;;  %v207_v27 = vmul.f32 %v201_v22, %v201_v22 }
 0x228   :  { %v208_v28 = vmul.f32 %v204_v24, %v190_v19  ;;  %v205_v29 = vmul.f32 %v193_v25, %v193_v25 }
 0x229   :  { %v214_v30 = vmul.f32 0.044715, %v210_v26  ;;  %v211_v31 = vmul.f32 %v207_v27, %v201_v22 }
 0x22a   :  { %v212_v32 = vmul.f32 0.044715, %v208_v28  ;;  %v209_v33 = vmul.f32 %v205_v29, %v193_v25 }
 0x22b   :  { %v218_v34 = vadd.f32 %v214_v30, %v198_v17  ;;  %v215_v35 = vmul.f32 0.044715, %v211_v31 }
 0x22c   :  { %v213_v36 = vmul.f32 0.044715, %v209_v33  ;;  %v216_v37 = vadd.f32 %v212_v32, %v190_v19 }
 0x22d   :  { %v222_v38 = vmul.f32 0.7978846, %v218_v34  ;;  %v219_v39 = vadd.f32 %v215_v35, %v201_v22 }
 0x22e   :  { %v217_v40 = vadd.f32 %v213_v36, %v193_v25  ;;  %v220_v41 = vmul.f32 0.7978846, %v216_v37 }
 0x22f   :  { %525 = vtanh.f32 %v222_v38  ;;  %v223_v42 = vmul.f32 0.7978846, %v219_v39 }
 0x230   :  { %v221_v43 = vmul.f32 0.7978846, %v217_v40  ;;  %527 = vtanh.f32 %v220_v41 }
 0x231   :  { %529 = vtanh.f32 %v223_v42 }
 0x232   :  { %531 = vtanh.f32 %v221_v43 }
 0x239   :  { %v526_v44 = vpop.eup %525 }
 0x23a   :  { %v528_v45 = vpop.eup %527  ;;  %v230_v46 = vadd.f32 1.0, %v526_v44 }
 0x23b   :  { %v530_v47 = vpop.eup %529  ;;  %v228_v48 = vadd.f32 1.0, %v528_v45 }
 0x23c   :  { %v532_v49 = vpop.eup %531  ;;  %v231_v50 = vadd.f32 1.0, %v530_v47  ;;  %v234_v51 = vmul.f32 0.5, %v230_v46 }
 0x23d   :  { %v229_v52 = vadd.f32 1.0, %v532_v49  ;;  %v232_v53 = vmul.f32 0.5, %v228_v48 }
 0x23e   :  { %v235_v54 = vmul.f32 0.5, %v231_v50  ;;  %v238_v56 = vmul.f32 %v234_v51, %v198_v17 }
 0x23f   :  { %v233_v55 = vmul.f32 0.5, %v229_v52  ;;  %v236_v58 = vmul.f32 %v232_v53, %v190_v19 }
 0x240   :  { %v239_v57 = vmul.f32 %v235_v54, %v201_v22 }
 0x241   :  { %v237_v59 = vmul.f32 %v233_v55, %v193_v25 }
 0x242   :  { %v245_v60 = vpack.c.bf16 %v239_v57, %v238_v56 }
 0x243   :  { %v244_v61 = vpack.c.bf16 %v237_v59, %v236_v58 }
 0x245   :  { %502 = vmatprep.mubr.bf16.mxu1 %v244_v61 }
 0x246   :  { %503 = vmatmul.mubr.bf16.vlgmr.msra.gmra.mrb[0].mxu1 %v245_v60 }
 0x319   :  { %v504_v0 = vpop.f32.mrb[0].mxu1 }
 0x31a   :  { %v361_v6 = vadd.f32 %v504_v0, %v242_v62  ;;  %v344_v7 = vpop.f32.mrb[1].mxu1 }
 0x31b   :  { %v359_v9 = vadd.f32 %v344_v7, %v240_v63  ;;  %v505_v10 = vpop.f32.mrb[2].mxu1 }
 0x31c   :  { %365 = vst.msk [vmem:[#allocation3 + $0x10] sm:$0xff] %vm39_vm0, %v361_v6  ;;  %v362_v11 = vadd.f32 %v505_v10, %v243_v1  ;;  %v347_v12 = vpop.f32.mrb[3].mxu1 }
 0x31d   :  { %363 = vst.msk [vmem:[#allocation3] sm:$0xff] %vm39_vm0, %v359_v9  ;;  %v360_v13 = vadd.f32 %v347_v12, %v241_v8 }
 0x31e   :  { %366 = vst.msk [vmem:[#allocation3 + $0x18] sm:$0xff] %vm39_vm0, %v362_v11 }
 0x31f   :  { %364 = vst.msk [vmem:[#allocation3 + $0x8] sm:$0xff] %vm39_vm0, %v360_v13 }
 0x323   :  { %v372_v15 = vld [vmem:[#allocation3 + $0x10] sm:$0xff] }
 0x324   :  { %v383_v16 = vadd.f32 %v437_v14, %v372_v15  ;;  %v370_v17 = vld [vmem:[#allocation3] sm:$0xff] }
 0x325   :  { %v381_v18 = vadd.f32 %v437_v14, %v370_v17  ;;  %v373_v19 = vld [vmem:[#allocation3 + $0x18] sm:$0xff] }
 0x326   :  { %v395_v20 = vadd.f32 %v584_v4, %v383_v16  ;;  %v384_v21 = vadd.f32 %v437_v14, %v373_v19  ;;  %v371_v22 = vld [vmem:[#allocation3 + $0x8] sm:$0xff] }
 0x327   :  { %v393_v23 = vadd.f32 %v580_v2, %v381_v18  ;;  %v382_v24 = vadd.f32 %v437_v14, %v371_v22 }
 0x328   :  { %v444_v25 = vpack.c.bf16 %v395_v20, %v395_v20  ;;  %v396_v26 = vadd.f32 %v586_v5, %v384_v21 }
 0x329   :  { %v442_v27 = vpack.c.bf16 %v393_v23, %v393_v23  ;;  %v394_v28 = vadd.f32 %v582_v3, %v382_v24 }
 0x32a   :  { %416 = vst.msk [vmem:[%s681_s7 + $0x8] sm:$0xf] %vm413_vm1, %v444_v25  ;;  %v445_v29 = vpack.c.bf16 %v396_v26, %v396_v26 }
 0x32b   :  { %414 = vst.msk [vmem:[%s681_s7] sm:$0xf] %vm413_vm1, %v442_v27  ;;  %v443_v4 = vpack.c.bf16 %v394_v28, %v394_v28 }
 0x32c   :  { %417 = vst.msk [vmem:[%s681_s7 + $0xc] sm:$0xf] %vm413_vm1, %v445_v29 }
 0x32d   :  { %415 = vst.msk [vmem:[%s681_s7 + $0x4] sm:$0xf] %vm413_vm1, %v443_v4 }

// kernel: fwd.54
= control target key start
LH: loop header
LB: loop body
LE: loop exit
PB: predicated region body
PF: predicated region fallthrough
CT: control target
= control target key end

     0   :  { %s1481_s12 = smov 0   ;;  %s1483_s13 = smov 0   ;;  %s1803_s0 = inlined_call_operand.vmem [shape: bf16[2,16,32], index: 0, kind: input, shape index: {}]   ;;  %s1804_s1 = inlined_call_operand.vmem [shape: bf16[2,8,32], index: 1, kind: input, shape index: {}]   ;;  %s1805_s2 = inlined_call_operand.vmem [shape: bf16[2,8,32], index: 2, kind: input, shape index: {}]   ;;  %s1806_s3 = inlined_call_operand.vmem [shape: bf16[2,16,32], index: 3, kind: output, shape index: {}]  }
   0x1   :  { %s1485_s14 = smov 0  }
   0x2 LB: > { %s32_s15 = sadd.s32 1, %s1445_s13  ;;  %p1235_p0 = scmp.ge.s32.totalorder %s1449_s14, 1  ;;  %s1449_s14 = sphi %s1485_s14, %s13_s14   ;;  %s1445_s13 = sphi %s1483_s13, %s1808_s13   ;;  %s1441_s12 = sphi %s1481_s12, %s1807_s12  }
   0x3   : > { %p34_p1 = scmp.ge.s32.totalorder %s32_s15, 2  ;;  %p193_p2 = scmp.lt.s32.totalorder %s1449_s14, 3 }
   0x5   : > { %s1810_s15 = smov (%p34_p1, %s32_s15), 0  ;;  %p194_p3 = pnand %p1235_p0, %p193_p2 }
   0x6   : > { %p240_p4 = scmp.lt.s32.totalorder (!%p194_p3), %s1441_s12, 1  ;;  %vm295_vm0 = vcmask (!%p194_p3), 64512   ;;  %v1451_v0 = vmov (!%p194_p3), 0.0   ;;  %vm1452_vm1 = vmmov (!%p194_p3), 0   ;;  %vm278_vm2 = vcmask (!%p194_p3), 7168   ;;  %s1455_s24 = smov (!%p194_p3), 120  }
   0x7   : > { %197 = sbr.rel (%p194_p3) target bundleno = 1477 (0x5c5), region = 32  ;;  %1277 = vmatprep.subr.bf16.mxu0 (!%p194_p3), %v1451_v0  ;;  %296 = vst.msk [vmem:[#allocation4] sm:$0xff] (!%p194_p3), %vm295_vm0, %v1451_v0  ;;  %297 = vst.msk [vmem:[#allocation4 + $0x8] sm:$0xff] (!%p194_p3), %vm295_vm0, %v1451_v0  ;;  %1279 = vmatprep.mubr.msk.bf16.mxu0 (!%p194_p3), %vm1452_vm1, %v1451_v0  ;;  %v1453_v4 = vmov (!%p194_p3), -1e+30   ;;  %v1454_v11 = vmov (!%p194_p3), 0  }
   0x8   : > { %298 = vst.msk [vmem:[#allocation4 + $0x10] sm:$0xff] (!%p194_p3), %vm295_vm0, %v1451_v0  ;;  %299 = vst.msk [vmem:[#allocation4 + $0x18] sm:$0xff] (!%p194_p3), %vm295_vm0, %v1451_v0  ;;  %1283 = vmatprep.subr.bf16.mxu1 (!%p194_p3), %v1451_v0  ;;  %1285 = vmatprep.mubr.msk.bf16.mxu1 (!%p194_p3), %vm1452_vm1, %v1451_v0  ;;  %vm426_vm3 = vcmask (!%p194_p3), 1043456   ;;  %s1456_s28 = smov (!%p194_p3), 112   ;;  %s1457_s29 = smov (!%p194_p3), 104   ;;  %vm1094_vm4 = vcmask (!%p194_p3), 130048  }
   0x9   : > { %300 = vst.msk [vmem:[#allocation4 + $0x20] sm:$0xff] (!%p194_p3), %vm295_vm0, %v1451_v0  ;;  %301 = vst.msk [vmem:[#allocation4 + $0x28] sm:$0xff] (!%p194_p3), %vm295_vm0, %v1451_v0  ;;  %1359 = vset.pattern.permute.xlu1 (!%p194_p3), %v1454_v11  ;;  %1360 = vset.pattern.permute.xlu0 (!%p194_p3), %v1454_v11  ;;  %s1458_s30 = smov (!%p194_p3), 8   ;;  %s1459_s4 = smov (!%p194_p3), 16   ;;  %vm1097_vm5 = vcmask (!%p194_p3), 195584   ;;  %vm1108_vm6 = vcmask (!%p194_p3), 257024  }
   0xa   : > { %302 = vst.msk [vmem:[#allocation4 + $0x30] sm:$0xff] (!%p194_p3), %vm295_vm0, %v1451_v0  ;;  %303 = vst.msk [vmem:[#allocation4 + $0x38] sm:$0xff] (!%p194_p3), %vm295_vm0, %v1451_v0  ;;  %s1460_s5 = smov (!%p194_p3), 24  }
   0xb   : > { %279 = vst.msk [vmem:[#allocation2] sm:$0xff] (!%p194_p3), %vm278_vm2, %v1453_v4  ;;  %280 = vst.msk [vmem:[#allocation2 + $0x8] sm:$0xff] (!%p194_p3), %vm278_vm2, %v1453_v4 }
   0xc   : > { %281 = vst.msk [vmem:[#allocation2 + $0x10] sm:$0xff] (!%p194_p3), %vm278_vm2, %v1453_v4  ;;  %282 = vst.msk [vmem:[#allocation2 + $0x18] sm:$0xff] (!%p194_p3), %vm278_vm2, %v1453_v4 }
   0xd   : > { %283 = vst.msk [vmem:[#allocation2 + $0x20] sm:$0xff] (!%p194_p3), %vm278_vm2, %v1453_v4  ;;  %284 = vst.msk [vmem:[#allocation2 + $0x28] sm:$0xff] (!%p194_p3), %vm278_vm2, %v1453_v4 }
   0xe   : > { %s1812_s12 = smov (!%p240_p4, %s1441_s12), 1  ;;  %285 = vst.msk [vmem:[#allocation2 + $0x30] sm:$0xff] %vm278_vm2, %v1453_v4  ;;  %286 = vst.msk [vmem:[#allocation2 + $0x38] sm:$0xff] %vm278_vm2, %v1453_v4 }
   0xf   : > { %s1257_s16 = sshll.u32 %s1812_s12, 3  ;;  %s1238_s17 = sshll.u32 %s1812_s12, 2  ;;  %287 = vst.msk [vmem:[#allocation3] sm:$0xff] %vm278_vm2, %v1451_v0  ;;  %288 = vst.msk [vmem:[#allocation3 + $0x8] sm:$0xff] %vm278_vm2, %v1451_v0 }
  0x10   : > { %s247_s20 = scalar_lea.vmem %s1803_s0, %s1257_s16  ;;  %s255_s23 = scalar_lea.vmem %s1804_s1, %s1238_s17  ;;  %289 = vst.msk [vmem:[#allocation3 + $0x10] sm:$0xff] %vm278_vm2, %v1451_v0  ;;  %290 = vst.msk [vmem:[#allocation3 + $0x18] sm:$0xff] %vm278_vm2, %v1451_v0 }
  0x11   : > { %v306_v1 = vld [vmem:[%s255_s23] sm:$0xf]  ;;  %291 = vst.msk [vmem:[#allocation3 + $0x20] sm:$0xff] %vm278_vm2, %v1451_v0  ;;  %292 = vst.msk [vmem:[#allocation3 + $0x28] sm:$0xff] %vm278_vm2, %v1451_v0  ;;  %s262_s27 = scalar_lea.vmem %s1805_s2, %s1238_s17  ;;  %s271_s8 = scalar_lea.vmem %s1806_s3, %s1257_s16 }
  0x12   : > { %v318_v2 = vsel %vm295_vm0, %v306_v1, 0  ;;  %v1377_v3 = vld [vmem:[%s247_s20] sm:$0xff]   ;;  %293 = vst.msk [vmem:[#allocation3 + $0x30] sm:$0xff] %vm278_vm2, %v1451_v0  ;;  %294 = vst.msk [vmem:[#allocation3 + $0x38] sm:$0xff] %vm278_vm2, %v1451_v0  ;;  %v1245_v12 = vcombine.low %v306_v1, %v306_v1  ;;  %v1573_v16 = vld [vmem:[#allocation2 + $0x8] sm:$0xff] }
  0x13   : > { %1278 = vmatpush3.bf16.xpose.msra.mxu0 %v318_v2  ;;  %v1568_v13 = vld [vmem:[#allocation2] sm:$0xff]  ;;  %v1652_v63 = vld [vmem:[#allocation2 + $0x10] sm:$0xff]  ;;  %v1654_v2 = vld [vmem:[#allocation2 + $0x18] sm:$0xff] }
  0x14   : > { %1295 = vmatprep.subr.bf16.mxu0 %v1451_v0  ;;  %v1594_v21 = vld [vmem:[%s262_s27] sm:$0xf]  ;;  %v1677_v11 = vld [vmem:[#allocation2 + $0x28] sm:$0xff] }
  0x15   : > { %v428_v22 = vsel %vm426_vm3, %v1594_v21, 0 }
  0x16   : > { %1284 = vmatpush3.bf16.msra.mxu1 %v428_v22 }
  0x17   : > { %1289 = vmatprep.subr.bf16.mxu1 %v1451_v0 }
  0x1a   : > { %1280 = vmatmul.mubr.msk.bf16.vlgmr.msra.gmra.mrb[0].mxu0 %vm295_vm0, %v1377_v3 }
  0x1b   : > { %1297 = vmatprep.mubr.msk.bf16.mxu0 %vm1452_vm1, %v1451_v0 }
  0xed   : > { %v354_v5 = vpop.f32.mrb[0].mxu0 }
  0xee   : > { %v1281_v6 = vpop.f32.mrb[1].mxu0  ;;  %v363_v7 = vsel %vm295_vm0, %v354_v5, -inf }
  0xef   : > { %364 = vmax.xlane.f32.xlu0 %v363_v7  ;;  %v357_v8 = vpop.f32.mrb[2].mxu0 }
  0xf0   : > { %v1282_v9 = vpop.f32.mrb[3].mxu0  ;;  %v366_v10 = vsel %vm295_vm0, %v357_v8, -inf }
  0xf1   : > { %v1674_v9 = vld [vmem:[#allocation2 + $0x20] sm:$0xff] }
  0xf3   : > { %367 = vmax.xlane.f32.xlu0 %v366_v10 }
 0x109   : > { %482 = vrot.lane.b32.xlu0 %v1245_v12, %s1455_s24 }
 0x17c   : > { %v365_v14 = vpop.xlane.xlu0 %364 }
 0x17d   : > { %v1571_v15 = vmax.f32 %v1568_v13, %v365_v14 }
 0x17f   : > { %v371_v17 = vsub.f32 %v1568_v13, %v1571_v15  ;;  %475 = vst.msk [vmem:[#allocation2] sm:$0xff] %vm278_vm2, %v1571_v15  ;;  %379 = vperm.xlu1 %1359, %v1571_v15  }
 0x180   : > { %v368_v18 = vpop.xlane.xlu0 %367 }
 0x181   : > { %v1581_v19 = vmax.f32 %v1573_v16, %v368_v18 }
 0x183   : > { %v372_v20 = vsub.f32 %v1573_v16, %v1581_v19  ;;  %476 = vst.msk [vmem:[#allocation2 + $0x8] sm:$0xff] %vm278_vm2, %v1581_v19  ;;  %384 = vperm.xlu1 %1359, %v1581_v19   ;;  %v373_v16 = vmul.f32 1.442695, %v371_v17 }
 0x184   : > { %v483_v30 = vpop.permute.xlu0 %482 }
 0x185   : > { %v488_v33 = vsel %vm295_vm0, %v483_v30, 0 }
 0x187   : > { %477 = vrot.lane.b32.xlu1 %v1377_v3, %s1455_s24 }
 0x18b   : > { %655 = vrot.lane.b32.xlu1 %v1245_v12, %s1456_s28 }
 0x18f   : > { %653 = vrot.lane.b32.xlu1 %v1377_v3, %s1456_s28 }
 0x193   : > { %825 = vrot.lane.b32.xlu1 %v1245_v12, %s1457_s29 }
 0x197   : > { %823 = vrot.lane.b32.xlu1 %v1377_v3, %s1457_s29 }
 0x1fe   : > { %v380_v23 = vpop.permute.xlu1 %379 }
 0x1ff   : > { %v387_v24 = vsub.f32 %v354_v5, %v380_v23  ;;  %v1247_v5 = vcombine.low %v1594_v21, %v1594_v21  ;;  %v1694_v23 = vld [vmem:[#allocation2 + $0x30] sm:$0xff] }
 0x201   : > { %v389_v25 = vmul.f32 1.442695, %v387_v24 }
 0x202   : > { %v385_v26 = vpop.permute.xlu1 %384 }
 0x203   : > { %v388_v27 = vsub.f32 %v357_v8, %v385_v26  ;;  %1379 = vpow2.f32 %v389_v25  ;;  %v1697_v25 = vld [vmem:[#allocation2 + $0x38] sm:$0xff] }
 0x205   : > { %v391_v28 = vmul.f32 1.442695, %v388_v27 }
 0x206   : > { %v478_v29 = vpop.permute.xlu1 %477 }
 0x207   : > { %1381 = vpow2.f32 %v391_v28 }
 0x20a   : > { %v656_v35 = vpop.permute.xlu1 %655 }
 0x20b   : > { %v661_v37 = vsel %vm295_vm0, %v656_v35, 0 }
 0x20d   : > { %v1603_v31 = vpop.eup %1379 }
 0x20e   : > { %v654_v36 = vpop.permute.xlu1 %653 }
 0x211   : > { %v1605_v32 = vpop.eup %1381 }
 0x212   : > { %v422_v34 = vpack.c.bf16 %v1605_v32, %v1603_v31  ;;  %v826_v38 = vpop.permute.xlu1 %825 }
 0x213   : > { %v831_v39 = vsel %vm295_vm0, %v826_v38, 0 }
 0x214   : > { %1286 = vmatmul.mubr.msk.bf16.vlgmr.msra.gmra.mrb[0].mxu1 %vm295_vm0, %v422_v34  ;;  %v397_v34 = vsel %vm295_vm0, %v1603_v31, 0.0 }
 0x215   : > { %1290 = vmatpush3.bf16.xpose.msra.mxu1 %v488_v33  ;;  %1291 = vmatprep.mubr.msk.bf16.mxu1 %vm1452_vm1, %v1451_v0  ;;  %v400_v33 = vsel %vm295_vm0, %v1605_v32, 0.0 }
 0x216   : > { %1301 = vmatprep.subr.bf16.mxu1 %v1451_v0  ;;  %v824_v40 = vpop.permute.xlu1 %823 }
 0x21c   : > { %1292 = vmatmul.mubr.msk.bf16.vlgmr.msra.gmra.mrb[4].mxu1 %vm295_vm0, %v478_v29 }
 0x21d   : > { %1302 = vmatpush3.bf16.xpose.msra.mxu1 %v661_v37  ;;  %1303 = vmatprep.mubr.msk.bf16.mxu1 %vm1452_vm1, %v1451_v0 }
 0x21e   : > { %1313 = vmatprep.subr.bf16.mxu1 %v1451_v0 }
 0x224   : > { %1304 = vmatmul.mubr.msk.bf16.vlgmr.msra.gmra.mrb[8].mxu1 %vm295_vm0, %v654_v36 }
 0x225   : > { %1314 = vmatpush3.bf16.xpose.msra.mxu1 %v831_v39  ;;  %1315 = vmatprep.mubr.msk.bf16.mxu1 %vm1452_vm1, %v1451_v0 }
 0x22c   : > { %1316 = vmatmul.mubr.msk.bf16.vlgmr.msra.gmra.mrb[12].mxu1 %vm295_vm0, %v824_v40 }
 0x2e7   : > { %v1624_v41 = vpop.f32.mrb[0].mxu1 }
 0x2e8   : > { %v1287_v42 = vpop.f32.mrb[1].mxu1 }
 0x2e9   : > { %v1626_v43 = vpop.f32.mrb[2].mxu1 }
 0x2ea   : > { %v1288_v44 = vpop.f32.mrb[3].mxu1 }
 0x2ef   : > { %v1628_v45 = vpop.f32.mrb[4].mxu1 }
 0x2f0   : > { %v1293_v46 = vpop.f32.mrb[5].mxu1  ;;  %v534_v47 = vsel %vm295_vm0, %v1628_v45, -inf }
 0x2f1   : > { %535 = vmax.xlane.f32.xlu1 %v534_v47  ;;  %v1632_v48 = vpop.f32.mrb[6].mxu1 }
 0x2f2   : > { %v1294_v49 = vpop.f32.mrb[7].mxu1  ;;  %v537_v50 = vsel %vm295_vm0, %v1632_v48, -inf }
 0x2f3   : > { %538 = vmax.xlane.f32.xlu0 %v537_v50 }
 0x2f7   : > { %v1636_v51 = vpop.f32.mrb[8].mxu1 }
 0x2f8   : > { %v1305_v52 = vpop.f32.mrb[9].mxu1  ;;  %v707_v53 = vsel %vm295_vm0, %v1636_v51, -inf }
 0x2f9   : > { %708 = vmax.xlane.f32.xlu0 %v707_v53  ;;  %v1640_v54 = vpop.f32.mrb[10].mxu1 }
 0x2fa   : > { %v1306_v55 = vpop.f32.mrb[11].mxu1  ;;  %v710_v56 = vsel %vm295_vm0, %v1640_v54, -inf }
 0x2fb   : > { %711 = vmax.xlane.f32.xlu1 %v710_v56 }
 0x2ff   : > { %v1644_v57 = vpop.f32.mrb[12].mxu1 }
 0x300   : > { %v1317_v58 = vpop.f32.mrb[13].mxu1  ;;  %v877_v59 = vsel %vm295_vm0, %v1644_v57, -inf }
 0x301   : > { %878 = vmax.xlane.f32.xlu0 %v877_v59  ;;  %v1648_v60 = vpop.f32.mrb[14].mxu1 }
 0x302   : > { %v1318_v61 = vpop.f32.mrb[15].mxu1  ;;  %v880_v62 = vsel %vm295_vm0, %v1648_v60, -inf }
 0x303   : > { %881 = vmax.xlane.f32.xlu1 %v880_v62 }
 0x37e   : > { %v536_v1 = vpop.xlane.xlu1 %535 }
 0x37f   : > { %v1657_v3 = vmax.f32 %v1652_v63, %v536_v1 }
 0x380   : > { %v539_v4 = vpop.xlane.xlu0 %538 }
 0x381   : > { %v542_v6 = vsub.f32 %v1652_v63, %v1657_v3  ;;  %651 = vst.msk [vmem:[#allocation2 + $0x10] sm:$0xff] %vm278_vm2, %v1657_v3  ;;  %v1666_v7 = vmax.f32 %v1654_v2, %v539_v4  ;;  %550 = vperm.xlu0 %1360, %v1657_v3  }
 0x383   : > { %v543_v8 = vsub.f32 %v1654_v2, %v1666_v7  ;;  %652 = vst.msk [vmem:[#allocation2 + $0x18] sm:$0xff] %vm278_vm2, %v1666_v7  ;;  %555 = vperm.xlu1 %1359, %v1666_v7  }
 0x385   : > { %938 = vrot.lane.b32.xlu0 %v1247_v5, %s1457_s29  ;;  %v546_v19 = vmul.f32 1.442695, %v543_v8 }
 0x386   : > { %v709_v10 = vpop.xlane.xlu0 %708 }
 0x387   : > { %v1680_v12 = vmax.f32 %v1674_v9, %v709_v10 }
 0x388   : > { %v712_v14 = vpop.xlane.xlu1 %711 }
 0x389   : > { %v715_v18 = vsub.f32 %v1674_v9, %v1680_v12  ;;  %821 = vst.msk [vmem:[#allocation2 + $0x20] sm:$0xff] %vm278_vm2, %v1680_v12  ;;  %v1687_v21 = vmax.f32 %v1677_v11, %v712_v14  ;;  %723 = vperm.xlu1 %1359, %v1680_v12  }
 0x38b   : > { %v716_v22 = vsub.f32 %v1677_v11, %v1687_v21  ;;  %822 = vst.msk [vmem:[#allocation2 + $0x28] sm:$0xff] %vm278_vm2, %v1687_v21 }
 0x38d   : > { %728 = vperm.xlu1 %1359, %v1687_v21   ;;  %v719_v13 = vmul.f32 1.442695, %v716_v22 }
 0x38e   : > { %v879_v24 = vpop.xlane.xlu0 %878 }
 0x38f   : > { %v1700_v26 = vmax.f32 %v1694_v23, %v879_v24  ;;  %v375_v24 = vmul.f32 1.442695, %v372_v20  ;;  %v544_v20 = vmul.f32 1.442695, %v542_v6 }
 0x390   : > { %v882_v27 = vpop.xlane.xlu1 %881 }
 0x391   : > { %v885_v28 = vsub.f32 %v1694_v23, %v1700_v26  ;;  %991 = vst.msk [vmem:[#allocation2 + $0x30] sm:$0xff] %vm278_vm2, %v1700_v26  ;;  %v1707_v29 = vmax.f32 %v1697_v25, %v882_v27  ;;  %893 = vperm.xlu1 %1359, %v1700_v26   ;;  %v393_v23 = vld [vmem:[#allocation3] sm:$0xff] }
 0x393   : > { %v886_v30 = vsub.f32 %v1697_v25, %v1707_v29  ;;  %992 = vst.msk [vmem:[#allocation2 + $0x38] sm:$0xff] %vm278_vm2, %v1707_v29  ;;  %v887_v63 = vmul.f32 1.442695, %v885_v28 }
 0x395   : > { %898 = vperm.xlu1 %1359, %v1707_v29   ;;  %v889_v3 = vmul.f32 1.442695, %v886_v30 }
 0x399   : > { %598 = vrot.lane.b32.xlu1 %v1247_v5, %s1455_s24 }
 0x39d   : > { %768 = vrot.lane.b32.xlu1 %v1247_v5, %s1456_s28 }
 0x3a4   : > { %401 = vadd.xlane.f32.xlu0 %v400_v33 }
 0x3c1   : > { %398 = vadd.xlane.f32.xlu1 %v397_v34 }
 0x400   : > { %v551_v35 = vpop.permute.xlu0 %550 }
 0x401   : > { %v558_v36 = vsub.f32 %v1628_v45, %v551_v35 }
 0x402   : > { %v556_v37 = vpop.permute.xlu1 %555 }
 0x403   : > { %v560_v38 = vmul.f32 1.442695, %v558_v36  ;;  %v559_v39 = vsub.f32 %v1632_v48, %v556_v37 }
 0x404   : > { %v939_v33 = vpop.permute.xlu0 %938 }
 0x405   : > { %1383 = vpow2.f32 %v560_v38  ;;  %v562_v40 = vmul.f32 1.442695, %v559_v39  ;;  %v944_v35 = vsel %vm426_vm3, %v939_v33, 0  ;;  %v394_v39 = vld [vmem:[#allocation3 + $0x8] sm:$0xff] }
 0x407   : > { %1385 = vpow2.f32 %v562_v40  ;;  %v565_v40 = vld [vmem:[#allocation3 + $0x10] sm:$0xff] }
 0x408   : > { %v724_v42 = vpop.permute.xlu1 %723 }
 0x409   : > { %v731_v44 = vsub.f32 %v1636_v51, %v724_v42  ;;  %v566_v42 = vld [vmem:[#allocation3 + $0x18] sm:$0xff] }
 0x40b   : > { %v733_v46 = vmul.f32 1.442695, %v731_v44 }
 0x40c   : > { %v729_v32 = vpop.permute.xlu1 %728 }
 0x40d   : > { %1387 = vpow2.f32 %v733_v46  ;;  %v732_v47 = vsub.f32 %v1640_v54, %v729_v32 }
 0x40f   : > { %v1384_v31 = vpop.eup %1383  ;;  %v735_v49 = vmul.f32 1.442695, %v732_v47 }
 0x410   : > { %v894_v50 = vpop.permute.xlu1 %893  ;;  %v569_v45 = vsel %vm295_vm0, %v1384_v31, 0.0 }
 0x411   : > { %v1386_v52 = vpop.eup %1385  ;;  %1389 = vpow2.f32 %v735_v49  ;;  %v901_v48 = vsub.f32 %v1644_v57, %v894_v50  ;;  %570 = vadd.xlane.f32.xlu1 %v569_v45  ;;  %v738_v50 = vld [vmem:[#allocation3 + $0x20] sm:$0xff] }
 0x412   : > { %v572_v53 = vsel %vm295_vm0, %v1386_v52, 0.0  ;;  %v594_v55 = vpack.c.bf16 %v1386_v52, %v1384_v31 }
 0x413   : > { %v903_v56 = vmul.f32 1.442695, %v901_v48  ;;  %573 = vadd.xlane.f32.xlu0 %v572_v53  ;;  %v739_v48 = vld [vmem:[#allocation3 + $0x28] sm:$0xff] }
 0x414   : > { %v899_v51 = vpop.permute.xlu1 %898 }
 0x415   : > { %1391 = vpow2.f32 %v903_v56  ;;  %v902_v58 = vsub.f32 %v1648_v60, %v899_v51 }
 0x417   : > { %v1388_v54 = vpop.eup %1387  ;;  %v905_v59 = vmul.f32 1.442695, %v902_v58  ;;  %v908_v58 = vld [vmem:[#allocation3 + $0x30] sm:$0xff] }
 0x418   : > { %v599_v61 = vpop.permute.xlu1 %598  ;;  %v742_v62 = vsel %vm295_vm0, %v1388_v54, 0.0 }
 0x419   : > { %1393 = vpow2.f32 %v905_v59  ;;  %v604_v1 = vsel %vm426_vm3, %v599_v61, 0  ;;  %743 = vadd.xlane.f32.xlu0 %v742_v62 }
 0x41a   : > { %1296 = vmatpush3.bf16.msra.mxu0 %v604_v1  ;;  %1395 = vpow2.f32 %v375_v24  ;;  %v909_v1 = vld [vmem:[#allocation3 + $0x38] sm:$0xff]  ;;  %v408_v24 = vld [vmem:[#allocation4] sm:$0xff] }
 0x41b   : > { %v1390_v57 = vpop.eup %1389  ;;  %1307 = vmatprep.subr.bf16.mxu0 %v1451_v0  ;;  %1397 = vpow2.f32 %v373_v16 }
 0x41c   : > { %v745_v4 = vsel %vm295_vm0, %v1390_v57, 0.0  ;;  %v769_v5 = vpop.permute.xlu1 %768  ;;  %v767_v10 = vpack.c.bf16 %v1390_v57, %v1388_v54  ;;  %1399 = vpow2.f32 %v546_v19 }
 0x41d   : > { %746 = vadd.xlane.f32.xlu1 %v745_v4  ;;  %1298 = vmatmul.mubr.msk.bf16.vlgmr.msra.gmra.mrb[4].mxu0 %vm295_vm0, %v594_v55  ;;  %v774_v60 = vsel %vm426_vm3, %v769_v5, 0  ;;  %1401 = vpow2.f32 %v544_v20 }
 0x41e   : > { %1308 = vmatpush3.bf16.msra.mxu0 %v774_v60  ;;  %1309 = vmatprep.mubr.msk.bf16.mxu0 %vm1452_vm1, %v1451_v0 }
 0x41f   : > { %v1392_v14 = vpop.eup %1391  ;;  %1319 = vmatprep.subr.bf16.mxu0 %v1451_v0 }
 0x420   : > { %v912_v27 = vsel %vm295_vm0, %v1392_v14, 0.0 }
 0x421   : > { %913 = vadd.xlane.f32.xlu0 %v912_v27  ;;  %v409_v27 = vld [vmem:[#allocation4 + $0x8] sm:$0xff] }
 0x423   : > { %v1394_v34 = vpop.eup %1393 }
 0x424   : > { %v915_v36 = vsel %vm295_vm0, %v1394_v34, 0.0  ;;  %v937_v37 = vpack.c.bf16 %v1394_v34, %v1392_v14  ;;  %v1396_v38 = vpop.eup %1395 }
 0x425   : > { %916 = vadd.xlane.f32.xlu1 %v915_v36  ;;  %1310 = vmatmul.mubr.msk.bf16.vlgmr.msra.gmra.mrb[8].mxu0 %vm295_vm0, %v767_v10  ;;  %v396_v15 = vmul.f32 %v1396_v38, %v394_v39  ;;  %v1398_v6 = vpop.eup %1397 }
 0x426   : > { %1320 = vmatpush3.bf16.msra.mxu0 %v944_v35  ;;  %1321 = vmatprep.mubr.msk.bf16.mxu0 %vm1452_vm1, %v1451_v0  ;;  %v717_v0 = vmul.f32 1.442695, %v715_v18  ;;  %v1400_v7 = vpop.eup %1399  ;;  %v395_v25 = vmul.f32 %v1398_v6, %v393_v23  ;;  %v754_v23 = vld [vmem:[#allocation4 + $0x28] sm:$0xff] }
 0x427   : > { %v1402_v8 = vpop.eup %1401  ;;  %v568_v47 = vmul.f32 %v1400_v7, %v566_v42 }
 0x428   : > { %1403 = vpow2.f32 %v717_v0  ;;  %v567_v44 = vmul.f32 %v1402_v8, %v565_v40 }
 0x429   : > { %1405 = vpow2.f32 %v719_v13 }
 0x42a   : > { %1407 = vpow2.f32 %v887_v63 }
 0x42b   : > { %1409 = vpow2.f32 %v889_v3 }
 0x42d   : > { %1322 = vmatmul.mubr.msk.bf16.vlgmr.msra.gmra.mrb[12].mxu0 %vm295_vm0, %v937_v37 }
 0x431   : > { %v402_v17 = vpop.xlane.xlu0 %401 }
 0x432   : > { %v404_v2 = vadd.f32 %v402_v17, %v396_v15  ;;  %v1404_v11 = vpop.eup %1403 }
 0x433   : > { %v1406_v12 = vpop.eup %1405  ;;  %v740_v45 = vmul.f32 %v1404_v11, %v738_v50 }
 0x434   : > { %407 = vst.msk [vmem:[#allocation3 + $0x8] sm:$0xff] %vm278_vm2, %v404_v2  ;;  %v1408_v18 = vpop.eup %1407  ;;  %v741_v56 = vmul.f32 %v1406_v12, %v739_v48  ;;  %v580_v2 = vld [vmem:[#allocation4 + $0x10] sm:$0xff] }
 0x435   : > { %v1410_v21 = vpop.eup %1409  ;;  %v910_v61 = vmul.f32 %v1408_v18, %v908_v58 }
 0x436   : > { %417 = vperm.xlu1 %1359, %v1396_v38   ;;  %v911_v5 = vmul.f32 %v1410_v21, %v909_v1 }
 0x437   : > { %412 = vperm.xlu0 %1360, %v1398_v6  }
 0x43a   : > { %589 = vperm.xlu1 %1359, %v1400_v7  }
 0x43b   : > { %584 = vperm.xlu0 %1360, %v1402_v8   ;;  %v999_v9 = vld [vmem:[#allocation3 + $0x8] sm:$0xff] }
 0x43c   : > { %1411 = vrcp.f32 %v999_v9 }
 0x43e   : > { %757 = vperm.xlu1 %1359, %v1404_v11  }
 0x43f   : > { %762 = vperm.xlu0 %1360, %v1406_v12  }
 0x442   : > { %927 = vperm.xlu1 %1359, %v1408_v18  }
 0x443   : > { %932 = vperm.xlu0 %1360, %v1410_v21   ;;  %v753_v21 = vld [vmem:[#allocation4 + $0x20] sm:$0xff] }
 0x446   : > { %v1412_v22 = vpop.eup %1411 }
 0x447   : > { %1009 = vperm.xlu0 %1360, %v1412_v22  }
 0x44e   : > { %v399_v26 = vpop.xlane.xlu1 %398 }
 0x44f   : > { %v403_v28 = vadd.f32 %v399_v26, %v395_v25 }
 0x451   : > { %406 = vst.msk [vmem:[#allocation3] sm:$0xff] %vm278_vm2, %v403_v28 }
 0x458   : > { %v998_v29 = vld [vmem:[#allocation3] sm:$0xff] }
 0x459   : > { %1413 = vrcp.f32 %v998_v29 }
 0x463   : > { %v1414_v30 = vpop.eup %1413 }
 0x464   : > { %1004 = vperm.xlu1 %1359, %v1414_v30  }
 0x49e   : > { %v571_v46 = vpop.xlane.xlu1 %570 }
 0x49f   : > { %v575_v32 = vadd.f32 %v571_v46, %v567_v44 }
 0x4a0   : > { %v574_v31 = vpop.xlane.xlu0 %573 }
 0x4a1   : > { %577 = vst.msk [vmem:[#allocation3 + $0x10] sm:$0xff] %vm278_vm2, %v575_v32  ;;  %v576_v49 = vadd.f32 %v574_v31, %v568_v47  ;;  %v923_v32 = vld [vmem:[#allocation4 + $0x30] sm:$0xff]  ;;  %v924_v31 = vld [vmem:[#allocation4 + $0x38] sm:$0xff] }
 0x4a3   : > { %578 = vst.msk [vmem:[#allocation3 + $0x18] sm:$0xff] %vm278_vm2, %v576_v49 }
 0x4a6   : > { %v744_v52 = vpop.xlane.xlu0 %743 }
 0x4a7   : > { %v748_v53 = vadd.f32 %v744_v52, %v740_v45 }
 0x4a8   : > { %v1016_v55 = vld [vmem:[#allocation3 + $0x10] sm:$0xff] }
 0x4a9   : > { %750 = vst.msk [vmem:[#allocation3 + $0x20] sm:$0xff] %vm278_vm2, %v748_v53  ;;  %1415 = vrcp.f32 %v1016_v55 }
 0x4aa   : > { %v747_v51 = vpop.xlane.xlu1 %746  ;;  %v1017_v54 = vld [vmem:[#allocation3 + $0x18] sm:$0xff] }
 0x4ab   : > { %v749_v59 = vadd.f32 %v747_v51, %v741_v56  ;;  %1417 = vrcp.f32 %v1017_v54 }
 0x4ad   : > { %751 = vst.msk [vmem:[#allocation3 + $0x28] sm:$0xff] %vm278_vm2, %v749_v59 }
 0x4ae   : > { %v914_v62 = vpop.xlane.xlu0 %913 }
 0x4af   : > { %v918_v57 = vadd.f32 %v914_v62, %v910_v61 }
 0x4b0   : > { %v1034_v4 = vld [vmem:[#allocation3 + $0x20] sm:$0xff] }
 0x4b1   : > { %920 = vst.msk [vmem:[#allocation3 + $0x30] sm:$0xff] %vm278_vm2, %v918_v57  ;;  %1419 = vrcp.f32 %v1034_v4 }
 0x4b2   : > { %v917_v10 = vpop.xlane.xlu1 %916 }
 0x4b3   : > { %v1416_v60 = vpop.eup %1415  ;;  %v919_v14 = vadd.f32 %v917_v10, %v911_v5 }
 0x4b4   : > { %1022 = vperm.xlu1 %1359, %v1416_v60   ;;  %v1035_v33 = vld [vmem:[#allocation3 + $0x28] sm:$0xff] }
 0x4b5   : > { %v1418_v34 = vpop.eup %1417  ;;  %921 = vst.msk [vmem:[#allocation3 + $0x38] sm:$0xff] %vm278_vm2, %v919_v14  ;;  %1421 = vrcp.f32 %v1035_v33 }
 0x4b6   : > { %1027 = vperm.xlu0 %1360, %v1418_v34   ;;  %v413_v35 = vpop.permute.xlu0 %412  ;;  %v418_v36 = vpop.permute.xlu1 %417 }
 0x4b7   : > { %v420_v37 = vmul.f32 %v413_v35, %v408_v24  ;;  %v421_v16 = vmul.f32 %v418_v36, %v409_v27 }
 0x4b8   : > { %v1052_v19 = vld [vmem:[#allocation3 + $0x30] sm:$0xff] }
 0x4b9   : > { %v471_v20 = vadd.f32 %v1624_v41, %v420_v37  ;;  %v472_v38 = vadd.f32 %v1626_v43, %v421_v16  ;;  %1423 = vrcp.f32 %v1052_v19  ;;  %v581_v41 = vld [vmem:[#allocation4 + $0x18] sm:$0xff] }
 0x4ba   : > { %v585_v63 = vpop.permute.xlu0 %584  ;;  %v590_v3 = vpop.permute.xlu1 %589 }
 0x4bb   : > { %v1420_v39 = vpop.eup %1419  ;;  %473 = vst.msk [vmem:[#allocation4] sm:$0xff] %vm295_vm0, %v471_v20  ;;  %474 = vst.msk [vmem:[#allocation4 + $0x8] sm:$0xff] %vm295_vm0, %v472_v38  ;;  %v592_v43 = vmul.f32 %v585_v63, %v580_v2  ;;  %v593_v7 = vmul.f32 %v590_v3, %v581_v41 }
 0x4bc   : > { %1040 = vperm.xlu1 %1359, %v1420_v39   ;;  %v1053_v0 = vld [vmem:[#allocation3 + $0x38] sm:$0xff] }
 0x4bd   : > { %1425 = vrcp.f32 %v1053_v0 }
 0x4be   : > { %v758_v22 = vpop.permute.xlu1 %757  ;;  %v763_v25 = vpop.permute.xlu0 %762 }
 0x4bf   : > { %v1422_v13 = vpop.eup %1421  ;;  %v765_v26 = vmul.f32 %v758_v22, %v753_v21  ;;  %v766_v29 = vmul.f32 %v763_v25, %v754_v23 }
 0x4c0   : > { %1045 = vperm.xlu0 %1360, %v1422_v13  }
 0x4c2   : > { %v928_v47 = vpop.permute.xlu1 %927  ;;  %v933_v49 = vpop.permute.xlu0 %932  ;;  %v996_v2 = vld [vmem:[#allocation4] sm:$0xff] }
 0x4c3   : > { %v1424_v15 = vpop.eup %1423  ;;  %v935_v50 = vmul.f32 %v928_v47, %v923_v32  ;;  %v936_v52 = vmul.f32 %v933_v49, %v924_v31 }
 0x4c4   : > { %1058 = vperm.xlu1 %1359, %v1424_v15  }
 0x4c6   : > { %v1010_v54 = vpop.permute.xlu0 %1009 }
 0x4c7   : > { %v1426_v17 = vpop.eup %1425 }
 0x4c8   : > { %1063 = vperm.xlu0 %1360, %v1426_v17   ;;  %v997_v17 = vld [vmem:[#allocation4 + $0x8] sm:$0xff] }
 0x4c9   : > { %v1013_v3 = vmul.f32 %v1010_v54, %v997_v17 }
 0x4e3   : > { %v1005_v58 = vpop.permute.xlu1 %1004 }
 0x4f0   : > { %v640_v6 = vpop.f32.mrb[4].mxu0 }
 0x4f1   : > { %v647_v8 = vadd.f32 %v640_v6, %v592_v43  ;;  %v1299_v9 = vpop.f32.mrb[5].mxu0  ;;  %v1012_v43 = vmul.f32 %v1005_v58, %v996_v2 }
 0x4f2   : > { %v643_v11 = vpop.f32.mrb[6].mxu0 }
 0x4f3   : > { %649 = vst.msk [vmem:[#allocation4 + $0x10] sm:$0xff] %vm295_vm0, %v647_v8  ;;  %v648_v12 = vadd.f32 %v643_v11, %v593_v7  ;;  %v1300_v18 = vpop.f32.mrb[7].mxu0 }
 0x4f5   : > { %650 = vst.msk [vmem:[#allocation4 + $0x18] sm:$0xff] %vm295_vm0, %v648_v12 }
 0x4f8   : > { %v810_v28 = vpop.f32.mrb[8].mxu0 }
 0x4f9   : > { %v817_v30 = vadd.f32 %v810_v28, %v765_v26  ;;  %v1311_v40 = vpop.f32.mrb[9].mxu0 }
 0x4fa   : > { %v813_v42 = vpop.f32.mrb[10].mxu0  ;;  %v1014_v61 = vld [vmem:[#allocation4 + $0x10] sm:$0xff] }
 0x4fb   : > { %819 = vst.msk [vmem:[#allocation4 + $0x20] sm:$0xff] %vm295_vm0, %v817_v30  ;;  %v818_v44 = vadd.f32 %v813_v42, %v766_v29  ;;  %v1312_v46 = vpop.f32.mrb[11].mxu0 }
 0x4fc   : > { %v1015_v1 = vld [vmem:[#allocation4 + $0x18] sm:$0xff] }
 0x4fd   : > { %820 = vst.msk [vmem:[#allocation4 + $0x28] sm:$0xff] %vm295_vm0, %v818_v44 }
 0x500   : > { %v980_v45 = vpop.f32.mrb[12].mxu0 }
 0x501   : > { %v987_v48 = vadd.f32 %v980_v45, %v935_v50  ;;  %v1323_v53 = vpop.f32.mrb[13].mxu0 }
 0x502   : > { %v983_v55 = vpop.f32.mrb[14].mxu0  ;;  %v1032_v60 = vld [vmem:[#allocation4 + $0x20] sm:$0xff] }
 0x503   : > { %989 = vst.msk [vmem:[#allocation4 + $0x30] sm:$0xff] %vm295_vm0, %v987_v48  ;;  %v988_v56 = vadd.f32 %v983_v55, %v936_v52  ;;  %v1324_v51 = vpop.f32.mrb[15].mxu0 }
 0x504   : > { %v1033_v24 = vld [vmem:[#allocation4 + $0x28] sm:$0xff] }
 0x505   : > { %990 = vst.msk [vmem:[#allocation4 + $0x38] sm:$0xff] %vm295_vm0, %v988_v56 }
 0x50a   : > { %v1050_v36 = vld [vmem:[#allocation4 + $0x30] sm:$0xff] }
 0x50c   : > { %v1051_v16 = vld [vmem:[#allocation4 + $0x38] sm:$0xff] }
 0x533   : > { %v1023_v59 = vpop.permute.xlu1 %1022 }
 0x534   : > { %v1030_v57 = vmul.f32 %v1023_v59, %v1014_v61 }
 0x535   : > { %v1028_v62 = vpop.permute.xlu0 %1027 }
 0x536   : > { %v1031_v4 = vmul.f32 %v1028_v62, %v1015_v1 }
 0x538   : > { %v1361_v5 = vpack.i.bf16 %v1031_v4, %v1030_v57 }
 0x53a   : > { %1362 = vrot.lane.b32.xlu1 %v1361_v5, %s1458_s30 }
 0x53b   : > { %v1041_v10 = vpop.permute.xlu1 %1040 }
 0x53c   : > { %v1048_v27 = vmul.f32 %v1041_v10, %v1032_v60 }
 0x53f   : > { %v1046_v14 = vpop.permute.xlu0 %1045 }
 0x540   : > { %v1049_v33 = vmul.f32 %v1046_v14, %v1033_v24 }
 0x542   : > { %v1366_v34 = vpack.i.bf16 %v1049_v33, %v1048_v27 }
 0x543   : > { %v1059_v35 = vpop.permute.xlu1 %1058 }
 0x544   : > { %1367 = vrot.lane.b32.xlu0 %v1366_v34, %s1459_s4  ;;  %v1066_v19 = vmul.f32 %v1059_v35, %v1050_v36 }
 0x547   : > { %v1064_v37 = vpop.permute.xlu0 %1063 }
 0x548   : > { %v1067_v20 = vmul.f32 %v1064_v37, %v1051_v16 }
 0x54a   : > { %v1371_v38 = vpack.i.bf16 %v1067_v20, %v1066_v19 }
 0x54c   : > { %1372 = vrot.lane.b32.xlu1 %v1371_v38, %s1460_s5 }
 0x5ac   : > { %v1363_v39 = vpop.permute.xlu1 %1362 }
 0x5ad   : > { %v1365_v13 = vunpack.i.h.bf16 %v1363_v39  ;;  %v1364_v15 = vunpack.i.l.bf16 %v1363_v39 }
 0x5af   : > { %v1093_v7 = vsel %vm295_vm0, %v1013_v3, %v1365_v13  ;;  %v1092_v8 = vsel %vm295_vm0, %v1012_v43, %v1364_v15 }
 0x5b6   : > { %v1368_v0 = vpop.permute.xlu0 %1367 }
 0x5b7   : > { %v1370_v63 = vunpack.i.h.bf16 %v1368_v0  ;;  %v1369_v41 = vunpack.i.l.bf16 %v1368_v0 }
 0x5b9   : > { %v1096_v12 = vsel %vm1094_vm4, %v1093_v7, %v1370_v63  ;;  %v1095_v18 = vsel %vm1094_vm4, %v1092_v8, %v1369_v41 }
 0x5be   : > { %v1373_v6 = vpop.permute.xlu1 %1372 }
 0x5bf   : > { %v1375_v9 = vunpack.i.h.bf16 %v1373_v6  ;;  %v1374_v11 = vunpack.i.l.bf16 %v1373_v6 }
 0x5c1   : > { %v1099_v21 = vsel %vm1097_vm5, %v1096_v12, %v1375_v9  ;;  %v1098_v22 = vsel %vm1097_vm5, %v1095_v18, %v1374_v11 }
 0x5c2   : > { %v1260_v23 = vpack.c.bf16 %v1099_v21, %v1099_v21  ;;  %v1259_v25 = vpack.c.bf16 %v1098_v22, %v1098_v22 }
 0x5c4   : > { %1110 = vst.msk [vmem:[%s271_s8 + $0x4] sm:$0xf] %vm1108_vm6, %v1260_v23  ;;  %1109 = vst.msk [vmem:[%s271_s8] sm:$0xf] %vm1108_vm6, %v1259_v25 }
 0x5c5 PF: > { %s13_s14 = sadd.s32 1, %s1449_s14   ;;  %s1807_s12 = smov %s1445_s13 }
 0x5c6   : > { %p10_p5 = scmp.ge.s32.totalorder %s13_s14, 4   ;;  %s1808_s13 = smov %s1810_s15 }
 0x5c8   :  { %12 = sbr.rel (!%p10_p5) target bundleno = 2 (0x2), region = 85 }

// kernel: fwd.57
= control target key start
LH: loop header
LB: loop body
LE: loop exit
PB: predicated region body
PF: predicated region fallthrough
CT: control target
= control target key end

     0   :  { %vm33_vm0 = vcmask 261120   ;;  %s315_s0 = inlined_call_operand.vmem [shape: bf16[32,32], index: 0, kind: input, shape index: {}]   ;;  %s316_s3 = inlined_call_operand.vmem [shape: bf16[32,128], index: 3, kind: input, shape index: {}]   ;;  %s317_s1 = inlined_call_operand.vmem [shape: f32[1,32], index: 1, kind: input, shape index: {}]   ;;  %s318_s2 = inlined_call_operand.vmem [shape: f32[1,32], index: 2, kind: input, shape index: {}]   ;;  %s319_s4 = inlined_call_operand.vmem [shape: f32[1,128], index: 4, kind: input, shape index: {}]   ;;  %s320_s5 = inlined_call_operand.vmem [shape: f32[32,128], index: 5, kind: output, shape index: {}]  }
   0x1   :  { %v210_v0 = vld [vmem:[%s315_s0] sm:$0xff]   ;;  %v217_v1 = vld [vmem:[%s315_s0 + $0x8] sm:$0xff]  }
   0x2   :  { %v211_v2 = vunpack.c.l.bf16 %v210_v0  ;;  %v215_v3 = vunpack.c.l.bf16 %v217_v1  ;;  %v212_v4 = vunpack.c.h.bf16 %v210_v0  ;;  %v216_v5 = vunpack.c.h.bf16 %v217_v1  ;;  %v230_v30 = vld [vmem:[%s316_s3] sm:$0xff]   ;;  %v231_v31 = vld [vmem:[%s316_s3 + $0x8] sm:$0xff]  }
   0x3   :  { %222 = vmatprep.subr.bf16.mxu0 %v230_v30  ;;  %v202_v46 = vld [vmem:[%s317_s1] ss:$0 sm:$0xff] }
   0x4   :  { %v34_v6 = vsel %vm33_vm0, %v211_v2, 0.0  ;;  %v40_v7 = vsel %vm33_vm0, %v215_v3, 0.0  ;;  %v37_v8 = vsel %vm33_vm0, %v212_v4, 0.0  ;;  %v43_v9 = vsel %vm33_vm0, %v216_v5, 0.0  ;;  %223 = vmatpush3.bf16.msra.mxu0 %v230_v30  ;;  %v203_v51 = vld [vmem:[%s318_s2] ss:$0 sm:$0xff] }
   0x5   :  { %35 = vadd.xlane.f32.xlu0 %v34_v6  ;;  %41 = vadd.xlane.f32.xlu1 %v40_v7 }
   0x6   :  { %224 = vmatprep.subr.bf16.mxu0 %v231_v31 }
   0x8   :  { %225 = vmatpush3.bf16.msra.mxu0 %v231_v31 }
   0x9   :  { %38 = vadd.xlane.f32.xlu0 %v37_v8  ;;  %44 = vadd.xlane.f32.xlu1 %v43_v9 }
  0x92   :  { %v36_v10 = vpop.xlane.xlu0 %35  ;;  %v42_v11 = vpop.xlane.xlu1 %41 }
  0x93   :  { %v47_v12 = vmul.f32 0.03125, %v36_v10  ;;  %v49_v13 = vmul.f32 0.03125, %v42_v11 }
  0x95   :  { %v51_v14 = vsub.f32 %v211_v2, %v47_v12  ;;  %v53_v15 = vsub.f32 %v215_v3, %v49_v13  ;;  %v204_v2 = vld [vmem:[%s319_s4] ss:$0 sm:$0xff] }
  0x96   :  { %v39_v16 = vpop.xlane.xlu0 %38  ;;  %v45_v17 = vpop.xlane.xlu1 %44 }
  0x97   :  { %v48_v18 = vmul.f32 0.03125, %v39_v16  ;;  %v50_v19 = vmul.f32 0.03125, %v45_v17  ;;  %v55_v20 = vmul.f32 %v51_v14, %v51_v14  ;;  %v57_v21 = vmul.f32 %v53_v15, %v53_v15 }
  0x99   :  { %v52_v22 = vsub.f32 %v212_v4, %v48_v18  ;;  %v54_v23 = vsub.f32 %v216_v5, %v50_v19  ;;  %v59_v24 = vsel %vm33_vm0, %v55_v20, 0.0  ;;  %v65_v25 = vsel %vm33_vm0, %v57_v21, 0.0 }
  0x9a   :  { %60 = vadd.xlane.f32.xlu0 %v59_v24 }
  0x9b   :  { %v56_v26 = vmul.f32 %v52_v22, %v52_v22  ;;  %v58_v27 = vmul.f32 %v54_v23, %v54_v23 }
  0x9d   :  { %v62_v28 = vsel %vm33_vm0, %v56_v26, 0.0  ;;  %v68_v29 = vsel %vm33_vm0, %v58_v27, 0.0 }
  0x9e   :  { %66 = vadd.xlane.f32.xlu0 %v65_v25  ;;  %63 = vadd.xlane.f32.xlu1 %v62_v28 }
  0xa2   :  { %69 = vadd.xlane.f32.xlu1 %v68_v29 }
 0x127   :  { %v61_v32 = vpop.xlane.xlu0 %60 }
 0x128   :  { %v71_v33 = vmul.f32 0.03125, %v61_v32 }
 0x12a   :  { %v75_v34 = vadd.f32 1e-05, %v71_v33 }
 0x12b   :  { %v64_v35 = vpop.xlane.xlu1 %63  ;;  %v67_v36 = vpop.xlane.xlu0 %66 }
 0x12c   :  { %232 = vrsqrt.f32 %v75_v34  ;;  %v72_v37 = vmul.f32 0.03125, %v64_v35  ;;  %v73_v38 = vmul.f32 0.03125, %v67_v36 }
 0x12e   :  { %v76_v39 = vadd.f32 1e-05, %v72_v37  ;;  %v77_v40 = vadd.f32 1e-05, %v73_v38 }
 0x12f   :  { %v70_v41 = vpop.xlane.xlu1 %69 }
 0x130   :  { %234 = vrsqrt.f32 %v76_v39  ;;  %v74_v42 = vmul.f32 0.03125, %v70_v41 }
 0x131   :  { %236 = vrsqrt.f32 %v77_v40 }
 0x132   :  { %v78_v43 = vadd.f32 1e-05, %v74_v42 }
 0x134   :  { %238 = vrsqrt.f32 %v78_v43 }
 0x136   :  { %v233_v44 = vpop.eup %232 }
 0x137   :  { %v83_v45 = vmul.f32 %v233_v44, %v51_v14 }
 0x139   :  { %v94_v49 = vmul.f32 %v202_v46, %v83_v45 }
 0x13a   :  { %v235_v47 = vpop.eup %234 }
 0x13b   :  { %v237_v48 = vpop.eup %236  ;;  %v84_v50 = vmul.f32 %v235_v47, %v52_v22  ;;  %v105_v55 = vadd.f32 %v203_v51, %v94_v49 }
 0x13c   :  { %v85_v52 = vmul.f32 %v237_v48, %v53_v15 }
 0x13d   :  { %v95_v53 = vmul.f32 %v202_v46, %v84_v50 }
 0x13e   :  { %v239_v54 = vpop.eup %238  ;;  %v96_v57 = vmul.f32 %v202_v46, %v85_v52 }
 0x13f   :  { %v106_v56 = vadd.f32 %v203_v51, %v95_v53  ;;  %v86_v58 = vmul.f32 %v239_v54, %v54_v23 }
 0x140   :  { %v107_v61 = vadd.f32 %v203_v51, %v96_v57 }
 0x141   :  { %v109_v59 = vpack.c.bf16 %v106_v56, %v105_v55  ;;  %v97_v60 = vmul.f32 %v202_v46, %v86_v58 }
 0x143   :  { %111 = vst.msk [vmem:[#allocation2] sm:$0xff] %vm33_vm0, %v109_v59  ;;  %v108_v62 = vadd.f32 %v203_v51, %v97_v60 }
 0x145   :  { %v110_v63 = vpack.c.bf16 %v108_v62, %v107_v61 }
 0x147   :  { %112 = vst.msk [vmem:[#allocation2 + $0x8] sm:$0xff] %vm33_vm0, %v110_v63 }
 0x14a   :  { %v113_v0 = vld [vmem:[#allocation2] sm:$0xff] }
 0x14b   :  { %226 = vmatprep.mubr.msk.bf16.mxu0 %vm33_vm0, %v113_v0 }
 0x14e   :  { %v114_v1 = vld [vmem:[#allocation2 + $0x8] sm:$0xff] }
 0x14f   :  { %227 = vmatmul.mubr.msk.bf16.vlgmr.msra.gmra.mrb[0].mxu0 %vm33_vm0, %v114_v1 }
 0x222   :  { %v228_v3 = vpop.f32.mrb[0].mxu0 }
 0x223   :  { %v188_v4 = vadd.f32 %v228_v3, %v204_v2  ;;  %v179_v5 = vpop.f32.mrb[1].mxu0 }
 0x224   :  { %v180_v6 = vadd.f32 %v204_v2, %v179_v5  ;;  %v229_v7 = vpop.f32.mrb[2].mxu0 }
 0x225   :  { %196 = vst [vmem:[%s320_s5 + $0x10] sm:$0xff] %v188_v4  ;;  %v191_v8 = vadd.f32 %v229_v7, %v204_v2  ;;  %v182_v9 = vpop.f32.mrb[3].mxu0 }
 0x226   :  { %194 = vst [vmem:[%s320_s5] sm:$0xff] %v180_v6  ;;  %v183_v10 = vadd.f32 %v204_v2, %v182_v9 }
 0x227   :  { %197 = vst [vmem:[%s320_s5 + $0x18] sm:$0xff] %v191_v8 }
 0x228   :  { %195 = vst [vmem:[%s320_s5 + $0x8] sm:$0xff] %v183_v10 }

</bundles_post_ra>
